<compile_context>
chip_gen: v5e
topology: v5e:2x2
jax: 0.10.0
libtpu: 0.0.40
codegen_flags: <defaults>
</compile_context>

<pallas_src>
import functools

import numpy as np

import jax
import jax.numpy as jnp
from jax.experimental import pallas as pl
from jax.experimental.pallas import tpu as pltpu


# ------------------------------ fused kernel -------------------------------- #

def _lenet_kernel(x_ref, w1_ref, w2_ref, s1_ref, s2_ref,
                  w1fc_ref, w2fc_ref, w3fc_ref, cb_ref, fb_ref, o_ref):
    f32, bf16 = jnp.float32, jnp.bfloat16

    # ---- conv1 (3->6, 5x5, VALID) + bias + ReLU : (6, 27*31) lane-dense ----
    x = x_ref[0].astype(bf16)                     # (3, 1024) CHW-flat, zero padded
    w1 = w1_ref[...].astype(bf16)                 # (6, 75), cols = (di*5+dj)*3 + ci
    acc1 = jnp.zeros((6, 27 * 31), f32)
    for k in range(25):                           # 25 shifted matmuls, MXU-accumulated in f32
        di, dj = k // 5, k % 5
        s = di * 31 + dj
        acc1 = acc1 + jnp.dot(w1[:, k * 3:(k + 1) * 3], x[:, s:s + 27 * 31],
                              preferred_element_type=f32)
    y1 = jnp.maximum(acc1 + cb_ref[0:6, 0:1], 0.0)          # (6, 837) f32

    # ---- pool1: 2x2/2 max pool = selection matmul + max over 4 lane groups ----
    p1 = jnp.dot(y1.astype(bf16), s1_ref[...], preferred_element_type=f32)   # (6, 704)
    a1 = jnp.maximum(jnp.maximum(p1[:, 0:176], p1[:, 176:352]),
                     jnp.maximum(p1[:, 352:528], p1[:, 528:704]))            # (6, 176)

    # ---- conv2 (6->16, 5x5, VALID) + bias + ReLU : (16, 9*13) ----
    a1b = a1.astype(bf16)
    w2 = w2_ref[...].astype(bf16)                 # (16, 150)
    acc2 = jnp.zeros((16, 9 * 13), f32)
    for k in range(25):
        di, dj = k // 5, k % 5
        s = di * 13 + dj
        acc2 = acc2 + jnp.dot(w2[:, k * 6:(k + 1) * 6], a1b[:, s:s + 9 * 13],
                              preferred_element_type=f32)
    y2 = jnp.maximum(acc2 + cb_ref[0:16, 1:2], 0.0)         # (16, 117)

    # ---- pool2 ----
    p2 = jnp.dot(y2.astype(bf16), s2_ref[...], preferred_element_type=f32)   # (16, 64)
    a2 = jnp.maximum(jnp.maximum(p2[:, 0:16], p2[:, 16:32]),
                     jnp.maximum(p2[:, 32:48], p2[:, 48:64]))                # (16, 16)

    # ---- fc1 (256->120): NCHW flatten folded into per-channel weight slices ----
    a2b = a2.astype(bf16)
    w1fc = w1fc_ref[...].astype(bf16)             # (256, 120), row = c*16 + p*4 + q
    h = fb_ref[:, 0:120]                          # (1, 120) f32 bias
    for c in range(16):
        h = h + jnp.dot(a2b[c:c + 1, :], w1fc[c * 16:(c + 1) * 16, :],
                        preferred_element_type=f32)
    h = jnp.maximum(h, 0.0)

    # ---- fc2 (120->84) + ReLU, fc3 (84->10) ----
    h = jnp.maximum(jnp.dot(h.astype(bf16), w2fc_ref[...].astype(bf16),
                            preferred_element_type=f32) + fb_ref[:, 120:204], 0.0)
    y = jnp.dot(h.astype(bf16), w3fc_ref[...].astype(bf16),
                preferred_element_type=f32) + fb_ref[:, 204:214]
    o_ref[0] = y.astype(o_ref.dtype)              # (1, 10)


# ------------------------------- constants ---------------------------------- #

def _pool_selection(ho, wo, w_stride, out_cols):
    """0/1 matrix (ho*w_stride, 4*out_cols): lane group t=a*2+b, column p*qo+q selects
    the flat input lane (2p+a)*w_stride + (2q+b).  Extra columns stay zero (padding)."""
    po, qo = ho // 2, wo // 2
    s = np.zeros((ho * w_stride, 4 * out_cols), np.float32)
    for a in range(2):
        for b in range(2):
            base = (a * 2 + b) * out_cols
            for p in range(po):
                for q in range(qo):
                    s[(2 * p + a) * w_stride + (2 * q + b), base + p * qo + q] = 1.0
    return s


@functools.lru_cache(maxsize=None)
def _pool_selection_consts():
    s1 = jnp.asarray(_pool_selection(27, 27, 31, 176), dtype=jnp.bfloat16)  # (837, 704)
    s2 = jnp.asarray(_pool_selection(9, 9, 13, 16), dtype=jnp.bfloat16)     # (117, 64)
    return s1, s2


# --------------------------------- wrapper ----------------------------------- #

def neuralnet_forward(x, params):
    """Mirrors NeuralNet.forward: x is (N, input_size) with N*input_size % 2883 == 0."""
    bs = (x.shape[0] * x.shape[1]) // 2883

    # Input -> per-image CHW-flat (channels on sublanes, i*31+j on lanes), zero-padded
    # on the lane axis so the 25 (di,dj) shift-slices stay in bounds.
    xi = x.reshape(bs, 3, 31 * 31).astype(jnp.float32)
    xi = jnp.pad(xi, ((0, 0), (0, 0), (0, 1024 - 31 * 31)))

    # Weight / bias packing (layout-only; would be done once / folded under jit).
    w1p = jnp.transpose(params["conv1_w"], (0, 2, 3, 1)).reshape(6, 75).astype(jnp.float32)
    w2p = jnp.transpose(params["conv2_w"], (0, 2, 3, 1)).reshape(16, 150).astype(jnp.float32)
    w1fc = params["fc1_w"].T.astype(jnp.float32)        # (256, 120)
    w2fc = params["fc2_w"].T.astype(jnp.float32)        # (120, 84)
    w3fc = params["fc3_w"].T.astype(jnp.float32)        # (84, 10)

    cb = jnp.zeros((16, 2), jnp.float32)
    cb = cb.at[0:6, 0].set(params["conv1_b"].astype(jnp.float32))
    cb = cb.at[0:16, 1].set(params["conv2_b"].astype(jnp.float32))
    fb = jnp.zeros((1, 256), jnp.float32)
    fb = fb.at[0, 0:120].set(params["fc1_b"].astype(jnp.float32))
    fb = fb.at[0, 120:204].set(params["fc2_b"].astype(jnp.float32))
    fb = fb.at[0, 204:214].set(params["fc3_b"].astype(jnp.float32))

    s1, s2 = _pool_selection_consts()

    y = pl.pallas_call(
        _lenet_kernel,
        out_shape=jax.ShapeDtypeStruct((bs, 1, 10), jnp.float32),
        grid=(bs,),
        in_specs=[
            pl.BlockSpec((1, 3, 1024), lambda n: (n, 0, 0)),   # image n
            pl.BlockSpec((6, 75), lambda n: (0, 0)),           # conv1 weights (packed)
            pl.BlockSpec((16, 150), lambda n: (0, 0)),         # conv2 weights (packed)
            pl.BlockSpec((837, 704), lambda n: (0, 0)),        # pool1 selection (bf16)
            pl.BlockSpec((117, 64), lambda n: (0, 0)),         # pool2 selection (bf16)
            pl.BlockSpec((256, 120), lambda n: (0, 0)),        # fc1 weights (pre-transposed)
            pl.BlockSpec((120, 84), lambda n: (0, 0)),         # fc2 weights
            pl.BlockSpec((84, 10), lambda n: (0, 0)),          # fc3 weights
            pl.BlockSpec((16, 2), lambda n: (0, 0)),           # conv biases (packed columns)
            pl.BlockSpec((1, 256), lambda n: (0, 0)),          # fc biases (packed row)
        ],
        out_specs=pl.BlockSpec((1, 1, 10), lambda n: (n, 0, 0)),
        compiler_params=pltpu.CompilerParams(
            dimension_semantics=("parallel",)),                 # v7x megacore over batch
    )(xi, w1p, w2p, s1, s2, w1fc, w2fc, w3fc, cb, fb)
    return y.reshape(bs, 10)


# Pure-JAX reference (same math, no Pallas) used only to validate the kernel.
def reference_forward(x, params):
    bs = (x.shape[0] * x.shape[1]) // 2883
    xi = x.reshape(bs, 3, 31, 31)

    def conv(z, w, b):
        y = jax.lax.conv_general_dilated(
            z, w, (1, 1), "VALID",
            dimension_numbers=("NCHW", "OIHW", "NCHW"),
            precision=jax.lax.Precision.HIGHEST)
        return y + b[None, :, None, None]

    def pool(z):
        return jax.lax.reduce_window(z, -jnp.inf, jax.lax.max,
                                     (1, 1, 2, 2), (1, 1, 2, 2), "VALID")

    h = pool(jax.nn.relu(conv(xi, params["conv1_w"], params["conv1_b"])))
    h = pool(jax.nn.relu(conv(h, params["conv2_w"], params["conv2_b"])))
    h = h.reshape(bs, -1)
    hp = jax.lax.Precision.HIGHEST
    h = jax.nn.relu(jnp.dot(h, params["fc1_w"].T, precision=hp) + params["fc1_b"])
    h = jax.nn.relu(jnp.dot(h, params["fc2_w"].T, precision=hp) + params["fc2_b"])
    return jnp.dot(h, params["fc3_w"].T, precision=hp) + params["fc3_b"]


# NOTE: NeuralNet.regularization() is a training-time penalty, not part of forward();
# it is intentionally not implemented as a kernel.

if __name__ == "__main__":
    key = jax.random.PRNGKey(0)
    ks = jax.random.split(key, 11)
    # Deterministic synthetic parameters with the shapes from NeuralNet.__init__.
    params = {
        "conv1_w": 0.1 * jax.random.normal(ks[0], (6, 3, 5, 5), jnp.float32),
        "conv1_b": 0.1 * jax.random.normal(ks[1], (6,), jnp.float32),
        "conv2_w": 0.1 * jax.random.normal(ks[2], (16, 6, 5, 5), jnp.float32),
        "conv2_b": 0.1 * jax.random.normal(ks[3], (16,), jnp.float32),
        "fc1_w": 0.1 * jax.random.normal(ks[4], (120, 256), jnp.float32),
        "fc1_b": 0.1 * jax.random.normal(ks[5], (120,), jnp.float32),
        "fc2_w": 0.1 * jax.random.normal(ks[6], (84, 120), jnp.float32),
        "fc2_b": 0.1 * jax.random.normal(ks[7], (84,), jnp.float32),
        "fc3_w": 0.1 * jax.random.normal(ks[8], (10, 84), jnp.float32),
        "fc3_b": 0.1 * jax.random.normal(ks[9], (10,), jnp.float32),
    }

    # (N, input_size) with N*input_size / 2883 = batch of 2 images of 3x31x31.
    x = jax.random.normal(ks[10], (2, 2883), jnp.float32)

    y = jax.block_until_ready(neuralnet_forward(x, params))
    assert y.shape == (2, 10), y.shape

    y_ref = jax.block_until_ready(reference_forward(x, params))
    # bf16 MXU operands with f32 accumulation vs. an all-f32 HIGHEST-precision reference.
    assert jnp.allclose(y, y_ref, rtol=2e-2, atol=2e-2), (
        "max abs err = %s" % jnp.max(jnp.abs(y - y_ref)))

    print("KERNEL_OK")
</pallas_src>

<mosaic_0001>
module attributes {stable_mosaic.version = 11 : i64} {
  func.func @_lenet_kernel(%arg0: i32, %arg1: memref<1x3x1024xf32, #tpu.memory_space<vmem>>, %arg2: memref<6x75xf32, #tpu.memory_space<vmem>>, %arg3: memref<16x150xf32, #tpu.memory_space<vmem>>, %arg4: memref<837x704xbf16, #tpu.memory_space<vmem>>, %arg5: memref<117x64xbf16, #tpu.memory_space<vmem>>, %arg6: memref<256x120xf32, #tpu.memory_space<vmem>>, %arg7: memref<120x84xf32, #tpu.memory_space<vmem>>, %arg8: memref<84x10xf32, #tpu.memory_space<vmem>>, %arg9: memref<16x2xf32, #tpu.memory_space<vmem>>, %arg10: memref<1x256xf32, #tpu.memory_space<vmem>>, %arg11: memref<1x1x10xf32, #tpu.memory_space<vmem>>) attributes {dimension_semantics = [#tpu.dimension_semantics<parallel>], iteration_bounds = array<i64: 2>, scalar_prefetch = 0 : i64, scratch_operands = 0 : i64, tpu.core_type = #tpu.core_type<tc>, window_params = [{transform_indices = @transform_0, window_bounds = array<i64: 1, 3, 1024>}, {pipeline_mode = #tpu.pipeline_mode<synchronous>, transform_indices = @transform_1, window_bounds = array<i64: 6, 75>}, {pipeline_mode = #tpu.pipeline_mode<synchronous>, transform_indices = @transform_2, window_bounds = array<i64: 16, 150>}, {pipeline_mode = #tpu.pipeline_mode<synchronous>, transform_indices = @transform_3, window_bounds = array<i64: 837, 704>}, {pipeline_mode = #tpu.pipeline_mode<synchronous>, transform_indices = @transform_4, window_bounds = array<i64: 117, 64>}, {pipeline_mode = #tpu.pipeline_mode<synchronous>, transform_indices = @transform_5, window_bounds = array<i64: 256, 120>}, {pipeline_mode = #tpu.pipeline_mode<synchronous>, transform_indices = @transform_6, window_bounds = array<i64: 120, 84>}, {pipeline_mode = #tpu.pipeline_mode<synchronous>, transform_indices = @transform_7, window_bounds = array<i64: 84, 10>}, {pipeline_mode = #tpu.pipeline_mode<synchronous>, transform_indices = @transform_8, window_bounds = array<i64: 16, 2>}, {pipeline_mode = #tpu.pipeline_mode<synchronous>, transform_indices = @transform_9, window_bounds = array<i64: 1, 256>}, {transform_indices = @transform_10, window_bounds = array<i64: 1, 1, 10>}]} {
    %c0 = arith.constant 0 : index
    %c0_0 = arith.constant 0 : index
    %c0_1 = arith.constant 0 : index
    %0 = vector.load %arg1[%c0, %c0_0, %c0_1] : memref<1x3x1024xf32, #tpu.memory_space<vmem>>, vector<1x3x1024xf32>
    %1 = vector.shape_cast %0 : vector<1x3x1024xf32> to vector<3x1024xf32>
    %2 = arith.truncf %1 : vector<3x1024xf32> to vector<3x1024xbf16>
    %c0_2 = arith.constant 0 : index
    %c0_3 = arith.constant 0 : index
    %3 = vector.load %arg2[%c0_2, %c0_3] : memref<6x75xf32, #tpu.memory_space<vmem>>, vector<6x75xf32>
    %4 = arith.truncf %3 : vector<6x75xf32> to vector<6x75xbf16>
    %cst = arith.constant 0.000000e+00 : f32
    %5 = vector.broadcast %cst : f32 to vector<6x837xf32>
    %6 = vector.extract_strided_slice %4 {offsets = [0, 0], sizes = [6, 3], strides = [1, 1]} : vector<6x75xbf16> to vector<6x3xbf16>
    %7 = vector.extract_strided_slice %2 {offsets = [0, 0], sizes = [3, 837], strides = [1, 1]} : vector<3x1024xbf16> to vector<3x837xbf16>
    %cst_4 = arith.constant dense<0.000000e+00> : vector<6x837xf32>
    %8 = tpu.matmul %6, %7, %cst_4 {dimension_numbers = #tpu.dot_dimension_numbers<[1], [0], [0], [1], [0, 0, 1, 1], [], []>} : vector<6x3xbf16>, vector<3x837xbf16>, vector<6x837xf32> -> vector<6x837xf32>
    %9 = arith.addf %5, %8 : vector<6x837xf32>
    %10 = vector.extract_strided_slice %4 {offsets = [0, 3], sizes = [6, 3], strides = [1, 1]} : vector<6x75xbf16> to vector<6x3xbf16>
    %11 = vector.extract_strided_slice %2 {offsets = [0, 1], sizes = [3, 837], strides = [1, 1]} : vector<3x1024xbf16> to vector<3x837xbf16>
    %cst_5 = arith.constant dense<0.000000e+00> : vector<6x837xf32>
    %12 = tpu.matmul %10, %11, %cst_5 {dimension_numbers = #tpu.dot_dimension_numbers<[1], [0], [0], [1], [0, 0, 1, 1], [], []>} : vector<6x3xbf16>, vector<3x837xbf16>, vector<6x837xf32> -> vector<6x837xf32>
    %13 = arith.addf %9, %12 : vector<6x837xf32>
    %14 = vector.extract_strided_slice %4 {offsets = [0, 6], sizes = [6, 3], strides = [1, 1]} : vector<6x75xbf16> to vector<6x3xbf16>
    %15 = vector.extract_strided_slice %2 {offsets = [0, 2], sizes = [3, 837], strides = [1, 1]} : vector<3x1024xbf16> to vector<3x837xbf16>
    %cst_6 = arith.constant dense<0.000000e+00> : vector<6x837xf32>
    %16 = tpu.matmul %14, %15, %cst_6 {dimension_numbers = #tpu.dot_dimension_numbers<[1], [0], [0], [1], [0, 0, 1, 1], [], []>} : vector<6x3xbf16>, vector<3x837xbf16>, vector<6x837xf32> -> vector<6x837xf32>
    %17 = arith.addf %13, %16 : vector<6x837xf32>
    %18 = vector.extract_strided_slice %4 {offsets = [0, 9], sizes = [6, 3], strides = [1, 1]} : vector<6x75xbf16> to vector<6x3xbf16>
    %19 = vector.extract_strided_slice %2 {offsets = [0, 3], sizes = [3, 837], strides = [1, 1]} : vector<3x1024xbf16> to vector<3x837xbf16>
    %cst_7 = arith.constant dense<0.000000e+00> : vector<6x837xf32>
    %20 = tpu.matmul %18, %19, %cst_7 {dimension_numbers = #tpu.dot_dimension_numbers<[1], [0], [0], [1], [0, 0, 1, 1], [], []>} : vector<6x3xbf16>, vector<3x837xbf16>, vector<6x837xf32> -> vector<6x837xf32>
    %21 = arith.addf %17, %20 : vector<6x837xf32>
    %22 = vector.extract_strided_slice %4 {offsets = [0, 12], sizes = [6, 3], strides = [1, 1]} : vector<6x75xbf16> to vector<6x3xbf16>
    %23 = vector.extract_strided_slice %2 {offsets = [0, 4], sizes = [3, 837], strides = [1, 1]} : vector<3x1024xbf16> to vector<3x837xbf16>
    %cst_8 = arith.constant dense<0.000000e+00> : vector<6x837xf32>
    %24 = tpu.matmul %22, %23, %cst_8 {dimension_numbers = #tpu.dot_dimension_numbers<[1], [0], [0], [1], [0, 0, 1, 1], [], []>} : vector<6x3xbf16>, vector<3x837xbf16>, vector<6x837xf32> -> vector<6x837xf32>
    %25 = arith.addf %21, %24 : vector<6x837xf32>
    %26 = vector.extract_strided_slice %4 {offsets = [0, 15], sizes = [6, 3], strides = [1, 1]} : vector<6x75xbf16> to vector<6x3xbf16>
    %27 = vector.extract_strided_slice %2 {offsets = [0, 31], sizes = [3, 837], strides = [1, 1]} : vector<3x1024xbf16> to vector<3x837xbf16>
    %cst_9 = arith.constant dense<0.000000e+00> : vector<6x837xf32>
    %28 = tpu.matmul %26, %27, %cst_9 {dimension_numbers = #tpu.dot_dimension_numbers<[1], [0], [0], [1], [0, 0, 1, 1], [], []>} : vector<6x3xbf16>, vector<3x837xbf16>, vector<6x837xf32> -> vector<6x837xf32>
    %29 = arith.addf %25, %28 : vector<6x837xf32>
    %30 = vector.extract_strided_slice %4 {offsets = [0, 18], sizes = [6, 3], strides = [1, 1]} : vector<6x75xbf16> to vector<6x3xbf16>
    %31 = vector.extract_strided_slice %2 {offsets = [0, 32], sizes = [3, 837], strides = [1, 1]} : vector<3x1024xbf16> to vector<3x837xbf16>
    %cst_10 = arith.constant dense<0.000000e+00> : vector<6x837xf32>
    %32 = tpu.matmul %30, %31, %cst_10 {dimension_numbers = #tpu.dot_dimension_numbers<[1], [0], [0], [1], [0, 0, 1, 1], [], []>} : vector<6x3xbf16>, vector<3x837xbf16>, vector<6x837xf32> -> vector<6x837xf32>
    %33 = arith.addf %29, %32 : vector<6x837xf32>
    %34 = vector.extract_strided_slice %4 {offsets = [0, 21], sizes = [6, 3], strides = [1, 1]} : vector<6x75xbf16> to vector<6x3xbf16>
    %35 = vector.extract_strided_slice %2 {offsets = [0, 33], sizes = [3, 837], strides = [1, 1]} : vector<3x1024xbf16> to vector<3x837xbf16>
    %cst_11 = arith.constant dense<0.000000e+00> : vector<6x837xf32>
    %36 = tpu.matmul %34, %35, %cst_11 {dimension_numbers = #tpu.dot_dimension_numbers<[1], [0], [0], [1], [0, 0, 1, 1], [], []>} : vector<6x3xbf16>, vector<3x837xbf16>, vector<6x837xf32> -> vector<6x837xf32>
    %37 = arith.addf %33, %36 : vector<6x837xf32>
    %38 = vector.extract_strided_slice %4 {offsets = [0, 24], sizes = [6, 3], strides = [1, 1]} : vector<6x75xbf16> to vector<6x3xbf16>
    %39 = vector.extract_strided_slice %2 {offsets = [0, 34], sizes = [3, 837], strides = [1, 1]} : vector<3x1024xbf16> to vector<3x837xbf16>
    %cst_12 = arith.constant dense<0.000000e+00> : vector<6x837xf32>
    %40 = tpu.matmul %38, %39, %cst_12 {dimension_numbers = #tpu.dot_dimension_numbers<[1], [0], [0], [1], [0, 0, 1, 1], [], []>} : vector<6x3xbf16>, vector<3x837xbf16>, vector<6x837xf32> -> vector<6x837xf32>
    %41 = arith.addf %37, %40 : vector<6x837xf32>
    %42 = vector.extract_strided_slice %4 {offsets = [0, 27], sizes = [6, 3], strides = [1, 1]} : vector<6x75xbf16> to vector<6x3xbf16>
    %43 = vector.extract_strided_slice %2 {offsets = [0, 35], sizes = [3, 837], strides = [1, 1]} : vector<3x1024xbf16> to vector<3x837xbf16>
    %cst_13 = arith.constant dense<0.000000e+00> : vector<6x837xf32>
    %44 = tpu.matmul %42, %43, %cst_13 {dimension_numbers = #tpu.dot_dimension_numbers<[1], [0], [0], [1], [0, 0, 1, 1], [], []>} : vector<6x3xbf16>, vector<3x837xbf16>, vector<6x837xf32> -> vector<6x837xf32>
    %45 = arith.addf %41, %44 : vector<6x837xf32>
    %46 = vector.extract_strided_slice %4 {offsets = [0, 30], sizes = [6, 3], strides = [1, 1]} : vector<6x75xbf16> to vector<6x3xbf16>
    %47 = vector.extract_strided_slice %2 {offsets = [0, 62], sizes = [3, 837], strides = [1, 1]} : vector<3x1024xbf16> to vector<3x837xbf16>
    %cst_14 = arith.constant dense<0.000000e+00> : vector<6x837xf32>
    %48 = tpu.matmul %46, %47, %cst_14 {dimension_numbers = #tpu.dot_dimension_numbers<[1], [0], [0], [1], [0, 0, 1, 1], [], []>} : vector<6x3xbf16>, vector<3x837xbf16>, vector<6x837xf32> -> vector<6x837xf32>
    %49 = arith.addf %45, %48 : vector<6x837xf32>
    %50 = vector.extract_strided_slice %4 {offsets = [0, 33], sizes = [6, 3], strides = [1, 1]} : vector<6x75xbf16> to vector<6x3xbf16>
    %51 = vector.extract_strided_slice %2 {offsets = [0, 63], sizes = [3, 837], strides = [1, 1]} : vector<3x1024xbf16> to vector<3x837xbf16>
    %cst_15 = arith.constant dense<0.000000e+00> : vector<6x837xf32>
    %52 = tpu.matmul %50, %51, %cst_15 {dimension_numbers = #tpu.dot_dimension_numbers<[1], [0], [0], [1], [0, 0, 1, 1], [], []>} : vector<6x3xbf16>, vector<3x837xbf16>, vector<6x837xf32> -> vector<6x837xf32>
    %53 = arith.addf %49, %52 : vector<6x837xf32>
    %54 = vector.extract_strided_slice %4 {offsets = [0, 36], sizes = [6, 3], strides = [1, 1]} : vector<6x75xbf16> to vector<6x3xbf16>
    %55 = vector.extract_strided_slice %2 {offsets = [0, 64], sizes = [3, 837], strides = [1, 1]} : vector<3x1024xbf16> to vector<3x837xbf16>
    %cst_16 = arith.constant dense<0.000000e+00> : vector<6x837xf32>
    %56 = tpu.matmul %54, %55, %cst_16 {dimension_numbers = #tpu.dot_dimension_numbers<[1], [0], [0], [1], [0, 0, 1, 1], [], []>} : vector<6x3xbf16>, vector<3x837xbf16>, vector<6x837xf32> -> vector<6x837xf32>
    %57 = arith.addf %53, %56 : vector<6x837xf32>
    %58 = vector.extract_strided_slice %4 {offsets = [0, 39], sizes = [6, 3], strides = [1, 1]} : vector<6x75xbf16> to vector<6x3xbf16>
    %59 = vector.extract_strided_slice %2 {offsets = [0, 65], sizes = [3, 837], strides = [1, 1]} : vector<3x1024xbf16> to vector<3x837xbf16>
    %cst_17 = arith.constant dense<0.000000e+00> : vector<6x837xf32>
    %60 = tpu.matmul %58, %59, %cst_17 {dimension_numbers = #tpu.dot_dimension_numbers<[1], [0], [0], [1], [0, 0, 1, 1], [], []>} : vector<6x3xbf16>, vector<3x837xbf16>, vector<6x837xf32> -> vector<6x837xf32>
    %61 = arith.addf %57, %60 : vector<6x837xf32>
    %62 = vector.extract_strided_slice %4 {offsets = [0, 42], sizes = [6, 3], strides = [1, 1]} : vector<6x75xbf16> to vector<6x3xbf16>
    %63 = vector.extract_strided_slice %2 {offsets = [0, 66], sizes = [3, 837], strides = [1, 1]} : vector<3x1024xbf16> to vector<3x837xbf16>
    %cst_18 = arith.constant dense<0.000000e+00> : vector<6x837xf32>
    %64 = tpu.matmul %62, %63, %cst_18 {dimension_numbers = #tpu.dot_dimension_numbers<[1], [0], [0], [1], [0, 0, 1, 1], [], []>} : vector<6x3xbf16>, vector<3x837xbf16>, vector<6x837xf32> -> vector<6x837xf32>
    %65 = arith.addf %61, %64 : vector<6x837xf32>
    %66 = vector.extract_strided_slice %4 {offsets = [0, 45], sizes = [6, 3], strides = [1, 1]} : vector<6x75xbf16> to vector<6x3xbf16>
    %67 = vector.extract_strided_slice %2 {offsets = [0, 93], sizes = [3, 837], strides = [1, 1]} : vector<3x1024xbf16> to vector<3x837xbf16>
    %cst_19 = arith.constant dense<0.000000e+00> : vector<6x837xf32>
    %68 = tpu.matmul %66, %67, %cst_19 {dimension_numbers = #tpu.dot_dimension_numbers<[1], [0], [0], [1], [0, 0, 1, 1], [], []>} : vector<6x3xbf16>, vector<3x837xbf16>, vector<6x837xf32> -> vector<6x837xf32>
    %69 = arith.addf %65, %68 : vector<6x837xf32>
    %70 = vector.extract_strided_slice %4 {offsets = [0, 48], sizes = [6, 3], strides = [1, 1]} : vector<6x75xbf16> to vector<6x3xbf16>
    %71 = vector.extract_strided_slice %2 {offsets = [0, 94], sizes = [3, 837], strides = [1, 1]} : vector<3x1024xbf16> to vector<3x837xbf16>
    %cst_20 = arith.constant dense<0.000000e+00> : vector<6x837xf32>
    %72 = tpu.matmul %70, %71, %cst_20 {dimension_numbers = #tpu.dot_dimension_numbers<[1], [0], [0], [1], [0, 0, 1, 1], [], []>} : vector<6x3xbf16>, vector<3x837xbf16>, vector<6x837xf32> -> vector<6x837xf32>
    %73 = arith.addf %69, %72 : vector<6x837xf32>
    %74 = vector.extract_strided_slice %4 {offsets = [0, 51], sizes = [6, 3], strides = [1, 1]} : vector<6x75xbf16> to vector<6x3xbf16>
    %75 = vector.extract_strided_slice %2 {offsets = [0, 95], sizes = [3, 837], strides = [1, 1]} : vector<3x1024xbf16> to vector<3x837xbf16>
    %cst_21 = arith.constant dense<0.000000e+00> : vector<6x837xf32>
    %76 = tpu.matmul %74, %75, %cst_21 {dimension_numbers = #tpu.dot_dimension_numbers<[1], [0], [0], [1], [0, 0, 1, 1], [], []>} : vector<6x3xbf16>, vector<3x837xbf16>, vector<6x837xf32> -> vector<6x837xf32>
    %77 = arith.addf %73, %76 : vector<6x837xf32>
    %78 = vector.extract_strided_slice %4 {offsets = [0, 54], sizes = [6, 3], strides = [1, 1]} : vector<6x75xbf16> to vector<6x3xbf16>
    %79 = vector.extract_strided_slice %2 {offsets = [0, 96], sizes = [3, 837], strides = [1, 1]} : vector<3x1024xbf16> to vector<3x837xbf16>
    %cst_22 = arith.constant dense<0.000000e+00> : vector<6x837xf32>
    %80 = tpu.matmul %78, %79, %cst_22 {dimension_numbers = #tpu.dot_dimension_numbers<[1], [0], [0], [1], [0, 0, 1, 1], [], []>} : vector<6x3xbf16>, vector<3x837xbf16>, vector<6x837xf32> -> vector<6x837xf32>
    %81 = arith.addf %77, %80 : vector<6x837xf32>
    %82 = vector.extract_strided_slice %4 {offsets = [0, 57], sizes = [6, 3], strides = [1, 1]} : vector<6x75xbf16> to vector<6x3xbf16>
    %83 = vector.extract_strided_slice %2 {offsets = [0, 97], sizes = [3, 837], strides = [1, 1]} : vector<3x1024xbf16> to vector<3x837xbf16>
    %cst_23 = arith.constant dense<0.000000e+00> : vector<6x837xf32>
    %84 = tpu.matmul %82, %83, %cst_23 {dimension_numbers = #tpu.dot_dimension_numbers<[1], [0], [0], [1], [0, 0, 1, 1], [], []>} : vector<6x3xbf16>, vector<3x837xbf16>, vector<6x837xf32> -> vector<6x837xf32>
    %85 = arith.addf %81, %84 : vector<6x837xf32>
    %86 = vector.extract_strided_slice %4 {offsets = [0, 60], sizes = [6, 3], strides = [1, 1]} : vector<6x75xbf16> to vector<6x3xbf16>
    %87 = vector.extract_strided_slice %2 {offsets = [0, 124], sizes = [3, 837], strides = [1, 1]} : vector<3x1024xbf16> to vector<3x837xbf16>
    %cst_24 = arith.constant dense<0.000000e+00> : vector<6x837xf32>
    %88 = tpu.matmul %86, %87, %cst_24 {dimension_numbers = #tpu.dot_dimension_numbers<[1], [0], [0], [1], [0, 0, 1, 1], [], []>} : vector<6x3xbf16>, vector<3x837xbf16>, vector<6x837xf32> -> vector<6x837xf32>
    %89 = arith.addf %85, %88 : vector<6x837xf32>
    %90 = vector.extract_strided_slice %4 {offsets = [0, 63], sizes = [6, 3], strides = [1, 1]} : vector<6x75xbf16> to vector<6x3xbf16>
    %91 = vector.extract_strided_slice %2 {offsets = [0, 125], sizes = [3, 837], strides = [1, 1]} : vector<3x1024xbf16> to vector<3x837xbf16>
    %cst_25 = arith.constant dense<0.000000e+00> : vector<6x837xf32>
    %92 = tpu.matmul %90, %91, %cst_25 {dimension_numbers = #tpu.dot_dimension_numbers<[1], [0], [0], [1], [0, 0, 1, 1], [], []>} : vector<6x3xbf16>, vector<3x837xbf16>, vector<6x837xf32> -> vector<6x837xf32>
    %93 = arith.addf %89, %92 : vector<6x837xf32>
    %94 = vector.extract_strided_slice %4 {offsets = [0, 66], sizes = [6, 3], strides = [1, 1]} : vector<6x75xbf16> to vector<6x3xbf16>
    %95 = vector.extract_strided_slice %2 {offsets = [0, 126], sizes = [3, 837], strides = [1, 1]} : vector<3x1024xbf16> to vector<3x837xbf16>
    %cst_26 = arith.constant dense<0.000000e+00> : vector<6x837xf32>
    %96 = tpu.matmul %94, %95, %cst_26 {dimension_numbers = #tpu.dot_dimension_numbers<[1], [0], [0], [1], [0, 0, 1, 1], [], []>} : vector<6x3xbf16>, vector<3x837xbf16>, vector<6x837xf32> -> vector<6x837xf32>
    %97 = arith.addf %93, %96 : vector<6x837xf32>
    %98 = vector.extract_strided_slice %4 {offsets = [0, 69], sizes = [6, 3], strides = [1, 1]} : vector<6x75xbf16> to vector<6x3xbf16>
    %99 = vector.extract_strided_slice %2 {offsets = [0, 127], sizes = [3, 837], strides = [1, 1]} : vector<3x1024xbf16> to vector<3x837xbf16>
    %cst_27 = arith.constant dense<0.000000e+00> : vector<6x837xf32>
    %100 = tpu.matmul %98, %99, %cst_27 {dimension_numbers = #tpu.dot_dimension_numbers<[1], [0], [0], [1], [0, 0, 1, 1], [], []>} : vector<6x3xbf16>, vector<3x837xbf16>, vector<6x837xf32> -> vector<6x837xf32>
    %101 = arith.addf %97, %100 : vector<6x837xf32>
    %102 = vector.extract_strided_slice %4 {offsets = [0, 72], sizes = [6, 3], strides = [1, 1]} : vector<6x75xbf16> to vector<6x3xbf16>
    %103 = vector.extract_strided_slice %2 {offsets = [0, 128], sizes = [3, 837], strides = [1, 1]} : vector<3x1024xbf16> to vector<3x837xbf16>
    %cst_28 = arith.constant dense<0.000000e+00> : vector<6x837xf32>
    %104 = tpu.matmul %102, %103, %cst_28 {dimension_numbers = #tpu.dot_dimension_numbers<[1], [0], [0], [1], [0, 0, 1, 1], [], []>} : vector<6x3xbf16>, vector<3x837xbf16>, vector<6x837xf32> -> vector<6x837xf32>
    %105 = arith.addf %101, %104 : vector<6x837xf32>
    %c0_29 = arith.constant 0 : index
    %c0_30 = arith.constant 0 : index
    %106 = vector.load %arg9[%c0_29, %c0_30] : memref<16x2xf32, #tpu.memory_space<vmem>>, vector<6x1xf32>
    %107 = vector.broadcast %106 : vector<6x1xf32> to vector<6x837xf32>
    %108 = arith.addf %105, %107 : vector<6x837xf32>
    %cst_31 = arith.constant 0.000000e+00 : f32
    %109 = vector.broadcast %cst_31 : f32 to vector<6x837xf32>
    %110 = arith.maximumf %108, %109 : vector<6x837xf32>
    %111 = arith.truncf %110 : vector<6x837xf32> to vector<6x837xbf16>
    %c0_32 = arith.constant 0 : index
    %c0_33 = arith.constant 0 : index
    %112 = vector.load %arg4[%c0_32, %c0_33] : memref<837x704xbf16, #tpu.memory_space<vmem>>, vector<837x704xbf16>
    %cst_34 = arith.constant dense<0.000000e+00> : vector<6x704xf32>
    %113 = tpu.matmul %111, %112, %cst_34 {dimension_numbers = #tpu.dot_dimension_numbers<[1], [0], [0], [1], [0, 0, 1, 1], [], []>} : vector<6x837xbf16>, vector<837x704xbf16>, vector<6x704xf32> -> vector<6x704xf32>
    %114 = vector.extract_strided_slice %113 {offsets = [0, 0], sizes = [6, 176], strides = [1, 1]} : vector<6x704xf32> to vector<6x176xf32>
    %115 = vector.extract_strided_slice %113 {offsets = [0, 176], sizes = [6, 176], strides = [1, 1]} : vector<6x704xf32> to vector<6x176xf32>
    %116 = arith.maximumf %114, %115 : vector<6x176xf32>
    %117 = vector.extract_strided_slice %113 {offsets = [0, 352], sizes = [6, 176], strides = [1, 1]} : vector<6x704xf32> to vector<6x176xf32>
    %118 = vector.extract_strided_slice %113 {offsets = [0, 528], sizes = [6, 176], strides = [1, 1]} : vector<6x704xf32> to vector<6x176xf32>
    %119 = arith.maximumf %117, %118 : vector<6x176xf32>
    %120 = arith.maximumf %116, %119 : vector<6x176xf32>
    %121 = arith.truncf %120 : vector<6x176xf32> to vector<6x176xbf16>
    %c0_35 = arith.constant 0 : index
    %c0_36 = arith.constant 0 : index
    %122 = vector.load %arg3[%c0_35, %c0_36] : memref<16x150xf32, #tpu.memory_space<vmem>>, vector<16x150xf32>
    %123 = arith.truncf %122 : vector<16x150xf32> to vector<16x150xbf16>
    %cst_37 = arith.constant 0.000000e+00 : f32
    %124 = vector.broadcast %cst_37 : f32 to vector<16x117xf32>
    %125 = vector.extract_strided_slice %123 {offsets = [0, 0], sizes = [16, 6], strides = [1, 1]} : vector<16x150xbf16> to vector<16x6xbf16>
    %126 = vector.extract_strided_slice %121 {offsets = [0, 0], sizes = [6, 117], strides = [1, 1]} : vector<6x176xbf16> to vector<6x117xbf16>
    %cst_38 = arith.constant dense<0.000000e+00> : vector<16x117xf32>
    %127 = tpu.matmul %125, %126, %cst_38 {dimension_numbers = #tpu.dot_dimension_numbers<[1], [0], [0], [1], [0, 0, 1, 1], [], []>} : vector<16x6xbf16>, vector<6x117xbf16>, vector<16x117xf32> -> vector<16x117xf32>
    %128 = arith.addf %124, %127 : vector<16x117xf32>
    %129 = vector.extract_strided_slice %123 {offsets = [0, 6], sizes = [16, 6], strides = [1, 1]} : vector<16x150xbf16> to vector<16x6xbf16>
    %130 = vector.extract_strided_slice %121 {offsets = [0, 1], sizes = [6, 117], strides = [1, 1]} : vector<6x176xbf16> to vector<6x117xbf16>
    %cst_39 = arith.constant dense<0.000000e+00> : vector<16x117xf32>
    %131 = tpu.matmul %129, %130, %cst_39 {dimension_numbers = #tpu.dot_dimension_numbers<[1], [0], [0], [1], [0, 0, 1, 1], [], []>} : vector<16x6xbf16>, vector<6x117xbf16>, vector<16x117xf32> -> vector<16x117xf32>
    %132 = arith.addf %128, %131 : vector<16x117xf32>
    %133 = vector.extract_strided_slice %123 {offsets = [0, 12], sizes = [16, 6], strides = [1, 1]} : vector<16x150xbf16> to vector<16x6xbf16>
    %134 = vector.extract_strided_slice %121 {offsets = [0, 2], sizes = [6, 117], strides = [1, 1]} : vector<6x176xbf16> to vector<6x117xbf16>
    %cst_40 = arith.constant dense<0.000000e+00> : vector<16x117xf32>
    %135 = tpu.matmul %133, %134, %cst_40 {dimension_numbers = #tpu.dot_dimension_numbers<[1], [0], [0], [1], [0, 0, 1, 1], [], []>} : vector<16x6xbf16>, vector<6x117xbf16>, vector<16x117xf32> -> vector<16x117xf32>
    %136 = arith.addf %132, %135 : vector<16x117xf32>
    %137 = vector.extract_strided_slice %123 {offsets = [0, 18], sizes = [16, 6], strides = [1, 1]} : vector<16x150xbf16> to vector<16x6xbf16>
    %138 = vector.extract_strided_slice %121 {offsets = [0, 3], sizes = [6, 117], strides = [1, 1]} : vector<6x176xbf16> to vector<6x117xbf16>
    %cst_41 = arith.constant dense<0.000000e+00> : vector<16x117xf32>
    %139 = tpu.matmul %137, %138, %cst_41 {dimension_numbers = #tpu.dot_dimension_numbers<[1], [0], [0], [1], [0, 0, 1, 1], [], []>} : vector<16x6xbf16>, vector<6x117xbf16>, vector<16x117xf32> -> vector<16x117xf32>
    %140 = arith.addf %136, %139 : vector<16x117xf32>
    %141 = vector.extract_strided_slice %123 {offsets = [0, 24], sizes = [16, 6], strides = [1, 1]} : vector<16x150xbf16> to vector<16x6xbf16>
    %142 = vector.extract_strided_slice %121 {offsets = [0, 4], sizes = [6, 117], strides = [1, 1]} : vector<6x176xbf16> to vector<6x117xbf16>
    %cst_42 = arith.constant dense<0.000000e+00> : vector<16x117xf32>
    %143 = tpu.matmul %141, %142, %cst_42 {dimension_numbers = #tpu.dot_dimension_numbers<[1], [0], [0], [1], [0, 0, 1, 1], [], []>} : vector<16x6xbf16>, vector<6x117xbf16>, vector<16x117xf32> -> vector<16x117xf32>
    %144 = arith.addf %140, %143 : vector<16x117xf32>
    %145 = vector.extract_strided_slice %123 {offsets = [0, 30], sizes = [16, 6], strides = [1, 1]} : vector<16x150xbf16> to vector<16x6xbf16>
    %146 = vector.extract_strided_slice %121 {offsets = [0, 13], sizes = [6, 117], strides = [1, 1]} : vector<6x176xbf16> to vector<6x117xbf16>
    %cst_43 = arith.constant dense<0.000000e+00> : vector<16x117xf32>
    %147 = tpu.matmul %145, %146, %cst_43 {dimension_numbers = #tpu.dot_dimension_numbers<[1], [0], [0], [1], [0, 0, 1, 1], [], []>} : vector<16x6xbf16>, vector<6x117xbf16>, vector<16x117xf32> -> vector<16x117xf32>
    %148 = arith.addf %144, %147 : vector<16x117xf32>
    %149 = vector.extract_strided_slice %123 {offsets = [0, 36], sizes = [16, 6], strides = [1, 1]} : vector<16x150xbf16> to vector<16x6xbf16>
    %150 = vector.extract_strided_slice %121 {offsets = [0, 14], sizes = [6, 117], strides = [1, 1]} : vector<6x176xbf16> to vector<6x117xbf16>
    %cst_44 = arith.constant dense<0.000000e+00> : vector<16x117xf32>
    %151 = tpu.matmul %149, %150, %cst_44 {dimension_numbers = #tpu.dot_dimension_numbers<[1], [0], [0], [1], [0, 0, 1, 1], [], []>} : vector<16x6xbf16>, vector<6x117xbf16>, vector<16x117xf32> -> vector<16x117xf32>
    %152 = arith.addf %148, %151 : vector<16x117xf32>
    %153 = vector.extract_strided_slice %123 {offsets = [0, 42], sizes = [16, 6], strides = [1, 1]} : vector<16x150xbf16> to vector<16x6xbf16>
    %154 = vector.extract_strided_slice %121 {offsets = [0, 15], sizes = [6, 117], strides = [1, 1]} : vector<6x176xbf16> to vector<6x117xbf16>
    %cst_45 = arith.constant dense<0.000000e+00> : vector<16x117xf32>
    %155 = tpu.matmul %153, %154, %cst_45 {dimension_numbers = #tpu.dot_dimension_numbers<[1], [0], [0], [1], [0, 0, 1, 1], [], []>} : vector<16x6xbf16>, vector<6x117xbf16>, vector<16x117xf32> -> vector<16x117xf32>
    %156 = arith.addf %152, %155 : vector<16x117xf32>
    %157 = vector.extract_strided_slice %123 {offsets = [0, 48], sizes = [16, 6], strides = [1, 1]} : vector<16x150xbf16> to vector<16x6xbf16>
    %158 = vector.extract_strided_slice %121 {offsets = [0, 16], sizes = [6, 117], strides = [1, 1]} : vector<6x176xbf16> to vector<6x117xbf16>
    %cst_46 = arith.constant dense<0.000000e+00> : vector<16x117xf32>
    %159 = tpu.matmul %157, %158, %cst_46 {dimension_numbers = #tpu.dot_dimension_numbers<[1], [0], [0], [1], [0, 0, 1, 1], [], []>} : vector<16x6xbf16>, vector<6x117xbf16>, vector<16x117xf32> -> vector<16x117xf32>
    %160 = arith.addf %156, %159 : vector<16x117xf32>
    %161 = vector.extract_strided_slice %123 {offsets = [0, 54], sizes = [16, 6], strides = [1, 1]} : vector<16x150xbf16> to vector<16x6xbf16>
    %162 = vector.extract_strided_slice %121 {offsets = [0, 17], sizes = [6, 117], strides = [1, 1]} : vector<6x176xbf16> to vector<6x117xbf16>
    %cst_47 = arith.constant dense<0.000000e+00> : vector<16x117xf32>
    %163 = tpu.matmul %161, %162, %cst_47 {dimension_numbers = #tpu.dot_dimension_numbers<[1], [0], [0], [1], [0, 0, 1, 1], [], []>} : vector<16x6xbf16>, vector<6x117xbf16>, vector<16x117xf32> -> vector<16x117xf32>
    %164 = arith.addf %160, %163 : vector<16x117xf32>
    %165 = vector.extract_strided_slice %123 {offsets = [0, 60], sizes = [16, 6], strides = [1, 1]} : vector<16x150xbf16> to vector<16x6xbf16>
    %166 = vector.extract_strided_slice %121 {offsets = [0, 26], sizes = [6, 117], strides = [1, 1]} : vector<6x176xbf16> to vector<6x117xbf16>
    %cst_48 = arith.constant dense<0.000000e+00> : vector<16x117xf32>
    %167 = tpu.matmul %165, %166, %cst_48 {dimension_numbers = #tpu.dot_dimension_numbers<[1], [0], [0], [1], [0, 0, 1, 1], [], []>} : vector<16x6xbf16>, vector<6x117xbf16>, vector<16x117xf32> -> vector<16x117xf32>
    %168 = arith.addf %164, %167 : vector<16x117xf32>
    %169 = vector.extract_strided_slice %123 {offsets = [0, 66], sizes = [16, 6], strides = [1, 1]} : vector<16x150xbf16> to vector<16x6xbf16>
    %170 = vector.extract_strided_slice %121 {offsets = [0, 27], sizes = [6, 117], strides = [1, 1]} : vector<6x176xbf16> to vector<6x117xbf16>
    %cst_49 = arith.constant dense<0.000000e+00> : vector<16x117xf32>
    %171 = tpu.matmul %169, %170, %cst_49 {dimension_numbers = #tpu.dot_dimension_numbers<[1], [0], [0], [1], [0, 0, 1, 1], [], []>} : vector<16x6xbf16>, vector<6x117xbf16>, vector<16x117xf32> -> vector<16x117xf32>
    %172 = arith.addf %168, %171 : vector<16x117xf32>
    %173 = vector.extract_strided_slice %123 {offsets = [0, 72], sizes = [16, 6], strides = [1, 1]} : vector<16x150xbf16> to vector<16x6xbf16>
    %174 = vector.extract_strided_slice %121 {offsets = [0, 28], sizes = [6, 117], strides = [1, 1]} : vector<6x176xbf16> to vector<6x117xbf16>
    %cst_50 = arith.constant dense<0.000000e+00> : vector<16x117xf32>
    %175 = tpu.matmul %173, %174, %cst_50 {dimension_numbers = #tpu.dot_dimension_numbers<[1], [0], [0], [1], [0, 0, 1, 1], [], []>} : vector<16x6xbf16>, vector<6x117xbf16>, vector<16x117xf32> -> vector<16x117xf32>
    %176 = arith.addf %172, %175 : vector<16x117xf32>
    %177 = vector.extract_strided_slice %123 {offsets = [0, 78], sizes = [16, 6], strides = [1, 1]} : vector<16x150xbf16> to vector<16x6xbf16>
    %178 = vector.extract_strided_slice %121 {offsets = [0, 29], sizes = [6, 117], strides = [1, 1]} : vector<6x176xbf16> to vector<6x117xbf16>
    %cst_51 = arith.constant dense<0.000000e+00> : vector<16x117xf32>
    %179 = tpu.matmul %177, %178, %cst_51 {dimension_numbers = #tpu.dot_dimension_numbers<[1], [0], [0], [1], [0, 0, 1, 1], [], []>} : vector<16x6xbf16>, vector<6x117xbf16>, vector<16x117xf32> -> vector<16x117xf32>
    %180 = arith.addf %176, %179 : vector<16x117xf32>
    %181 = vector.extract_strided_slice %123 {offsets = [0, 84], sizes = [16, 6], strides = [1, 1]} : vector<16x150xbf16> to vector<16x6xbf16>
    %182 = vector.extract_strided_slice %121 {offsets = [0, 30], sizes = [6, 117], strides = [1, 1]} : vector<6x176xbf16> to vector<6x117xbf16>
    %cst_52 = arith.constant dense<0.000000e+00> : vector<16x117xf32>
    %183 = tpu.matmul %181, %182, %cst_52 {dimension_numbers = #tpu.dot_dimension_numbers<[1], [0], [0], [1], [0, 0, 1, 1], [], []>} : vector<16x6xbf16>, vector<6x117xbf16>, vector<16x117xf32> -> vector<16x117xf32>
    %184 = arith.addf %180, %183 : vector<16x117xf32>
    %185 = vector.extract_strided_slice %123 {offsets = [0, 90], sizes = [16, 6], strides = [1, 1]} : vector<16x150xbf16> to vector<16x6xbf16>
    %186 = vector.extract_strided_slice %121 {offsets = [0, 39], sizes = [6, 117], strides = [1, 1]} : vector<6x176xbf16> to vector<6x117xbf16>
    %cst_53 = arith.constant dense<0.000000e+00> : vector<16x117xf32>
    %187 = tpu.matmul %185, %186, %cst_53 {dimension_numbers = #tpu.dot_dimension_numbers<[1], [0], [0], [1], [0, 0, 1, 1], [], []>} : vector<16x6xbf16>, vector<6x117xbf16>, vector<16x117xf32> -> vector<16x117xf32>
    %188 = arith.addf %184, %187 : vector<16x117xf32>
    %189 = vector.extract_strided_slice %123 {offsets = [0, 96], sizes = [16, 6], strides = [1, 1]} : vector<16x150xbf16> to vector<16x6xbf16>
    %190 = vector.extract_strided_slice %121 {offsets = [0, 40], sizes = [6, 117], strides = [1, 1]} : vector<6x176xbf16> to vector<6x117xbf16>
    %cst_54 = arith.constant dense<0.000000e+00> : vector<16x117xf32>
    %191 = tpu.matmul %189, %190, %cst_54 {dimension_numbers = #tpu.dot_dimension_numbers<[1], [0], [0], [1], [0, 0, 1, 1], [], []>} : vector<16x6xbf16>, vector<6x117xbf16>, vector<16x117xf32> -> vector<16x117xf32>
    %192 = arith.addf %188, %191 : vector<16x117xf32>
    %193 = vector.extract_strided_slice %123 {offsets = [0, 102], sizes = [16, 6], strides = [1, 1]} : vector<16x150xbf16> to vector<16x6xbf16>
    %194 = vector.extract_strided_slice %121 {offsets = [0, 41], sizes = [6, 117], strides = [1, 1]} : vector<6x176xbf16> to vector<6x117xbf16>
    %cst_55 = arith.constant dense<0.000000e+00> : vector<16x117xf32>
    %195 = tpu.matmul %193, %194, %cst_55 {dimension_numbers = #tpu.dot_dimension_numbers<[1], [0], [0], [1], [0, 0, 1, 1], [], []>} : vector<16x6xbf16>, vector<6x117xbf16>, vector<16x117xf32> -> vector<16x117xf32>
    %196 = arith.addf %192, %195 : vector<16x117xf32>
    %197 = vector.extract_strided_slice %123 {offsets = [0, 108], sizes = [16, 6], strides = [1, 1]} : vector<16x150xbf16> to vector<16x6xbf16>
    %198 = vector.extract_strided_slice %121 {offsets = [0, 42], sizes = [6, 117], strides = [1, 1]} : vector<6x176xbf16> to vector<6x117xbf16>
    %cst_56 = arith.constant dense<0.000000e+00> : vector<16x117xf32>
    %199 = tpu.matmul %197, %198, %cst_56 {dimension_numbers = #tpu.dot_dimension_numbers<[1], [0], [0], [1], [0, 0, 1, 1], [], []>} : vector<16x6xbf16>, vector<6x117xbf16>, vector<16x117xf32> -> vector<16x117xf32>
    %200 = arith.addf %196, %199 : vector<16x117xf32>
    %201 = vector.extract_strided_slice %123 {offsets = [0, 114], sizes = [16, 6], strides = [1, 1]} : vector<16x150xbf16> to vector<16x6xbf16>
    %202 = vector.extract_strided_slice %121 {offsets = [0, 43], sizes = [6, 117], strides = [1, 1]} : vector<6x176xbf16> to vector<6x117xbf16>
    %cst_57 = arith.constant dense<0.000000e+00> : vector<16x117xf32>
    %203 = tpu.matmul %201, %202, %cst_57 {dimension_numbers = #tpu.dot_dimension_numbers<[1], [0], [0], [1], [0, 0, 1, 1], [], []>} : vector<16x6xbf16>, vector<6x117xbf16>, vector<16x117xf32> -> vector<16x117xf32>
    %204 = arith.addf %200, %203 : vector<16x117xf32>
    %205 = vector.extract_strided_slice %123 {offsets = [0, 120], sizes = [16, 6], strides = [1, 1]} : vector<16x150xbf16> to vector<16x6xbf16>
    %206 = vector.extract_strided_slice %121 {offsets = [0, 52], sizes = [6, 117], strides = [1, 1]} : vector<6x176xbf16> to vector<6x117xbf16>
    %cst_58 = arith.constant dense<0.000000e+00> : vector<16x117xf32>
    %207 = tpu.matmul %205, %206, %cst_58 {dimension_numbers = #tpu.dot_dimension_numbers<[1], [0], [0], [1], [0, 0, 1, 1], [], []>} : vector<16x6xbf16>, vector<6x117xbf16>, vector<16x117xf32> -> vector<16x117xf32>
    %208 = arith.addf %204, %207 : vector<16x117xf32>
    %209 = vector.extract_strided_slice %123 {offsets = [0, 126], sizes = [16, 6], strides = [1, 1]} : vector<16x150xbf16> to vector<16x6xbf16>
    %210 = vector.extract_strided_slice %121 {offsets = [0, 53], sizes = [6, 117], strides = [1, 1]} : vector<6x176xbf16> to vector<6x117xbf16>
    %cst_59 = arith.constant dense<0.000000e+00> : vector<16x117xf32>
    %211 = tpu.matmul %209, %210, %cst_59 {dimension_numbers = #tpu.dot_dimension_numbers<[1], [0], [0], [1], [0, 0, 1, 1], [], []>} : vector<16x6xbf16>, vector<6x117xbf16>, vector<16x117xf32> -> vector<16x117xf32>
    %212 = arith.addf %208, %211 : vector<16x117xf32>
    %213 = vector.extract_strided_slice %123 {offsets = [0, 132], sizes = [16, 6], strides = [1, 1]} : vector<16x150xbf16> to vector<16x6xbf16>
    %214 = vector.extract_strided_slice %121 {offsets = [0, 54], sizes = [6, 117], strides = [1, 1]} : vector<6x176xbf16> to vector<6x117xbf16>
    %cst_60 = arith.constant dense<0.000000e+00> : vector<16x117xf32>
    %215 = tpu.matmul %213, %214, %cst_60 {dimension_numbers = #tpu.dot_dimension_numbers<[1], [0], [0], [1], [0, 0, 1, 1], [], []>} : vector<16x6xbf16>, vector<6x117xbf16>, vector<16x117xf32> -> vector<16x117xf32>
    %216 = arith.addf %212, %215 : vector<16x117xf32>
    %217 = vector.extract_strided_slice %123 {offsets = [0, 138], sizes = [16, 6], strides = [1, 1]} : vector<16x150xbf16> to vector<16x6xbf16>
    %218 = vector.extract_strided_slice %121 {offsets = [0, 55], sizes = [6, 117], strides = [1, 1]} : vector<6x176xbf16> to vector<6x117xbf16>
    %cst_61 = arith.constant dense<0.000000e+00> : vector<16x117xf32>
    %219 = tpu.matmul %217, %218, %cst_61 {dimension_numbers = #tpu.dot_dimension_numbers<[1], [0], [0], [1], [0, 0, 1, 1], [], []>} : vector<16x6xbf16>, vector<6x117xbf16>, vector<16x117xf32> -> vector<16x117xf32>
    %220 = arith.addf %216, %219 : vector<16x117xf32>
    %221 = vector.extract_strided_slice %123 {offsets = [0, 144], sizes = [16, 6], strides = [1, 1]} : vector<16x150xbf16> to vector<16x6xbf16>
    %222 = vector.extract_strided_slice %121 {offsets = [0, 56], sizes = [6, 117], strides = [1, 1]} : vector<6x176xbf16> to vector<6x117xbf16>
    %cst_62 = arith.constant dense<0.000000e+00> : vector<16x117xf32>
    %223 = tpu.matmul %221, %222, %cst_62 {dimension_numbers = #tpu.dot_dimension_numbers<[1], [0], [0], [1], [0, 0, 1, 1], [], []>} : vector<16x6xbf16>, vector<6x117xbf16>, vector<16x117xf32> -> vector<16x117xf32>
    %224 = arith.addf %220, %223 : vector<16x117xf32>
    %c0_63 = arith.constant 0 : index
    %c1 = arith.constant 1 : index
    %225 = vector.load %arg9[%c0_63, %c1] : memref<16x2xf32, #tpu.memory_space<vmem>>, vector<16x1xf32>
    %226 = vector.broadcast %225 : vector<16x1xf32> to vector<16x117xf32>
    %227 = arith.addf %224, %226 : vector<16x117xf32>
    %cst_64 = arith.constant 0.000000e+00 : f32
    %228 = vector.broadcast %cst_64 : f32 to vector<16x117xf32>
    %229 = arith.maximumf %227, %228 : vector<16x117xf32>
    %230 = arith.truncf %229 : vector<16x117xf32> to vector<16x117xbf16>
    %c0_65 = arith.constant 0 : index
    %c0_66 = arith.constant 0 : index
    %231 = vector.load %arg5[%c0_65, %c0_66] : memref<117x64xbf16, #tpu.memory_space<vmem>>, vector<117x64xbf16>
    %cst_67 = arith.constant dense<0.000000e+00> : vector<16x64xf32>
    %232 = tpu.matmul %230, %231, %cst_67 {dimension_numbers = #tpu.dot_dimension_numbers<[1], [0], [0], [1], [0, 0, 1, 1], [], []>} : vector<16x117xbf16>, vector<117x64xbf16>, vector<16x64xf32> -> vector<16x64xf32>
    %233 = vector.extract_strided_slice %232 {offsets = [0, 0], sizes = [16, 16], strides = [1, 1]} : vector<16x64xf32> to vector<16x16xf32>
    %234 = vector.extract_strided_slice %232 {offsets = [0, 16], sizes = [16, 16], strides = [1, 1]} : vector<16x64xf32> to vector<16x16xf32>
    %235 = arith.maximumf %233, %234 : vector<16x16xf32>
    %236 = vector.extract_strided_slice %232 {offsets = [0, 32], sizes = [16, 16], strides = [1, 1]} : vector<16x64xf32> to vector<16x16xf32>
    %237 = vector.extract_strided_slice %232 {offsets = [0, 48], sizes = [16, 16], strides = [1, 1]} : vector<16x64xf32> to vector<16x16xf32>
    %238 = arith.maximumf %236, %237 : vector<16x16xf32>
    %239 = arith.maximumf %235, %238 : vector<16x16xf32>
    %240 = arith.truncf %239 : vector<16x16xf32> to vector<16x16xbf16>
    %c0_68 = arith.constant 0 : index
    %c0_69 = arith.constant 0 : index
    %241 = vector.load %arg6[%c0_68, %c0_69] : memref<256x120xf32, #tpu.memory_space<vmem>>, vector<256x120xf32>
    %242 = arith.truncf %241 : vector<256x120xf32> to vector<256x120xbf16>
    %c0_70 = arith.constant 0 : index
    %c0_71 = arith.constant 0 : index
    %243 = vector.load %arg10[%c0_70, %c0_71] : memref<1x256xf32, #tpu.memory_space<vmem>>, vector<1x120xf32>
    %244 = vector.extract_strided_slice %240 {offsets = [0, 0], sizes = [1, 16], strides = [1, 1]} : vector<16x16xbf16> to vector<1x16xbf16>
    %245 = vector.extract_strided_slice %242 {offsets = [0, 0], sizes = [16, 120], strides = [1, 1]} : vector<256x120xbf16> to vector<16x120xbf16>
    %cst_72 = arith.constant dense<0.000000e+00> : vector<1x120xf32>
    %246 = tpu.matmul %244, %245, %cst_72 {dimension_numbers = #tpu.dot_dimension_numbers<[1], [0], [0], [1], [0, 0, 1, 1], [], []>} : vector<1x16xbf16>, vector<16x120xbf16>, vector<1x120xf32> -> vector<1x120xf32>
    %247 = arith.addf %243, %246 : vector<1x120xf32>
    %248 = vector.extract_strided_slice %240 {offsets = [1, 0], sizes = [1, 16], strides = [1, 1]} : vector<16x16xbf16> to vector<1x16xbf16>
    %249 = vector.extract_strided_slice %242 {offsets = [16, 0], sizes = [16, 120], strides = [1, 1]} : vector<256x120xbf16> to vector<16x120xbf16>
    %cst_73 = arith.constant dense<0.000000e+00> : vector<1x120xf32>
    %250 = tpu.matmul %248, %249, %cst_73 {dimension_numbers = #tpu.dot_dimension_numbers<[1], [0], [0], [1], [0, 0, 1, 1], [], []>} : vector<1x16xbf16>, vector<16x120xbf16>, vector<1x120xf32> -> vector<1x120xf32>
    %251 = arith.addf %247, %250 : vector<1x120xf32>
    %252 = vector.extract_strided_slice %240 {offsets = [2, 0], sizes = [1, 16], strides = [1, 1]} : vector<16x16xbf16> to vector<1x16xbf16>
    %253 = vector.extract_strided_slice %242 {offsets = [32, 0], sizes = [16, 120], strides = [1, 1]} : vector<256x120xbf16> to vector<16x120xbf16>
    %cst_74 = arith.constant dense<0.000000e+00> : vector<1x120xf32>
    %254 = tpu.matmul %252, %253, %cst_74 {dimension_numbers = #tpu.dot_dimension_numbers<[1], [0], [0], [1], [0, 0, 1, 1], [], []>} : vector<1x16xbf16>, vector<16x120xbf16>, vector<1x120xf32> -> vector<1x120xf32>
    %255 = arith.addf %251, %254 : vector<1x120xf32>
    %256 = vector.extract_strided_slice %240 {offsets = [3, 0], sizes = [1, 16], strides = [1, 1]} : vector<16x16xbf16> to vector<1x16xbf16>
    %257 = vector.extract_strided_slice %242 {offsets = [48, 0], sizes = [16, 120], strides = [1, 1]} : vector<256x120xbf16> to vector<16x120xbf16>
    %cst_75 = arith.constant dense<0.000000e+00> : vector<1x120xf32>
    %258 = tpu.matmul %256, %257, %cst_75 {dimension_numbers = #tpu.dot_dimension_numbers<[1], [0], [0], [1], [0, 0, 1, 1], [], []>} : vector<1x16xbf16>, vector<16x120xbf16>, vector<1x120xf32> -> vector<1x120xf32>
    %259 = arith.addf %255, %258 : vector<1x120xf32>
    %260 = vector.extract_strided_slice %240 {offsets = [4, 0], sizes = [1, 16], strides = [1, 1]} : vector<16x16xbf16> to vector<1x16xbf16>
    %261 = vector.extract_strided_slice %242 {offsets = [64, 0], sizes = [16, 120], strides = [1, 1]} : vector<256x120xbf16> to vector<16x120xbf16>
    %cst_76 = arith.constant dense<0.000000e+00> : vector<1x120xf32>
    %262 = tpu.matmul %260, %261, %cst_76 {dimension_numbers = #tpu.dot_dimension_numbers<[1], [0], [0], [1], [0, 0, 1, 1], [], []>} : vector<1x16xbf16>, vector<16x120xbf16>, vector<1x120xf32> -> vector<1x120xf32>
    %263 = arith.addf %259, %262 : vector<1x120xf32>
    %264 = vector.extract_strided_slice %240 {offsets = [5, 0], sizes = [1, 16], strides = [1, 1]} : vector<16x16xbf16> to vector<1x16xbf16>
    %265 = vector.extract_strided_slice %242 {offsets = [80, 0], sizes = [16, 120], strides = [1, 1]} : vector<256x120xbf16> to vector<16x120xbf16>
    %cst_77 = arith.constant dense<0.000000e+00> : vector<1x120xf32>
    %266 = tpu.matmul %264, %265, %cst_77 {dimension_numbers = #tpu.dot_dimension_numbers<[1], [0], [0], [1], [0, 0, 1, 1], [], []>} : vector<1x16xbf16>, vector<16x120xbf16>, vector<1x120xf32> -> vector<1x120xf32>
    %267 = arith.addf %263, %266 : vector<1x120xf32>
    %268 = vector.extract_strided_slice %240 {offsets = [6, 0], sizes = [1, 16], strides = [1, 1]} : vector<16x16xbf16> to vector<1x16xbf16>
    %269 = vector.extract_strided_slice %242 {offsets = [96, 0], sizes = [16, 120], strides = [1, 1]} : vector<256x120xbf16> to vector<16x120xbf16>
    %cst_78 = arith.constant dense<0.000000e+00> : vector<1x120xf32>
    %270 = tpu.matmul %268, %269, %cst_78 {dimension_numbers = #tpu.dot_dimension_numbers<[1], [0], [0], [1], [0, 0, 1, 1], [], []>} : vector<1x16xbf16>, vector<16x120xbf16>, vector<1x120xf32> -> vector<1x120xf32>
    %271 = arith.addf %267, %270 : vector<1x120xf32>
    %272 = vector.extract_strided_slice %240 {offsets = [7, 0], sizes = [1, 16], strides = [1, 1]} : vector<16x16xbf16> to vector<1x16xbf16>
    %273 = vector.extract_strided_slice %242 {offsets = [112, 0], sizes = [16, 120], strides = [1, 1]} : vector<256x120xbf16> to vector<16x120xbf16>
    %cst_79 = arith.constant dense<0.000000e+00> : vector<1x120xf32>
    %274 = tpu.matmul %272, %273, %cst_79 {dimension_numbers = #tpu.dot_dimension_numbers<[1], [0], [0], [1], [0, 0, 1, 1], [], []>} : vector<1x16xbf16>, vector<16x120xbf16>, vector<1x120xf32> -> vector<1x120xf32>
    %275 = arith.addf %271, %274 : vector<1x120xf32>
    %276 = vector.extract_strided_slice %240 {offsets = [8, 0], sizes = [1, 16], strides = [1, 1]} : vector<16x16xbf16> to vector<1x16xbf16>
    %277 = vector.extract_strided_slice %242 {offsets = [128, 0], sizes = [16, 120], strides = [1, 1]} : vector<256x120xbf16> to vector<16x120xbf16>
    %cst_80 = arith.constant dense<0.000000e+00> : vector<1x120xf32>
    %278 = tpu.matmul %276, %277, %cst_80 {dimension_numbers = #tpu.dot_dimension_numbers<[1], [0], [0], [1], [0, 0, 1, 1], [], []>} : vector<1x16xbf16>, vector<16x120xbf16>, vector<1x120xf32> -> vector<1x120xf32>
    %279 = arith.addf %275, %278 : vector<1x120xf32>
    %280 = vector.extract_strided_slice %240 {offsets = [9, 0], sizes = [1, 16], strides = [1, 1]} : vector<16x16xbf16> to vector<1x16xbf16>
    %281 = vector.extract_strided_slice %242 {offsets = [144, 0], sizes = [16, 120], strides = [1, 1]} : vector<256x120xbf16> to vector<16x120xbf16>
    %cst_81 = arith.constant dense<0.000000e+00> : vector<1x120xf32>
    %282 = tpu.matmul %280, %281, %cst_81 {dimension_numbers = #tpu.dot_dimension_numbers<[1], [0], [0], [1], [0, 0, 1, 1], [], []>} : vector<1x16xbf16>, vector<16x120xbf16>, vector<1x120xf32> -> vector<1x120xf32>
    %283 = arith.addf %279, %282 : vector<1x120xf32>
    %284 = vector.extract_strided_slice %240 {offsets = [10, 0], sizes = [1, 16], strides = [1, 1]} : vector<16x16xbf16> to vector<1x16xbf16>
    %285 = vector.extract_strided_slice %242 {offsets = [160, 0], sizes = [16, 120], strides = [1, 1]} : vector<256x120xbf16> to vector<16x120xbf16>
    %cst_82 = arith.constant dense<0.000000e+00> : vector<1x120xf32>
    %286 = tpu.matmul %284, %285, %cst_82 {dimension_numbers = #tpu.dot_dimension_numbers<[1], [0], [0], [1], [0, 0, 1, 1], [], []>} : vector<1x16xbf16>, vector<16x120xbf16>, vector<1x120xf32> -> vector<1x120xf32>
    %287 = arith.addf %283, %286 : vector<1x120xf32>
    %288 = vector.extract_strided_slice %240 {offsets = [11, 0], sizes = [1, 16], strides = [1, 1]} : vector<16x16xbf16> to vector<1x16xbf16>
    %289 = vector.extract_strided_slice %242 {offsets = [176, 0], sizes = [16, 120], strides = [1, 1]} : vector<256x120xbf16> to vector<16x120xbf16>
    %cst_83 = arith.constant dense<0.000000e+00> : vector<1x120xf32>
    %290 = tpu.matmul %288, %289, %cst_83 {dimension_numbers = #tpu.dot_dimension_numbers<[1], [0], [0], [1], [0, 0, 1, 1], [], []>} : vector<1x16xbf16>, vector<16x120xbf16>, vector<1x120xf32> -> vector<1x120xf32>
    %291 = arith.addf %287, %290 : vector<1x120xf32>
    %292 = vector.extract_strided_slice %240 {offsets = [12, 0], sizes = [1, 16], strides = [1, 1]} : vector<16x16xbf16> to vector<1x16xbf16>
    %293 = vector.extract_strided_slice %242 {offsets = [192, 0], sizes = [16, 120], strides = [1, 1]} : vector<256x120xbf16> to vector<16x120xbf16>
    %cst_84 = arith.constant dense<0.000000e+00> : vector<1x120xf32>
    %294 = tpu.matmul %292, %293, %cst_84 {dimension_numbers = #tpu.dot_dimension_numbers<[1], [0], [0], [1], [0, 0, 1, 1], [], []>} : vector<1x16xbf16>, vector<16x120xbf16>, vector<1x120xf32> -> vector<1x120xf32>
    %295 = arith.addf %291, %294 : vector<1x120xf32>
    %296 = vector.extract_strided_slice %240 {offsets = [13, 0], sizes = [1, 16], strides = [1, 1]} : vector<16x16xbf16> to vector<1x16xbf16>
    %297 = vector.extract_strided_slice %242 {offsets = [208, 0], sizes = [16, 120], strides = [1, 1]} : vector<256x120xbf16> to vector<16x120xbf16>
    %cst_85 = arith.constant dense<0.000000e+00> : vector<1x120xf32>
    %298 = tpu.matmul %296, %297, %cst_85 {dimension_numbers = #tpu.dot_dimension_numbers<[1], [0], [0], [1], [0, 0, 1, 1], [], []>} : vector<1x16xbf16>, vector<16x120xbf16>, vector<1x120xf32> -> vector<1x120xf32>
    %299 = arith.addf %295, %298 : vector<1x120xf32>
    %300 = vector.extract_strided_slice %240 {offsets = [14, 0], sizes = [1, 16], strides = [1, 1]} : vector<16x16xbf16> to vector<1x16xbf16>
    %301 = vector.extract_strided_slice %242 {offsets = [224, 0], sizes = [16, 120], strides = [1, 1]} : vector<256x120xbf16> to vector<16x120xbf16>
    %cst_86 = arith.constant dense<0.000000e+00> : vector<1x120xf32>
    %302 = tpu.matmul %300, %301, %cst_86 {dimension_numbers = #tpu.dot_dimension_numbers<[1], [0], [0], [1], [0, 0, 1, 1], [], []>} : vector<1x16xbf16>, vector<16x120xbf16>, vector<1x120xf32> -> vector<1x120xf32>
    %303 = arith.addf %299, %302 : vector<1x120xf32>
    %304 = vector.extract_strided_slice %240 {offsets = [15, 0], sizes = [1, 16], strides = [1, 1]} : vector<16x16xbf16> to vector<1x16xbf16>
    %305 = vector.extract_strided_slice %242 {offsets = [240, 0], sizes = [16, 120], strides = [1, 1]} : vector<256x120xbf16> to vector<16x120xbf16>
    %cst_87 = arith.constant dense<0.000000e+00> : vector<1x120xf32>
    %306 = tpu.matmul %304, %305, %cst_87 {dimension_numbers = #tpu.dot_dimension_numbers<[1], [0], [0], [1], [0, 0, 1, 1], [], []>} : vector<1x16xbf16>, vector<16x120xbf16>, vector<1x120xf32> -> vector<1x120xf32>
    %307 = arith.addf %303, %306 : vector<1x120xf32>
    %cst_88 = arith.constant 0.000000e+00 : f32
    %308 = vector.broadcast %cst_88 : f32 to vector<1x120xf32>
    %309 = arith.maximumf %307, %308 : vector<1x120xf32>
    %310 = arith.truncf %309 : vector<1x120xf32> to vector<1x120xbf16>
    %c0_89 = arith.constant 0 : index
    %c0_90 = arith.constant 0 : index
    %311 = vector.load %arg7[%c0_89, %c0_90] : memref<120x84xf32, #tpu.memory_space<vmem>>, vector<120x84xf32>
    %312 = arith.truncf %311 : vector<120x84xf32> to vector<120x84xbf16>
    %cst_91 = arith.constant dense<0.000000e+00> : vector<1x84xf32>
    %313 = tpu.matmul %310, %312, %cst_91 {dimension_numbers = #tpu.dot_dimension_numbers<[1], [0], [0], [1], [0, 0, 1, 1], [], []>} : vector<1x120xbf16>, vector<120x84xbf16>, vector<1x84xf32> -> vector<1x84xf32>
    %c0_92 = arith.constant 0 : index
    %c120 = arith.constant 120 : index
    %314 = vector.load %arg10[%c0_92, %c120] : memref<1x256xf32, #tpu.memory_space<vmem>>, vector<1x84xf32>
    %315 = arith.addf %313, %314 : vector<1x84xf32>
    %cst_93 = arith.constant 0.000000e+00 : f32
    %316 = vector.broadcast %cst_93 : f32 to vector<1x84xf32>
    %317 = arith.maximumf %315, %316 : vector<1x84xf32>
    %318 = arith.truncf %317 : vector<1x84xf32> to vector<1x84xbf16>
    %c0_94 = arith.constant 0 : index
    %c0_95 = arith.constant 0 : index
    %319 = vector.load %arg8[%c0_94, %c0_95] : memref<84x10xf32, #tpu.memory_space<vmem>>, vector<84x10xf32>
    %320 = arith.truncf %319 : vector<84x10xf32> to vector<84x10xbf16>
    %cst_96 = arith.constant dense<0.000000e+00> : vector<1x10xf32>
    %321 = tpu.matmul %318, %320, %cst_96 {dimension_numbers = #tpu.dot_dimension_numbers<[1], [0], [0], [1], [0, 0, 1, 1], [], []>} : vector<1x84xbf16>, vector<84x10xbf16>, vector<1x10xf32> -> vector<1x10xf32>
    %c0_97 = arith.constant 0 : index
    %c204 = arith.constant 204 : index
    %322 = vector.load %arg10[%c0_97, %c204] : memref<1x256xf32, #tpu.memory_space<vmem>>, vector<1x10xf32>
    %323 = arith.addf %321, %322 : vector<1x10xf32>
    %c0_98 = arith.constant 0 : index
    %c0_99 = arith.constant 0 : index
    %c0_100 = arith.constant 0 : index
    %324 = vector.load %arg11[%c0_98, %c0_99, %c0_100] : memref<1x1x10xf32, #tpu.memory_space<vmem>>, vector<1x1x10xf32>
    %325 = vector.shape_cast %324 : vector<1x1x10xf32> to vector<1x10xf32>
    %326 = vector.shape_cast %323 : vector<1x10xf32> to vector<1x1x10xf32>
    tpu.vector_store %arg11[%c0_98, %c0_99, %c0_100], %326 {strides = array<i32>} : memref<1x1x10xf32, #tpu.memory_space<vmem>>, vector<1x1x10xf32>,
    return
  }
  func.func @transform_0(%arg0: i32) -> (i32, i32, i32) {
    %c0_i32 = arith.constant 0 : i32
    %c0_i32_0 = arith.constant 0 : i32
    %c0_i32_1 = arith.constant 0 : i32
    return %arg0, %c0_i32, %c0_i32_0 : i32, i32, i32
  }
  func.func @transform_1(%arg0: i32) -> (i32, i32) {
    %c0_i32 = arith.constant 0 : i32
    %c0_i32_0 = arith.constant 0 : i32
    %c0_i32_1 = arith.constant 0 : i32
    return %c0_i32, %c0_i32_0 : i32, i32
  }
  func.func @transform_2(%arg0: i32) -> (i32, i32) {
    %c0_i32 = arith.constant 0 : i32
    %c0_i32_0 = arith.constant 0 : i32
    %c0_i32_1 = arith.constant 0 : i32
    return %c0_i32, %c0_i32_0 : i32, i32
  }
  func.func @transform_3(%arg0: i32) -> (i32, i32) {
    %c0_i32 = arith.constant 0 : i32
    %c0_i32_0 = arith.constant 0 : i32
    %c0_i32_1 = arith.constant 0 : i32
    return %c0_i32, %c0_i32_0 : i32, i32
  }
  func.func @transform_4(%arg0: i32) -> (i32, i32) {
    %c0_i32 = arith.constant 0 : i32
    %c0_i32_0 = arith.constant 0 : i32
    %c0_i32_1 = arith.constant 0 : i32
    return %c0_i32, %c0_i32_0 : i32, i32
  }
  func.func @transform_5(%arg0: i32) -> (i32, i32) {
    %c0_i32 = arith.constant 0 : i32
    %c0_i32_0 = arith.constant 0 : i32
    %c0_i32_1 = arith.constant 0 : i32
    return %c0_i32, %c0_i32_0 : i32, i32
  }
  func.func @transform_6(%arg0: i32) -> (i32, i32) {
    %c0_i32 = arith.constant 0 : i32
    %c0_i32_0 = arith.constant 0 : i32
    %c0_i32_1 = arith.constant 0 : i32
    return %c0_i32, %c0_i32_0 : i32, i32
  }
  func.func @transform_7(%arg0: i32) -> (i32, i32) {
    %c0_i32 = arith.constant 0 : i32
    %c0_i32_0 = arith.constant 0 : i32
    %c0_i32_1 = arith.constant 0 : i32
    return %c0_i32, %c0_i32_0 : i32, i32
  }
  func.func @transform_8(%arg0: i32) -> (i32, i32) {
    %c0_i32 = arith.constant 0 : i32
    %c0_i32_0 = arith.constant 0 : i32
    %c0_i32_1 = arith.constant 0 : i32
    return %c0_i32, %c0_i32_0 : i32, i32
  }
  func.func @transform_9(%arg0: i32) -> (i32, i32) {
    %c0_i32 = arith.constant 0 : i32
    %c0_i32_0 = arith.constant 0 : i32
    %c0_i32_1 = arith.constant 0 : i32
    return %c0_i32, %c0_i32_0 : i32, i32
  }
  func.func @transform_10(%arg0: i32) -> (i32, i32, i32) {
    %c0_i32 = arith.constant 0 : i32
    %c0_i32_0 = arith.constant 0 : i32
    %c0_i32_1 = arith.constant 0 : i32
    return %arg0, %c0_i32, %c0_i32_0 : i32, i32, i32
  }
}

</mosaic_0001>

<bundles_post_ra>
// kernel: tpu_custom_call.1
= control target key start
LH: loop header
LB: loop body
LE: loop exit
PB: predicated region body
PF: predicated region fallthrough
CT: control target
= control target key end

     0   :  { %s14676_s0 = inlined_call_operand.vmem [shape: f32[2,3,1024], index: 0, kind: input, shape index: {}]   ;;  %s14677_s1 = inlined_call_operand.vmem [shape: f32[6,75], index: 1, kind: input, shape index: {}]   ;;  %s14678_s2 = inlined_call_operand.vmem [shape: f32[16,150], index: 2, kind: input, shape index: {}]   ;;  %s14679_s3 = inlined_call_operand.vmem [shape: bf16[837,704], index: 3, kind: input, shape index: {}]   ;;  %s14680_s4 = inlined_call_operand.vmem [shape: bf16[117,64], index: 4, kind: input, shape index: {}]   ;;  %s14681_s5 = inlined_call_operand.vmem [shape: f32[256,120], index: 5, kind: input, shape index: {}]   ;;  %s14682_s6 = inlined_call_operand.vmem [shape: f32[120,84], index: 6, kind: input, shape index: {}]   ;;  %s14683_s7 = inlined_call_operand.vmem [shape: f32[84,10], index: 7, kind: input, shape index: {}]   ;;  %s14684_s8 = inlined_call_operand.vmem [shape: f32[16,2], index: 8, kind: input, shape index: {}]   ;;  %s14685_s9 = inlined_call_operand.vmem [shape: f32[1,256], index: 9, kind: input, shape index: {}]   ;;  %s14686_s10 = inlined_call_operand.hbm [shape: f32[2,1,10], index: 10, kind: output, shape index: {}]  }
   0x1   :  { %14724 = sst [smem:[#allocation5_spill]] %s14676_s0 }
   0x2   :  { %15 = vsyncpa [#allocation3], 0 }
   0x3   :  { %17 = vsyncpa [#allocation3 + $0x1], 0  ;;  %s10183_s13 = smov 0   ;;  %s10185_s14 = smov 0  }
   0x4   :  { %s10187_s15 = smov 0   ;;  %s10189_s16 = smov 0  }
   0x5 LB: > { %s10204_s17 = sadd.s32 4294967295, %s10057_s16   ;;  %s8039_s18 = sadd.s32 4294967294, %s10057_s16   ;;  %s10057_s16 = sphi %s10189_s16, %s14755_s16   ;;  %s10053_s15 = sphi %s10187_s15, %s14754_s15   ;;  %s10049_s14 = sphi %s10185_s14, %s14753_s14   ;;  %s10045_s13 = sphi %s10183_s13, %s14752_s13  }
   0x6   : > { %s10208_s19 = sadd.s32 1, %s10057_s16   ;;  %s245_s20 = sadd.s32 1, %s10053_s15 }
   0x7   : > { %s242_s21 = ssub.s32 %s10057_s16, %s10208_s19  ;;  %p255_p0 = scmp.ne.s32.totalorder %s10053_s15, %s10049_s14 }
   0x8   : > { %p243_p1 = scmp.eq.s32.totalorder %s242_s21, 0  ;;  %p256_p2 = scmp.eq.s32.totalorder %s10204_s17, 1 }
   0x9   : > { %p261_p3 = scmp.ne.s32.totalorder %s10049_s14, %s10045_s13  ;;  %p262_p4 = scmp.eq.s32.totalorder %s8039_s18, 1 }
   0xa   : > { %s10219_s22 = scalar_select %p243_p1, %s10053_s15, %s245_s20  }
   0xb   : > { %p10221_p5 = por %p256_p2, %p255_p0  ;;  %p10225_p6 = por %p262_p4, %p261_p3 }
   0xc   : > { %p8042_p7 = scmp.ge.s32.totalorder %s10057_s16, 1  ;;  %p315_p8 = scmp.lt.s32.totalorder %s10057_s16, 3 }
   0xe   : > { %p316_p9 = pnand %p8042_p7, %p315_p8 }
   0xf   : > { %p352_p10 = scmp.lt.s32.totalorder (!%p316_p9), %s10204_s17, 1  ;;  %s14727_s0 = sld [smem:[#allocation5_spill]] (!%p316_p9) }
  0x10   : > { %319 = sbr.rel (%p316_p9) target bundleno = 2827 (0xb0b), region = 60  ;;  %s14696_s12 = smov (!%p316_p9), 125  }
  0x11   : > { %s14695_s18 = smov (!%p316_p9), 127   ;;  %s14717_s20 = smov (!%p316_p9), 122  }
  0x12   : > { %s14697_s21 = smov (!%p316_p9), 126   ;;  %s10063_s25 = smov (!%p316_p9), 119  }
  0x13   : > { %s14689_s26 = smov (!%p316_p9), 124   ;;  %s14687_s29 = smov (!%p316_p9), 96  }
  0x14   : > { %s14691_s30 = smov (!%p316_p9), 113  }
  0x15   : > { %v393_v0 = vld [vmem:[%s14677_s1] sm:$0x3f]  ;;  %s353_s27 = scalar_select %p352_p10, %s10204_s17, 1  ;;  %vm443_vm0 = vcmask 1040384   ;;  %vm444_vm1 = vcmask 1041408   ;;  %v10067_v35 = vmov 65535  }
  0x16   : > { %v10235_v1 = vpack.c.bf16 %v393_v0, %v393_v0  ;;  %v445_v36 = vsel %vm443_vm0, 4294967295, %v10067_v35  ;;  %vm432_vm2 = vcmask 1039360   ;;  %vm439_vm3 = vcmask 23552  }
  0x17   : > { %s9548_s28 = sshll.u32 %s353_s27, 5  ;;  %s14715_s27 = smov 116   ;;  %v10340_v37 = vsel %vm444_vm1, %v445_v36, 0  ;;  %vm690_vm4 = vcmask 1031168   ;;  %vm835_vm5 = vcmask 1022976   ;;  %vm980_vm6 = vcmask 1014784  }
  0x18   : > { %v396_v2 = vunpack.c.l.b16 %v10235_v1  ;;  %s356_s11 = scalar_lea.vmem %s14727_s0, %s9548_s28  ;;  %s10066_s28 = smov 97   ;;  %vm1125_vm7 = vcmask 793600   ;;  %vm1270_vm8 = vcmask 785408   ;;  %vm1415_vm9 = vcmask 777216  }
  0x19   : > { %v359_v4 = vld [vmem:[%s356_s11 + $0x8] sm:$0x77]  ;;  %v358_v5 = vld [vmem:[%s356_s11] sm:$0x77]  ;;  %v360_v6 = vld [vmem:[%s356_s11 + $0x10] sm:$0x77] }
  0x1a   : > { %v10239_v3 = vpack.c.b16 %v396_v2, %v396_v2  ;;  %368 = vst [vmem:[#allocation1 + $0x10] ss:$2 sm:$0xff] %v359_v4  ;;  %v361_v7 = vld [vmem:[%s356_s11 + $0x18] sm:$0x77]  ;;  %s14702_s11 = smov 110   ;;  %vm1560_vm10 = vcmask 769024  }
  0x1b   : > { %366 = vst [vmem:[#allocation1] ss:$2 sm:$0xff] %v358_v5  ;;  %vm1705_vm11 = vcmask 760832   ;;  %vm1854_vm12 = vcmask 539648   ;;  %vm2002_vm13 = vcmask 531456   ;;  %vm2150_vm14 = vcmask 523264  }
  0x1c   : > { %398 = vrot.lane.b32.xlu1 %v10239_v3, %s14696_s12  ;;  %370 = vst [vmem:[#allocation1 + $0x20] ss:$2 sm:$0xff] %v360_v6  ;;  %vm2298_vm15 = vcmask 515072   ;;  %vm2446_vm0 = vcmask 506880   ;;  %s14730_s0 = smov 104  }
  0x1d   : > { %372 = vst [vmem:[#allocation1 + $0x30] ss:$2 sm:$0xff] %v361_v7 }
  0x21   : > { %v375_v8 = vld.sshfl [vmem:[#allocation1 + $0x10] sm:$0xff pattern:$0x75316420]  ;;  %v376_v9 = vld.sshfl [vmem:[#allocation1 + $0x18] sm:$0xff pattern:$0x75316420] }
  0x22   : > { %v390_v10 = vpack.c.bf16 %v376_v9, %v375_v8  ;;  %v373_v11 = vld.sshfl [vmem:[#allocation1] sm:$0xff pattern:$0x75316420]  ;;  %v374_v12 = vld.sshfl [vmem:[#allocation1 + $0x8] sm:$0xff pattern:$0x75316420] }
  0x23   : > { %v389_v13 = vpack.c.bf16 %v374_v12, %v373_v11  ;;  %v377_v14 = vld.sshfl [vmem:[#allocation1 + $0x20] sm:$0xff pattern:$0x75316420]  ;;  %v378_v15 = vld.sshfl [vmem:[#allocation1 + $0x28] sm:$0xff pattern:$0x75316420] }
  0x24   : > { %v407_v16 = vunpack.c.h.b16 %v390_v10  ;;  %v391_v17 = vpack.c.bf16 %v378_v15, %v377_v14  ;;  %v406_v18 = vunpack.c.l.b16 %v390_v10  ;;  %v379_v26 = vld.sshfl [vmem:[#allocation1 + $0x30] sm:$0xff pattern:$0x75316420]  ;;  %v380_v27 = vld.sshfl [vmem:[#allocation1 + $0x38] sm:$0xff pattern:$0x75316420] }
  0x25   : > { %v404_v19 = vunpack.c.l.b16 %v389_v13  ;;  %v405_v25 = vunpack.c.h.b16 %v389_v13  ;;  %v10264_v31 = vpack.c.bf16 %v380_v27, %v379_v26 }
  0x26   : > { %v10246_v20 = vpack.c.b16 %v407_v16, %v407_v16  ;;  %v10248_v21 = vpack.c.b16 %v406_v18, %v406_v18  ;;  %v408_v23 = vunpack.c.l.b16 %v391_v17  ;;  %v409_v24 = vunpack.c.h.b16 %v391_v17 }
  0x27   : > { %v10250_v22 = vpack.c.b16 %v404_v19, %v404_v19  ;;  %v10262_v30 = vpack.c.b16 %v405_v25, %v405_v25  ;;  %v410_v32 = vunpack.c.l.b16 %v10264_v31 }
  0x28   : > { %424 = vrot.lane.b32.xlu2 %v10246_v20, %s14695_s18  ;;  %422 = vrot.lane.b32.xlu1 %v10248_v21, %s14695_s18  ;;  %v10258_v28 = vpack.c.b16 %v408_v23, %v408_v23  ;;  %v10260_v29 = vpack.c.b16 %v409_v24, %v409_v24  ;;  %v10402_v61 = vand.u32 %v10340_v37, %v10246_v20 }
  0x29   : > { %418 = vrot.lane.b32.xlu0 %v10250_v22, %s14695_s18  ;;  %v10273_v33 = vpack.c.b16 %v410_v32, %v410_v32  ;;  %v563_v40 = vand.u32 %v10340_v37, %v10250_v22  ;;  %v10408_v0 = vand.u32 %v10340_v37, %v10248_v21  ;;  %v10430_v11 = vand.u32 %v10340_v37, %v10262_v30 }
  0x2a   : > { %v10352_v43 = vand.u32 %v10340_v37, %v10258_v28 }
  0x2b   : > { %v10434_v12 = vand.u32 %v10340_v37, %v10273_v33 }
  0x30   : > { %426 = vrot.lane.b32.xlu2 %v10258_v28, %s14695_s18  ;;  %428 = vrot.lane.b32.xlu1 %v10260_v29, %s14695_s18 }
  0x31   : > { %420 = vrot.lane.b32.xlu0 %v10262_v30, %s14695_s18 }
  0x38   : > { %674 = vrot.lane.b32.xlu1 %v10239_v3, %s14717_s20  ;;  %676 = vrot.lane.b32.xlu2 %v10250_v22, %s14697_s21  ;;  %s14734_s20 = smov 92  }
  0x39   : > { %430 = vrot.lane.b32.xlu0 %v10273_v33, %s14695_s18  ;;  %s14705_s18 = smov 92  }
  0x40   : > { %686 = vrot.lane.b32.xlu1 %v10260_v29, %s14697_s21  ;;  %680 = vrot.lane.b32.xlu2 %v10248_v21, %s14697_s21 }
  0x41   : > { %678 = vrot.lane.b32.xlu0 %v10262_v30, %s14697_s21 }
  0x48   : > { %823 = vrot.lane.b32.xlu1 %v10262_v30, %s14696_s12  ;;  %682 = vrot.lane.b32.xlu2 %v10246_v20, %s14697_s21 }
  0x49   : > { %684 = vrot.lane.b32.xlu0 %v10258_v28, %s14697_s21 }
  0x50   : > { %821 = vrot.lane.b32.xlu1 %v10250_v22, %s14696_s12  ;;  %825 = vrot.lane.b32.xlu2 %v10248_v21, %s14696_s12 }
  0x51   : > { %688 = vrot.lane.b32.xlu0 %v10273_v33, %s14697_s21  ;;  %s14698_s21 = smov 89  }
  0x58   : > { %833 = vrot.lane.b32.xlu1 %v10273_v33, %s14696_s12  ;;  %827 = vrot.lane.b32.xlu2 %v10246_v20, %s14696_s12 }
  0x59   : > { %819 = vrot.lane.b32.xlu0 %v10239_v3, %s10063_s25  ;;  %s10071_s25 = smov 95  }
  0x60   : > { %972 = vrot.lane.b32.xlu1 %v10246_v20, %s14689_s26  ;;  %829 = vrot.lane.b32.xlu2 %v10258_v28, %s14696_s12 }
  0x61   : > { %831 = vrot.lane.b32.xlu0 %v10260_v29, %s14696_s12  ;;  %s14713_s12 = smov 86  }
  0x68   : > { %974 = vrot.lane.b32.xlu1 %v10258_v28, %s14689_s26  ;;  %964 = vrot.lane.b32.xlu2 %v10239_v3, %s14715_s27  ;;  %s14729_s27 = smov 122  }
  0x69   : > { %970 = vrot.lane.b32.xlu0 %v10248_v21, %s14689_s26 }
  0x70   : > { %976 = vrot.lane.b32.xlu1 %v10260_v29, %s14689_s26  ;;  %966 = vrot.lane.b32.xlu2 %v10250_v22, %s14689_s26 }
  0x71   : > { %968 = vrot.lane.b32.xlu0 %v10262_v30, %s14689_s26 }
  0x78   : > { %1117 = vrot.lane.b32.xlu1 %v10246_v20, %s10066_s28  ;;  %1111 = vrot.lane.b32.xlu2 %v10250_v22, %s10066_s28 }
  0x79   : > { %978 = vrot.lane.b32.xlu0 %v10273_v33, %s14689_s26  ;;  %s10075_s26 = smov 93  }
  0x80   : > { %1115 = vrot.lane.b32.xlu1 %v10248_v21, %s10066_s28  ;;  %1119 = vrot.lane.b32.xlu2 %v10258_v28, %s10066_s28 }
  0x81   : > { %1113 = vrot.lane.b32.xlu0 %v10262_v30, %s10066_s28 }
  0x82   : > { %v425_v34 = vpop.permute.xlu2 %424 }
  0x88   : > { %1258 = vrot.lane.b32.xlu1 %v10262_v30, %s14687_s29  ;;  %1121 = vrot.lane.b32.xlu2 %v10260_v29, %s10066_s28 }
  0x89   : > { %1109 = vrot.lane.b32.xlu0 %v10239_v3, %s14691_s30  ;;  %s14700_s30 = smov 98  }
  0x8a   : > { %v427_v38 = vpop.permute.xlu2 %426 }
  0x8b   : > { %v436_v39 = vsel %vm432_vm2, %v425_v34, %v427_v38 }
  0x8c   : > { %v457_v41 = vand.u32 %v10340_v37, %v436_v39 }
  0x8e   : > { %514 = vmatpush.bf16.msra.mxu3 %v457_v41  ;;  %v10348_v42 = vpop.permute.xlu1 %398 }
  0x90   : > { %1260 = vrot.lane.b32.xlu1 %v10248_v21, %s14687_s29  ;;  %1254 = vrot.lane.b32.xlu2 %v10239_v3, %s14702_s11  ;;  %s14718_s11 = smov 80  }
  0x91   : > { %8048 = vmatmul.msk.bf16.vlgmr.msra.gmra.mxu3 %vm439_vm3, %v10348_v42  ;;  %1256 = vrot.lane.b32.xlu0 %v10250_v22, %s14687_s29 }
  0x92   : > { %590 = vmatpush.bf16.msrb.mxu3 %v563_v40  ;;  %v677_v44 = vpop.permute.xlu2 %676 }
  0x96   : > { %642 = vmatpush.bf16.msra.mxu3 %v10352_v43 }
  0x98   : > { %1262 = vrot.lane.b32.xlu1 %v10246_v20, %s14687_s29  ;;  %1264 = vrot.lane.b32.xlu2 %v10258_v28, %s14687_s29 }
  0x99   : > { %1123 = vrot.lane.b32.xlu0 %v10273_v33, %s10066_s28  ;;  %s10072_s28 = smov 107  }
  0x9a   : > { %v423_v45 = vpop.permute.xlu1 %422  ;;  %v10378_v49 = vpop.permute.xlu2 %680 }
  0x9b   : > { %v419_v46 = vpop.permute.xlu0 %418  ;;  %v435_v47 = vsel %vm432_vm2, %v423_v45, %v425_v34  ;;  %v10475_v34 = vand.u32 %v10340_v37, %v10260_v29 }
  0x9c   : > { %v454_v53 = vand.u32 %v10340_v37, %v435_v47 }
  0xa0   : > { %1405 = vrot.lane.b32.xlu1 %v10248_v21, %s10071_s25  ;;  %1268 = vrot.lane.b32.xlu2 %v10273_v33, %s14687_s29 }
  0xa1   : > { %8052 = vmatmul.msk.bf16.vlgmr.msrb.gmra.mxu3 %vm439_vm3, %v10235_v1  ;;  %1266 = vrot.lane.b32.xlu0 %v10260_v29, %s14687_s29  ;;  %s10074_s29 = smov 94  }
  0xa2   : > { %v429_v48 = vpop.permute.xlu1 %428  ;;  %v10398_v59 = vpop.permute.xlu2 %682 }
  0xa3   : > { %v421_v50 = vpop.permute.xlu0 %420  ;;  %v437_v54 = vsel %vm432_vm2, %v427_v38, %v429_v48 }
  0xa4   : > { %v433_v51 = vsel %vm432_vm2, %v419_v46, %v421_v50  ;;  %v434_v52 = vsel %vm432_vm2, %v421_v50, %v423_v45  ;;  %v460_v57 = vand.u32 %v10340_v37, %v437_v54  ;;  %v693_v46 = vsel %vm690_vm4, %v10378_v49, %v10398_v59 }
  0xa5   : > { %v448_v55 = vand.u32 %v10340_v37, %v433_v51  ;;  %v451_v56 = vand.u32 %v10340_v37, %v434_v52 }
  0xa7   : > { %475 = vmatpush.bf16.msra.mxu0 %v448_v55  ;;  %488 = vmatpush.bf16.msra.mxu1 %v451_v56 }
  0xa8   : > { %1407 = vrot.lane.b32.xlu1 %v10246_v20, %s10071_s25  ;;  %1399 = vrot.lane.b32.xlu2 %v10239_v3, %s10072_s28  ;;  %s14716_s28 = smov 104  }
  0xa9   : > { %1403 = vrot.lane.b32.xlu0 %v10262_v30, %s10071_s25 }
  0xaa   : > { %8045 = vmatmul.msk.bf16.vlgmr.msra.gmra.mxu0 %vm439_vm3, %v10348_v42  ;;  %8046 = vmatmul.msk.bf16.vlgmr.msra.gmra.mxu1 %vm439_vm3, %v10348_v42  ;;  %v10396_v58 = vpop.permute.xlu1 %674  ;;  %v826_v8 = vpop.permute.xlu2 %825 }
  0xab   : > { %501 = vmatpush.bf16.msrb.mxu0 %v454_v53  ;;  %v431_v60 = vpop.permute.xlu0 %430 }
  0xac   : > { %v466_v62 = vand.u32 %v10340_v37, %v431_v60  ;;  %v438_v63 = vsel %vm432_vm2, %v429_v48, %v431_v60  ;;  %v707_v48 = vand.u32 %v693_v46, %v10340_v37  ;;  %vm2594_vm2 = vcmask 285696  }
  0xad   : > { %v463_v2 = vand.u32 %v10340_v37, %v438_v63 }
  0xae   : > { %553 = vmatpush.bf16.msra.mxu2 %v466_v62 }
  0xaf   : > { %527 = vmatpush.bf16.msra.mxu0 %v460_v57  ;;  %540 = vmatpush.bf16.msrb.mxu1 %v463_v2 }
  0xb0   : > { %1409 = vrot.lane.b32.xlu1 %v10258_v28, %s10071_s25  ;;  %1411 = vrot.lane.b32.xlu2 %v10260_v29, %s10071_s25 }
  0xb1   : > { %8051 = vmatmul.msk.bf16.vlgmr.msra.gmra.mxu2 %vm439_vm3, %v10348_v42  ;;  %8056 = vmatmul.msk.bf16.vlgmr.msra.gmra.mxu3 %vm439_vm3, %v10235_v1 }
  0xb2   : > { %629 = vmatpush.bf16.msrb.mxu2 %v10402_v61  ;;  %v687_v4 = vpop.permute.xlu1 %686  ;;  %1401 = vrot.lane.b32.xlu0 %v10250_v22, %s10071_s25  ;;  %v10450_v17 = vpop.permute.xlu2 %827 }
  0xb3   : > { %616 = vmatpush.bf16.msra.mxu1 %v10408_v0  ;;  %v679_v5 = vpop.permute.xlu0 %678  ;;  %v838_v18 = vsel %vm835_vm5, %v826_v8, %v10450_v17 }
  0xb4   : > { %v691_v6 = vsel %vm690_vm4, %v677_v44, %v679_v5  ;;  %v692_v7 = vsel %vm690_vm4, %v679_v5, %v10378_v49  ;;  %v852_v26 = vand.u32 %v838_v18, %v10340_v37 }
  0xb5   : > { %v701_v9 = vand.u32 %v691_v6, %v10340_v37  ;;  %v704_v10 = vand.u32 %v692_v7, %v10340_v37 }
  0xb7   : > { %741 = vmatpush.bf16.msrb.mxu3 %v704_v10  ;;  %728 = vmatpush.bf16.msra.mxu2 %v701_v9 }
  0xb8   : > { %1544 = vrot.lane.b32.xlu1 %v10239_v3, %s14716_s28  ;;  %1550 = vrot.lane.b32.xlu2 %v10248_v21, %s10074_s29  ;;  %s14728_s28 = smov 80  }
  0xba   : > { %8047 = vmatmul.msk.bf16.vlgmr.msrb.gmra.mxu0 %vm439_vm3, %v10348_v42  ;;  %8050 = vmatmul.msk.bf16.vlgmr.msrb.gmra.mxu1 %vm439_vm3, %v10348_v42  ;;  %v824_v13 = vpop.permute.xlu1 %823 }
  0xbb   : > { %v685_v14 = vpop.permute.xlu0 %684  ;;  %603 = vmatpush.bf16.msrb.mxu0 %v10430_v11  ;;  %668 = vmatpush.bf16.msrb.mxu1 %v10434_v12  ;;  %v837_v38 = vsel %vm835_vm5, %v824_v13, %v826_v8 }
  0xbc   : > { %v695_v15 = vsel %vm690_vm4, %v685_v14, %v687_v4  ;;  %1413 = vrot.lane.b32.xlu0 %v10273_v33, %s10071_s25  ;;  %v694_v24 = vsel %vm690_vm4, %v10398_v59, %v685_v14  ;;  %v849_v40 = vand.u32 %v837_v38, %v10340_v37 }
  0xbd   : > { %v713_v16 = vand.u32 %v695_v15, %v10340_v37  ;;  %v710_v32 = vand.u32 %v694_v24, %v10340_v37 }
  0xc0   : > { %1546 = vrot.lane.b32.xlu1 %v10250_v22, %s10074_s29  ;;  %1548 = vrot.lane.b32.xlu2 %v10262_v30, %s10074_s29 }
  0xc1   : > { %8055 = vmatmul.msk.bf16.vlgmr.msrb.gmra.mxu2 %vm439_vm3, %v10235_v1  ;;  %8060 = vmatmul.msk.bf16.vlgmr.msrb.gmra.mxu3 %vm439_vm3, %v10396_v58 }
  0xc2   : > { %780 = vmatpush.bf16.msrb.mxu2 %v713_v16  ;;  %v822_v19 = vpop.permute.xlu1 %821 }
  0xc3   : > { %v10460_v23 = vpop.permute.xlu0 %688  ;;  %v836_v47 = vsel %vm835_vm5, %v822_v19, %v824_v13 }
  0xc4   : > { %v696_v25 = vsel %vm690_vm4, %v687_v4, %v10460_v23  ;;  %1552 = vrot.lane.b32.xlu0 %v10246_v20, %s10074_s29  ;;  %v846_v50 = vand.u32 %v836_v47, %v10340_v37  ;;  %v719_v62 = vand.u32 %v10460_v23, %v10340_v37  ;;  %vm2742_vm4 = vcmask 277504  }
  0xc5   : > { %v716_v27 = vand.u32 %v696_v25, %v10340_v37 }
  0xc7   : > { %793 = vmatpush.bf16.msra.mxu3 %v716_v27 }
  0xc8   : > { %1691 = vrot.lane.b32.xlu1 %v10250_v22, %s10075_s26  ;;  %1558 = vrot.lane.b32.xlu2 %v10273_v33, %s10074_s29 }
  0xca   : > { %8049 = vmatmul.msk.bf16.vlgmr.msra.gmra.mxu0 %vm439_vm3, %v10348_v42  ;;  %8054 = vmatmul.msk.bf16.vlgmr.msra.gmra.mxu1 %vm439_vm3, %v10235_v1  ;;  %v834_v36 = vpop.permute.xlu1 %833  ;;  %v830_v42 = vpop.permute.xlu2 %829 }
  0xcb   : > { %899 = vmatpush.bf16.msrb.mxu3 %v852_v26  ;;  %v10484_v39 = vpop.permute.xlu0 %819  ;;  %655 = vmatpush.bf16.msra.mxu0 %v10475_v34  ;;  %v864_v41 = vand.u32 %v834_v36, %v10340_v37  ;;  %v839_v10 = vsel %vm835_vm5, %v10450_v17, %v830_v42 }
  0xcc   : > { %767 = vmatpush.bf16.msra.mxu1 %v710_v32  ;;  %1554 = vrot.lane.b32.xlu0 %v10258_v28, %s10074_s29  ;;  %v855_v16 = vand.u32 %v839_v10, %v10340_v37 }
  0xd0   : > { %1699 = vrot.lane.b32.xlu1 %v10258_v28, %s10075_s26  ;;  %1693 = vrot.lane.b32.xlu2 %v10262_v30, %s10075_s26 }
  0xd1   : > { %8059 = vmatmul.msk.bf16.vlgmr.msra.gmra.mxu2 %vm439_vm3, %v10396_v58  ;;  %8064 = vmatmul.msk.bf16.vlgmr.msra.gmra.mxu3 %vm439_vm3, %v10396_v58 }
  0xd2   : > { %886 = vmatpush.bf16.msra.mxu2 %v849_v40  ;;  %951 = vmatpush.bf16.msra.mxu3 %v864_v41  ;;  %v973_v44 = vpop.permute.xlu1 %972  ;;  %v10517_v51 = vpop.permute.xlu2 %964 }
  0xd3   : > { %v832_v45 = vpop.permute.xlu0 %831 }
  0xd4   : > { %1556 = vrot.lane.b32.xlu0 %v10260_v29, %s10074_s29  ;;  %v841_v52 = vsel %vm835_vm5, %v832_v45, %v834_v36  ;;  %s14693_s29 = smov 101   ;;  %v840_v60 = vsel %vm835_vm5, %v830_v42, %v832_v45  ;;  %vm2890_vm5 = vcmask 269312  }
  0xd5   : > { %v861_v55 = vand.u32 %v841_v52, %v10340_v37  ;;  %v858_v63 = vand.u32 %v840_v60, %v10340_v37 }
  0xd8   : > { %1701 = vrot.lane.b32.xlu1 %v10260_v29, %s10075_s26  ;;  %1689 = vrot.lane.b32.xlu2 %v10239_v3, %s14693_s29  ;;  %s10078_s29 = smov 66  }
  0xda   : > { %8053 = vmatmul.msk.bf16.vlgmr.msrb.gmra.mxu0 %vm439_vm3, %v10235_v1  ;;  %8058 = vmatmul.msk.bf16.vlgmr.msrb.gmra.mxu1 %vm439_vm3, %v10235_v1  ;;  %v10515_v49 = vpop.permute.xlu1 %974  ;;  %v967_v57 = vpop.permute.xlu2 %966 }
  0xdb   : > { %754 = vmatpush.bf16.msrb.mxu0 %v707_v48  ;;  %v971_v53 = vpop.permute.xlu0 %970  ;;  %873 = vmatpush.bf16.msrb.mxu1 %v846_v50  ;;  %v984_v54 = vsel %vm980_vm6, %v973_v44, %v10515_v49 }
  0xdc   : > { %1697 = vrot.lane.b32.xlu0 %v10246_v20, %s10075_s26  ;;  %v1000_v56 = vand.u32 %v984_v54, %v10340_v37  ;;  %v983_v5 = vsel %vm980_vm6, %v971_v53, %v973_v44 }
  0xdd   : > { %v997_v7 = vand.u32 %v983_v5, %v10340_v37 }
  0xe0   : > { %1834 = vrot.lane.b32.xlu1 %v10239_v3, %s14700_s30  ;;  %1838 = vrot.lane.b32.xlu2 %v10250_v22, %s10078_s29  ;;  %s10088_s30 = smov 83  }
  0xe1   : > { %8063 = vmatmul.msk.bf16.vlgmr.msrb.gmra.mxu2 %vm439_vm3, %v10396_v58  ;;  %8068 = vmatmul.msk.bf16.vlgmr.msrb.gmra.mxu3 %vm439_vm3, %v10484_v39 }
  0xe2   : > { %938 = vmatpush.bf16.msrb.mxu2 %v861_v55  ;;  %1057 = vmatpush.bf16.msrb.mxu3 %v1000_v56  ;;  %v10548_v2 = vpop.permute.xlu1 %976  ;;  %v1112_v4 = vpop.permute.xlu2 %1111 }
  0xe3   : > { %v969_v59 = vpop.permute.xlu0 %968  ;;  %v985_v52 = vsel %vm980_vm6, %v10515_v49, %v10548_v2 }
  0xe4   : > { %1695 = vrot.lane.b32.xlu0 %v10248_v21, %s10075_s26  ;;  %v982_v13 = vsel %vm980_vm6, %v969_v59, %v971_v53  ;;  %v981_v32 = vsel %vm980_vm6, %v967_v57, %v969_v59  ;;  %v1003_v55 = vand.u32 %v985_v52, %v10340_v37 }
  0xe5   : > { %v994_v18 = vand.u32 %v982_v13, %v10340_v37  ;;  %v991_v38 = vand.u32 %v981_v32, %v10340_v37 }
  0xe8   : > { %1846 = vrot.lane.b32.xlu1 %v10258_v28, %s10078_s29  ;;  %1703 = vrot.lane.b32.xlu2 %v10273_v33, %s10075_s26  ;;  %s10079_s26 = smov 65  }
  0xea   : > { %8057 = vmatmul.msk.bf16.vlgmr.msra.gmra.mxu0 %vm439_vm3, %v10235_v1  ;;  %8062 = vmatmul.msk.bf16.vlgmr.msra.gmra.mxu1 %vm439_vm3, %v10396_v58  ;;  %v1118_v1 = vpop.permute.xlu1 %1117  ;;  %v1120_v8 = vpop.permute.xlu2 %1119 }
  0xeb   : > { %806 = vmatpush.bf16.msra.mxu0 %v719_v62  ;;  %v979_v6 = vpop.permute.xlu0 %978  ;;  %925 = vmatpush.bf16.msra.mxu1 %v858_v63  ;;  %v1129_v44 = vsel %vm1125_vm7, %v1118_v1, %v1120_v8 }
  0xec   : > { %1840 = vrot.lane.b32.xlu0 %v10262_v30, %s10078_s29  ;;  %v1009_v24 = vand.u32 %v979_v6, %v10340_v37  ;;  %v986_v36 = vsel %vm980_vm6, %v10548_v2, %v979_v6  ;;  %vm3038_vm6 = vcmask 261120  }
  0xed   : > { %v1006_v40 = vand.u32 %v986_v36, %v10340_v37 }
  0xf0   : > { %1850 = vrot.lane.b32.xlu1 %v10273_v33, %s10078_s29  ;;  %1848 = vrot.lane.b32.xlu2 %v10260_v29, %s10078_s29 }
  0xf1   : > { %8067 = vmatmul.msk.bf16.vlgmr.msra.gmra.mxu2 %vm439_vm3, %v10484_v39  ;;  %8072 = vmatmul.msk.bf16.vlgmr.msra.gmra.mxu3 %vm439_vm3, %v10484_v39 }
  0xf2   : > { %1044 = vmatpush.bf16.msra.mxu2 %v997_v7  ;;  %v10582_v17 = vpop.permute.xlu1 %1115  ;;  %v10584_v19 = vpop.permute.xlu2 %1121 }
  0xf3   : > { %v10562_v9 = vpop.permute.xlu0 %1113  ;;  %v1130_v23 = vsel %vm1125_vm7, %v1120_v8, %v10584_v19  ;;  %v1128_v54 = vsel %vm1125_vm7, %v10582_v17, %v1118_v1 }
  0xf4   : > { %v1126_v14 = vsel %vm1125_vm7, %v1112_v4, %v10562_v9  ;;  %1842 = vrot.lane.b32.xlu0 %v10248_v21, %s10078_s29  ;;  %v1148_v25 = vand.u32 %v1130_v23, %v10340_v37  ;;  %v1142_v56 = vand.u32 %v1128_v54, %v10340_v37  ;;  %v1127_v5 = vsel %vm1125_vm7, %v10562_v9, %v10582_v17 }
  0xf5   : > { %v1136_v15 = vand.u32 %v1126_v14, %v10340_v37  ;;  %v1139_v7 = vand.u32 %v1127_v5, %v10340_v37 }
  0xf7   : > { %1163 = vmatpush.bf16.msra.mxu3 %v1136_v15 }
  0xf8   : > { %1984 = vrot.lane.b32.xlu1 %v10239_v3, %s10071_s25  ;;  %1988 = vrot.lane.b32.xlu2 %v10262_v30, %s10079_s26  ;;  %s10080_s25 = smov 64  }
  0xfa   : > { %8061 = vmatmul.msk.bf16.vlgmr.msrb.gmra.mxu0 %vm439_vm3, %v10396_v58  ;;  %8066 = vmatmul.msk.bf16.vlgmr.msrb.gmra.mxu1 %vm439_vm3, %v10484_v39  ;;  %v1259_v26 = vpop.permute.xlu1 %1258  ;;  %v10615_v42 = vpop.permute.xlu2 %1254 }
  0xfb   : > { %912 = vmatpush.bf16.msrb.mxu0 %v855_v16  ;;  %1031 = vmatpush.bf16.msrb.mxu1 %v994_v18  ;;  %v10598_v27 = vpop.permute.xlu0 %1109  ;;  %v1836_v18 = vunpack.c.h.b16 %v10264_v31 }
  0xfc   : > { %1844 = vrot.lane.b32.xlu0 %v10246_v20, %s10078_s29 }
  0xfd   : > { %v10686_v23 = vpack.c.b16 %v1836_v18, %v1836_v18 }
 0x100   : > { %1986 = vrot.lane.b32.xlu2 %v10250_v22, %s10079_s26  ;;  %1852 = vrot.lane.b32.xlu1 %v10686_v23, %s10078_s29  ;;  %s10081_s29 = smov 63  }
 0x101   : > { %8071 = vmatmul.msk.bf16.vlgmr.msrb.gmra.mxu2 %vm439_vm3, %v10484_v39  ;;  %8076 = vmatmul.msk.bf16.vlgmr.msrb.gmra.mxu3 %vm439_vm3, %v10517_v51 }
 0x102   : > { %1096 = vmatpush.bf16.msrb.mxu2 %v1009_v24  ;;  %1215 = vmatpush.bf16.msrb.mxu3 %v1148_v25  ;;  %v10613_v41 = vpop.permute.xlu1 %1260  ;;  %v10630_v48 = vpop.permute.xlu2 %1264 }
 0x103   : > { %v1272_v45 = vsel %vm1270_vm8, %v1259_v26, %v10613_v41  ;;  %v1257_v46 = vpop.permute.xlu0 %1256 }
 0x104   : > { %1990 = vrot.lane.b32.xlu0 %v10248_v21, %s10079_s26  ;;  %v1284_v47 = vand.u32 %v1272_v45, %v10340_v37  ;;  %v1271_v59 = vsel %vm1270_vm8, %v1257_v46, %v1259_v26 }
 0x108   : > { %1996 = vrot.lane.b32.xlu2 %v10260_v29, %s10079_s26  ;;  %1994 = vrot.lane.b32.xlu1 %v10258_v28, %s10079_s26 }
 0x10a   : > { %8065 = vmatmul.msk.bf16.vlgmr.msra.gmra.mxu0 %vm439_vm3, %v10396_v58  ;;  %8070 = vmatmul.msk.bf16.vlgmr.msra.gmra.mxu1 %vm439_vm3, %v10484_v39  ;;  %v1145_v58 = vand.u32 %v1129_v44, %v10340_v37  ;;  %v10647_v57 = vpop.permute.xlu1 %1262  ;;  %v10649_v49 = vpop.permute.xlu2 %1268 }
 0x10b   : > { %1018 = vmatpush.bf16.msra.mxu0 %v991_v38  ;;  %1083 = vmatpush.bf16.msra.mxu1 %v1006_v40  ;;  %v1124_v50 = vpop.permute.xlu0 %1123  ;;  %v1274_v45 = vsel %vm1270_vm8, %v10647_v57, %v10630_v48 }
 0x10c   : > { %1992 = vrot.lane.b32.xlu0 %v10246_v20, %s10079_s26  ;;  %v1154_v10 = vand.u32 %v1124_v50, %v10340_v37  ;;  %v1131_v38 = vsel %vm1125_vm7, %v10584_v19, %v1124_v50  ;;  %v1290_v52 = vand.u32 %v1274_v45, %v10340_v37  ;;  %vm3186_vm7 = vcmask 252928  }
 0x10d   : > { %v1151_v46 = vand.u32 %v1131_v38, %v10340_v37 }
 0x110   : > { %2000 = vrot.lane.b32.xlu2 %v10686_v23, %s10079_s26  ;;  %2140 = vrot.lane.b32.xlu1 %v10246_v20, %s10080_s25 }
 0x111   : > { %8075 = vmatmul.msk.bf16.vlgmr.msra.gmra.mxu2 %vm439_vm3, %v10517_v51  ;;  %8080 = vmatmul.msk.bf16.vlgmr.msra.gmra.mxu3 %vm439_vm3, %v10598_v27 }
 0x112   : > { %1202 = vmatpush.bf16.msra.mxu2 %v1145_v58  ;;  %1321 = vmatpush.bf16.msra.mxu3 %v1284_v47  ;;  %v1406_v4 = vpop.permute.xlu1 %1405  ;;  %v10694_v36 = vpop.permute.xlu2 %1399 }
 0x113   : > { %v1267_v60 = vpop.permute.xlu0 %1266 }
 0x114   : > { %v10635_v53 = vpop.f32.mrf.mxu3  ;;  %1998 = vrot.lane.b32.xlu0 %v10273_v33, %s10079_s26  ;;  %v1276_v63 = vsel %vm1270_vm8, %v1267_v60, %v10649_v49  ;;  %v1275_v15 = vsel %vm1270_vm8, %v10630_v48, %v1267_v60 }
 0x115   : > { %v1296_v2 = vand.u32 %v1276_v63, %v10340_v37  ;;  %v1293_v24 = vand.u32 %v1275_v15, %v10340_v37 }
 0x118   : > { %2132 = vrot.lane.b32.xlu2 %v10239_v3, %s14705_s18  ;;  %2142 = vrot.lane.b32.xlu1 %v10258_v28, %s10080_s25  ;;  %s10096_s18 = smov 71  }
 0x11a   : > { %8069 = vmatmul.msk.bf16.vlgmr.msrb.gmra.mxu0 %vm439_vm3, %v10484_v39  ;;  %8074 = vmatmul.msk.bf16.vlgmr.msrb.gmra.mxu1 %vm439_vm3, %v10517_v51  ;;  %v1281_v39 = vand.u32 %v1271_v59, %v10340_v37  ;;  %v10677_v9 = vpop.permute.xlu1 %1407  ;;  %v10717_v19 = vpop.permute.xlu2 %1411 }
 0x11b   : > { %1070 = vmatpush.bf16.msrb.mxu0 %v1003_v55  ;;  %1189 = vmatpush.bf16.msrb.mxu1 %v1142_v56  ;;  %v1404_v14 = vpop.permute.xlu0 %1403  ;;  %v1418_v16 = vsel %vm1415_vm9, %v1406_v4, %v10677_v9 }
 0x11c   : > { %v518_v62 = vpop.f32.mrf.mxu3  ;;  %2138 = vrot.lane.b32.xlu0 %v10248_v21, %s10080_s25  ;;  %v1432_v25 = vand.u32 %v1418_v16, %v10340_v37  ;;  %v1417_v50 = vsel %vm1415_vm9, %v1404_v14, %v1406_v4 }
 0x11d   : > { %v1429_v56 = vand.u32 %v1417_v50, %v10340_v37 }
 0x120   : > { %2134 = vrot.lane.b32.xlu2 %v10250_v22, %s10080_s25  ;;  %2148 = vrot.lane.b32.xlu1 %v10686_v23, %s10080_s25 }
 0x121   : > { %8079 = vmatmul.msk.bf16.vlgmr.msrb.gmra.mxu2 %vm439_vm3, %v10517_v51  ;;  %8084 = vmatmul.msk.bf16.vlgmr.msrb.gmra.mxu3 %vm439_vm3, %v10598_v27 }
 0x122   : > { %1308 = vmatpush.bf16.msrb.mxu2 %v1281_v39  ;;  %1373 = vmatpush.bf16.msrb.mxu3 %v1296_v2  ;;  %v10738_v63 = vpop.permute.xlu1 %1409  ;;  %v1273_v2 = vsel %vm1270_vm8, %v10613_v41, %v10647_v57  ;;  %vm3334_vm8 = vcmask 31744  }
 0x124   : > { %v592_v6 = vpop.f32.mrf.mxu3  ;;  %2136 = vrot.lane.b32.xlu0 %v10262_v30, %s10080_s25  ;;  %v1402_v31 = vpop.permute.xlu0 %1401 }
 0x127   : > { %v477_v1 = vpop.f32.mrf.mxu0  ;;  %v10668_v8 = vpop.f32.mrf.mxu1 }
 0x128   : > { %v10671_v13 = vadd.f32 %v592_v6, %v477_v1  ;;  %v1416_v6 = vsel %vm1415_vm9, %v1402_v31, %v1404_v14  ;;  %v1287_v1 = vand.u32 %v1273_v2, %v10340_v37  ;;  %2144 = vrot.lane.b32.xlu2 %v10260_v29, %s10080_s25  ;;  %2284 = vrot.lane.b32.xlu1 %v10262_v30, %s10081_s29 }
 0x129   : > { %v1426_v16 = vand.u32 %v1416_v6, %v10340_v37 }
 0x12a   : > { %8073 = vmatmul.msk.bf16.vlgmr.msra.gmra.mxu0 %vm439_vm3, %v10517_v51  ;;  %8078 = vmatmul.msk.bf16.vlgmr.msra.gmra.mxu1 %vm439_vm3, %v10517_v51 }
 0x12b   : > { %1176 = vmatpush.bf16.msra.mxu0 %v1139_v7  ;;  %1241 = vmatpush.bf16.msra.mxu1 %v1154_v10 }
 0x12c   : > { %v594_v17 = vpop.f32.mrf.mxu3  ;;  %2146 = vrot.lane.b32.xlu0 %v10273_v33, %s10080_s25  ;;  %s14711_s25 = smov 62  }
 0x12e   : > { %v1414_v48 = vpop.permute.xlu0 %1413 }
 0x12f   : > { %v479_v26 = vpop.f32.mrf.mxu0  ;;  %v492_v32 = vpop.f32.mrf.mxu1  ;;  %v1444_v59 = vand.u32 %v1414_v48, %v10340_v37  ;;  %v1421_v17 = vsel %vm1415_vm9, %v10717_v19, %v1414_v48  ;;  %v1420_v48 = vsel %vm1415_vm9, %v10738_v63, %v10717_v19 }
 0x130   : > { %v1441_v32 = vand.u32 %v1421_v17, %v10340_v37  ;;  %2288 = vrot.lane.b32.xlu2 %v10246_v20, %s10081_s29  ;;  %2280 = vrot.lane.b32.xlu1 %v10239_v3, %s14698_s21  ;;  %s10086_s21 = smov 35  }
 0x131   : > { %8083 = vmatmul.msk.bf16.vlgmr.msra.gmra.mxu2 %vm439_vm3, %v10598_v27  ;;  %8088 = vmatmul.msk.bf16.vlgmr.msra.gmra.mxu3 %vm439_vm3, %v10615_v42 }
 0x132   : > { %1360 = vmatpush.bf16.msra.mxu2 %v1293_v24  ;;  %1479 = vmatpush.bf16.msra.mxu3 %v1432_v25 }
 0x134   : > { %v10702_v40 = vpop.f32.mrf.mxu2  ;;  %v644_v44 = vpop.f32.mrf.mxu3  ;;  %2282 = vrot.lane.b32.xlu0 %v10250_v22, %s10081_s29 }
 0x136   : > { %v10740_v39 = vpop.permute.xlu0 %1552 }
 0x137   : > { %v503_v58 = vpop.f32.mrf.mxu0  ;;  %v10710_v47 = vpop.f32.mrf.mxu1 }
 0x138   : > { %2286 = vrot.lane.b32.xlu2 %v10248_v21, %s10081_s29  ;;  %2430 = vrot.lane.b32.xlu1 %v10250_v22, %s14711_s25 }
 0x13a   : > { %8077 = vmatmul.msk.bf16.vlgmr.msrb.gmra.mxu0 %vm439_vm3, %v10517_v51  ;;  %8082 = vmatmul.msk.bf16.vlgmr.msrb.gmra.mxu1 %vm439_vm3, %v10598_v27  ;;  %v10732_v51 = vpop.permute.xlu2 %1550 }
 0x13b   : > { %1228 = vmatpush.bf16.msrb.mxu0 %v1151_v46  ;;  %1347 = vmatpush.bf16.msrb.mxu1 %v1290_v52 }
 0x13c   : > { %v557_v54 = vpop.f32.mrf.mxu2  ;;  %v646_v55 = vpop.f32.mrf.mxu3  ;;  %2290 = vrot.lane.b32.xlu0 %v10258_v28, %s10081_s29 }
 0x13d   : > { %v1299_v54 = vand.u32 %v10649_v49, %v10340_v37 }
 0x13e   : > { %v10769_v18 = vpop.permute.xlu0 %1554 }
 0x13f   : > { %v505_v60 = vpop.f32.mrf.mxu0  ;;  %v544_v62 = vpop.f32.mrf.mxu1  ;;  %v1564_v24 = vsel %vm1560_vm10, %v10740_v39, %v10769_v18 }
 0x140   : > { %v1580_v31 = vand.u32 %v1564_v24, %v10340_v37  ;;  %2432 = vrot.lane.b32.xlu2 %v10262_v30, %s14711_s25  ;;  %2294 = vrot.lane.b32.xlu1 %v10273_v33, %s10081_s29 }
 0x141   : > { %8087 = vmatmul.msk.bf16.vlgmr.msrb.gmra.mxu2 %vm439_vm3, %v10615_v42  ;;  %8092 = vmatmul.msk.bf16.vlgmr.msrb.gmra.mxu3 %vm439_vm3, %v10615_v42 }
 0x142   : > { %1466 = vmatpush.bf16.msrb.mxu2 %v1429_v56  ;;  %1531 = vmatpush.bf16.msrb.mxu3 %v1444_v59  ;;  %v10761_v14 = vpop.permute.xlu2 %1548  ;;  %v1438_v59 = vand.u32 %v1420_v48, %v10340_v37 }
 0x144   : > { %v631_v4 = vpop.f32.mrf.mxu2  ;;  %v743_v5 = vpop.f32.mrf.mxu3  ;;  %2292 = vrot.lane.b32.xlu0 %v10260_v29, %s10081_s29 }
 0x145   : > { %v10749_v7 = vadd.f32 %v631_v4, %v10635_v53  ;;  %v10767_v53 = vpop.permute.xlu1 %1544 }
 0x146   : > { %v10819_v2 = vpop.permute.xlu0 %1556 }
 0x147   : > { %v529_v10 = vpop.f32.mrf.mxu0  ;;  %v618_v15 = vpop.f32.mrf.mxu1 }
 0x148   : > { %v10757_v41 = vadd.f32 %v644_v44, %v529_v10  ;;  %v10759_v57 = vadd.f32 %v618_v15, %v503_v58  ;;  %2296 = vrot.lane.b32.xlu2 %v10686_v23, %s10081_s29  ;;  %2438 = vrot.lane.b32.xlu1 %v10258_v28, %s14711_s25  ;;  %s10087_s29 = smov 34  }
 0x14a   : > { %8081 = vmatmul.msk.bf16.vlgmr.msra.gmra.mxu0 %vm439_vm3, %v10598_v27  ;;  %8086 = vmatmul.msk.bf16.vlgmr.msra.gmra.mxu1 %vm439_vm3, %v10598_v27  ;;  %v10784_v45 = vpop.permute.xlu2 %1558 }
 0x14b   : > { %1334 = vmatpush.bf16.msra.mxu0 %v1287_v1  ;;  %1453 = vmatpush.bf16.msra.mxu1 %v1426_v16  ;;  %v1419_v16 = vsel %vm1415_vm9, %v10677_v9, %v10738_v63  ;;  %vm3630_vm9 = vcmask 15360  }
 0x14c   : > { %v633_v25 = vpop.f32.mrf.mxu2  ;;  %v745_v26 = vpop.f32.mrf.mxu3  ;;  %2428 = vrot.lane.b32.xlu0 %v10239_v3, %s14713_s12  ;;  %s14739_s12 = smov 62  }
 0x14d   : > { %v10790_v46 = vpop.permute.xlu1 %1546  ;;  %v1562_v25 = vsel %vm1560_vm10, %v10761_v14, %v10732_v51 }
 0x14e   : > { %v10838_v15 = vpop.permute.xlu0 %1697 }
 0x14f   : > { %v531_v38 = vpop.f32.mrf.mxu0  ;;  %v620_v44 = vpop.f32.mrf.mxu1 }
 0x150   : > { %v1574_v44 = vand.u32 %v1562_v25, %v10340_v37  ;;  %2440 = vrot.lane.b32.xlu2 %v10260_v29, %s14711_s25  ;;  %2442 = vrot.lane.b32.xlu1 %v10273_v33, %s14711_s25 }
 0x151   : > { %8091 = vmatmul.msk.bf16.vlgmr.msra.gmra.mxu2 %vm439_vm3, %v10615_v42  ;;  %8096 = vmatmul.msk.bf16.vlgmr.msra.gmra.mxu3 %vm439_vm3, %v10694_v36 }
 0x152   : > { %1518 = vmatpush.bf16.msra.mxu2 %v1441_v32  ;;  %1637 = vmatpush.bf16.msra.mxu3 %v1580_v31  ;;  %v1435_v32 = vand.u32 %v1419_v16, %v10340_v37 }
 0x154   : > { %v730_v58 = vpop.f32.mrf.mxu2  ;;  %v795_v52 = vpop.f32.mrf.mxu3  ;;  %2434 = vrot.lane.b32.xlu0 %v10248_v21, %s14711_s25 }
 0x155   : > { %v10798_v50 = vadd.f32 %v730_v58, %v10671_v13  ;;  %v10811_v13 = vpop.permute.xlu2 %1693  ;;  %v1692_v62 = vpop.permute.xlu1 %1691 }
 0x156   : > { %v10869_v58 = vpop.permute.xlu0 %1695 }
 0x157   : > { %v605_v55 = vpop.f32.mrf.mxu0  ;;  %v670_v56 = vpop.f32.mrf.mxu1 }
 0x158   : > { %v606_v19 = vadd.f32 %v605_v55, %v10668_v8  ;;  %v10809_v60 = vadd.f32 %v670_v56, %v10702_v40  ;;  %v1563_v8 = vsel %vm1560_vm10, %v10732_v51, %v10740_v39  ;;  %v1706_v40 = vsel %vm1705_vm11, %v1692_v62, %v10811_v13  ;;  %2580 = vrot.lane.b32.xlu2 %v10262_v30, %s10086_s21 }
 0x159   : > { %v1716_v6 = vand.u32 %v1706_v40, %v10340_v37  ;;  %v1561_v62 = vsel %vm1560_vm10, %v10790_v46, %v10761_v14  ;;  %2576 = vrot.lane.b32.xlu1 %v10239_v3, %s10088_s30  ;;  %s10089_s30 = smov 33  }
 0x15a   : > { %8085 = vmatmul.msk.bf16.vlgmr.msrb.gmra.mxu0 %vm439_vm3, %v10598_v27  ;;  %8090 = vmatmul.msk.bf16.vlgmr.msrb.gmra.mxu1 %vm439_vm3, %v10615_v42  ;;  %v10817_v49 = vadd.f32 %v743_v5, %v606_v19  ;;  %v1577_v5 = vand.u32 %v1563_v8, %v10340_v37 }
 0x15b   : > { %1386 = vmatpush.bf16.msrb.mxu0 %v1299_v54  ;;  %1505 = vmatpush.bf16.msrb.mxu1 %v1438_v59  ;;  %v1589_v54 = vand.u32 %v10784_v45, %v10340_v37 }
 0x15c   : > { %v732_v4 = vpop.f32.mrf.mxu2  ;;  %v797_v27 = vpop.f32.mrf.mxu3  ;;  %2436 = vrot.lane.b32.xlu0 %v10246_v20, %s14711_s25 }
 0x15d   : > { %v1700_v39 = vpop.permute.xlu1 %1699  ;;  %v10886_v59 = vpop.permute.xlu2 %1689  ;;  %v1566_v4 = vsel %vm1560_vm10, %v10819_v2, %v10784_v45 }
 0x15e   : > { %v10888_v19 = vpop.permute.xlu0 %1840 }
 0x15f   : > { %v607_v1 = vpop.f32.mrf.mxu0  ;;  %v672_v10 = vpop.f32.mrf.mxu1 }
 0x160   : > { %v1586_v10 = vand.u32 %v1566_v4, %v10340_v37  ;;  %2578 = vrot.lane.b32.xlu2 %v10250_v22, %s10086_s21 }
 0x161   : > { %8095 = vmatmul.msk.bf16.vlgmr.msrb.gmra.mxu2 %vm439_vm3, %v10694_v36  ;;  %8100 = vmatmul.msk.bf16.vlgmr.msrb.gmra.mxu3 %vm439_vm3, %v10694_v36 }
 0x162   : > { %1624 = vmatpush.bf16.msrb.mxu2 %v1577_v5  ;;  %1743 = vmatpush.bf16.msrb.mxu3 %v1716_v6  ;;  %v1571_v5 = vand.u32 %v1561_v62, %v10340_v37 }
 0x163   : > { %2444 = vrot.lane.b32.xlu1 %v10686_v23, %s14711_s25 }
 0x164   : > { %v782_v17 = vpop.f32.mrf.mxu2  ;;  %v901_v24 = vpop.f32.mrf.mxu3  ;;  %2582 = vrot.lane.b32.xlu0 %v10248_v21, %s10086_s21 }
 0x165   : > { %v10849_v26 = vadd.f32 %v782_v17, %v10757_v41  ;;  %v10867_v41 = vpop.permute.xlu1 %1701  ;;  %v1839_v16 = vpop.permute.xlu2 %1838  ;;  %v1709_v17 = vsel %vm1705_vm11, %v10838_v15, %v1700_v39 }
 0x166   : > { %v1855_v4 = vsel %vm1854_vm12, %v1839_v16, %v10888_v19  ;;  %v1707_v16 = vsel %vm1705_vm11, %v10811_v13, %v10869_v58 }
 0x167   : > { %v657_v31 = vpop.f32.mrf.mxu0  ;;  %v769_v38 = vpop.f32.mrf.mxu1 }
 0x168   : > { %v658_v9 = vadd.f32 %v657_v31, %v10710_v47  ;;  %v10859_v51 = vadd.f32 %v769_v38, %v10749_v7  ;;  %v1710_v47 = vsel %vm1705_vm11, %v1700_v39, %v10867_v41  ;;  %2588 = vrot.lane.b32.xlu2 %v10260_v29, %s10086_s21 }
 0x16a   : > { %8089 = vmatmul.msk.bf16.vlgmr.msra.gmra.mxu0 %vm439_vm3, %v10615_v42  ;;  %8094 = vmatmul.msk.bf16.vlgmr.msra.gmra.mxu1 %vm439_vm3, %v10694_v36  ;;  %v10865_v63 = vadd.f32 %v795_v52, %v658_v9  ;;  %v1728_v52 = vand.u32 %v1710_v47, %v10340_v37  ;;  %v1565_v9 = vsel %vm1560_vm10, %v10769_v18, %v10819_v2  ;;  %vm3778_vm10 = vcmask 7168  }
 0x16b   : > { %1492 = vmatpush.bf16.msra.mxu0 %v1435_v32  ;;  %1611 = vmatpush.bf16.msra.mxu1 %v1574_v44 }
 0x16c   : > { %v784_v48 = vpop.f32.mrf.mxu2  ;;  %v903_v7 = vpop.f32.mrf.mxu3  ;;  %2584 = vrot.lane.b32.xlu0 %v10246_v20, %s10086_s21  ;;  %2586 = vrot.lane.b32.xlu1 %v10258_v28, %s10086_s21 }
 0x16d   : > { %v10940_v44 = vpop.permute.xlu2 %1703  ;;  %v1708_v7 = vsel %vm1705_vm11, %v10869_v58, %v10838_v15 }
 0x16e   : > { %v1722_v62 = vand.u32 %v1708_v7, %v10340_v37 }
 0x16f   : > { %v659_v55 = vpop.f32.mrf.mxu0  ;;  %v771_v56 = vpop.f32.mrf.mxu1 }
 0x170   : > { %2592 = vrot.lane.b32.xlu2 %v10686_v23, %s10086_s21 }
 0x171   : > { %8099 = vmatmul.msk.bf16.vlgmr.msra.gmra.mxu2 %vm439_vm3, %v10694_v36  ;;  %8104 = vmatmul.msk.bf16.vlgmr.msra.gmra.mxu3 %vm439_vm3, %v10767_v53 }
 0x172   : > { %1676 = vmatpush.bf16.msra.mxu2 %v1589_v54  ;;  %1795 = vmatpush.bf16.msra.mxu3 %v1728_v52  ;;  %v1583_v52 = vand.u32 %v1565_v9, %v10340_v37 }
 0x174   : > { %v888_v8 = vpop.f32.mrf.mxu2  ;;  %v953_v40 = vpop.f32.mrf.mxu3  ;;  %2590 = vrot.lane.b32.xlu0 %v10273_v33, %s10086_s21  ;;  %2732 = vrot.lane.b32.xlu1 %v10246_v20, %s10087_s29  ;;  %s14703_s21 = smov 74  }
 0x175   : > { %v10899_v27 = vadd.f32 %v888_v8, %v10817_v49  ;;  %v10917_v49 = vpop.permute.xlu1 %1834  ;;  %v1849_v8 = vpop.permute.xlu2 %1848 }
 0x177   : > { %v756_v6 = vpop.f32.mrf.mxu0  ;;  %v875_v1 = vpop.f32.mrf.mxu1 }
 0x178   : > { %v814_v14 = vadd.f32 %v756_v6, %v10759_v57  ;;  %v10909_v45 = vadd.f32 %v875_v1, %v10798_v50  ;;  %v10921_v57 = vpop.permute.xlu0 %1842  ;;  %2724 = vrot.lane.b32.xlu2 %v10239_v3, %s14718_s11  ;;  %s14735_s11 = smov 32  }
 0x17a   : > { %8093 = vmatmul.msk.bf16.vlgmr.msrb.gmra.mxu0 %vm439_vm3, %v10615_v42  ;;  %8098 = vmatmul.msk.bf16.vlgmr.msrb.gmra.mxu1 %vm439_vm3, %v10694_v36  ;;  %v10915_v46 = vadd.f32 %v901_v24, %v814_v14  ;;  %v1856_v42 = vsel %vm1854_vm12, %v10888_v19, %v10921_v57  ;;  %v1725_v24 = vand.u32 %v1709_v17, %v10340_v37 }
 0x17b   : > { %1598 = vmatpush.bf16.msrb.mxu0 %v1571_v5  ;;  %1663 = vmatpush.bf16.msrb.mxu1 %v1586_v10  ;;  %v1869_v32 = vand.u32 %v1856_v42, %v10340_v37  ;;  %v1719_v42 = vand.u32 %v1707_v16, %v10340_v37 }
 0x17c   : > { %v890_v50 = vpop.f32.mrf.mxu2  ;;  %v955_v25 = vpop.f32.mrf.mxu3  ;;  %2730 = vrot.lane.b32.xlu0 %v10248_v21, %s10087_s29  ;;  %2734 = vrot.lane.b32.xlu1 %v10258_v28, %s10087_s29 }
 0x17d   : > { %v10938_v38 = vpop.permute.xlu1 %1846  ;;  %v10988_v19 = vpop.permute.xlu2 %1988 }
 0x17f   : > { %v758_v31 = vpop.f32.mrf.mxu0  ;;  %v877_v39 = vpop.f32.mrf.mxu1 }
 0x180   : > { %v1734_v31 = vand.u32 %v10940_v44, %v10340_v37  ;;  %2726 = vrot.lane.b32.xlu2 %v10250_v22, %s10087_s29 }
 0x181   : > { %8103 = vmatmul.msk.bf16.vlgmr.msrb.gmra.mxu2 %vm439_vm3, %v10767_v53  ;;  %8108 = vmatmul.msk.bf16.vlgmr.msrb.gmra.mxu3 %vm439_vm3, %v10886_v59 }
 0x182   : > { %1782 = vmatpush.bf16.msrb.mxu2 %v1725_v24  ;;  %1906 = vmatpush.bf16.msrb.mxu3 %v1869_v32 }
 0x184   : > { %v940_v47 = vpop.f32.mrf.mxu2  ;;  %v1059_v48 = vpop.f32.mrf.mxu3  ;;  %2728 = vrot.lane.b32.xlu0 %v10262_v30, %s10087_s29  ;;  %2740 = vrot.lane.b32.xlu1 %v10686_v23, %s10087_s29 }
 0x185   : > { %v10951_v54 = vadd.f32 %v940_v47, %v10865_v63  ;;  %v10968_v63 = vpop.permute.xlu1 %1850  ;;  %v11019_v9 = vpop.permute.xlu2 %1986 }
 0x187   : > { %v808_v55 = vpop.f32.mrf.mxu0  ;;  %v927_v56 = vpop.f32.mrf.mxu1 }
 0x188   : > { %v818_v18 = vadd.f32 %v808_v55, %v10809_v60  ;;  %v10960_v2 = vadd.f32 %v927_v56, %v10849_v26  ;;  %v1860_v60 = vsel %vm1854_vm12, %v1849_v8, %v10968_v63  ;;  %v10974_v26 = vpop.permute.xlu0 %1844  ;;  %2736 = vrot.lane.b32.xlu2 %v10260_v29, %s10087_s29 }
 0x189   : > { %v1881_v6 = vand.u32 %v1860_v60, %v10340_v37 }
 0x18a   : > { %8097 = vmatmul.msk.bf16.vlgmr.msra.gmra.mxu0 %vm439_vm3, %v10694_v36  ;;  %8102 = vmatmul.msk.bf16.vlgmr.msra.gmra.mxu1 %vm439_vm3, %v10767_v53  ;;  %v10966_v15 = vadd.f32 %v953_v40, %v818_v18  ;;  %v1866_v40 = vand.u32 %v1855_v4, %v10340_v37  ;;  %v1711_v4 = vsel %vm1705_vm11, %v10867_v41, %v10940_v44  ;;  %vm5931_vm11 = vcmask 564224  }
 0x18b   : > { %1650 = vmatpush.bf16.msra.mxu0 %v1583_v52  ;;  %1769 = vmatpush.bf16.msra.mxu1 %v1722_v62 }
 0x18c   : > { %v942_v5 = vpop.f32.mrf.mxu2  ;;  %v1061_v36 = vpop.f32.mrf.mxu3  ;;  %2738 = vrot.lane.b32.xlu0 %v10273_v33, %s10087_s29  ;;  %s14706_s29 = smov 32   ;;  %2876 = vrot.lane.b32.xlu1 %v10262_v30, %s10089_s30 }
 0x18d   : > { %v1858_v36 = vsel %vm1854_vm12, %v10974_v26, %v10938_v38 }
 0x18e   : > { %v1875_v16 = vand.u32 %v1858_v36, %v10340_v37 }
 0x18f   : > { %v810_v1 = vpop.f32.mrf.mxu0  ;;  %v929_v10 = vpop.f32.mrf.mxu1 }
 0x190   : > { %v10990_v14 = vpop.permute.xlu0 %1990  ;;  %2880 = vrot.lane.b32.xlu2 %v10246_v20, %s10089_s30 }
 0x191   : > { %8107 = vmatmul.msk.bf16.vlgmr.msra.gmra.mxu2 %vm439_vm3, %v10767_v53  ;;  %8112 = vmatmul.msk.bf16.vlgmr.msra.gmra.mxu3 %vm439_vm3, %v10886_v59 }
 0x192   : > { %1893 = vmatpush.bf16.msra.mxu2 %v1866_v40  ;;  %1958 = vmatpush.bf16.msra.mxu3 %v1881_v6  ;;  %v1731_v6 = vand.u32 %v1711_v4, %v10340_v37 }
 0x194   : > { %v1046_v17 = vpop.f32.mrf.mxu2  ;;  %v1165_v50 = vpop.f32.mrf.mxu3  ;;  %2874 = vrot.lane.b32.xlu0 %v10250_v22, %s10089_s30 }
 0x195   : > { %v10998_v25 = vadd.f32 %v1046_v17, %v10915_v46  ;;  %v11011_v46 = vpop.permute.xlu1 %1984 }
 0x197   : > { %v914_v24 = vpop.f32.mrf.mxu0  ;;  %v1033_v32 = vpop.f32.mrf.mxu1 }
 0x198   : > { %v960_v13 = vadd.f32 %v914_v24, %v10859_v51  ;;  %v11009_v58 = vadd.f32 %v1033_v32, %v10899_v27  ;;  %v1859_v51 = vsel %vm1854_vm12, %v10938_v38, %v1849_v8  ;;  %v11023_v27 = vpop.permute.xlu0 %1992  ;;  %v11042_v8 = vpop.permute.xlu2 %1996  ;;  %v2004_v24 = vsel %vm2002_vm13, %v10988_v19, %v10990_v14  ;;  %2878 = vrot.lane.b32.xlu2 %v10248_v21, %s10089_s30 }
 0x199   : > { %v2005_v52 = vsel %vm2002_vm13, %v10990_v14, %v11023_v27 }
 0x19a   : > { %8101 = vmatmul.msk.bf16.vlgmr.msrb.gmra.mxu0 %vm439_vm3, %v10767_v53  ;;  %8106 = vmatmul.msk.bf16.vlgmr.msrb.gmra.mxu1 %vm439_vm3, %v10767_v53  ;;  %v11017_v39 = vadd.f32 %v1059_v48, %v960_v13  ;;  %v1878_v48 = vand.u32 %v1859_v51, %v10340_v37  ;;  %v2020_v55 = vand.u32 %v2005_v52, %v10340_v37 }
 0x19b   : > { %1756 = vmatpush.bf16.msrb.mxu0 %v1719_v42  ;;  %1821 = vmatpush.bf16.msrb.mxu1 %v1734_v31 }
 0x19c   : > { %v1048_v47 = vpop.f32.mrf.mxu2  ;;  %v1167_v7 = vpop.f32.mrf.mxu3  ;;  %2882 = vrot.lane.b32.xlu0 %v10258_v28, %s10089_s30 }
 0x19d   : > { %v11040_v18 = vpop.permute.xlu1 %1852  ;;  %v1857_v47 = vsel %vm1854_vm12, %v10921_v57, %v10974_v26 }
 0x19f   : > { %v916_v56 = vpop.f32.mrf.mxu0  ;;  %v1035_v62 = vpop.f32.mrf.mxu1 }
 0x1a0   : > { %v2001_v17 = vpop.permute.xlu2 %2000  ;;  %v1999_v42 = vpop.permute.xlu0 %1998  ;;  %v1872_v56 = vand.u32 %v1857_v47, %v10340_v37  ;;  %3024 = vrot.lane.b32.xlu2 %v10262_v30, %s14706_s29 }
 0x1a1   : > { %8111 = vmatmul.msk.bf16.vlgmr.msrb.gmra.mxu2 %vm439_vm3, %v10886_v59  ;;  %8116 = vmatmul.msk.bf16.vlgmr.msrb.gmra.mxu3 %vm439_vm3, %v10917_v49  ;;  %v2009_v32 = vsel %vm2002_vm13, %v1999_v42, %v2001_v17 }
 0x1a2   : > { %1945 = vmatpush.bf16.msrb.mxu2 %v1878_v48  ;;  %2067 = vmatpush.bf16.msrb.mxu3 %v2020_v55  ;;  %v2003_v48 = vsel %vm2002_vm13, %v11019_v9, %v10988_v19 }
 0x1a4   : > { %v1098_v60 = vpop.f32.mrf.mxu2  ;;  %v1217_v5 = vpop.f32.mrf.mxu3  ;;  %2884 = vrot.lane.b32.xlu0 %v10260_v29, %s10089_s30 }
 0x1a5   : > { %v11053_v40 = vadd.f32 %v1098_v60, %v10966_v15  ;;  %v11065_v44 = vpop.permute.xlu1 %1994  ;;  %v2014_v60 = vand.u32 %v2003_v48, %v10340_v37 }
 0x1a7   : > { %v1020_v1 = vpop.f32.mrf.mxu0  ;;  %v1085_v10 = vpop.f32.mrf.mxu1 }
 0x1a8   : > { %v1102_v41 = vadd.f32 %v1020_v1, %v10909_v45  ;;  %v11063_v38 = vadd.f32 %v1085_v10, %v10951_v54  ;;  %v11091_v51 = vpop.permute.xlu0 %2138  ;;  %v11142_v17 = vpop.permute.xlu2 %2132  ;;  %2888 = vrot.lane.b32.xlu2 %v10686_v23, %s10089_s30 }
 0x1aa   : > { %8105 = vmatmul.msk.bf16.vlgmr.msra.gmra.mxu0 %vm439_vm3, %v10767_v53  ;;  %8110 = vmatmul.msk.bf16.vlgmr.msra.gmra.mxu1 %vm439_vm3, %v10886_v59  ;;  %v11071_v15 = vadd.f32 %v1165_v50, %v1102_v41  ;;  %v2017_v53 = vand.u32 %v2004_v24, %v10340_v37  ;;  %v2032_v50 = vand.u32 %v2009_v32, %v10340_v37 }
 0x1ab   : > { %1808 = vmatpush.bf16.msra.mxu0 %v1731_v6  ;;  %1932 = vmatpush.bf16.msra.mxu1 %v1875_v16  ;;  %v1861_v24 = vsel %vm1854_vm12, %v10968_v63, %v11040_v18  ;;  %v2007_v32 = vsel %vm2002_vm13, %v11065_v44, %v11042_v8  ;;  %vm6508_vm12 = vcmask 654336  }
 0x1ac   : > { %v1100_v45 = vpop.f32.mrf.mxu2  ;;  %v1219_v54 = vpop.f32.mrf.mxu3  ;;  %3020 = vrot.lane.b32.xlu0 %v10239_v3, %s14703_s21  ;;  %s10093_s21 = smov 77   ;;  %v2026_v47 = vand.u32 %v2007_v32, %v10340_v37 }
 0x1ad   : > { %v11089_v14 = vpop.permute.xlu1 %2140  ;;  %2872 = vrot.lane.b32.xlu1 %v10239_v3, %s10093_s21  ;;  %s10094_s21 = smov 31  }
 0x1af   : > { %v1022_v31 = vpop.f32.mrf.mxu0  ;;  %v1087_v13 = vpop.f32.mrf.mxu1 }
 0x1b0   : > { %v11122_v9 = vpop.permute.xlu0 %2136  ;;  %3032 = vrot.lane.b32.xlu2 %v10260_v29, %s14706_s29 }
 0x1b1   : > { %8115 = vmatmul.msk.bf16.vlgmr.msra.gmra.mxu2 %vm439_vm3, %v10917_v49  ;;  %8120 = vmatmul.msk.bf16.vlgmr.msra.gmra.mxu3 %vm439_vm3, %v10917_v49 }
 0x1b2   : > { %2054 = vmatpush.bf16.msra.mxu2 %v2017_v53  ;;  %2119 = vmatpush.bf16.msra.mxu3 %v2032_v50  ;;  %v1884_v50 = vand.u32 %v1861_v24, %v10340_v37 }
 0x1b4   : > { %v1204_v7 = vpop.f32.mrf.mxu2  ;;  %v1323_v52 = vpop.f32.mrf.mxu3  ;;  %3026 = vrot.lane.b32.xlu0 %v10248_v21, %s14706_s29 }
 0x1b5   : > { %v11102_v55 = vadd.f32 %v1204_v7, %v11017_v39  ;;  %v11114_v19 = vpop.permute.xlu1 %2142  ;;  %3022 = vrot.lane.b32.xlu1 %v10250_v22, %s14706_s29  ;;  %v11175_v7 = vpop.permute.xlu2 %2134 }
 0x1b7   : > { %v1072_v62 = vpop.f32.mrf.mxu0  ;;  %v1191_v4 = vpop.f32.mrf.mxu1 }
 0x1b8   : > { %v1106_v57 = vadd.f32 %v1072_v62, %v10960_v2  ;;  %v11112_v26 = vadd.f32 %v1191_v4, %v10998_v25  ;;  %v2008_v2 = vsel %vm2002_vm13, %v11042_v8, %v1999_v42  ;;  %v2154_v25 = vsel %vm2150_vm14, %v11089_v14, %v11114_v19  ;;  %v11144_v42 = vpop.permute.xlu0 %2146  ;;  %3172 = vrot.lane.b32.xlu2 %v10262_v30, %s10094_s21 }
 0x1b9   : > { %v2029_v1 = vand.u32 %v2008_v2, %v10340_v37  ;;  %v2006_v2 = vsel %vm2002_vm13, %v11023_v27, %v11065_v44  ;;  %vm6562_vm13 = vcmask 48128  }
 0x1ba   : > { %8109 = vmatmul.msk.bf16.vlgmr.msrb.gmra.mxu0 %vm439_vm3, %v10886_v59  ;;  %8114 = vmatmul.msk.bf16.vlgmr.msrb.gmra.mxu1 %vm439_vm3, %v10886_v59  ;;  %v11120_v39 = vadd.f32 %v1217_v5, %v1106_v57  ;;  %v2171_v5 = vand.u32 %v2154_v25, %v10340_v37 }
 0x1bb   : > { %1919 = vmatpush.bf16.msrb.mxu0 %v1872_v56  ;;  %2041 = vmatpush.bf16.msrb.mxu1 %v2014_v60 }
 0x1bc   : > { %v1206_v36 = vpop.f32.mrf.mxu2  ;;  %v1325_v6 = vpop.f32.mrf.mxu3  ;;  %3028 = vrot.lane.b32.xlu0 %v10246_v20, %s14706_s29 }
 0x1bd   : > { %v11140_v41 = vpop.permute.xlu1 %2148  ;;  %2886 = vrot.lane.b32.xlu1 %v10273_v33, %s10089_s30  ;;  %v2152_v6 = vsel %vm2150_vm14, %v11122_v9, %v11091_v51  ;;  %s10095_s30 = smov 4  }
 0x1be   : > { %v2165_v24 = vand.u32 %v2152_v6, %v10340_v37 }
 0x1bf   : > { %v1074_v10 = vpop.f32.mrf.mxu0  ;;  %v1193_v16 = vpop.f32.mrf.mxu1 }
 0x1c0   : > { %v2283_v48 = vpop.permute.xlu0 %2282  ;;  %3170 = vrot.lane.b32.xlu2 %v10250_v22, %s10094_s21 }
 0x1c1   : > { %8119 = vmatmul.msk.bf16.vlgmr.msrb.gmra.mxu2 %vm439_vm3, %v10917_v49  ;;  %8124 = vmatmul.msk.bf16.vlgmr.msrb.gmra.mxu3 %vm439_vm3, %v11011_v46 }
 0x1c2   : > { %2106 = vmatpush.bf16.msrb.mxu2 %v2029_v1  ;;  %2228 = vmatpush.bf16.msrb.mxu3 %v2171_v5  ;;  %v2023_v5 = vand.u32 %v2006_v2, %v10340_v37 }
 0x1c4   : > { %v1310_v45 = vpop.f32.mrf.mxu2  ;;  %v1375_v54 = vpop.f32.mrf.mxu3  ;;  %3174 = vrot.lane.b32.xlu0 %v10248_v21, %s10094_s21 }
 0x1c5   : > { %v11155_v53 = vadd.f32 %v1310_v45, %v11071_v15  ;;  %v11167_v8 = vpop.permute.xlu1 %2284  ;;  %3030 = vrot.lane.b32.xlu1 %v10258_v28, %s14706_s29 }
 0x1c7   : > { %v1178_v31 = vpop.f32.mrf.mxu0  ;;  %v1243_v13 = vpop.f32.mrf.mxu1 }
 0x1c8   : > { %v1248_v63 = vadd.f32 %v1178_v31, %v11009_v58  ;;  %v11165_v18 = vadd.f32 %v1243_v13, %v11053_v40  ;;  %v2153_v58 = vsel %vm2150_vm14, %v11091_v51, %v11089_v14  ;;  %v2299_v40 = vsel %vm2298_vm15, %v2283_v48, %v11167_v8  ;;  %v11194_v14 = vpop.permute.xlu2 %2144  ;;  %v11196_v57 = vpop.permute.xlu0 %2290  ;;  %3180 = vrot.lane.b32.xlu2 %v10260_v29, %s10094_s21 }
 0x1c9   : > { %v2310_v62 = vand.u32 %v2299_v40, %v10340_v37 }
 0x1ca   : > { %8113 = vmatmul.msk.bf16.vlgmr.msra.gmra.mxu0 %vm439_vm3, %v10886_v59  ;;  %8118 = vmatmul.msk.bf16.vlgmr.msra.gmra.mxu1 %vm439_vm3, %v10917_v49  ;;  %v11173_v15 = vadd.f32 %v1323_v52, %v1248_v63  ;;  %v2168_v52 = vand.u32 %v2153_v58, %v10340_v37 }
 0x1cb   : > { %1971 = vmatpush.bf16.msra.mxu0 %v1884_v50  ;;  %2093 = vmatpush.bf16.msra.mxu1 %v2026_v47 }
 0x1cc   : > { %v1312_v56 = vpop.f32.mrf.mxu2  ;;  %v1377_v59 = vpop.f32.mrf.mxu3  ;;  %3176 = vrot.lane.b32.xlu0 %v10246_v20, %s10094_s21 }
 0x1cd   : > { %v11219_v51 = vpop.permute.xlu1 %2280  ;;  %3034 = vrot.lane.b32.xlu1 %v10273_v33, %s14706_s29  ;;  %v2151_v59 = vsel %vm2150_vm14, %v11175_v7, %v11122_v9 }
 0x1ce   : > { %v2162_v2 = vand.u32 %v2151_v59, %v10340_v37 }
 0x1cf   : > { %v1180_v4 = vpop.f32.mrf.mxu0  ;;  %v1245_v60 = vpop.f32.mrf.mxu1 }
 0x1d0   : > { %v11227_v45 = vpop.permute.xlu2 %2288  ;;  %v11229_v32 = vpop.permute.xlu0 %2292  ;;  %3184 = vrot.lane.b32.xlu2 %v10686_v23, %s10094_s21 }
 0x1d1   : > { %8123 = vmatmul.msk.bf16.vlgmr.msra.gmra.mxu2 %vm439_vm3, %v11011_v46  ;;  %8128 = vmatmul.msk.bf16.vlgmr.msra.gmra.mxu3 %vm439_vm3, %v11011_v46 }
 0x1d2   : > { %2215 = vmatpush.bf16.msra.mxu2 %v2168_v52  ;;  %2337 = vmatpush.bf16.msra.mxu3 %v2310_v62  ;;  %v2156_v52 = vsel %vm2150_vm14, %v11194_v14, %v11144_v42 }
 0x1d4   : > { %v1362_v25 = vpop.f32.mrf.mxu2  ;;  %v1481_v36 = vpop.f32.mrf.mxu3  ;;  %3182 = vrot.lane.b32.xlu0 %v10273_v33, %s10094_s21 }
 0x1d5   : > { %v11207_v1 = vadd.f32 %v1362_v25, %v11120_v39  ;;  %v2177_v25 = vand.u32 %v2156_v52, %v10340_v37  ;;  %3168 = vrot.lane.b32.xlu1 %v10239_v3, %s10096_s18  ;;  %s10097_s18 = smov 3  }
 0x1d7   : > { %v1230_v10 = vpop.f32.mrf.mxu0  ;;  %v1349_v16 = vpop.f32.mrf.mxu1 }
 0x1d8   : > { %v1252_v27 = vadd.f32 %v1230_v10, %v11063_v38  ;;  %v11217_v44 = vadd.f32 %v1349_v16, %v11102_v55  ;;  %v2157_v38 = vsel %vm2150_vm14, %v11144_v42, %v11140_v41  ;;  %v2303_v55 = vsel %vm2298_vm15, %v11196_v57, %v11229_v32  ;;  %v11249_v41 = vpop.permute.xlu1 %2430  ;;  %v11251_v48 = vpop.permute.xlu2 %2286 }
 0x1d9   : > { %v2322_v13 = vand.u32 %v2303_v55, %v10340_v37  ;;  %v11253_v58 = vpop.permute.xlu0 %2428  ;;  %v2155_v55 = vsel %vm2150_vm14, %v11114_v19, %v11194_v14  ;;  %vm6689_vm14 = vcmask 941056  }
 0x1da   : > { %8117 = vmatmul.msk.bf16.vlgmr.msrb.gmra.mxu0 %vm439_vm3, %v10917_v49  ;;  %8122 = vmatmul.msk.bf16.vlgmr.msrb.gmra.mxu1 %vm439_vm3, %v11011_v46  ;;  %v11225_v39 = vadd.f32 %v1375_v54, %v1252_v27  ;;  %v2180_v54 = vand.u32 %v2157_v38, %v10340_v37 }
 0x1db   : > { %2080 = vmatpush.bf16.msrb.mxu0 %v2023_v5  ;;  %2202 = vmatpush.bf16.msrb.mxu1 %v2165_v24  ;;  %v2302_v5 = vsel %vm2298_vm15, %v11227_v45, %v11196_v57 }
 0x1dc   : > { %v1364_v50 = vpop.f32.mrf.mxu2  ;;  %v1483_v31 = vpop.f32.mrf.mxu3  ;;  %3322 = vrot.lane.b32.xlu0 %v10248_v21, %s10095_s30 }
 0x1dd   : > { %3036 = vrot.lane.b32.xlu1 %v10686_v23, %s14706_s29  ;;  %s14710_s29 = smov 68  }
 0x1de   : > { %3316 = vrot.lane.b32.xlu2 %v10239_v3, %s14710_s29  ;;  %s14732_s29 = smov 86  }
 0x1df   : > { %v1232_v47 = vpop.f32.mrf.mxu0  ;;  %v1351_v63 = vpop.f32.mrf.mxu1 }
 0x1e0   : > { %v11281_v7 = vpop.permute.xlu1 %2294  ;;  %v2433_v6 = vpop.permute.xlu2 %2432  ;;  %v2174_v47 = vand.u32 %v2155_v55, %v10340_v37 }
 0x1e1   : > { %8127 = vmatmul.msk.bf16.vlgmr.msrb.gmra.mxu2 %vm439_vm3, %v11011_v46  ;;  %8132 = vmatmul.msk.bf16.vlgmr.msrb.gmra.mxu3 %vm439_vm3, %v11142_v17 }
 0x1e2   : > { %2267 = vmatpush.bf16.msrb.mxu2 %v2180_v54  ;;  %2389 = vmatpush.bf16.msrb.mxu3 %v2322_v13  ;;  %v2301_v54 = vsel %vm2298_vm15, %v11251_v48, %v11227_v45 }
 0x1e3   : > { %v2316_v59 = vand.u32 %v2301_v54, %v10340_v37 }
 0x1e4   : > { %v1468_v40 = vpop.f32.mrf.mxu2  ;;  %v1533_v56 = vpop.f32.mrf.mxu3  ;;  %3320 = vrot.lane.b32.xlu0 %v10262_v30, %s10095_s30 }
 0x1e5   : > { %v11264_v62 = vadd.f32 %v1468_v40, %v11173_v15  ;;  %3178 = vrot.lane.b32.xlu1 %v10258_v28, %s10094_s21  ;;  %s14708_s21 = smov 2  }
 0x1e6   : > { %3318 = vrot.lane.b32.xlu2 %v10250_v22, %s10095_s30 }
 0x1e7   : > { %v1336_v4 = vpop.f32.mrf.mxu0  ;;  %v1455_v60 = vpop.f32.mrf.mxu1 }
 0x1e8   : > { %v1394_v9 = vadd.f32 %v1336_v4, %v11112_v26  ;;  %v11273_v42 = vadd.f32 %v1455_v60, %v11155_v53  ;;  %v11286_v26 = vpop.permute.xlu0 %2434  ;;  %v11302_v57 = vpop.permute.xlu1 %2438  ;;  %v2447_v4 = vsel %vm2446_vm0, %v11249_v41, %v2433_v6 }
 0x1e9   : > { %v2297_v38 = vpop.permute.xlu2 %2296 }
 0x1ea   : > { %8121 = vmatmul.msk.bf16.vlgmr.msra.gmra.mxu0 %vm439_vm3, %v10917_v49  ;;  %8126 = vmatmul.msk.bf16.vlgmr.msra.gmra.mxu1 %vm439_vm3, %v11011_v46  ;;  %v11279_v15 = vadd.f32 %v1481_v36, %v1394_v9  ;;  %v2448_v49 = vsel %vm2446_vm0, %v2433_v6, %v11286_v26  ;;  %v2319_v36 = vand.u32 %v2302_v5, %v10340_v37 }
 0x1eb   : > { %2189 = vmatpush.bf16.msra.mxu0 %v2162_v2  ;;  %2254 = vmatpush.bf16.msra.mxu1 %v2177_v25  ;;  %v2461_v16 = vand.u32 %v2448_v49, %v10340_v37  ;;  %v2300_v5 = vsel %vm2298_vm15, %v11167_v8, %v11251_v48  ;;  %v2305_v49 = vsel %vm2298_vm15, %v11281_v7, %v2297_v38 }
 0x1ec   : > { %v1470_v53 = vpop.f32.mrf.mxu2  ;;  %v1535_v10 = vpop.f32.mrf.mxu3  ;;  %3330 = vrot.lane.b32.xlu0 %v10273_v33, %s10095_s30  ;;  %v2328_v55 = vand.u32 %v2305_v49, %v10340_v37 }
 0x1ed   : > { %3324 = vrot.lane.b32.xlu1 %v10246_v20, %s10095_s30 }
 0x1ee   : > { %3328 = vrot.lane.b32.xlu2 %v10260_v29, %s10095_s30 }
 0x1ef   : > { %v1338_v24 = vpop.f32.mrf.mxu0  ;;  %v1457_v27 = vpop.f32.mrf.mxu1 }
 0x1f0   : > { %v11331_v45 = vpop.permute.xlu1 %2442 }
 0x1f1   : > { %8131 = vmatmul.msk.bf16.vlgmr.msra.gmra.mxu2 %vm439_vm3, %v11142_v17  ;;  %8136 = vmatmul.msk.bf16.vlgmr.msra.gmra.mxu3 %vm439_vm3, %v11219_v51  ;;  %v2441_v52 = vpop.permute.xlu2 %2440 }
 0x1f2   : > { %2376 = vmatpush.bf16.msra.mxu2 %v2319_v36  ;;  %2498 = vmatpush.bf16.msra.mxu3 %v2461_v16  ;;  %v2313_v16 = vand.u32 %v2300_v5, %v10340_v37 }
 0x1f4   : > { %v1520_v50 = vpop.f32.mrf.mxu2  ;;  %v1639_v31 = vpop.f32.mrf.mxu3  ;;  %3466 = vrot.lane.b32.xlu0 %v10250_v22, %s10097_s18 }
 0x1f5   : > { %v11313_v13 = vadd.f32 %v1520_v50, %v11225_v39  ;;  %3326 = vrot.lane.b32.xlu1 %v10258_v28, %s10095_s30 }
 0x1f6   : > { %3472 = vrot.lane.b32.xlu2 %v10246_v20, %s10097_s18 }
 0x1f7   : > { %v1388_v63 = vpop.f32.mrf.mxu0  ;;  %v1507_v40 = vpop.f32.mrf.mxu1 }
 0x1f8   : > { %v1398_v19 = vadd.f32 %v1388_v63, %v11165_v18  ;;  %v11323_v14 = vadd.f32 %v1507_v40, %v11207_v1  ;;  %v2452_v18 = vsel %vm2446_vm0, %v2441_v52, %v11331_v45  ;;  %v11337_v1 = vpop.permute.xlu0 %2436  ;;  %v11375_v38 = vpop.permute.xlu1 %2576 }
 0x1f9   : > { %v2473_v2 = vand.u32 %v2452_v18, %v10340_v37  ;;  %v11351_v41 = vpop.permute.xlu2 %2580  ;;  %v2304_v18 = vsel %vm2298_vm15, %v11229_v32, %v11281_v7  ;;  %vm6749_vm15 = vcmask 924672  }
 0x1fa   : > { %8125 = vmatmul.msk.bf16.vlgmr.msrb.gmra.mxu0 %vm439_vm3, %v11011_v46  ;;  %8130 = vmatmul.msk.bf16.vlgmr.msrb.gmra.mxu1 %vm439_vm3, %v11142_v17  ;;  %v11329_v39 = vadd.f32 %v1533_v56, %v1398_v19  ;;  %v2458_v56 = vand.u32 %v2447_v4, %v10340_v37 }
 0x1fb   : > { %2241 = vmatpush.bf16.msrb.mxu0 %v2174_v47  ;;  %2363 = vmatpush.bf16.msrb.mxu1 %v2316_v59 }
 0x1fc   : > { %v1522_v60 = vpop.f32.mrf.mxu2  ;;  %v1641_v46 = vpop.f32.mrf.mxu3  ;;  %3474 = vrot.lane.b32.xlu0 %v10258_v28, %s10097_s18 }
 0x1fd   : > { %3332 = vrot.lane.b32.xlu1 %v10686_v23, %s10095_s30  ;;  %s10101_s30 = smov 59  }
 0x1fe   : > { %3470 = vrot.lane.b32.xlu2 %v10248_v21, %s10097_s18 }
 0x1ff   : > { %v1390_v25 = vpop.f32.mrf.mxu0  ;;  %v1509_v9 = vpop.f32.mrf.mxu1 }
 0x200   : > { %v11353_v6 = vpop.permute.xlu0 %2582  ;;  %v2325_v25 = vand.u32 %v2304_v18, %v10340_v37 }
 0x201   : > { %8135 = vmatmul.msk.bf16.vlgmr.msrb.gmra.mxu2 %vm439_vm3, %v11142_v17  ;;  %8140 = vmatmul.msk.bf16.vlgmr.msrb.gmra.mxu3 %vm439_vm3, %v11219_v51  ;;  %v11383_v50 = vpop.permute.xlu2 %2578 }
 0x202   : > { %2485 = vmatpush.bf16.msrb.mxu2 %v2458_v56  ;;  %2550 = vmatpush.bf16.msrb.mxu3 %v2473_v2  ;;  %v2450_v56 = vsel %vm2446_vm0, %v11337_v1, %v11302_v57 }
 0x204   : > { %v1626_v53 = vpop.f32.mrf.mxu2  ;;  %v1745_v10 = vpop.f32.mrf.mxu3  ;;  %3476 = vrot.lane.b32.xlu0 %v10260_v29, %s10097_s18 }
 0x205   : > { %v11363_v36 = vadd.f32 %v1626_v53, %v11279_v15  ;;  %v2467_v53 = vand.u32 %v2450_v56, %v10340_v37  ;;  %3468 = vrot.lane.b32.xlu1 %v10262_v30, %s10097_s18 }
 0x206   : > { %3616 = vrot.lane.b32.xlu2 %v10262_v30, %s14708_s21 }
 0x207   : > { %v1494_v24 = vpop.f32.mrf.mxu0  ;;  %v1613_v27 = vpop.f32.mrf.mxu1 }
 0x208   : > { %v1540_v8 = vadd.f32 %v1494_v24, %v11217_v44  ;;  %v11373_v48 = vadd.f32 %v1613_v27, %v11264_v62  ;;  %v2451_v44 = vsel %vm2446_vm0, %v11302_v57, %v2441_v52  ;;  %v11387_v62 = vpop.permute.xlu0 %2584  ;;  %v11400_v52 = vpop.permute.xlu1 %2444  ;;  %v2596_v24 = vsel %vm2594_vm2, %v11351_v41, %v11353_v6 }
 0x209   : > { %v2597_v63 = vsel %vm2594_vm2, %v11353_v6, %v11387_v62  ;;  %v11406_v4 = vpop.permute.xlu2 %2588 }
 0x20a   : > { %8129 = vmatmul.msk.bf16.vlgmr.msra.gmra.mxu0 %vm439_vm3, %v11142_v17  ;;  %8134 = vmatmul.msk.bf16.vlgmr.msra.gmra.mxu1 %vm439_vm3, %v11142_v17  ;;  %v11381_v15 = vadd.f32 %v1639_v31, %v1540_v8  ;;  %v2470_v31 = vand.u32 %v2451_v44, %v10340_v37  ;;  %v2612_v40 = vand.u32 %v2597_v63, %v10340_v37 }
 0x20b   : > { %2350 = vmatpush.bf16.msra.mxu0 %v2313_v16  ;;  %2415 = vmatpush.bf16.msra.mxu1 %v2328_v55 }
 0x20c   : > { %v1628_v54 = vpop.f32.mrf.mxu2  ;;  %v1747_v47 = vpop.f32.mrf.mxu3  ;;  %3612 = vrot.lane.b32.xlu0 %v10239_v3, %s14711_s25  ;;  %s14720_s25 = smov 8  }
 0x20d   : > { %3464 = vrot.lane.b32.xlu1 %v10239_v3, %s10079_s26  ;;  %v2449_v54 = vsel %vm2446_vm0, %v11286_v26, %v11337_v1  ;;  %s10100_s26 = smov 1  }
 0x20e   : > { %3480 = vrot.lane.b32.xlu2 %v10686_v23, %s10097_s18 }
 0x20f   : > { %v1496_v59 = vpop.f32.mrf.mxu0  ;;  %v1615_v19 = vpop.f32.mrf.mxu1 }
 0x210   : > { %v11429_v57 = vpop.permute.xlu1 %2586  ;;  %v2591_v16 = vpop.permute.xlu0 %2590  ;;  %v2464_v59 = vand.u32 %v2449_v54, %v10340_v37 }
 0x211   : > { %8139 = vmatmul.msk.bf16.vlgmr.msra.gmra.mxu2 %vm439_vm3, %v11219_v51  ;;  %8144 = vmatmul.msk.bf16.vlgmr.msra.gmra.mxu3 %vm439_vm3, %v11253_v58  ;;  %v2593_v49 = vpop.permute.xlu2 %2592 }
 0x212   : > { %2537 = vmatpush.bf16.msra.mxu2 %v2470_v31  ;;  %2659 = vmatpush.bf16.msra.mxu3 %v2612_v40  ;;  %v2595_v31 = vsel %vm2594_vm2, %v11383_v50, %v11351_v41 }
 0x214   : > { %v1678_v60 = vpop.f32.mrf.mxu2  ;;  %v1797_v46 = vpop.f32.mrf.mxu3  ;;  %3618 = vrot.lane.b32.xlu0 %v10248_v21, %s14708_s21 }
 0x215   : > { %v11417_v2 = vadd.f32 %v1678_v60, %v11329_v39  ;;  %v2606_v60 = vand.u32 %v2595_v31, %v10340_v37  ;;  %3614 = vrot.lane.b32.xlu1 %v10250_v22, %s14708_s21 }
 0x216   : > { %3624 = vrot.lane.b32.xlu2 %v10260_v29, %s14708_s21 }
 0x217   : > { %v1600_v9 = vpop.f32.mrf.mxu0  ;;  %v1665_v5 = vpop.f32.mrf.mxu1 }
 0x218   : > { %v1682_v32 = vadd.f32 %v1600_v9, %v11273_v42  ;;  %v11427_v7 = vadd.f32 %v1665_v5, %v11313_v13  ;;  %v2601_v42 = vsel %vm2594_vm2, %v2591_v16, %v2593_v49  ;;  %v11449_v6 = vpop.permute.xlu1 %2732  ;;  %v11455_v44 = vpop.permute.xlu0 %2730  ;;  %v2453_v49 = vsel %vm2446_vm0, %v11331_v45, %v11400_v52 }
 0x219   : > { %vm6809_vm0 = vcmask 908288  }
 0x21a   : > { %8133 = vmatmul.msk.bf16.vlgmr.msrb.gmra.mxu0 %vm439_vm3, %v11142_v17  ;;  %8138 = vmatmul.msk.bf16.vlgmr.msrb.gmra.mxu1 %vm439_vm3, %v11219_v51  ;;  %v11435_v39 = vadd.f32 %v1745_v10, %v1682_v32  ;;  %v2609_v17 = vand.u32 %v2596_v24, %v10340_v37  ;;  %v2624_v10 = vand.u32 %v2601_v42, %v10340_v37 }
 0x21b   : > { %2402 = vmatpush.bf16.msrb.mxu0 %v2325_v25  ;;  %2524 = vmatpush.bf16.msrb.mxu1 %v2467_v53  ;;  %v2599_v42 = vsel %vm2594_vm2, %v11429_v57, %v11406_v4 }
 0x21c   : > { %v1680_v13 = vpop.f32.mrf.mxu2  ;;  %v1799_v27 = vpop.f32.mrf.mxu3  ;;  %3620 = vrot.lane.b32.xlu0 %v10246_v20, %s14708_s21 }
 0x21d   : > { %3478 = vrot.lane.b32.xlu1 %v10273_v33, %s10097_s18  ;;  %v2476_v27 = vand.u32 %v2453_v49, %v10340_v37  ;;  %s14712_s18 = smov 56  }
 0x21e   : > { %3764 = vrot.lane.b32.xlu2 %v10262_v30, %s10100_s26  ;;  %v2745_v30 = vsel %vm2742_vm4, %v11455_v44, %v11449_v6 }
 0x21f   : > { %v1602_v55 = vpop.f32.mrf.mxu0  ;;  %v1667_v8 = vpop.f32.mrf.mxu1 }
 0x220   : > { %v2618_v55 = vand.u32 %v2599_v42, %v10340_v37 }
 0x221   : > { %8143 = vmatmul.msk.bf16.vlgmr.msrb.gmra.mxu2 %vm439_vm3, %v11253_v58  ;;  %8148 = vmatmul.msk.bf16.vlgmr.msrb.gmra.mxu3 %vm439_vm3, %v11253_v58 }
 0x222   : > { %2646 = vmatpush.bf16.msrb.mxu2 %v2609_v17  ;;  %2711 = vmatpush.bf16.msrb.mxu3 %v2624_v10 }
 0x224   : > { %v1784_v47 = vpop.f32.mrf.mxu2  ;;  %v1908_v63 = vpop.f32.mrf.mxu3  ;;  %3766 = vrot.lane.b32.xlu0 %v10248_v21, %s10100_s26 }
 0x225   : > { %v11466_v40 = vadd.f32 %v1784_v47, %v11381_v15  ;;  %v11478_v21 = vpop.permute.xlu1 %2734  ;;  %v11486_v15 = vpop.permute.xlu0 %2728  ;;  %3622 = vrot.lane.b32.xlu1 %v10258_v28, %s14708_s21  ;;  %v2760_v47 = vand.u32 %v2745_v30, %v10340_v37 }
 0x226   : > { %3762 = vrot.lane.b32.xlu2 %v10250_v22, %s10100_s26  ;;  %v2744_v22 = vsel %vm2742_vm4, %v11486_v15, %v11455_v44 }
 0x227   : > { %v1652_v19 = vpop.f32.mrf.mxu0  ;;  %v1771_v18 = vpop.f32.mrf.mxu1 }
 0x228   : > { %v1686_v26 = vadd.f32 %v1652_v19, %v11323_v14  ;;  %v11476_v1 = vadd.f32 %v1771_v18, %v11363_v36  ;;  %v2600_v14 = vsel %vm2594_vm2, %v11406_v4, %v2591_v16  ;;  %v2746_v36 = vsel %vm2742_vm4, %v11449_v6, %v11478_v21 }
 0x229   : > { %v2621_v25 = vand.u32 %v2600_v14, %v10340_v37  ;;  %v2598_v18 = vsel %vm2594_vm2, %v11387_v62, %v11429_v57  ;;  %vm6779_vm2 = vcmask 916480  }
 0x22a   : > { %8137 = vmatmul.msk.bf16.vlgmr.msra.gmra.mxu0 %vm439_vm3, %v11219_v51  ;;  %8142 = vmatmul.msk.bf16.vlgmr.msra.gmra.mxu1 %vm439_vm3, %v11219_v51  ;;  %v11484_v41 = vadd.f32 %v1797_v46, %v1686_v26  ;;  %v2763_v46 = vand.u32 %v2746_v36, %v10340_v37  ;;  %v2615_v14 = vand.u32 %v2598_v18, %v10340_v37 }
 0x22b   : > { %2511 = vmatpush.bf16.msra.mxu0 %v2464_v59  ;;  %2633 = vmatpush.bf16.msra.mxu1 %v2606_v60 }
 0x22c   : > { %v1786_v50 = vpop.f32.mrf.mxu2  ;;  %v1910_v56 = vpop.f32.mrf.mxu3  ;;  %3768 = vrot.lane.b32.xlu0 %v10246_v20, %s10100_s26 }
 0x22d   : > { %v11501_v53 = vpop.permute.xlu1 %2740  ;;  %v11507_v20 = vpop.permute.xlu2 %2724  ;;  %3626 = vrot.lane.b32.xlu1 %v10273_v33, %s14708_s21  ;;  %v2757_v56 = vand.u32 %v2744_v22, %v10340_v37 }
 0x22e   : > { %v11509_v32 = vpop.permute.xlu0 %2738  ;;  %3772 = vrot.lane.b32.xlu2 %v10260_v29, %s10100_s26 }
 0x22f   : > { %v1654_v9 = vpop.f32.mrf.mxu0  ;;  %v1773_v5 = vpop.f32.mrf.mxu1  ;;  %v2749_v29 = vsel %vm2742_vm4, %v11509_v32, %v11501_v53 }
 0x230   : > { %v2772_v5 = vand.u32 %v2749_v29, %v10340_v37 }
 0x231   : > { %8147 = vmatmul.msk.bf16.vlgmr.msra.gmra.mxu2 %vm439_vm3, %v11253_v58  ;;  %8152 = vmatmul.msk.bf16.vlgmr.msra.gmra.mxu3 %vm439_vm3, %v11375_v38 }
 0x232   : > { %2698 = vmatpush.bf16.msra.mxu2 %v2621_v25  ;;  %2820 = vmatpush.bf16.msra.mxu3 %v2763_v46 }
 0x234   : > { %v1895_v16 = vpop.f32.mrf.mxu2  ;;  %v1960_v24 = vpop.f32.mrf.mxu3  ;;  %3774 = vrot.lane.b32.xlu0 %v10273_v33, %s10100_s26 }
 0x235   : > { %v11520_v13 = vadd.f32 %v1895_v16, %v11435_v39  ;;  %v11532_v4 = vpop.permute.xlu1 %2876  ;;  %v11540_v8 = vpop.permute.xlu2 %2726  ;;  %3760 = vrot.lane.b32.xlu1 %v10239_v3, %s10101_s30  ;;  %s14737_s30 = smov 98  }
 0x236   : > { %v2875_v54 = vpop.permute.xlu0 %2874  ;;  %3776 = vrot.lane.b32.xlu2 %v10686_v23, %s10100_s26 }
 0x237   : > { %v1758_v17 = vpop.f32.mrf.mxu0  ;;  %v1823_v10 = vpop.f32.mrf.mxu1 }
 0x238   : > { %v1828_v45 = vadd.f32 %v1758_v17, %v11373_v48  ;;  %v11530_v52 = vadd.f32 %v1823_v10, %v11417_v2  ;;  %v2891_v48 = vsel %vm2890_vm5, %v2875_v54, %v11532_v4  ;;  %v2743_v10 = vsel %vm2742_vm4, %v11540_v8, %v11486_v15 }
 0x23a   : > { %8141 = vmatmul.msk.bf16.vlgmr.msrb.gmra.mxu0 %vm439_vm3, %v11219_v51  ;;  %8146 = vmatmul.msk.bf16.vlgmr.msrb.gmra.mxu1 %vm439_vm3, %v11253_v58  ;;  %v11538_v39 = vadd.f32 %v1908_v63, %v1828_v45  ;;  %v2902_v63 = vand.u32 %v2891_v48, %v10340_v37  ;;  %v2754_v48 = vand.u32 %v2743_v10, %v10340_v37 }
 0x23b   : > { %2563 = vmatpush.bf16.msrb.mxu0 %v2476_v27  ;;  %2685 = vmatpush.bf16.msrb.mxu1 %v2618_v55 }
 0x23c   : > { %v1897_v2 = vpop.f32.mrf.mxu2  ;;  %v1962_v51 = vpop.f32.mrf.mxu3  ;;  %3908 = vrot.lane.b32.xlu0 %v10239_v3, %s14712_s18  ;;  %s14731_s18 = smov 116  }
 0x23d   : > { %v11557_v6 = vpop.permute.xlu2 %2736  ;;  %v11577_v44 = vpop.permute.xlu1 %2872  ;;  %3628 = vrot.lane.b32.xlu1 %v10686_v23, %s14708_s21  ;;  %s14733_s21 = smov 56  }
 0x23e   : > { %v2883_v19 = vpop.permute.xlu0 %2882  ;;  %v2748_v55 = vsel %vm2742_vm4, %v11557_v6, %v11509_v32 }
 0x23f   : > { %v1760_v31 = vpop.f32.mrf.mxu0  ;;  %v1825_v59 = vpop.f32.mrf.mxu1  ;;  %v2769_v2 = vand.u32 %v2748_v55, %v10340_v37 }
 0x241   : > { %8151 = vmatmul.msk.bf16.vlgmr.msrb.gmra.mxu2 %vm439_vm3, %v11375_v38  ;;  %8156 = vmatmul.msk.bf16.vlgmr.msrb.gmra.mxu3 %vm439_vm3, %v11375_v38 }
 0x242   : > { %2807 = vmatpush.bf16.msrb.mxu2 %v2760_v47  ;;  %2929 = vmatpush.bf16.msrb.mxu3 %v2902_v63 }
 0x244   : > { %v1947_v60 = vpop.f32.mrf.mxu2  ;;  %v2069_v33 = vpop.f32.mrf.mxu3 }
 0x245   : > { %v11566_v26 = vadd.f32 %v1947_v60, %v11484_v41  ;;  %v2881_v25 = vpop.permute.xlu2 %2880  ;;  %v3023_v53 = vpop.permute.xlu1 %3022  ;;  %3770 = vrot.lane.b32.xlu1 %v10258_v28, %s10100_s26  ;;  %s14736_s26 = smov 110  }
 0x246   : > { %v11585_v46 = vpop.permute.xlu0 %2884  ;;  %v2894_v47 = vsel %vm2890_vm5, %v2881_v25, %v2883_v19 }
 0x247   : > { %v1810_v36 = vpop.f32.mrf.mxu0  ;;  %v1934_v50 = vpop.f32.mrf.mxu1 }
 0x248   : > { %v1832_v62 = vadd.f32 %v1810_v36, %v11427_v7  ;;  %v11575_v57 = vadd.f32 %v1934_v50, %v11466_v40  ;;  %v2895_v7 = vsel %vm2890_vm5, %v2883_v19, %v11585_v46 }
 0x249   : > { %v2914_v49 = vand.u32 %v2895_v7, %v10340_v37 }
 0x24a   : > { %8145 = vmatmul.msk.bf16.vlgmr.msra.gmra.mxu0 %vm439_vm3, %v11253_v58  ;;  %8150 = vmatmul.msk.bf16.vlgmr.msra.gmra.mxu1 %vm439_vm3, %v11375_v38  ;;  %v11583_v41 = vadd.f32 %v1960_v24, %v1832_v62 }
 0x24b   : > { %2672 = vmatpush.bf16.msra.mxu0 %v2615_v14  ;;  %2794 = vmatpush.bf16.msra.mxu1 %v2757_v56 }
 0x24c   : > { %v1949_v40 = vpop.f32.mrf.mxu2  ;;  %v2071_v9 = vpop.f32.mrf.mxu3 }
 0x24d   : > { %v11604_v3 = vpop.permute.xlu2 %2878 }
 0x24e   : > { %v11606_v42 = vpop.permute.xlu0 %3020  ;;  %v2893_v36 = vsel %vm2890_vm5, %v11604_v3, %v2881_v25  ;;  %v2892_v10 = vsel %vm2890_vm5, %v11532_v4, %v11604_v3 }
 0x24f   : > { %v1812_v16 = vpop.f32.mrf.mxu0  ;;  %v1936_v24 = vpop.f32.mrf.mxu1  ;;  %v2908_v7 = vand.u32 %v2893_v36, %v10340_v37 }
 0x251   : > { %8155 = vmatmul.msk.bf16.vlgmr.msra.gmra.mxu2 %vm439_vm3, %v11375_v38  ;;  %8160 = vmatmul.msk.bf16.vlgmr.msra.gmra.mxu3 %vm439_vm3, %v11507_v20 }
 0x252   : > { %2859 = vmatpush.bf16.msra.mxu2 %v2772_v5  ;;  %2981 = vmatpush.bf16.msra.mxu3 %v2914_v49 }
 0x254   : > { %v2056_v27 = vpop.f32.mrf.mxu2  ;;  %v2121_v17 = vpop.f32.mrf.mxu3 }
 0x255   : > { %v11615_v45 = vadd.f32 %v2056_v27, %v11538_v39  ;;  %v11629_v39 = vpop.permute.xlu1 %2886  ;;  %v3025_v8 = vpop.permute.xlu2 %3024 }
 0x256   : > { %v11632_v28 = vpop.permute.xlu0 %3026  ;;  %v3039_v25 = vsel %vm3038_vm6, %v3023_v53, %v3025_v8  ;;  %v2896_v36 = vsel %vm2890_vm5, %v11585_v46, %v11629_v39 }
 0x257   : > { %v1921_v54 = vpop.f32.mrf.mxu0  ;;  %v2043_v30 = vpop.f32.mrf.mxu1  ;;  %v3040_v63 = vsel %vm3038_vm6, %v3025_v8, %v11632_v28 }
 0x258   : > { %v1979_v51 = vadd.f32 %v1921_v54, %v11476_v1  ;;  %v11623_v15 = vadd.f32 %v2043_v30, %v11520_v13  ;;  %v3053_v31 = vand.u32 %v3040_v63, %v10340_v37 }
 0x25a   : > { %8149 = vmatmul.msk.bf16.vlgmr.msrb.gmra.mxu0 %vm439_vm3, %v11253_v58  ;;  %8154 = vmatmul.msk.bf16.vlgmr.msrb.gmra.mxu1 %vm439_vm3, %v11375_v38  ;;  %v2127_v32 = vadd.f32 %v2069_v33, %v1979_v51  ;;  %v2911_v58 = vand.u32 %v2894_v47, %v10340_v37  ;;  %v2747_v33 = vsel %vm2742_vm4, %v11478_v21, %v11557_v6  ;;  %vm6719_vm4 = vcmask 932864  }
 0x25b   : > { %2781 = vmatpush.bf16.msrb.mxu0 %v2754_v48  ;;  %2846 = vmatpush.bf16.msrb.mxu1 %v2769_v2  ;;  %v2766_v56 = vand.u32 %v2747_v33, %v10340_v37  ;;  %v2905_v2 = vand.u32 %v2892_v10, %v10340_v37 }
 0x25c   : > { %v2058_v1 = vpop.f32.mrf.mxu2  ;;  %v2123_v13 = vpop.f32.mrf.mxu3 }
 0x25d   : > { %v11642_v19 = vpop.permute.xlu1 %3030  ;;  %v2889_v60 = vpop.permute.xlu2 %2888 }
 0x25e   : > { %v11667_v5 = vpop.permute.xlu0 %3028  ;;  %v2897_v30 = vsel %vm2890_vm5, %v11629_v39, %v2889_v60  ;;  %vm6929_vm5 = vcmask 809984  }
 0x25f   : > { %v1923_v59 = vpop.f32.mrf.mxu0  ;;  %v2045_v18 = vpop.f32.mrf.mxu1  ;;  %v2920_v47 = vand.u32 %v2897_v30, %v10340_v37 }
 0x261   : > { %8159 = vmatmul.msk.bf16.vlgmr.msrb.gmra.mxu2 %vm439_vm3, %v11507_v20  ;;  %8164 = vmatmul.msk.bf16.vlgmr.msrb.gmra.mxu3 %vm439_vm3, %v11577_v44 }
 0x262   : > { %2968 = vmatpush.bf16.msrb.mxu2 %v2911_v58  ;;  %3090 = vmatpush.bf16.msrb.mxu3 %v3053_v31 }
 0x264   : > { %v2108_v22 = vpop.f32.mrf.mxu2  ;;  %v2230_v14 = vpop.f32.mrf.mxu3 }
 0x265   : > { %v11650_v50 = vadd.f32 %v2108_v22, %v11583_v41  ;;  %v11662_v6 = vpop.permute.xlu1 %3034  ;;  %v3033_v41 = vpop.permute.xlu2 %3032 }
 0x267   : > { %v1973_v62 = vpop.f32.mrf.mxu0  ;;  %v2095_v29 = vpop.f32.mrf.mxu1 }
 0x268   : > { %v1983_v40 = vadd.f32 %v1973_v62, %v11530_v52  ;;  %v11656_v9 = vadd.f32 %v2095_v29, %v11566_v26  ;;  %v3044_v52 = vsel %vm3038_vm6, %v3033_v41, %v11662_v6  ;;  %v3042_v29 = vsel %vm3038_vm6, %v11667_v5, %v11642_v19 }
 0x269   : > { %v3065_v16 = vand.u32 %v3044_v52, %v10340_v37  ;;  %v3059_v52 = vand.u32 %v3042_v29, %v10340_v37 }
 0x26a   : > { %8153 = vmatmul.msk.bf16.vlgmr.msra.gmra.mxu0 %vm439_vm3, %v11375_v38  ;;  %8158 = vmatmul.msk.bf16.vlgmr.msra.gmra.mxu1 %vm439_vm3, %v11507_v20  ;;  %v2131_v21 = vadd.f32 %v2121_v17, %v1983_v40  ;;  %v3050_v38 = vand.u32 %v3039_v25, %v10340_v37  ;;  %v3175_v17 = vpop.permute.xlu0 %3174  ;;  %v2917_v40 = vand.u32 %v2896_v36, %v10340_v37 }
 0x26b   : > { %2833 = vmatpush.bf16.msra.mxu0 %v2766_v56  ;;  %2955 = vmatpush.bf16.msra.mxu1 %v2908_v7 }
 0x26c   : > { %v2110_v26 = vpop.f32.mrf.mxu2  ;;  %v2232_v49 = vpop.f32.mrf.mxu3 }
 0x26d   : > { %v11675_v53 = vpop.permute.xlu2 %3172  ;;  %v11690_v63 = vpop.permute.xlu1 %3168 }
 0x26f   : > { %v1975_v24 = vpop.f32.mrf.mxu0  ;;  %v2097_v27 = vpop.f32.mrf.mxu1 }
 0x271   : > { %8163 = vmatmul.msk.bf16.vlgmr.msra.gmra.mxu2 %vm439_vm3, %v11507_v20  ;;  %8168 = vmatmul.msk.bf16.vlgmr.msra.gmra.mxu3 %vm439_vm3, %v11577_v44 }
 0x272   : > { %3077 = vmatpush.bf16.msra.mxu2 %v3050_v38  ;;  %3142 = vmatpush.bf16.msra.mxu3 %v3065_v16  ;;  %v3188_v38 = vsel %vm3186_vm7, %v11675_v53, %v3175_v17 }
 0x273   : > { %v3201_v24 = vand.u32 %v3188_v38, %v10340_v37 }
 0x274   : > { %v2217_v55 = vpop.f32.mrf.mxu2  ;;  %v2339_v54 = vpop.f32.mrf.mxu3 }
 0x275   : > { %v11682_v48 = vadd.f32 %v2217_v55, %v2127_v32  ;;  %v3171_v3 = vpop.permute.xlu2 %3170  ;;  %v3043_v32 = vsel %vm3038_vm6, %v11642_v19, %v3033_v41  ;;  %v11704_v22 = vpop.permute.xlu1 %3036 }
 0x276   : > { %v3062_v59 = vand.u32 %v3043_v32, %v10340_v37  ;;  %v3045_v29 = vsel %vm3038_vm6, %v11662_v6, %v11704_v22 }
 0x277   : > { %v2082_v51 = vpop.f32.mrf.mxu0  ;;  %v2204_v8 = vpop.f32.mrf.mxu1 }
 0x278   : > { %v2128_v1 = vadd.f32 %v2082_v51, %v11575_v57  ;;  %v11688_v13 = vadd.f32 %v2204_v8, %v11615_v45  ;;  %v11698_v57 = vpop.permute.xlu0 %3176  ;;  %v3187_v51 = vsel %vm3186_vm7, %v3171_v3, %v11675_v53 }
 0x279   : > { %v3189_v31 = vsel %vm3186_vm7, %v3175_v17, %v11698_v57 }
 0x27a   : > { %8157 = vmatmul.msk.bf16.vlgmr.msrb.gmra.mxu0 %vm439_vm3, %v11507_v20  ;;  %8162 = vmatmul.msk.bf16.vlgmr.msrb.gmra.mxu1 %vm439_vm3, %v11507_v20  ;;  %v2276_v4 = vadd.f32 %v2230_v14, %v2128_v1  ;;  %v3204_v18 = vand.u32 %v3189_v31, %v10340_v37 }
 0x27b   : > { %2942 = vmatpush.bf16.msrb.mxu0 %v2905_v2  ;;  %3007 = vmatpush.bf16.msrb.mxu1 %v2920_v47 }
 0x27c   : > { %v2219_v45 = vpop.f32.mrf.mxu2  ;;  %v2341_v58 = vpop.f32.mrf.mxu3 }
 0x27d   : > { %v11710_v14 = vpop.permute.xlu2 %3180  ;;  %v11726_v46 = vpop.permute.xlu1 %3178  ;;  %v3198_v45 = vand.u32 %v3187_v51, %v10340_v37 }
 0x27f   : > { %v2084_v60 = vpop.f32.mrf.mxu0  ;;  %v2206_v33 = vpop.f32.mrf.mxu1 }
 0x281   : > { %8167 = vmatmul.msk.bf16.vlgmr.msrb.gmra.mxu2 %vm439_vm3, %v11577_v44  ;;  %8172 = vmatmul.msk.bf16.vlgmr.msrb.gmra.mxu3 %vm439_vm3, %v11606_v42 }
 0x282   : > { %3129 = vmatpush.bf16.msrb.mxu2 %v3062_v59  ;;  %3251 = vmatpush.bf16.msrb.mxu3 %v3204_v18 }
 0x284   : > { %v2269_v56 = vpop.f32.mrf.mxu2  ;;  %v2391_v62 = vpop.f32.mrf.mxu3 }
 0x285   : > { %v11718_v7 = vadd.f32 %v2269_v56, %v2131_v21  ;;  %v3185_v19 = vpop.permute.xlu2 %3184  ;;  %v3183_v21 = vpop.permute.xlu0 %3182 }
 0x286   : > { %v3325_v55 = vpop.permute.xlu1 %3324 }
 0x287   : > { %v2191_v41 = vpop.f32.mrf.mxu0  ;;  %v2256_v25 = vpop.f32.mrf.mxu1 }
 0x288   : > { %v2273_v26 = vadd.f32 %v2191_v41, %v11623_v15  ;;  %v11724_v49 = vadd.f32 %v2256_v25, %v11650_v50  ;;  %v3193_v15 = vsel %vm3186_vm7, %v3183_v21, %v3185_v19  ;;  %v3191_v25 = vsel %vm3186_vm7, %v11726_v46, %v11710_v14 }
 0x289   : > { %v3216_v27 = vand.u32 %v3193_v15, %v10340_v37  ;;  %v3210_v38 = vand.u32 %v3191_v25, %v10340_v37 }
 0x28a   : > { %8161 = vmatmul.msk.bf16.vlgmr.msra.gmra.mxu0 %vm439_vm3, %v11507_v20  ;;  %8166 = vmatmul.msk.bf16.vlgmr.msra.gmra.mxu1 %vm439_vm3, %v11577_v44  ;;  %v2421_v39 = vadd.f32 %v2339_v54, %v2273_v26  ;;  %v3041_v54 = vsel %vm3038_vm6, %v11632_v28, %v11667_v5  ;;  %v3068_v26 = vand.u32 %v3045_v29, %v10340_v37 }
 0x28b   : > { %2994 = vmatpush.bf16.msra.mxu0 %v2917_v40  ;;  %3116 = vmatpush.bf16.msra.mxu1 %v3059_v52  ;;  %v3056_v47 = vand.u32 %v3041_v54, %v10340_v37 }
 0x28c   : > { %v2271_v50 = vpop.f32.mrf.mxu2  ;;  %v2393_v16 = vpop.f32.mrf.mxu3 }
 0x28d   : > { %v11741_v17 = vpop.permute.xlu0 %3322  ;;  %v11774_v56 = vpop.permute.xlu2 %3316 }
 0x28e   : > { %v11756_v28 = vpop.permute.xlu1 %3326  ;;  %v3337_v16 = vsel %vm3334_vm8, %v11741_v17, %v3325_v55 }
 0x28f   : > { %v2193_v20 = vpop.f32.mrf.mxu0  ;;  %v2258_v10 = vpop.f32.mrf.mxu1 }
 0x291   : > { %8171 = vmatmul.msk.bf16.vlgmr.msra.gmra.mxu2 %vm439_vm3, %v11606_v42  ;;  %8176 = vmatmul.msk.bf16.vlgmr.msra.gmra.mxu3 %vm439_vm3, %v11606_v42 }
 0x292   : > { %3238 = vmatpush.bf16.msra.mxu2 %v3201_v24  ;;  %3303 = vmatpush.bf16.msra.mxu3 %v3216_v27  ;;  %v3352_v27 = vand.u32 %v3337_v16, %v10340_v37 }
 0x294   : > { %v2378_v30 = vpop.f32.mrf.mxu2  ;;  %v2500_v2 = vpop.f32.mrf.mxu3 }
 0x295   : > { %v11748_v8 = vadd.f32 %v2378_v30, %v2276_v4  ;;  %v11762_v53 = vpop.permute.xlu0 %3320  ;;  %v3192_v4 = vsel %vm3186_vm7, %v11710_v14, %v3183_v21  ;;  %v3319_v14 = vpop.permute.xlu2 %3318  ;;  %v3190_v30 = vsel %vm3186_vm7, %v11698_v57, %v11726_v46  ;;  %vm6899_vm7 = vcmask 818176  }
 0x296   : > { %v3213_v59 = vand.u32 %v3192_v4, %v10340_v37  ;;  %v3333_v36 = vpop.permute.xlu1 %3332 }
 0x297   : > { %v2243_v1 = vpop.f32.mrf.mxu0  ;;  %v2365_v32 = vpop.f32.mrf.mxu1 }
 0x298   : > { %v2277_v58 = vadd.f32 %v2243_v1, %v11656_v9  ;;  %v11754_v31 = vadd.f32 %v2365_v32, %v11682_v48  ;;  %v3338_v9 = vsel %vm3334_vm8, %v3325_v55, %v11756_v28  ;;  %v3207_v32 = vand.u32 %v3190_v30, %v10340_v37 }
 0x299   : > { %v3355_v18 = vand.u32 %v3338_v9, %v10340_v37 }
 0x29a   : > { %8165 = vmatmul.msk.bf16.vlgmr.msrb.gmra.mxu0 %vm439_vm3, %v11577_v44  ;;  %8170 = vmatmul.msk.bf16.vlgmr.msrb.gmra.mxu1 %vm439_vm3, %v11577_v44  ;;  %v2425_v5 = vadd.f32 %v2391_v62, %v2277_v58 }
 0x29b   : > { %3103 = vmatpush.bf16.msrb.mxu0 %v3056_v47  ;;  %3225 = vmatpush.bf16.msrb.mxu1 %v3198_v45  ;;  %v3336_v47 = vsel %vm3334_vm8, %v11762_v53, %v11741_v17 }
 0x29c   : > { %v2380_v48 = vpop.f32.mrf.mxu2  ;;  %v2502_v3 = vpop.f32.mrf.mxu3  ;;  %v3349_v4 = vand.u32 %v3336_v47, %v10340_v37 }
 0x29d   : > { %v11776_v62 = vpop.permute.xlu0 %3330  ;;  %v11808_v55 = vpop.permute.xlu2 %3328 }
 0x29e   : > { %v11792_v6 = vpop.permute.xlu1 %3468  ;;  %v3341_v3 = vsel %vm3334_vm8, %v11776_v62, %v3333_v36 }
 0x29f   : > { %v2245_v60 = vpop.f32.mrf.mxu0  ;;  %v2367_v33 = vpop.f32.mrf.mxu1 }
 0x2a1   : > { %8175 = vmatmul.msk.bf16.vlgmr.msrb.gmra.mxu2 %vm439_vm3, %v11606_v42  ;;  %8180 = vmatmul.msk.bf16.vlgmr.msrb.gmra.mxu3 %vm439_vm3, %v11690_v63 }
 0x2a2   : > { %3290 = vmatpush.bf16.msrb.mxu2 %v3213_v59  ;;  %3412 = vmatpush.bf16.msrb.mxu3 %v3355_v18  ;;  %v3364_v18 = vand.u32 %v3341_v3, %v10340_v37 }
 0x2a4   : > { %v2487_v40 = vpop.f32.mrf.mxu2  ;;  %v2552_v41 = vpop.f32.mrf.mxu3 }
 0x2a5   : > { %v11784_v52 = vadd.f32 %v2487_v40, %v2421_v39  ;;  %v3467_v39 = vpop.permute.xlu0 %3466  ;;  %v3473_v17 = vpop.permute.xlu2 %3472 }
 0x2a6   : > { %v11824_v57 = vpop.permute.xlu1 %3464 }
 0x2a7   : > { %v2352_v19 = vpop.f32.mrf.mxu0  ;;  %v2417_v21 = vpop.f32.mrf.mxu1 }
 0x2a8   : > { %v2422_v15 = vadd.f32 %v2352_v19, %v11688_v13  ;;  %v11790_v50 = vadd.f32 %v2417_v21, %v11718_v7  ;;  %v3483_v13 = vsel %vm439_vm3, %v3467_v39, %v11792_v6  ;;  %v3335_v19 = vsel %vm3334_vm8, %v3319_v14, %v11762_v53 }
 0x2a9   : > { %v3340_v21 = vsel %vm3334_vm8, %v11808_v55, %v11776_v62  ;;  %v3346_v16 = vand.u32 %v3335_v19, %v10340_v37 }
 0x2aa   : > { %8169 = vmatmul.msk.bf16.vlgmr.msra.gmra.mxu0 %vm439_vm3, %v11577_v44  ;;  %8174 = vmatmul.msk.bf16.vlgmr.msra.gmra.mxu1 %vm439_vm3, %v11606_v42  ;;  %v2570_v22 = vadd.f32 %v2500_v2, %v2422_v15  ;;  %v3494_v44 = vand.u32 %v3483_v13, %v10340_v37  ;;  %v3361_v13 = vand.u32 %v3340_v21, %v10340_v37 }
 0x2ab   : > { %3155 = vmatpush.bf16.msra.mxu0 %v3068_v26  ;;  %3277 = vmatpush.bf16.msra.mxu1 %v3210_v38 }
 0x2ac   : > { %v2489_v7 = vpop.f32.mrf.mxu2  ;;  %v2554_v24 = vpop.f32.mrf.mxu3 }
 0x2ad   : > { %v3475_v54 = vpop.permute.xlu0 %3474  ;;  %v11842_v40 = vpop.permute.xlu2 %3470 }
 0x2ae   : > { %v3615_v36 = vpop.permute.xlu1 %3614  ;;  %v3486_v14 = vsel %vm439_vm3, %v3473_v17, %v3475_v54 }
 0x2af   : > { %v2354_v20 = vpop.f32.mrf.mxu0  ;;  %v2419_v10 = vpop.f32.mrf.mxu1 }
 0x2b1   : > { %8179 = vmatmul.msk.bf16.vlgmr.msra.gmra.mxu2 %vm439_vm3, %v11690_v63  ;;  %8184 = vmatmul.msk.bf16.vlgmr.msra.gmra.mxu3 %vm439_vm3, %v11690_v63 }
 0x2b2   : > { %3399 = vmatpush.bf16.msra.mxu2 %v3352_v27  ;;  %3521 = vmatpush.bf16.msra.mxu3 %v3494_v44 }
 0x2b4   : > { %v2539_v2 = vpop.f32.mrf.mxu2  ;;  %v2661_v51 = vpop.f32.mrf.mxu3 }
 0x2b5   : > { %v11816_v1 = vadd.f32 %v2539_v2, %v2425_v5  ;;  %v11830_v5 = vpop.permute.xlu0 %3476 }
 0x2b6   : > { %v11863_v62 = vpop.permute.xlu1 %3478 }
 0x2b7   : > { %v2404_v45 = vpop.f32.mrf.mxu0  ;;  %v2526_v58 = vpop.f32.mrf.mxu1 }
 0x2b8   : > { %v2426_v9 = vadd.f32 %v2404_v45, %v11724_v49  ;;  %v11822_v48 = vadd.f32 %v2526_v58, %v11748_v8  ;;  %v3487_v49 = vsel %vm439_vm3, %v3475_v54, %v11830_v5  ;;  %v3485_v45 = vsel %vm439_vm3, %v11842_v40, %v3473_v17 }
 0x2b9   : > { %v3506_v60 = vand.u32 %v3487_v49, %v10340_v37  ;;  %v3500_v49 = vand.u32 %v3485_v45, %v10340_v37 }
 0x2ba   : > { %8173 = vmatmul.msk.bf16.vlgmr.msrb.gmra.mxu0 %vm439_vm3, %v11606_v42  ;;  %8178 = vmatmul.msk.bf16.vlgmr.msrb.gmra.mxu1 %vm439_vm3, %v11690_v63  ;;  %v2574_v46 = vadd.f32 %v2552_v41, %v2426_v9 }
 0x2bb   : > { %3264 = vmatpush.bf16.msrb.mxu0 %v3207_v32  ;;  %3386 = vmatpush.bf16.msrb.mxu1 %v3349_v4 }
 0x2bc   : > { %v2541_v8 = vpop.f32.mrf.mxu2  ;;  %v2663_v59 = vpop.f32.mrf.mxu3 }
 0x2bd   : > { %v11844_v41 = vpop.permute.xlu0 %3612 }
 0x2be   : > { %v11876_v54 = vpop.permute.xlu1 %3622 }
 0x2bf   : > { %v2406_v33 = vpop.f32.mrf.mxu0  ;;  %v2528_v29 = vpop.f32.mrf.mxu1 }
 0x2c1   : > { %8183 = vmatmul.msk.bf16.vlgmr.msrb.gmra.mxu2 %vm439_vm3, %v11690_v63  ;;  %8188 = vmatmul.msk.bf16.vlgmr.msrb.gmra.mxu3 %vm439_vm3, %v11774_v56 }
 0x2c2   : > { %3451 = vmatpush.bf16.msrb.mxu2 %v3364_v18  ;;  %3573 = vmatpush.bf16.msrb.mxu3 %v3506_v60 }
 0x2c4   : > { %v2648_v25 = vpop.f32.mrf.mxu2  ;;  %v2713_v26 = vpop.f32.mrf.mxu3 }
 0x2c5   : > { %v11851_v38 = vadd.f32 %v2648_v25, %v2570_v22  ;;  %v3617_v22 = vpop.permute.xlu2 %3616  ;;  %v11866_v27 = vpop.permute.xlu0 %3618 }
 0x2c6   : > { %v3632_v44 = vsel %vm3630_vm9, %v3617_v22, %v11866_v27  ;;  %v3631_v17 = vsel %vm3630_vm9, %v3615_v36, %v3617_v22  ;;  %v3484_v36 = vsel %vm439_vm3, %v11792_v6, %v11842_v40 }
 0x2c7   : > { %v2513_v15 = vpop.f32.mrf.mxu0  ;;  %v2635_v39 = vpop.f32.mrf.mxu1  ;;  %v3645_v20 = vand.u32 %v3632_v44, %v10340_v37 }
 0x2c8   : > { %v2571_v7 = vadd.f32 %v2513_v15, %v11754_v31  ;;  %v11857_v24 = vadd.f32 %v2635_v39, %v11784_v52 }
 0x2ca   : > { %8177 = vmatmul.msk.bf16.vlgmr.msra.gmra.mxu0 %vm439_vm3, %v11606_v42  ;;  %8182 = vmatmul.msk.bf16.vlgmr.msra.gmra.mxu1 %vm439_vm3, %v11690_v63  ;;  %v2719_v53 = vadd.f32 %v2661_v51, %v2571_v7  ;;  %v3503_v42 = vand.u32 %v3486_v14, %v10340_v37  ;;  %v3339_v51 = vsel %vm3334_vm8, %v11756_v28, %v11808_v55  ;;  %v11895_v55 = vpop.permute.xlu1 %3626  ;;  %vm6839_vm8 = vcmask 834560  }
 0x2cb   : > { %3373 = vmatpush.bf16.msra.mxu0 %v3346_v16  ;;  %3438 = vmatpush.bf16.msra.mxu1 %v3361_v13  ;;  %v3358_v4 = vand.u32 %v3339_v51, %v10340_v37  ;;  %v3497_v13 = vand.u32 %v3484_v36, %v10340_v37  ;;  %v3488_v51 = vsel %vm439_vm3, %v11830_v5, %v11863_v62 }
 0x2cc   : > { %v2650_v31 = vpop.f32.mrf.mxu2  ;;  %v2715_v52 = vpop.f32.mrf.mxu3 }
 0x2cd   : > { %v3481_v2 = vpop.permute.xlu2 %3480  ;;  %v11900_v60 = vpop.permute.xlu0 %3620 }
 0x2ce   : > { %v3489_v21 = vsel %vm439_vm3, %v11863_v62, %v3481_v2  ;;  %v3634_v45 = vsel %vm3630_vm9, %v11900_v60, %v11876_v54 }
 0x2cf   : > { %v2515_v10 = vpop.f32.mrf.mxu0  ;;  %v2637_v30 = vpop.f32.mrf.mxu1  ;;  %v3512_v14 = vand.u32 %v3489_v21, %v10340_v37 }
 0x2d1   : > { %8187 = vmatmul.msk.bf16.vlgmr.msra.gmra.mxu2 %vm439_vm3, %v11774_v56  ;;  %8192 = vmatmul.msk.bf16.vlgmr.msra.gmra.mxu3 %vm439_vm3, %v11824_v57 }
 0x2d2   : > { %3560 = vmatpush.bf16.msra.mxu2 %v3503_v42  ;;  %3682 = vmatpush.bf16.msra.mxu3 %v3645_v20 }
 0x2d4   : > { %v2700_v47 = vpop.f32.mrf.mxu2  ;;  %v2822_v32 = vpop.f32.mrf.mxu3 }
 0x2d5   : > { %v11883_v58 = vadd.f32 %v2700_v47, %v2574_v46  ;;  %v3625_v46 = vpop.permute.xlu2 %3624  ;;  %v3767_v16 = vpop.permute.xlu0 %3766 }
 0x2d7   : > { %v2565_v9 = vpop.f32.mrf.mxu0  ;;  %v2687_v3 = vpop.f32.mrf.mxu1 }
 0x2d8   : > { %v2575_v8 = vadd.f32 %v2565_v9, %v11790_v50  ;;  %v11889_v59 = vadd.f32 %v2687_v3, %v11816_v1  ;;  %v3636_v50 = vsel %vm3630_vm9, %v3625_v46, %v11895_v55  ;;  %v3509_v3 = vand.u32 %v3488_v51, %v10340_v37 }
 0x2d9   : > { %v3657_v33 = vand.u32 %v3636_v50, %v10340_v37 }
 0x2da   : > { %8181 = vmatmul.msk.bf16.vlgmr.msrb.gmra.mxu0 %vm439_vm3, %v11690_v63  ;;  %8186 = vmatmul.msk.bf16.vlgmr.msrb.gmra.mxu1 %vm439_vm3, %v11774_v56  ;;  %v2723_v28 = vadd.f32 %v2713_v26, %v2575_v8  ;;  %v3642_v63 = vand.u32 %v3631_v17, %v10340_v37 }
 0x2db   : > { %3425 = vmatpush.bf16.msrb.mxu0 %v3358_v4  ;;  %3547 = vmatpush.bf16.msrb.mxu1 %v3500_v49 }
 0x2dc   : > { %v2702_v18 = vpop.f32.mrf.mxu2  ;;  %v2824_v1 = vpop.f32.mrf.mxu3 }
 0x2dd   : > { %v11915_v39 = vpop.permute.xlu2 %3764 }
 0x2de   : > { %v3780_v62 = vsel %vm3778_vm10, %v11915_v39, %v3767_v16 }
 0x2df   : > { %v2567_v29 = vpop.f32.mrf.mxu0  ;;  %v2689_v25 = vpop.f32.mrf.mxu1 }
 0x2e0   : > { %v11966_v29 = vpop.permute.xlu1 %3760  ;;  %v3633_v25 = vsel %vm3630_vm9, %v11866_v27, %v11900_v60 }
 0x2e1   : > { %8191 = vmatmul.msk.bf16.vlgmr.msrb.gmra.mxu2 %vm439_vm3, %v11774_v56  ;;  %8196 = vmatmul.msk.bf16.vlgmr.msrb.gmra.mxu3 %vm439_vm3, %v11824_v57 }
 0x2e2   : > { %3669 = vmatpush.bf16.msrb.mxu2 %v3642_v63  ;;  %3734 = vmatpush.bf16.msrb.mxu3 %v3657_v33 }
 0x2e4   : > { %v2809_v26 = vpop.f32.mrf.mxu2  ;;  %v2931_v19 = vpop.f32.mrf.mxu3 }
 0x2e5   : > { %v11913_v15 = vadd.f32 %v2809_v26, %v2719_v53  ;;  %v3635_v53 = vsel %vm3630_vm9, %v11876_v54, %v3625_v46  ;;  %v3763_v42 = vpop.permute.xlu2 %3762  ;;  %v3651_v46 = vand.u32 %v3634_v45, %v10340_v37 }
 0x2e7   : > { %v2674_v7 = vpop.f32.mrf.mxu0  ;;  %v2796_v22 = vpop.f32.mrf.mxu1 }
 0x2e8   : > { %v2720_v31 = vadd.f32 %v2674_v7, %v11822_v48  ;;  %v11921_v6 = vadd.f32 %v2796_v22, %v11851_v38  ;;  %v11929_v48 = vpop.permute.xlu0 %3768  ;;  %v3654_v38 = vand.u32 %v3635_v53, %v10340_v37 }
 0x2e9   : > { %v3781_v20 = vsel %vm3778_vm10, %v3767_v16, %v11929_v48  ;;  %v3648_v16 = vand.u32 %v3633_v25, %v10340_v37 }
 0x2ea   : > { %8185 = vmatmul.msk.bf16.vlgmr.msra.gmra.mxu0 %vm439_vm3, %v11774_v56  ;;  %8190 = vmatmul.msk.bf16.vlgmr.msra.gmra.mxu1 %vm439_vm3, %v11774_v56  ;;  %v2868_v40 = vadd.f32 %v2822_v32, %v2720_v31  ;;  %v3796_v2 = vand.u32 %v3781_v20, %v10340_v37 }
 0x2eb   : > { %3534 = vmatpush.bf16.msra.mxu0 %v3497_v13  ;;  %3599 = vmatpush.bf16.msra.mxu1 %v3512_v14 }
 0x2ec   : > { %v2811_v52 = vpop.f32.mrf.mxu2  ;;  %v2933_v44 = vpop.f32.mrf.mxu3 }
 0x2ed   : > { %v3773_v9 = vpop.permute.xlu2 %3772 }
 0x2ef   : > { %v2676_v10 = vpop.f32.mrf.mxu0  ;;  %v2798_v30 = vpop.f32.mrf.mxu1 }
 0x2f0   : > { %v3775_v1 = vpop.permute.xlu0 %3774 }
 0x2f1   : > { %8195 = vmatmul.msk.bf16.vlgmr.msra.gmra.mxu2 %vm439_vm3, %v11824_v57  ;;  %8200 = vmatmul.msk.bf16.vlgmr.msra.gmra.mxu3 %vm439_vm3, %v11844_v41  ;;  %v3784_v60 = vsel %vm3778_vm10, %v3773_v9, %v3775_v1 }
 0x2f2   : > { %3721 = vmatpush.bf16.msra.mxu2 %v3654_v38  ;;  %3843 = vmatpush.bf16.msra.mxu3 %v3796_v2  ;;  %v3805_v52 = vand.u32 %v3784_v60, %v10340_v37 }
 0x2f4   : > { %v2861_v47 = vpop.f32.mrf.mxu2  ;;  %v2983_v32 = vpop.f32.mrf.mxu3 }
 0x2f5   : > { %v11945_v4 = vadd.f32 %v2861_v47, %v2723_v28  ;;  %v3777_v18 = vpop.permute.xlu2 %3776 }
 0x2f7   : > { %v2783_v49 = vpop.f32.mrf.mxu0  ;;  %v2848_v8 = vpop.f32.mrf.mxu1 }
 0x2f8   : > { %v2865_v17 = vadd.f32 %v2783_v49, %v11857_v24  ;;  %v11951_v50 = vadd.f32 %v2848_v8, %v11883_v58  ;;  %v3793_v24 = vand.u32 %v3780_v62, %v10340_v37  ;;  %v3785_v58 = vsel %vm3778_vm10, %v3775_v1, %v3777_v18 }
 0x2f9   : > { %v3914_v1 = vand.u32 %v10686_v23, %v10340_v37 }
 0x2fa   : > { %8189 = vmatmul.msk.bf16.vlgmr.msrb.gmra.mxu0 %vm439_vm3, %v11774_v56  ;;  %8194 = vmatmul.msk.bf16.vlgmr.msrb.gmra.mxu1 %vm439_vm3, %v11824_v57  ;;  %v3013_v5 = vadd.f32 %v2931_v19, %v2865_v17  ;;  %v3808_v56 = vand.u32 %v3785_v58, %v10340_v37  ;;  %v3779_v19 = vsel %vm3778_vm10, %v3763_v42, %v11915_v39  ;;  %v3629_v39 = vpop.permute.xlu1 %3628 }
 0x2fb   : > { %3586 = vmatpush.bf16.msrb.mxu0 %v3509_v3  ;;  %3708 = vmatpush.bf16.msrb.mxu1 %v3651_v46  ;;  %v3790_v22 = vand.u32 %v3779_v19, %v10340_v37  ;;  %v3637_v20 = vsel %vm3630_vm9, %v11895_v55, %v3629_v39 }
 0x2fc   : > { %v2863_v54 = vpop.f32.mrf.mxu2  ;;  %v2985_v28 = vpop.f32.mrf.mxu3  ;;  %v3660_v47 = vand.u32 %v3637_v20, %v10340_v37 }
 0x2ff   : > { %v2785_v63 = vpop.f32.mrf.mxu0  ;;  %v2850_v33 = vpop.f32.mrf.mxu1 }
 0x300   : > { %v3909_v63 = vpop.permute.xlu0 %3908  ;;  %v10103_v33 = vmov 0  }
 0x301   : > { %8199 = vmatmul.msk.bf16.vlgmr.msrb.gmra.mxu2 %vm439_vm3, %v11844_v41  ;;  %8204 = vmatmul.msk.bf16.vlgmr.msrb.gmra.mxu3 %vm439_vm3, %v11844_v41 }
 0x302   : > { %3830 = vmatpush.bf16.msrb.mxu2 %v3793_v24  ;;  %3895 = vmatpush.bf16.msrb.mxu3 %v3808_v56 }
 0x303   : > { %9976 = vset.pattern.permute.xlu1 %v10103_v33 }
 0x304   : > { %v2970_v36 = vpop.f32.mrf.mxu2  ;;  %v3092_v26 = vpop.f32.mrf.mxu3 }
 0x305   : > { %v3016_v21 = vadd.f32 %v2970_v36, %v2868_v40 }
 0x307   : > { %v2835_v13 = vpop.f32.mrf.mxu0  ;;  %v2957_v7 = vpop.f32.mrf.mxu1 }
 0x308   : > { %v2869_v14 = vadd.f32 %v2835_v13, %v11889_v59  ;;  %v11977_v31 = vadd.f32 %v2957_v7, %v11913_v15  ;;  %v3771_v15 = vpop.permute.xlu1 %3770 }
 0x309   : > { %v3783_v10 = vsel %vm3778_vm10, %v3771_v15, %v3773_v9 }
 0x30a   : > { %8193 = vmatmul.msk.bf16.vlgmr.msra.gmra.mxu0 %vm439_vm3, %v11824_v57  ;;  %8198 = vmatmul.msk.bf16.vlgmr.msra.gmra.mxu1 %vm439_vm3, %v11824_v57  ;;  %v3017_v27 = vadd.f32 %v2983_v32, %v2869_v14  ;;  %v3802_v32 = vand.u32 %v3783_v10, %v10340_v37 }
 0x30b   : > { %3695 = vmatpush.bf16.msra.mxu0 %v3648_v16  ;;  %3817 = vmatpush.bf16.msra.mxu1 %v3790_v22 }
 0x30c   : > { %v2972_v40 = vpop.f32.mrf.mxu2  ;;  %v3094_v53 = vpop.f32.mrf.mxu3 }
 0x30f   : > { %v2837_v59 = vpop.f32.mrf.mxu0  ;;  %v2959_v44 = vpop.f32.mrf.mxu1 }
 0x311   : > { %8203 = vmatmul.msk.bf16.vlgmr.msra.gmra.mxu2 %vm439_vm3, %v11844_v41  ;;  %8208 = vmatmul.msk.bf16.vlgmr.msra.gmra.mxu3 %vm439_vm3, %v11966_v29 }
 0x312   : > { %3882 = vmatpush.bf16.msra.mxu2 %v3805_v52  ;;  %3962 = vmatpush.bf16.msra.mxu3 %v10352_v43 }
 0x314   : > { %v3079_v42 = vpop.f32.mrf.mxu2  ;;  %v3144_v38 = vpop.f32.mrf.mxu3 }
 0x315   : > { %v3161_v30 = vadd.f32 %v3079_v42, %v3013_v5 }
 0x317   : > { %v2944_v2 = vpop.f32.mrf.mxu0  ;;  %v3009_v51 = vpop.f32.mrf.mxu1 }
 0x318   : > { %v3014_v45 = vadd.f32 %v2944_v2, %v11921_v6  ;;  %v3019_v3 = vadd.f32 %v3009_v51, %v11945_v4  ;;  %v3782_v4 = vsel %vm3778_vm10, %v11929_v48, %v3771_v15  ;;  %vm7049_vm10 = vcmask 711680  }
 0x319   : > { %v3799_v62 = vand.u32 %v3782_v4, %v10340_v37 }
 0x31a   : > { %8197 = vmatmul.msk.bf16.vlgmr.msrb.gmra.mxu0 %vm439_vm3, %v11824_v57  ;;  %8202 = vmatmul.msk.bf16.vlgmr.msrb.gmra.mxu1 %vm439_vm3, %v11844_v41  ;;  %v3162_v43 = vadd.f32 %v3092_v26, %v3014_v45 }
 0x31b   : > { %3747 = vmatpush.bf16.msrb.mxu0 %v3660_v47  ;;  %3869 = vmatpush.bf16.msrb.mxu1 %v3802_v32 }
 0x31c   : > { %v3081_v55 = vpop.f32.mrf.mxu2  ;;  %v3146_v9 = vpop.f32.mrf.mxu3 }
 0x31f   : > { %v2946_v49 = vpop.f32.mrf.mxu0  ;;  %v3011_v8 = vpop.f32.mrf.mxu1 }
 0x321   : > { %8207 = vmatmul.msk.bf16.vlgmr.msrb.gmra.mxu2 %vm439_vm3, %v11966_v29  ;;  %8212 = vmatmul.msk.bf16.vlgmr.msrb.gmra.mxu3 %vm439_vm3, %v11966_v29 }
 0x322   : > { %3949 = vmatpush.bf16.msrb.mxu2 %v10402_v61 }
 0x324   : > { %v3131_v6 = vpop.f32.mrf.mxu2  ;;  %v3253_v57 = vpop.f32.mrf.mxu3 }
 0x325   : > { %v3165_v46 = vadd.f32 %v3131_v6, %v3017_v27 }
 0x327   : > { %v2996_v17 = vpop.f32.mrf.mxu0  ;;  %v3118_v5 = vpop.f32.mrf.mxu1 }
 0x328   : > { %v3018_v54 = vadd.f32 %v2996_v17, %v11951_v50  ;;  %v3164_v28 = vadd.f32 %v3118_v5, %v3016_v21  ;;  %v4014_v50 = vld [vmem:[%s14684_s8] sm:$0x3f]  ;;  %v9642_v17 = vld [vmem:[%s14679_s3 + $0x2e4] sm:$0xf0] }
 0x329   : > { %4017 = vperm.xlu1 %9976, %v4014_v50  }
 0x32a   : > { %8201 = vmatmul.msk.bf16.vlgmr.msra.gmra.mxu0 %vm439_vm3, %v11844_v41  ;;  %8206 = vmatmul.msk.bf16.vlgmr.msra.gmra.mxu1 %vm439_vm3, %v11966_v29  ;;  %v3166_v61 = vadd.f32 %v3144_v38, %v3018_v54 }
 0x32b   : > { %3856 = vmatpush.bf16.msra.mxu0 %v3799_v62  ;;  %3936 = vmatpush.bf16.msra.mxu1 %v10408_v0 }
 0x32c   : > { %v3133_v18 = vpop.f32.mrf.mxu2  ;;  %v3255_v48 = vpop.f32.mrf.mxu3 }
 0x32d   : > { %v9738_v18 = vld [vmem:[%s14679_s3 + $0x5e4] sm:$0xf0] }
 0x32f   : > { %v2998_v24 = vpop.f32.mrf.mxu0  ;;  %v3120_v58 = vpop.f32.mrf.mxu1 }
 0x330   : > { %v8558_v58 = vld [vmem:[%s14679_s3 + $0x2a0] sm:$0xf] }
 0x331   : > { %8211 = vmatmul.msk.bf16.vlgmr.msra.gmra.mxu2 %vm439_vm3, %v11966_v29  ;;  %8216 = vmatmul.msk.bf16.vlgmr.msra.gmra.mxu3 %vm439_vm3, %v3909_v63 }
 0x332   : > { %4001 = vmatpush.bf16.msra.mxu2 %v3914_v1 }
 0x334   : > { %v3240_v0 = vpop.f32.mrf.mxu2  ;;  %v3305_v56 = vpop.f32.mrf.mxu3 }
 0x335   : > { %v3310_v25 = vadd.f32 %v3240_v0, %v3162_v43 }
 0x337   : > { %v3105_v37 = vpop.f32.mrf.mxu0  ;;  %v3227_v23 = vpop.f32.mrf.mxu1 }
 0x338   : > { %v3163_v36 = vadd.f32 %v3105_v37, %v11977_v31  ;;  %v3309_v26 = vadd.f32 %v3227_v23, %v3161_v30 }
 0x33a   : > { %8205 = vmatmul.msk.bf16.vlgmr.msrb.gmra.mxu0 %vm439_vm3, %v11844_v41  ;;  %8210 = vmatmul.msk.bf16.vlgmr.msrb.gmra.mxu1 %vm439_vm3, %v11966_v29  ;;  %v3311_v19 = vadd.f32 %v3253_v57, %v3163_v36  ;;  %v8534_v36 = vld [vmem:[%s14679_s3 + $0x270] sm:$0xf] }
 0x33b   : > { %3923 = vmatpush.bf16.msrb.mxu0 %v10430_v11  ;;  %3988 = vmatpush.bf16.msrb.mxu1 %v10434_v12 }
 0x33c   : > { %v3242_v21 = vpop.f32.mrf.mxu2  ;;  %v3307_v16 = vpop.f32.mrf.mxu3 }
 0x33f   : > { %v3107_v13 = vpop.f32.mrf.mxu0  ;;  %v3229_v7 = vpop.f32.mrf.mxu1 }
 0x340   : > { %v8774_v13 = vld [vmem:[%s14679_s3 + $0x450] sm:$0xf]  ;;  %v9690_v7 = vld [vmem:[%s14679_s3 + $0x464] sm:$0xf0] }
 0x341   : > { %8215 = vmatmul.msk.bf16.vlgmr.msrb.gmra.mxu2 %vm439_vm3, %v3909_v63 }
 0x344   : > { %v3292_v22 = vpop.f32.mrf.mxu2  ;;  %v3414_v14 = vpop.f32.mrf.mxu3 }
 0x345   : > { %v3314_v31 = vadd.f32 %v3292_v22, %v3166_v61  ;;  %v8966_v61 = vld [vmem:[%s14679_s3 + $0x5d0] sm:$0xf]  ;;  %v8775_v22 = vor.u32 %v9690_v7, %v8774_v13 }
 0x346   : > { %v8967_v48 = vor.u32 %v9738_v18, %v8966_v61  ;;  %v9612_v18 = vld [vmem:[%s14679_s3 + $0x1f4] sm:$0xf0]  ;;  %v8822_v7 = vld [vmem:[%s14679_s3 + $0x4b0] sm:$0xf] }
 0x347   : > { %v3157_v27 = vpop.f32.mrf.mxu0  ;;  %v3279_v60 = vpop.f32.mrf.mxu1 }
 0x348   : > { %v3167_v41 = vadd.f32 %v3157_v27, %v3019_v3  ;;  %v3313_v39 = vadd.f32 %v3279_v60, %v3165_v46  ;;  %v8582_v46 = vld [vmem:[%s14679_s3 + $0x2d0] sm:$0xf]  ;;  %5995 = vmatpush.bf16.msrb.mxu2 %v8967_v48  ;;  %v8702_v48 = vld [vmem:[%s14679_s3 + $0x3c0] sm:$0xf] }
 0x349   : > { %v8583_v54 = vor.u32 %v9642_v17, %v8582_v46  ;;  %v9588_v46 = vld [vmem:[%s14679_s3 + $0x134] sm:$0xf0]  ;;  %v8462_v17 = vld [vmem:[%s14679_s3 + $0x1e0] sm:$0xf] }
 0x34a   : > { %8209 = vmatmul.msk.bf16.vlgmr.msra.gmra.mxu0 %vm439_vm3, %v11966_v29  ;;  %8214 = vmatmul.msk.bf16.vlgmr.msra.gmra.mxu1 %vm439_vm3, %v3909_v63  ;;  %v3315_v11 = vadd.f32 %v3305_v56, %v3167_v41  ;;  %v8942_v56 = vld [vmem:[%s14679_s3 + $0x5a0] sm:$0xf] }
 0x34b   : > { %3975 = vmatpush.bf16.msra.mxu0 %v10475_v34  ;;  %5982 = vmatpush.bf16.msra.mxu1 %v8775_v22  ;;  %v9702_v22 = vld [vmem:[%s14679_s3 + $0x4c4] sm:$0xf0] }
 0x34c   : > { %v3294_v12 = vpop.f32.mrf.mxu2  ;;  %v3416_v40 = vpop.f32.mrf.mxu3 }
 0x34d   : > { %v8750_v12 = vld [vmem:[%s14679_s3 + $0x420] sm:$0xf] }
 0x34f   : > { %v3159_v53 = vpop.f32.mrf.mxu0  ;;  %v3281_v52 = vpop.f32.mrf.mxu1 }
 0x350   : > { %v9684_v53 = vld [vmem:[%s14679_s3 + $0x434] sm:$0xf0] }
 0x351   : > { %8219 = vmatmul.msk.bf16.vlgmr.msra.gmra.mxu2 %vm439_vm3, %v3909_v63  ;;  %v8751_v52 = vor.u32 %v9684_v53, %v8750_v12  ;;  %v9600_v12 = vld [vmem:[%s14679_s3 + $0x194] sm:$0xf0] }
 0x352   : > { %v9660_v53 = vld [vmem:[%s14679_s3 + $0x374] sm:$0xf0] }
 0x353   : > { %5983 = vmatpush.bf16.msra.mxu1 %v8751_v52 }
 0x354   : > { %v3401_v59 = vpop.f32.mrf.mxu2  ;;  %v3523_v44 = vpop.f32.mrf.mxu3 }
 0x355   : > { %v3459_v15 = vadd.f32 %v3401_v59, %v3311_v19  ;;  %v8894_v59 = vld [vmem:[%s14679_s3 + $0x540] sm:$0xf] }
 0x357   : > { %v3266_v42 = vpop.f32.mrf.mxu0  ;;  %v3388_v38 = vpop.f32.mrf.mxu1 }
 0x358   : > { %v3312_v20 = vadd.f32 %v3266_v42, %v3164_v28  ;;  %v12036_v10 = vadd.f32 %v3388_v38, %v3310_v25  ;;  %v9732_v25 = vld [vmem:[%s14679_s3 + $0x5b4] sm:$0xf0]  ;;  %v8390_v42 = vld [vmem:[%s14679_s3 + $0x150] sm:$0xf]  ;;  %v9594_v38 = vld [vmem:[%s14679_s3 + $0x164] sm:$0xf0] }
 0x359   : > { %v8943_v23 = vor.u32 %v9732_v25, %v8942_v56  ;;  %v9582_v56 = vld [vmem:[%s14679_s3 + $0x104] sm:$0xf0]  ;;  %v8438_v25 = vld [vmem:[%s14679_s3 + $0x1b0] sm:$0xf] }
 0x35a   : > { %8213 = vmatmul.msk.bf16.vlgmr.msrb.gmra.mxu0 %vm439_vm3, %v3909_v63  ;;  %8218 = vmatmul.msk.bf16.vlgmr.msrb.gmra.mxu1 %vm439_vm3, %v3909_v63  ;;  %v3460_v29 = vadd.f32 %v3414_v14, %v3312_v20  ;;  %v8918_v14 = vld [vmem:[%s14679_s3 + $0x570] sm:$0xf] }
 0x35b   : > { %5969 = vmatpush.bf16.msrb.mxu0 %v8583_v54  ;;  %5996 = vmatpush.bf16.msrb.mxu2 %v8943_v23  ;;  %v8486_v20 = vld [vmem:[%s14679_s3 + $0x210] sm:$0xf] }
 0x35c   : > { %v3403_v34 = vpop.f32.mrf.mxu2  ;;  %v3525_v30 = vpop.f32.mrf.mxu3 }
 0x35d   : > { %v8391_v30 = vor.u32 %v9594_v38, %v8390_v42  ;;  %v8798_v42 = vld [vmem:[%s14679_s3 + $0x480] sm:$0xf] }
 0x35f   : > { %v3268_v2 = vpop.f32.mrf.mxu0  ;;  %v3390_v51 = vpop.f32.mrf.mxu1  ;;  %5956 = vmatpush.bf16.msrb.mxu3 %v8391_v30  ;;  %v8392_v30 = vld [vmem:[%s14679_s3 + $0x168] sm:$0xf0] }
 0x360   : > { %v9618_v2 = vld [vmem:[%s14679_s3 + $0x224] sm:$0xf0]  ;;  %v8726_v51 = vld [vmem:[%s14679_s3 + $0x3f0] sm:$0xf] }
 0x364   : > { %v3453_v47 = vpop.f32.mrf.mxu2  ;;  %v3575_v32 = vpop.f32.mrf.mxu3 }
 0x365   : > { %v12040_v45 = vadd.f32 %v3453_v47, %v3315_v11  ;;  %v9624_v11 = vld [vmem:[%s14679_s3 + $0x254] sm:$0xf0]  ;;  %v9678_v47 = vld [vmem:[%s14679_s3 + $0x404] sm:$0xf0] }
 0x367   : > { %v3375_v3 = vpop.f32.mrf.mxu0  ;;  %v3440_v43 = vpop.f32.mrf.mxu1 }
 0x368   : > { %v3457_v55 = vadd.f32 %v3375_v3, %v3309_v26  ;;  %v12042_v9 = vadd.f32 %v3440_v43, %v3314_v31  ;;  %v9630_v26 = vld [vmem:[%s14679_s3 + $0x284] sm:$0xf0]  ;;  %v8487_v3 = vor.u32 %v9618_v2, %v8486_v20  ;;  %v8727_v43 = vor.u32 %v9678_v47, %v8726_v51  ;;  %v9696_v20 = vld [vmem:[%s14679_s3 + $0x494] sm:$0xf0]  ;;  %v8294_v47 = vld [vmem:[%s14679_s3 + $0x90] sm:$0xf] }
 0x369   : > { %v8535_v16 = vor.u32 %v9630_v26, %v8534_v36  ;;  %v9726_v31 = vld [vmem:[%s14679_s3 + $0x584] sm:$0xf0]  ;;  %v8799_v2 = vor.u32 %v9696_v20, %v8798_v42  ;;  %v9552_v20 = vld [vmem:[%s14679_s3 + $0x14] sm:$0xf0] }
 0x36a   : > { %8217 = vmatmul.msk.bf16.vlgmr.msra.gmra.mxu0 %vm439_vm3, %v3909_v63  ;;  %v12045_v49 = vadd.f32 %v3523_v44, %v3457_v55  ;;  %v9636_v63 = vld [vmem:[%s14679_s3 + $0x2b4] sm:$0xf0]  ;;  %v8919_v27 = vor.u32 %v9726_v31, %v8918_v14  ;;  %v8870_v55 = vld [vmem:[%s14679_s3 + $0x510] sm:$0xf]  ;;  %5984 = vmatpush.bf16.msra.mxu1 %v8727_v43  ;;  %v9606_v26 = vld [vmem:[%s14679_s3 + $0x1c4] sm:$0xf0]  ;;  %v8823_v14 = vor.u32 %v9702_v22, %v8822_v7 }
 0x36b   : > { %v8559_v0 = vor.u32 %v9636_v63, %v8558_v58  ;;  %v9720_v44 = vld [vmem:[%s14679_s3 + $0x554] sm:$0xf0]  ;;  %vm5935_vm3 = vcmask 1042432   ;;  %v8344_v7 = vld [vmem:[%s14679_s3 + $0x108] sm:$0xf0] }
 0x36c   : > { %v3455_v8 = vpop.f32.mrf.mxu2  ;;  %v3577_v6 = vpop.f32.mrf.mxu3  ;;  %5997 = vmatpush.bf16.msrb.mxu2 %v8919_v27 }
 0x36d   : > { %5970 = vmatpush.bf16.msrb.mxu0 %v8559_v0  ;;  %v9714_v8 = vld [vmem:[%s14679_s3 + $0x524] sm:$0xf0]  ;;  %v8342_v0 = vld [vmem:[%s14679_s3 + $0xf0] sm:$0xf] }
 0x36e   : > { %v8871_v6 = vor.u32 %v9714_v8, %v8870_v55 }
 0x36f   : > { %v3377_v57 = vpop.f32.mrf.mxu0  ;;  %v3442_v4 = vpop.f32.mrf.mxu1 }
 0x371   : > { %5971 = vmatpush.bf16.msrb.mxu0 %v8535_v16  ;;  %v8439_v16 = vor.u32 %v9606_v26, %v8438_v25  ;;  %v9648_v25 = vld [vmem:[%s14679_s3 + $0x314] sm:$0xf0]  ;;  %v5936_v26 = vsel %vm444_vm1, 4294967295, %v10067_v35 }
 0x374   : > { %v3562_v5 = vpop.f32.mrf.mxu2  ;;  %v12053_v62 = vpop.f32.mrf.mxu3 }
 0x375   : > { %v12055_v28 = vadd.f32 %v3562_v5, %v3460_v29 }
 0x377   : > { %v3427_v1 = vpop.f32.mrf.mxu0  ;;  %v3549_v24 = vpop.f32.mrf.mxu1 }
 0x378   : > { %v3461_v50 = vadd.f32 %v3427_v1, %v3313_v39  ;;  %v12069_v33 = vadd.f32 %v3549_v24, %v3459_v15  ;;  %v8510_v39 = vld [vmem:[%s14679_s3 + $0x240] sm:$0xf]  ;;  %v8895_v15 = vor.u32 %v9720_v44, %v8894_v59  ;;  %v9672_v1 = vld [vmem:[%s14679_s3 + $0x3d4] sm:$0xf0]  ;;  %v8463_v24 = vor.u32 %v9612_v18, %v8462_v17  ;;  %v9350_v44 = vld [vmem:[%s14679_s3 + $0x8d0] sm:$0xf] }
 0x379   : > { %v8511_v40 = vor.u32 %v9624_v11, %v8510_v39  ;;  %v8703_v58 = vor.u32 %v9672_v1, %v8702_v48  ;;  %v8414_v39 = vld [vmem:[%s14679_s3 + $0x180] sm:$0xf]  ;;  %v9828_v17 = vld [vmem:[%s14679_s3 + $0x8b4] sm:$0xf0]  ;;  %v9585_v18 = vld [vmem:[%s14679_s3 + $0x124] sm:$0xf] }
 0x37a   : > { %v12077_v37 = vadd.f32 %v3575_v32, %v3461_v50  ;;  %5998 = vmatpush.bf16.msrb.mxu2 %v8895_v15  ;;  %v8415_v52 = vor.u32 %v9600_v12, %v8414_v39  ;;  %v9834_v15 = vld [vmem:[%s14679_s3 + $0x8e4] sm:$0xf0]  ;;  %v9816_v39 = vld [vmem:[%s14679_s3 + $0x854] sm:$0xf0]  ;;  %v9446_v12 = vld [vmem:[%s14679_s3 + $0x990] sm:$0xf] }
 0x37b   : > { %5972 = vmatpush.bf16.msrb.mxu0 %v8511_v40  ;;  %5985 = vmatpush.bf16.msra.mxu1 %v8703_v58  ;;  %v8654_v40 = vld [vmem:[%s14679_s3 + $0x360] sm:$0xf]  ;;  %v9351_v38 = vor.u32 %v9834_v15, %v9350_v44 }
 0x37c   : > { %v3564_v19 = vpop.f32.mrf.mxu2  ;;  %v3686_v21 = vpop.f32.mrf.mxu3  ;;  %v8655_v59 = vor.u32 %v9660_v53, %v8654_v40  ;;  %v9858_v40 = vld [vmem:[%s14679_s3 + $0x9a4] sm:$0xf0] }
 0x37d   : > { %v8678_v19 = vld [vmem:[%s14679_s3 + $0x390] sm:$0xf]  ;;  %v9666_v21 = vld [vmem:[%s14679_s3 + $0x3a4] sm:$0xf0]  ;;  %v9447_v53 = vor.u32 %v9858_v40, %v9446_v12  ;;  %v9086_v12 = vld [vmem:[%s14679_s3 + $0x6c0] sm:$0xf] }
 0x37e   : > { %5999 = vmatpush.bf16.msrb.mxu2 %v8871_v6  ;;  %v8679_v13 = vor.u32 %v9666_v21, %v8678_v19  ;;  %v8630_v6 = vld [vmem:[%s14679_s3 + $0x330] sm:$0xf]  ;;  %v9768_v40 = vld [vmem:[%s14679_s3 + $0x6d4] sm:$0xf0] }
 0x37f   : > { %v3429_v60 = vpop.f32.mrf.mxu0  ;;  %v3551_v41 = vpop.f32.mrf.mxu1  ;;  %5973 = vmatpush.bf16.msrb.mxu0 %v8487_v3  ;;  %v9570_v3 = vld [vmem:[%s14679_s3 + $0xa4] sm:$0xf0] }
 0x380   : > { %5986 = vmatpush.bf16.msra.mxu1 %v8679_v13  ;;  %v8318_v60 = vld [vmem:[%s14679_s3 + $0xc0] sm:$0xf]  ;;  %v9576_v41 = vld [vmem:[%s14679_s3 + $0xd4] sm:$0xf0]  ;;  %v8295_v8 = vor.u32 %v9570_v3, %v8294_v47  ;;  %v9579_v13 = vld [vmem:[%s14679_s3 + $0xf4] sm:$0xf] }
 0x381   : > { %v8319_v11 = vor.u32 %v9576_v41, %v8318_v60  ;;  %v8347_v22 = vor.u32 %v9579_v13, %v8344_v7  ;;  %v9278_v41 = vld [vmem:[%s14679_s3 + $0x840] sm:$0xf]  ;;  %v9810_v47 = vld [vmem:[%s14679_s3 + $0x824] sm:$0xf0]  ;;  %v9206_v13 = vld [vmem:[%s14679_s3 + $0x7b0] sm:$0xf] }
 0x383   : > { %5974 = vmatpush.bf16.msrb.mxu0 %v8463_v24 }
 0x384   : > { %v3671_v29 = vpop.f32.mrf.mxu2  ;;  %v12124_v34 = vpop.f32.mrf.mxu3  ;;  %5987 = vmatpush.bf16.msra.mxu1 %v8655_v59  ;;  %v8320_v59 = vld [vmem:[%s14679_s3 + $0xd8] sm:$0xf0] }
 0x385   : > { %v12136_v32 = vadd.f32 %v3671_v29, %v12045_v49  ;;  %v8366_v49 = vld [vmem:[%s14679_s3 + $0x120] sm:$0xf]  ;;  %v9591_v29 = vld [vmem:[%s14679_s3 + $0x154] sm:$0xf] }
 0x386   : > { %v8367_v61 = vor.u32 %v9588_v46, %v8366_v49  ;;  %v8395_v51 = vor.u32 %v9591_v29, %v8392_v30  ;;  %v9158_v29 = vld [vmem:[%s14679_s3 + $0x750] sm:$0xf] }
 0x387   : > { %v3536_v57 = vpop.f32.mrf.mxu0  ;;  %v3601_v4 = vpop.f32.mrf.mxu1  ;;  %5975 = vmatpush.bf16.msrb.mxu0 %v8439_v16  ;;  %v12297_v16 = vsel %vm5935_vm3, %v5936_v26, 0  ;;  %v9110_v26 = vld [vmem:[%s14679_s3 + $0x6f0] sm:$0xf] }
 0x388   : > { %v3606_v5 = vadd.f32 %v3536_v57, %v12036_v10  ;;  %v12155_v54 = vadd.f32 %v3601_v4, %v12040_v45  ;;  %v8846_v10 = vld [vmem:[%s14679_s3 + $0x4e0] sm:$0xf]  ;;  %v9708_v45 = vld [vmem:[%s14679_s3 + $0x4f4] sm:$0xf0]  ;;  %5957 = vmatpush.bf16.msrb.mxu3 %v8367_v61  ;;  %v9654_v57 = vld [vmem:[%s14679_s3 + $0x344] sm:$0xf0] }
 0x389   : > { %v8847_v50 = vor.u32 %v9708_v45, %v8846_v10  ;;  %v9326_v4 = vld [vmem:[%s14679_s3 + $0x8a0] sm:$0xf]  ;;  %v8631_v46 = vor.u32 %v9654_v57, %v8630_v6  ;;  %v9564_v45 = vld [vmem:[%s14679_s3 + $0x74] sm:$0xf0] }
 0x38a   : > { %v12173_v63 = vadd.f32 %v12053_v62, %v3606_v5  ;;  %v8343_v62 = vor.u32 %v9582_v56, %v8342_v0  ;;  %v12261_v5 = vld [vmem:[%s14679_s3 + $0x9c0] sm:$0x77]  ;;  %v9327_v61 = vor.u32 %v9828_v17, %v9326_v4  ;;  %v9852_v6 = vld [vmem:[%s14679_s3 + $0x974] sm:$0xf0]  ;;  %v9567_v4 = vld [vmem:[%s14679_s3 + $0x94] sm:$0xf] }
 0x38b   : > { %6000 = vmatpush.bf16.msrb.mxu2 %v8847_v50  ;;  %5976 = vmatpush.bf16.msrb.mxu0 %v8415_v52  ;;  %v5295_v48 = vunpack.c.l.b16 %v12261_v5  ;;  %v8270_v10 = vld [vmem:[%s14679_s3 + $0x60] sm:$0xf]  ;;  %v9573_v52 = vld [vmem:[%s14679_s3 + $0xc4] sm:$0xf] }
 0x38c   : > { %v3673_v23 = vpop.f32.mrf.mxu2  ;;  %v3738_v36 = vpop.f32.mrf.mxu3  ;;  %5958 = vmatpush.bf16.msrb.mxu3 %v8343_v62  ;;  %5988 = vmatpush.bf16.msra.mxu1 %v8631_v46  ;;  %v8271_v0 = vor.u32 %v9564_v45, %v8270_v10  ;;  %v8606_v56 = vld [vmem:[%s14679_s3 + $0x300] sm:$0xf]  ;;  %v8323_v42 = vor.u32 %v9573_v52, %v8320_v59  ;;  %v8296_v46 = vld [vmem:[%s14679_s3 + $0xa8] sm:$0xf0]  ;;  %v9804_v10 = vld [vmem:[%s14679_s3 + $0x7f4] sm:$0xf0]  ;;  %v9087_v52 = vor.u32 %v9768_v40, %v9086_v12 }
 0x38d   : > { %v9302_v23 = vld [vmem:[%s14679_s3 + $0x870] sm:$0xf]  ;;  %v5613_v36 = vpack.c.b16 %v5295_v48, %v5295_v48  ;;  %v8607_v62 = vor.u32 %v9648_v25, %v8606_v56  ;;  %v8299_v17 = vor.u32 %v9567_v4, %v8296_v46  ;;  %v9780_v48 = vld [vmem:[%s14679_s3 + $0x734] sm:$0xf0]  ;;  %v9561_v25 = vld [vmem:[%s14679_s3 + $0x64] sm:$0xf] }
 0x38e   : > { %v9398_v45 = vld [vmem:[%s14679_s3 + $0x930] sm:$0xf]  ;;  %v9792_v59 = vld [vmem:[%s14679_s3 + $0x794] sm:$0xf0]  ;;  %v9783_v40 = vld [vmem:[%s14679_s3 + $0x754] sm:$0xf] }
 0x38f   : > { %v3538_v31 = vpop.f32.mrf.mxu0  ;;  %v3603_v27 = vpop.f32.mrf.mxu1  ;;  %6001 = vmatpush.bf16.msrb.mxu2 %v8823_v14  ;;  %6021 = vmatpush.bf16.msra.mxu0 %v9351_v38  ;;  %v5939_v35 = vand.u32 %v12297_v16, %v5613_v36  ;;  %v9558_v14 = vld [vmem:[%s14679_s3 + $0x44] sm:$0xf0]  ;;  %v8222_v38 = vld [vmem:[%s14679_s3] sm:$0xf]  ;;  %v9014_v46 = vld [vmem:[%s14679_s3 + $0x630] sm:$0xf] }
 0x390   : > { %5959 = vmatpush.bf16.msrb.mxu3 %v8319_v11  ;;  %5989 = vmatpush.bf16.msra.mxu1 %v8607_v62  ;;  %v9279_v11 = vor.u32 %v9816_v39, %v9278_v41  ;;  %v8223_v30 = vor.u32 %v9552_v20, %v8222_v38  ;;  %v9549_v38 = vld [vmem:[%s14679_s3 + $0x4] sm:$0xf]  ;;  %v8224_v20 = vld [vmem:[%s14679_s3 + $0x18] sm:$0xf0] }
 0x393   : > { %6002 = vmatpush.bf16.msrb.mxu2 %v8799_v2  ;;  %6022 = vmatpush.bf16.msra.mxu0 %v9327_v61  ;;  %v9786_v2 = vld [vmem:[%s14679_s3 + $0x764] sm:$0xf0] }
 0x394   : > { %v3723_v43 = vpop.f32.mrf.mxu2  ;;  %v12241_v55 = vpop.f32.mrf.mxu3  ;;  %5960 = vmatpush.bf16.msrb.mxu3 %v8295_v8  ;;  %6037 = vmatpush.bf16.msrb.mxu1 %v5939_v35  ;;  %v9159_v3 = vor.u32 %v9786_v2, %v9158_v29  ;;  %v9422_v8 = vld [vmem:[%s14679_s3 + $0x960] sm:$0xf]  ;;  %v9798_v35 = vld [vmem:[%s14679_s3 + $0x7c4] sm:$0xf0]  ;;  %v8227_v29 = vor.u32 %v9549_v38, %v8224_v20  ;;  %v8944_v38 = vld [vmem:[%s14679_s3 + $0x5b8] sm:$0xf0] }
 0x395   : > { %v12253_v49 = vadd.f32 %v3723_v43, %v12077_v37  ;;  %v8368_v37 = vld [vmem:[%s14679_s3 + $0x138] sm:$0xf0]  ;;  %v9423_v57 = vor.u32 %v9852_v6, %v9422_v8  ;;  %v9762_v2 = vld [vmem:[%s14679_s3 + $0x6a4] sm:$0xf0]  ;;  %v9756_v8 = vld [vmem:[%s14679_s3 + $0x674] sm:$0xf0] }
 0x396   : > { %v8371_v58 = vor.u32 %v9585_v18, %v8368_v37  ;;  %v9134_v37 = vld [vmem:[%s14679_s3 + $0x720] sm:$0xf] }
 0x397   : > { %6047 = vmatpush.bf16.msra.mxu2 %v8395_v51  ;;  %v3588_v1 = vpop.f32.mrf.mxu0  ;;  %v12270_v24 = vpop.f32.mrf.mxu1  ;;  %v9254_v51 = vld [vmem:[%s14679_s3 + $0x810] sm:$0xf] }
 0x398   : > { %v3610_v50 = vadd.f32 %v3588_v1, %v12042_v9  ;;  %v9822_v9 = vld [vmem:[%s14679_s3 + $0x884] sm:$0xf0]  ;;  %5961 = vmatpush.bf16.msrb.mxu3 %v8271_v0  ;;  %6038 = vmatpush.bf16.msrb.mxu1 %v9447_v53  ;;  %v9255_v43 = vor.u32 %v9810_v47, %v9254_v51  ;;  %v9230_v1 = vld [vmem:[%s14679_s3 + $0x7e0] sm:$0xf] }
 0x399   : > { %v9303_v21 = vor.u32 %v9822_v9, %v9302_v23  ;;  %v9231_v0 = vor.u32 %v9804_v10, %v9230_v1  ;;  %v8272_v23 = vld [vmem:[%s14679_s3 + $0x78] sm:$0xf0]  ;;  %v9182_v53 = vld [vmem:[%s14679_s3 + $0x780] sm:$0xf]  ;;  %v9744_v10 = vld [vmem:[%s14679_s3 + $0x614] sm:$0xf0] }
 0x39a   : > { %v12294_v19 = vadd.f32 %v12124_v34, %v3610_v50  ;;  %v8246_v34 = vld [vmem:[%s14679_s3 + $0x30] sm:$0xf]  ;;  %v9846_v50 = vld [vmem:[%s14679_s3 + $0x944] sm:$0xf0]  ;;  %v8275_v9 = vor.u32 %v9561_v25, %v8272_v23 }
 0x39b   : > { %6048 = vmatpush.bf16.msra.mxu2 %v8371_v58  ;;  %6023 = vmatpush.bf16.msra.mxu0 %v9303_v21  ;;  %v8247_v60 = vor.u32 %v9558_v14, %v8246_v34  ;;  %v9135_v58 = vor.u32 %v9780_v48, %v9134_v37  ;;  %v9399_v56 = vor.u32 %v9846_v50, %v9398_v45  ;;  %v9774_v21 = vld [vmem:[%s14679_s3 + $0x704] sm:$0xf0]  ;;  %v9840_v34 = vld [vmem:[%s14679_s3 + $0x914] sm:$0xf0] }
 0x39c   : > { %v3725_v31 = vpop.f32.mrf.mxu2  ;;  %v3847_v27 = vpop.f32.mrf.mxu3  ;;  %6039 = vmatpush.bf16.msrb.mxu1 %v9423_v57  ;;  %v9111_v7 = vor.u32 %v9774_v21, %v9110_v26  ;;  %v9207_v14 = vor.u32 %v9798_v35, %v9206_v13  ;;  %v3756_v21 = vadd.f32 %v12270_v24, %v12055_v28 }
 0x39d   : > { %5962 = vmatpush.bf16.msrb.mxu3 %v8247_v60  ;;  %v9555_v27 = vld [vmem:[%s14679_s3 + $0x34] sm:$0xf]  ;;  %v8248_v60 = vld [vmem:[%s14679_s3 + $0x48] sm:$0xf0] }
 0x39e   : > { %v8251_v41 = vor.u32 %v9555_v27, %v8248_v60  ;;  %v9681_v60 = vld [vmem:[%s14679_s3 + $0x424] sm:$0xf] }
 0x39f   : > { %6049 = vmatpush.bf16.msra.mxu2 %v8347_v22  ;;  %v3590_v44 = vpop.f32.mrf.mxu0  ;;  %v3712_v15 = vpop.f32.mrf.mxu1  ;;  %6024 = vmatpush.bf16.msra.mxu0 %v9279_v11  ;;  %v9374_v22 = vld [vmem:[%s14679_s3 + $0x900] sm:$0xf] }
 0x3a0   : > { %6040 = vmatpush.bf16.msrb.mxu1 %v9399_v56  ;;  %v9375_v31 = vor.u32 %v9840_v34, %v9374_v22 }
 0x3a1   : > { %5963 = vmatpush.bf16.msrb.mxu3 %v8223_v30  ;;  %v9062_v30 = vld [vmem:[%s14679_s3 + $0x690] sm:$0xf] }
 0x3a2   : > { %v9063_v51 = vor.u32 %v9762_v2, %v9062_v30 }
 0x3a3   : > { %6050 = vmatpush.bf16.msra.mxu2 %v8323_v42  ;;  %6025 = vmatpush.bf16.msra.mxu0 %v9255_v43  ;;  %v9183_v42 = vor.u32 %v9792_v59, %v9182_v53  ;;  %v9038_v43 = vld [vmem:[%s14679_s3 + $0x660] sm:$0xf]  ;;  %v9160_v53 = vld [vmem:[%s14679_s3 + $0x768] sm:$0xf0] }
 0x3a4   : > { %v12360_v61 = vpop.f32.mrf.mxu2  ;;  %v12362_v18 = vpop.f32.mrf.mxu3  ;;  %6041 = vmatpush.bf16.msrb.mxu1 %v9375_v31  ;;  %v9039_v6 = vor.u32 %v9756_v8, %v9038_v43  ;;  %v9163_v2 = vor.u32 %v9783_v40, %v9160_v53  ;;  %v9777_v8 = vld [vmem:[%s14679_s3 + $0x724] sm:$0xf] }
 0x3a5   : > { %6008 = vmatpush.bf16.msra.mxu3 %v9159_v3  ;;  %v3902_v13 = vadd.f32 %v12360_v61, %v12173_v63  ;;  %v9735_v63 = vld [vmem:[%s14679_s3 + $0x5d4] sm:$0xf]  ;;  %v8968_v61 = vld [vmem:[%s14679_s3 + $0x5e8] sm:$0xf0] }
 0x3a7   : > { %6051 = vmatpush.bf16.msra.mxu2 %v8299_v17  ;;  %v3697_v36 = vpop.f32.mrf.mxu0  ;;  %v12388_v62 = vpop.f32.mrf.mxu1  ;;  %6026 = vmatpush.bf16.msra.mxu0 %v9231_v0  ;;  %v9750_v17 = vld [vmem:[%s14679_s3 + $0x644] sm:$0xf0] }
 0x3a8   : > { %v9015_v37 = vor.u32 %v9750_v17, %v9014_v46  ;;  %v3755_v50 = vadd.f32 %v3697_v36, %v12069_v33  ;;  %v9687_v33 = vld [vmem:[%s14679_s3 + $0x454] sm:$0xf]  ;;  %v8920_v17 = vld [vmem:[%s14679_s3 + $0x588] sm:$0xf0] }
 0x3a9   : > { %6009 = vmatpush.bf16.msra.mxu3 %v9135_v58  ;;  %v8990_v58 = vld [vmem:[%s14679_s3 + $0x600] sm:$0xf]  ;;  %v9723_v46 = vld [vmem:[%s14679_s3 + $0x574] sm:$0xf] }
 0x3aa   : > { %v8991_v45 = vor.u32 %v9744_v10, %v8990_v58  ;;  %v3903_v25 = vadd.f32 %v12241_v55, %v3755_v50  ;;  %v8776_v55 = vld [vmem:[%s14679_s3 + $0x468] sm:$0xf0]  ;;  %v8704_v58 = vld [vmem:[%s14679_s3 + $0x3d8] sm:$0xf0] }
 0x3ab   : > { %6052 = vmatpush.bf16.msra.mxu2 %v8275_v9  ;;  %6027 = vmatpush.bf16.msra.mxu0 %v9207_v14  ;;  %v12462_v9 = vpop.permute.xlu1 %4017  ;;  %v8779_v31 = vor.u32 %v9687_v33, %v8776_v55  ;;  %v9112_v50 = vld [vmem:[%s14679_s3 + $0x708] sm:$0xf0]  ;;  %v9765_v33 = vld [vmem:[%s14679_s3 + $0x6c4] sm:$0xf]  ;;  %v9088_v55 = vld [vmem:[%s14679_s3 + $0x6d8] sm:$0xf0] }
 0x3ac   : > { %v3834_v39 = vpop.f32.mrf.mxu2  ;;  %v3899_v11 = vpop.f32.mrf.mxu3 }
 0x3ad   : > { %6010 = vmatpush.bf16.msra.mxu3 %v9111_v7 }
 0x3af   : > { %6053 = vmatpush.bf16.msra.mxu2 %v8251_v41  ;;  %v3699_v44 = vpop.f32.mrf.mxu0  ;;  %v3821_v15 = vpop.f32.mrf.mxu1  ;;  %6028 = vmatpush.bf16.msra.mxu0 %v9183_v42  ;;  %v8752_v41 = vld [vmem:[%s14679_s3 + $0x438] sm:$0xf0]  ;;  %v9729_v42 = vld [vmem:[%s14679_s3 + $0x5a4] sm:$0xf] }
 0x3b0   : > { %v8755_v15 = vor.u32 %v9681_v60, %v8752_v41  ;;  %v8872_v60 = vld [vmem:[%s14679_s3 + $0x528] sm:$0xf0] }
 0x3b1   : > { %6011 = vmatpush.bf16.msra.mxu3 %v9087_v52  ;;  %v8971_v52 = vor.u32 %v9735_v63, %v8968_v61  ;;  %v8584_v63 = vld [vmem:[%s14679_s3 + $0x2e8] sm:$0xf0]  ;;  %v9711_v61 = vld [vmem:[%s14679_s3 + $0x514] sm:$0xf] }
 0x3b3   : > { %6054 = vmatpush.bf16.msra.mxu2 %v8227_v29 }
 0x3b4   : > { %v12438_v47 = vpop.f32.mrf.mxu2  ;;  %v3964_v3 = vpop.f32.mrf.mxu3 }
 0x3b5   : > { %6012 = vmatpush.bf16.msra.mxu3 %v9063_v51  ;;  %v9675_v51 = vld [vmem:[%s14679_s3 + $0x3f4] sm:$0xf] }
 0x3b7   : > { %v3749_v57 = vpop.f32.mrf.mxu0  ;;  %v12446_v4 = vpop.f32.mrf.mxu1 }
 0x3b8   : > { %v3759_v20 = vadd.f32 %v3749_v57, %v12155_v54  ;;  %v9136_v54 = vld [vmem:[%s14679_s3 + $0x738] sm:$0xf0] }
 0x3b9   : > { %6013 = vmatpush.bf16.msra.mxu3 %v9039_v6  ;;  %v8947_v6 = vor.u32 %v9729_v42, %v8944_v38  ;;  %v8875_v38 = vor.u32 %v9711_v61, %v8872_v60 }
 0x3bc   : > { %v3886_v48 = vpop.f32.mrf.mxu2  ;;  %v3966_v1 = vpop.f32.mrf.mxu3 }
 0x3bd   : > { %6014 = vmatpush.bf16.msra.mxu3 %v9015_v37  ;;  %v3907_v37 = vadd.f32 %v12362_v18, %v3759_v20  ;;  %v9139_v48 = vor.u32 %v9777_v8, %v9136_v54  ;;  %v9669_v1 = vld [vmem:[%s14679_s3 + $0x3c4] sm:$0xf]  ;;  %v8923_v18 = vor.u32 %v9723_v46, %v8920_v17  ;;  %v8848_v8 = vld [vmem:[%s14679_s3 + $0x4f8] sm:$0xf0]  ;;  %v9651_v46 = vld [vmem:[%s14679_s3 + $0x334] sm:$0xf] }
 0x3be   : > { %v9633_v20 = vld [vmem:[%s14679_s3 + $0x2a4] sm:$0xf]  ;;  %v8632_v17 = vld [vmem:[%s14679_s3 + $0x348] sm:$0xf0] }
 0x3bf   : > { %v3751_v0 = vpop.f32.mrf.mxu0  ;;  %v3873_v56 = vpop.f32.mrf.mxu1 }
 0x3c0   : > { %v3901_v56 = vadd.f32 %v12388_v62, %v12136_v32  ;;  %v9663_v32 = vld [vmem:[%s14679_s3 + $0x394] sm:$0xf] }
 0x3c1   : > { %6015 = vmatpush.bf16.msra.mxu3 %v8991_v45  ;;  %v9771_v45 = vld [vmem:[%s14679_s3 + $0x6f4] sm:$0xf] }
 0x3c4   : > { %v3951_v23 = vpop.f32.mrf.mxu2 }
 0x3c5   : > { %v4009_v26 = vadd.f32 %v3951_v23, %v3903_v25  ;;  %v3906_v25 = vadd.f32 %v12438_v47, %v12294_v19  ;;  %v8707_v23 = vor.u32 %v9669_v1, %v8704_v58  ;;  %v8680_v19 = vld [vmem:[%s14679_s3 + $0x3a8] sm:$0xf0]  ;;  %v9040_v1 = vld [vmem:[%s14679_s3 + $0x678] sm:$0xf0] }
 0x3c7   : > { %v4022_v7 = vadd.f32 %v12462_v9, %v4009_v26  ;;  %v3858_v35 = vpop.f32.mrf.mxu0  ;;  %v3938_v22 = vpop.f32.mrf.mxu1  ;;  %v9717_v26 = vld [vmem:[%s14679_s3 + $0x544] sm:$0xf] }
 0x3c8   : > { %v3904_v36 = vadd.f32 %v3858_v35, %v3756_v21  ;;  %v4008_v34 = vadd.f32 %v3938_v22, %v3902_v13  ;;  %v8896_v21 = vld [vmem:[%s14679_s3 + $0x558] sm:$0xf0]  ;;  %v9115_v22 = vor.u32 %v9771_v45, %v9112_v50  ;;  %v8635_v45 = vor.u32 %v9651_v46, %v8632_v17  ;;  %v8536_v50 = vld [vmem:[%s14679_s3 + $0x288] sm:$0xf0]  ;;  %v9609_v46 = vld [vmem:[%s14679_s3 + $0x1e4] sm:$0xf] }
 0x3c9   : > { %v4029_v14 = vmax.f32 %v4022_v7, 0.0  ;;  %v8464_v17 = vld [vmem:[%s14679_s3 + $0x1f8] sm:$0xf0] }
 0x3ca   : > { %v4021_v28 = vadd.f32 %v12462_v9, %v4008_v34  ;;  %v4010_v24 = vadd.f32 %v3964_v3, %v3904_v36  ;;  %v8728_v3 = vld [vmem:[%s14679_s3 + $0x408] sm:$0xf0]  ;;  %v8899_v34 = vor.u32 %v9717_v26, %v8896_v21  ;;  %v9747_v21 = vld [vmem:[%s14679_s3 + $0x634] sm:$0xf] }
 0x3cb   : > { %v12482_v27 = vpack.c.bf16 %v4029_v14, %v4029_v14  ;;  %v8731_v57 = vor.u32 %v9675_v51, %v8728_v3  ;;  %v9639_v14 = vld [vmem:[%s14679_s3 + $0x2d4] sm:$0xf]  ;;  %v8560_v51 = vld [vmem:[%s14679_s3 + $0x2b8] sm:$0xf0]  ;;  %v9705_v3 = vld [vmem:[%s14679_s3 + $0x4e4] sm:$0xf] }
 0x3cc   : > { %v4028_v39 = vmax.f32 %v4021_v28, 0.0  ;;  %v4023_v11 = vadd.f32 %v12462_v9, %v4010_v24  ;;  %v3953_v12 = vpop.f32.mrf.mxu2  ;;  %v8587_v42 = vor.u32 %v9639_v14, %v8584_v63  ;;  %v8563_v58 = vor.u32 %v9633_v20, %v8560_v51  ;;  %v9741_v14 = vld [vmem:[%s14679_s3 + $0x604] sm:$0xf]  ;;  %v9448_v63 = vld [vmem:[%s14679_s3 + $0x9a8] sm:$0xf0] }
 0x3cd   : > { %5990 = vmatmul.bf16.vlgmr.msra.gmra.mxu1 %v12482_v27  ;;  %v8656_v12 = vld [vmem:[%s14679_s3 + $0x378] sm:$0xf0] }
 0x3ce   : > { %v12498_v59 = vpack.c.bf16 %v4028_v39, %v4028_v39  ;;  %v4030_v44 = vmax.f32 %v4023_v11, 0.0  ;;  %6073 = vmatpush.bf16.msra.mxu1 %v8779_v31  ;;  %v8683_v31 = vor.u32 %v9663_v32, %v8680_v19  ;;  %v9091_v39 = vor.u32 %v9765_v33, %v9088_v55  ;;  %v9657_v11 = vld [vmem:[%s14679_s3 + $0x364] sm:$0xf]  ;;  %v8800_v33 = vld [vmem:[%s14679_s3 + $0x498] sm:$0xf0] }
 0x3cf   : > { %v3860_v29 = vpop.f32.mrf.mxu0  ;;  %v3940_v30 = vpop.f32.mrf.mxu1  ;;  %v3905_v32 = vadd.f32 %v12446_v4, %v12253_v49  ;;  %v8398_v49 = vld [vmem:[%s14679_s3 + $0x158] sm:$0xf]  ;;  %v9595_v4 = vld [vmem:[%s14679_s3 + $0x16c] sm:$0xf0]  ;;  %v9424_v51 = vld [vmem:[%s14679_s3 + $0x978] sm:$0xf0] }
 0x3d0   : > { %v12513_v43 = vpack.c.bf16 %v4030_v44, %v4030_v44  ;;  %5977 = vmatmul.bf16.vlgmr.msrb.gmra.mxu0 %v12498_v59  ;;  %v9759_v44 = vld [vmem:[%s14679_s3 + $0x694] sm:$0xf] }
 0x3d1   : > { %6086 = vmatpush.bf16.msrb.mxu0 %v8971_v52 }
 0x3d2   : > { %6074 = vmatpush.bf16.msra.mxu1 %v8755_v15  ;;  %6003 = vmatmul.bf16.vlgmr.msrb.gmra.mxu2 %v12513_v43  ;;  %v9064_v15 = vld [vmem:[%s14679_s3 + $0x6a8] sm:$0xf0] }
 0x3d3   : > { %6099 = vmatpush.bf16.msrb.mxu2 %v9163_v2  ;;  %v8659_v2 = vor.u32 %v9657_v11, %v8656_v12  ;;  %v9643_v11 = vld [vmem:[%s14679_s3 + $0x2ec] sm:$0xf0] }
 0x3d4   : > { %v4003_v10 = vpop.f32.mrf.mxu2 }
 0x3d5   : > { %v4013_v0 = vadd.f32 %v4003_v10, %v3907_v37  ;;  %6087 = vmatpush.bf16.msrb.mxu0 %v8947_v6  ;;  %v5296_v37 = vunpack.c.h.b16 %v12261_v5  ;;  %v8851_v10 = vor.u32 %v9705_v3, %v8848_v8  ;;  %v9627_v5 = vld [vmem:[%s14679_s3 + $0x274] sm:$0xf]  ;;  %v8566_v8 = vld [vmem:[%s14679_s3 + $0x2a8] sm:$0xf] }
 0x3d6   : > { %6075 = vmatpush.bf16.msra.mxu1 %v8731_v57  ;;  %v9067_v57 = vor.u32 %v9759_v44, %v9064_v15 }
 0x3d7   : > { %v4026_v13 = vadd.f32 %v12462_v9, %v4013_v0  ;;  %6100 = vmatpush.bf16.msrb.mxu2 %v9139_v48  ;;  %v3925_v7 = vpop.f32.mrf.mxu0  ;;  %v3990_v35 = vpop.f32.mrf.mxu1  ;;  %v9753_v48 = vld [vmem:[%s14679_s3 + $0x664] sm:$0xf]  ;;  %v9699_v0 = vld [vmem:[%s14679_s3 + $0x4b4] sm:$0xf]  ;;  %v5614_v26 = vpack.c.b16 %v5296_v37, %v5296_v37 }
 0x3d8   : > { %v4007_v62 = vadd.f32 %v3925_v7, %v3901_v56  ;;  %v4012_v47 = vadd.f32 %v3990_v35, %v3906_v25  ;;  %v9043_v56 = vor.u32 %v9753_v48, %v9040_v1  ;;  %v9645_v25 = vld [vmem:[%s14679_s3 + $0x304] sm:$0xf]  ;;  %v8539_v7 = vor.u32 %v9627_v5, %v8536_v50  ;;  %v8350_v1 = vld [vmem:[%s14679_s3 + $0xf8] sm:$0xf]  ;;  %v9843_v5 = vld [vmem:[%s14679_s3 + $0x934] sm:$0xf] }
 0x3d9   : > { %v4033_v36 = vmax.f32 %v4026_v13, 0.0  ;;  %6088 = vmatpush.bf16.msrb.mxu0 %v8923_v18  ;;  %v8824_v18 = vld [vmem:[%s14679_s3 + $0x4c8] sm:$0xf0]  ;;  %v8467_v50 = vor.u32 %v9609_v46, %v8464_v17 }
 0x3da   : > { %v4020_v28 = vadd.f32 %v12462_v9, %v4007_v62  ;;  %v4025_v24 = vadd.f32 %v12462_v9, %v4012_v47  ;;  %6076 = vmatpush.bf16.msra.mxu1 %v8707_v23  ;;  %v8608_v23 = vld [vmem:[%s14679_s3 + $0x318] sm:$0xf0]  ;;  %v9016_v13 = vld [vmem:[%s14679_s3 + $0x648] sm:$0xf0]  ;;  %v8827_v35 = vor.u32 %v9699_v0, %v8824_v18  ;;  %v9693_v47 = vld [vmem:[%s14679_s3 + $0x484] sm:$0xf] }
 0x3db   : > { %v12579_v41 = vpack.c.bf16 %v4033_v36, %v4033_v36  ;;  %6101 = vmatpush.bf16.msrb.mxu2 %v9115_v22  ;;  %v9621_v22 = vld [vmem:[%s14679_s3 + $0x244] sm:$0xf]  ;;  %v8611_v19 = vor.u32 %v9645_v25, %v8608_v23  ;;  %v8512_v62 = vld [vmem:[%s14679_s3 + $0x258] sm:$0xf0]  ;;  %v9019_v36 = vor.u32 %v9747_v21, %v9016_v13  ;;  %v8803_v60 = vor.u32 %v9693_v47, %v8800_v33  ;;  %v8542_v0 = vld [vmem:[%s14679_s3 + $0x278] sm:$0xf] }
 0x3dc   : > { %v4027_v40 = vmax.f32 %v4020_v28, 0.0  ;;  %v4032_v53 = vmax.f32 %v4025_v24, 0.0  ;;  %v4005_v52 = vpop.f32.mrf.mxu2  ;;  %v8992_v24 = vld [vmem:[%s14679_s3 + $0x618] sm:$0xf0]  ;;  %v8515_v61 = vor.u32 %v9621_v22, %v8512_v62  ;;  %v9631_v18 = vld [vmem:[%s14679_s3 + $0x28c] sm:$0xf0] }
 0x3dd   : > { %6089 = vmatpush.bf16.msrb.mxu0 %v8899_v34  ;;  %9468 = vmatmul.msk.bf16.vlgmr.msrb.gmra.mxu1 %vm5931_vm11, %v12579_v41  ;;  %v5942_v34 = vand.u32 %v12297_v16, %v5614_v26  ;;  %v8488_v52 = vld [vmem:[%s14679_s3 + $0x228] sm:$0xf0]  ;;  %v8995_v44 = vor.u32 %v9741_v14, %v8992_v24  ;;  %v9603_v25 = vld [vmem:[%s14679_s3 + $0x1b4] sm:$0xf]  ;;  %v8326_v21 = vld [vmem:[%s14679_s3 + $0xc8] sm:$0xf] }
 0x3de   : > { %v12598_v29 = vpack.c.bf16 %v4027_v40, %v4027_v40  ;;  %v12600_v30 = vpack.c.bf16 %v4032_v53, %v4032_v53  ;;  %6077 = vmatpush.bf16.msra.mxu1 %v8683_v31  ;;  %v9855_v31 = vld [vmem:[%s14679_s3 + $0x994] sm:$0xf]  ;;  %v8399_v40 = vor.u32 %v9595_v4, %v8398_v49  ;;  %v8440_v23 = vld [vmem:[%s14679_s3 + $0x1c8] sm:$0xf0]  ;;  %v9577_v13 = vld [vmem:[%s14679_s3 + $0xdc] sm:$0xf0] }
 0x3df   : > { %6102 = vmatpush.bf16.msrb.mxu2 %v9091_v39  ;;  %v3927_v54 = vpop.f32.mrf.mxu0  ;;  %v3992_v6 = vpop.f32.mrf.mxu1  ;;  %v8590_v39 = vld [vmem:[%s14679_s3 + $0x2d8] sm:$0xf]  ;;  %v9615_v53 = vld [vmem:[%s14679_s3 + $0x214] sm:$0xf]  ;;  %v9451_v15 = vor.u32 %v9855_v31, %v9448_v63  ;;  %v9376_v22 = vld [vmem:[%s14679_s3 + $0x918] sm:$0xf0] }
 0x3e0   : > { %5964 = vmatmul.bf16.vlgmr.msrb.gmra.mxu3 %v12598_v29  ;;  %6029 = vmatmul.bf16.vlgmr.msra.gmra.mxu0 %v12600_v30  ;;  %v8591_v20 = vor.u32 %v9643_v11, %v8590_v39  ;;  %v8491_v3 = vor.u32 %v9615_v53, %v8488_v52  ;;  %v9637_v54 = vld [vmem:[%s14679_s3 + $0x2bc] sm:$0xf0]  ;;  %v8782_v47 = vld [vmem:[%s14679_s3 + $0x458] sm:$0xf]  ;;  %v9691_v33 = vld [vmem:[%s14679_s3 + $0x46c] sm:$0xf0] }
 0x3e1   : > { %6060 = vmatpush.bf16.msrb.mxu3 %v8587_v42  ;;  %6090 = vmatpush.bf16.msrb.mxu0 %v8875_v38  ;;  %v8374_v42 = vld [vmem:[%s14679_s3 + $0x128] sm:$0xf]  ;;  %v9625_v62 = vld [vmem:[%s14679_s3 + $0x25c] sm:$0xf0]  ;;  %v9831_v4 = vld [vmem:[%s14679_s3 + $0x8d4] sm:$0xf]  ;;  %v8783_v24 = vor.u32 %v9691_v33, %v8782_v47 }
 0x3e2   : > { %6078 = vmatpush.bf16.msra.mxu1 %v8659_v2  ;;  %6055 = vmatmul.bf16.vlgmr.msra.gmra.mxu2 %v12598_v29  ;;  %v9849_v2 = vld [vmem:[%s14679_s3 + $0x964] sm:$0xf]  ;;  %v9352_v14 = vld [vmem:[%s14679_s3 + $0x8e8] sm:$0xf0]  ;;  %v8302_v31 = vld [vmem:[%s14679_s3 + $0x98] sm:$0xf] }
 0x3e3   : > { %6103 = vmatpush.bf16.msrb.mxu2 %v9067_v57  ;;  %v9427_v48 = vor.u32 %v9849_v2, %v9424_v51  ;;  %v9571_v63 = vld [vmem:[%s14679_s3 + $0xac] sm:$0xf0]  ;;  %v8758_v11 = vld [vmem:[%s14679_s3 + $0x428] sm:$0xf]  ;;  %v9825_v52 = vld [vmem:[%s14679_s3 + $0x8a4] sm:$0xf] }
 0x3e4   : > { %v9619_v39 = vld [vmem:[%s14679_s3 + $0x22c] sm:$0xf0]  ;;  %v8303_v53 = vor.u32 %v9571_v63, %v8302_v31  ;;  %v9613_v2 = vld [vmem:[%s14679_s3 + $0x1fc] sm:$0xf0]  ;;  %v8734_v51 = vld [vmem:[%s14679_s3 + $0x3f8] sm:$0xf] }
 0x3e5   : > { %6061 = vmatpush.bf16.msrb.mxu3 %v8563_v58  ;;  %6091 = vmatpush.bf16.msrb.mxu0 %v8851_v10  ;;  %v9583_v58 = vld [vmem:[%s14679_s3 + $0x10c] sm:$0xf0]  ;;  %v8567_v10 = vor.u32 %v9637_v54, %v8566_v8  ;;  %v9304_v46 = vld [vmem:[%s14679_s3 + $0x888] sm:$0xf0]  ;;  %v9358_v47 = vld [vmem:[%s14679_s3 + $0x8d8] sm:$0xf] }
 0x3e6   : > { %6079 = vmatpush.bf16.msra.mxu1 %v8635_v45  ;;  %v9400_v45 = vld [vmem:[%s14679_s3 + $0x948] sm:$0xf0]  ;;  %v9835_v33 = vld [vmem:[%s14679_s3 + $0x8ec] sm:$0xf0]  ;;  %v9781_v31 = vld [vmem:[%s14679_s3 + $0x73c] sm:$0xf0] }
 0x3e7   : > { %6104 = vmatpush.bf16.msrb.mxu2 %v9043_v56  ;;  %v3977_v55 = vpop.f32.mrf.mxu0  ;;  %v8351_v56 = vor.u32 %v9583_v58, %v8350_v1  ;;  %v9403_v26 = vor.u32 %v9843_v5, %v9400_v45  ;;  %v9559_v1 = vld [vmem:[%s14679_s3 + $0x4c] sm:$0xf0]  ;;  %v8446_v58 = vld [vmem:[%s14679_s3 + $0x1b8] sm:$0xf]  ;;  %v8710_v5 = vld [vmem:[%s14679_s3 + $0x3c8] sm:$0xf] }
 0x3e8   : > { %v4011_v28 = vadd.f32 %v3977_v55, %v3905_v32  ;;  %v8518_v32 = vld [vmem:[%s14679_s3 + $0x248] sm:$0xf]  ;;  %v8327_v55 = vor.u32 %v9577_v13, %v8326_v21  ;;  %v9673_v45 = vld [vmem:[%s14679_s3 + $0x3dc] sm:$0xf0]  ;;  %v9166_v13 = vld [vmem:[%s14679_s3 + $0x758] sm:$0xf] }
 0x3e9   : > { %6062 = vmatpush.bf16.msrb.mxu3 %v8539_v7  ;;  %6092 = vmatpush.bf16.msrb.mxu0 %v8827_v35  ;;  %v8543_v7 = vor.u32 %v9631_v18, %v8542_v0  ;;  %v9837_v35 = vld [vmem:[%s14679_s3 + $0x904] sm:$0xf]  ;;  %v9553_v21 = vld [vmem:[%s14679_s3 + $0x1c] sm:$0xf0]  ;;  %v8662_v63 = vld [vmem:[%s14679_s3 + $0x368] sm:$0xf] }
 0x3ea   : > { %v4024_v12 = vadd.f32 %v12462_v9, %v4011_v28  ;;  %6080 = vmatpush.bf16.msra.mxu1 %v8611_v19  ;;  %v9589_v9 = vld [vmem:[%s14679_s3 + $0x13c] sm:$0xf0]  ;;  %v8443_v19 = vor.u32 %v9603_v25, %v8440_v23  ;;  %v9379_v49 = vor.u32 %v9837_v35, %v9376_v22  ;;  %v8519_v28 = vor.u32 %v9625_v62, %v8518_v32  ;;  %v9813_v18 = vld [vmem:[%s14679_s3 + $0x844] sm:$0xf]  ;;  %v8230_v25 = vld [vmem:[%s14679_s3 + $0x8] sm:$0xf] }
 0x3eb   : > { %6105 = vmatpush.bf16.msrb.mxu2 %v9019_v36  ;;  %v8375_v57 = vor.u32 %v9589_v9, %v8374_v42  ;;  %v9597_v36 = vld [vmem:[%s14679_s3 + $0x184] sm:$0xf]  ;;  %v8278_v9 = vld [vmem:[%s14679_s3 + $0x68] sm:$0xf]  ;;  %v9601_v22 = vld [vmem:[%s14679_s3 + $0x19c] sm:$0xf0] }
 0x3ec   : > { %v4031_v38 = vmax.f32 %v4024_v12, 0.0  ;;  %v9685_v12 = vld [vmem:[%s14679_s3 + $0x43c] sm:$0xf0]  ;;  %v8422_v35 = vld [vmem:[%s14679_s3 + $0x188] sm:$0xf] }
 0x3ed   : > { %6063 = vmatpush.bf16.msrb.mxu3 %v8515_v61  ;;  %6093 = vmatpush.bf16.msrb.mxu0 %v8803_v60  ;;  %v8494_v61 = vld [vmem:[%s14679_s3 + $0x218] sm:$0xf]  ;;  %v8759_v42 = vor.u32 %v9685_v12, %v8758_v11  ;;  %v9667_v62 = vld [vmem:[%s14679_s3 + $0x3ac] sm:$0xf0]  ;;  %v9829_v11 = vld [vmem:[%s14679_s3 + $0x8bc] sm:$0xf0] }
 0x3ee   : > { %6128 = vmatpush.bf16.msrb.mxu1 %v5942_v34  ;;  %v12715_v6 = vpack.c.bf16 %v4031_v38, %v4031_v38  ;;  %v8416_v34 = vld [vmem:[%s14679_s3 + $0x198] sm:$0xf0]  ;;  %v9565_v38 = vld [vmem:[%s14679_s3 + $0x7c] sm:$0xf0]  ;;  %v8686_v32 = vld [vmem:[%s14679_s3 + $0x398] sm:$0xf] }
 0x3ef   : > { %6081 = vmatmul.bf16.vlgmr.msra.gmra.mxu1 %v12482_v27  ;;  %6106 = vmatpush.bf16.msrb.mxu2 %v8995_v44  ;;  %v3979_v37 = vpop.f32.mrf.mxu0  ;;  %v8419_v60 = vor.u32 %v9597_v36, %v8416_v34  ;;  %v9328_v44 = vld [vmem:[%s14679_s3 + $0x8b8] sm:$0xf0]  ;;  %v8279_v54 = vor.u32 %v9565_v38, %v8278_v9  ;;  %v9807_v36 = vld [vmem:[%s14679_s3 + $0x814] sm:$0xf]  ;;  %v9256_v34 = vld [vmem:[%s14679_s3 + $0x828] sm:$0xf0] }
 0x3f0   : > { %6016 = vmatmul.bf16.vlgmr.msra.gmra.mxu3 %v12715_v6  ;;  %6094 = vmatmul.bf16.vlgmr.msrb.gmra.mxu0 %v12513_v43  ;;  %v9331_v8 = vor.u32 %v9825_v52, %v9328_v44  ;;  %v9801_v12 = vld [vmem:[%s14679_s3 + $0x7e4] sm:$0xf]  ;;  %v9775_v9 = vld [vmem:[%s14679_s3 + $0x70c] sm:$0xf0]  ;;  %v8638_v38 = vld [vmem:[%s14679_s3 + $0x338] sm:$0xf] }
 0x3f1   : > { %6138 = vmatpush.bf16.msra.mxu0 %v8399_v40  ;;  %6064 = vmatpush.bf16.msrb.mxu3 %v8491_v3  ;;  %v9355_v40 = vor.u32 %v9831_v4, %v9352_v14  ;;  %v9679_v3 = vld [vmem:[%s14679_s3 + $0x40c] sm:$0xf0]  ;;  %v8423_v4 = vor.u32 %v9601_v22, %v8422_v35  ;;  %v8687_v14 = vor.u32 %v9667_v62, %v8686_v32 }
 0x3f2   : > { %6129 = vmatpush.bf16.msrb.mxu1 %v9451_v15  ;;  %6107 = vmatmul.bf16.vlgmr.msrb.gmra.mxu2 %v12715_v6  ;;  %v8495_v15 = vor.u32 %v9619_v39, %v8494_v61  ;;  %v8735_v37 = vor.u32 %v9679_v3, %v8734_v51  ;;  %v9259_v61 = vor.u32 %v9807_v36, %v9256_v34  ;;  %v9334_v39 = vld [vmem:[%s14679_s3 + $0x8a8] sm:$0xf]  ;;  %v9310_v51 = vld [vmem:[%s14679_s3 + $0x878] sm:$0xf]  ;;  %v9823_v3 = vld [vmem:[%s14679_s3 + $0x88c] sm:$0xf0] }
 0x3f3   : > { %6151 = vmatpush.bf16.msra.mxu2 %v8591_v20  ;;  %v8470_v20 = vld [vmem:[%s14679_s3 + $0x1e8] sm:$0xf]  ;;  %v9763_v35 = vld [vmem:[%s14679_s3 + $0x6ac] sm:$0xf0] }
 0x3f4   : > { %v8471_v17 = vor.u32 %v9613_v2, %v8470_v20  ;;  %v9655_v2 = vld [vmem:[%s14679_s3 + $0x34c] sm:$0xf0]  ;;  %v8950_v34 = vld [vmem:[%s14679_s3 + $0x5a8] sm:$0xf] }
 0x3f5   : > { %6139 = vmatpush.bf16.msra.mxu0 %v8375_v57  ;;  %6065 = vmatpush.bf16.msrb.mxu3 %v8467_v50  ;;  %v9819_v57 = vld [vmem:[%s14679_s3 + $0x874] sm:$0xf]  ;;  %v9811_v62 = vld [vmem:[%s14679_s3 + $0x82c] sm:$0xf0] }
 0x3f6   : > { %6130 = vmatpush.bf16.msrb.mxu1 %v9427_v48  ;;  %v8254_v48 = vld [vmem:[%s14679_s3 + $0x38] sm:$0xf]  ;;  %v9307_v50 = vor.u32 %v9819_v57, %v9304_v46  ;;  %v9208_v57 = vld [vmem:[%s14679_s3 + $0x7c8] sm:$0xf0] }
 0x3f7   : > { %6152 = vmatpush.bf16.msra.mxu2 %v8567_v10  ;;  %v9607_v10 = vld [vmem:[%s14679_s3 + $0x1cc] sm:$0xf0]  ;;  %v8255_v0 = vor.u32 %v9559_v1, %v8254_v48  ;;  %v9094_v48 = vld [vmem:[%s14679_s3 + $0x6c8] sm:$0xf]  ;;  %v9769_v1 = vld [vmem:[%s14679_s3 + $0x6dc] sm:$0xf0] }
 0x3f8   : > { %v8447_v23 = vor.u32 %v9607_v10, %v8446_v58  ;;  %v8614_v58 = vld [vmem:[%s14679_s3 + $0x308] sm:$0xf] }
 0x3f9   : > { %6140 = vmatpush.bf16.msra.mxu0 %v8351_v56  ;;  %6066 = vmatpush.bf16.msrb.mxu3 %v8443_v19  ;;  %v9280_v56 = vld [vmem:[%s14679_s3 + $0x858] sm:$0xf0] }
 0x3fa   : > { %6131 = vmatpush.bf16.msrb.mxu1 %v9403_v26  ;;  %v8711_v26 = vor.u32 %v9673_v45, %v8710_v5  ;;  %v9283_v19 = vor.u32 %v9813_v18, %v9280_v56  ;;  %v9649_v5 = vld [vmem:[%s14679_s3 + $0x31c] sm:$0xf0]  ;;  %v9286_v45 = vld [vmem:[%s14679_s3 + $0x848] sm:$0xf]  ;;  %v9789_v18 = vld [vmem:[%s14679_s3 + $0x784] sm:$0xf] }
 0x3fb   : > { %6153 = vmatpush.bf16.msra.mxu2 %v8543_v7  ;;  %v9787_v7 = vld [vmem:[%s14679_s3 + $0x76c] sm:$0xf0]  ;;  %v9184_v56 = vld [vmem:[%s14679_s3 + $0x798] sm:$0xf0] }
 0x3fc   : > { %v9187_v32 = vor.u32 %v9789_v18, %v9184_v56  ;;  %v8976_v18 = vld [vmem:[%s14679_s3 + $0x5f0] sm:$0xf0] }
 0x3fd   : > { %6141 = vmatpush.bf16.msra.mxu0 %v8327_v55  ;;  %6067 = vmatpush.bf16.msrb.mxu3 %v8419_v60  ;;  %v8231_v55 = vor.u32 %v9553_v21, %v8230_v25  ;;  %v9661_v60 = vld [vmem:[%s14679_s3 + $0x37c] sm:$0xf0]  ;;  %v9095_v25 = vor.u32 %v9769_v1, %v9094_v48  ;;  %v8615_v21 = vor.u32 %v9649_v5, %v8614_v58  ;;  %v8784_v48 = vld [vmem:[%s14679_s3 + $0x470] sm:$0xf0]  ;;  %v9190_v58 = vld [vmem:[%s14679_s3 + $0x788] sm:$0xf] }
 0x3fe   : > { %6132 = vmatpush.bf16.msrb.mxu1 %v9379_v49  ;;  %v9167_v49 = vor.u32 %v9787_v7, %v9166_v13  ;;  %v8663_v44 = vor.u32 %v9661_v60, %v8662_v63  ;;  %v9070_v7 = vld [vmem:[%s14679_s3 + $0x698] sm:$0xf]  ;;  %v9805_v63 = vld [vmem:[%s14679_s3 + $0x7fc] sm:$0xf0]  ;;  %v9430_v60 = vld [vmem:[%s14679_s3 + $0x968] sm:$0xf] }
 0x3ff   : > { %6154 = vmatpush.bf16.msra.mxu2 %v8519_v28  ;;  %v9359_v28 = vor.u32 %v9835_v33, %v9358_v47  ;;  %v9454_v33 = vld [vmem:[%s14679_s3 + $0x998] sm:$0xf]  ;;  %v9071_v36 = vor.u32 %v9763_v35, %v9070_v7  ;;  %v9382_v5 = vld [vmem:[%s14679_s3 + $0x908] sm:$0xf]  ;;  %v9715_v7 = vld [vmem:[%s14679_s3 + $0x52c] sm:$0xf0] }
 0x400   : > { %6068 = vmatmul.bf16.vlgmr.msrb.gmra.mxu3 %v12498_v59 }
 0x401   : > { %6112 = vmatpush.bf16.msra.mxu3 %v9355_v40  ;;  %9469 = vmatmul.msk.bf16.vlgmr.msrb.gmra.mxu1 %vm5931_vm11, %v12579_v41  ;;  %v9232_v40 = vld [vmem:[%s14679_s3 + $0x7f8] sm:$0xf0] }
 0x402   : > { %6164 = vmatpush.bf16.msra.mxu1 %v8783_v24  ;;  %6142 = vmatpush.bf16.msra.mxu0 %v8303_v53  ;;  %v9142_v24 = vld [vmem:[%s14679_s3 + $0x728] sm:$0xf]  ;;  %v9235_v20 = vor.u32 %v9801_v12, %v9232_v40  ;;  %v8926_v12 = vld [vmem:[%s14679_s3 + $0x578] sm:$0xf]  ;;  %v9727_v40 = vld [vmem:[%s14679_s3 + $0x58c] sm:$0xf0] }
 0x403   : > { %6155 = vmatpush.bf16.msra.mxu2 %v8495_v15  ;;  %v12925_v53 = vld [vmem:[%s14679_s3 + $0x9c8] sm:$0x77]  ;;  %v9143_v52 = vor.u32 %v9781_v31, %v9142_v24  ;;  %v9335_v15 = vor.u32 %v9829_v11, %v9334_v39  ;;  %v9853_v39 = vld [vmem:[%s14679_s3 + $0x97c] sm:$0xf0] }
 0x404   : > { %v9238_v31 = vld [vmem:[%s14679_s3 + $0x7e8] sm:$0xf] }
 0x405   : > { %6113 = vmatpush.bf16.msra.mxu3 %v9331_v8  ;;  %v5297_v8 = vunpack.c.l.b16 %v12925_v53 }
 0x406   : > { %6165 = vmatpush.bf16.msra.mxu1 %v8759_v42  ;;  %6143 = vmatpush.bf16.msra.mxu0 %v8279_v54  ;;  %v9118_v42 = vld [vmem:[%s14679_s3 + $0x6f8] sm:$0xf]  ;;  %v9795_v54 = vld [vmem:[%s14679_s3 + $0x7b4] sm:$0xf] }
 0x407   : > { %6156 = vmatpush.bf16.msra.mxu2 %v8471_v17  ;;  %v9119_v46 = vor.u32 %v9775_v9, %v9118_v42  ;;  %v8639_v17 = vor.u32 %v9655_v2, %v8638_v38  ;;  %v9211_v10 = vor.u32 %v9795_v54, %v9208_v57  ;;  %v9431_v42 = vor.u32 %v9853_v39, %v9430_v60  ;;  %v9214_v9 = vld [vmem:[%s14679_s3 + $0x7b8] sm:$0xf]  ;;  %v9799_v38 = vld [vmem:[%s14679_s3 + $0x7cc] sm:$0xf0]  ;;  %v9721_v54 = vld [vmem:[%s14679_s3 + $0x55c] sm:$0xf0] }
 0x408   : > { %v9406_v2 = vld [vmem:[%s14679_s3 + $0x938] sm:$0xf]  ;;  %v8998_v57 = vld [vmem:[%s14679_s3 + $0x608] sm:$0xf]  ;;  %v8928_v60 = vld [vmem:[%s14679_s3 + $0x590] sm:$0xf0] }
 0x409   : > { %6114 = vmatpush.bf16.msra.mxu3 %v9307_v50  ;;  %v9817_v50 = vld [vmem:[%s14679_s3 + $0x85c] sm:$0xf0] }
 0x40a   : > { %6166 = vmatpush.bf16.msra.mxu1 %v8735_v37  ;;  %6144 = vmatpush.bf16.msra.mxu0 %v8255_v0  ;;  %v9311_v37 = vor.u32 %v9823_v3, %v9310_v51  ;;  %v5615_v0 = vpack.c.b16 %v5297_v8, %v5297_v8  ;;  %v9287_v13 = vor.u32 %v9817_v50, %v9286_v45  ;;  %v9847_v51 = vld [vmem:[%s14679_s3 + $0x94c] sm:$0xf0]  ;;  %v8902_v8 = vld [vmem:[%s14679_s3 + $0x548] sm:$0xf]  ;;  %v9841_v50 = vld [vmem:[%s14679_s3 + $0x91c] sm:$0xf0] }
 0x40b   : > { %6157 = vmatpush.bf16.msra.mxu2 %v8447_v23  ;;  %v8974_v23 = vld [vmem:[%s14679_s3 + $0x5d8] sm:$0xf]  ;;  %v9407_v1 = vor.u32 %v9847_v51, %v9406_v2  ;;  %v8903_v45 = vor.u32 %v9721_v54, %v8902_v8  ;;  %v9383_v35 = vor.u32 %v9841_v50, %v9382_v5  ;;  %v8904_v2 = vld [vmem:[%s14679_s3 + $0x560] sm:$0xf0]  ;;  %v9712_v5 = vld [vmem:[%s14679_s3 + $0x51c] sm:$0xf] }
 0x40c   : > { %v5945_v22 = vand.u32 %v12297_v16, %v5615_v0  ;;  %v9736_v0 = vld [vmem:[%s14679_s3 + $0x5dc] sm:$0xf]  ;;  %v8520_v8 = vld [vmem:[%s14679_s3 + $0x260] sm:$0xf0] }
 0x40d   : > { %6115 = vmatpush.bf16.msra.mxu3 %v9283_v19  ;;  %v9262_v19 = vld [vmem:[%s14679_s3 + $0x818] sm:$0xf] }
 0x40e   : > { %6167 = vmatpush.bf16.msra.mxu1 %v8711_v26  ;;  %6145 = vmatpush.bf16.msra.mxu0 %v8231_v55  ;;  %v9739_v26 = vld [vmem:[%s14679_s3 + $0x5ec] sm:$0xf0] }
 0x40f   : > { %6158 = vmatpush.bf16.msra.mxu2 %v8423_v4  ;;  %v8975_v47 = vor.u32 %v9739_v26, %v8974_v23  ;;  %v9859_v55 = vld [vmem:[%s14679_s3 + $0x9ac] sm:$0xf0]  ;;  %v9263_v4 = vor.u32 %v9811_v62, %v9262_v19  ;;  %v8592_v23 = vld [vmem:[%s14679_s3 + $0x2f0] sm:$0xf0]  ;;  %v8760_v19 = vld [vmem:[%s14679_s3 + $0x440] sm:$0xf0] }
 0x410   : > { %v9455_v24 = vor.u32 %v9859_v55, %v9454_v33  ;;  %v8952_v33 = vld [vmem:[%s14679_s3 + $0x5c0] sm:$0xf0] }
 0x411   : > { %6146 = vmatmul.bf16.vlgmr.msra.gmra.mxu0 %v12598_v29  ;;  %6116 = vmatpush.bf16.msra.mxu3 %v9259_v61 }
 0x412   : > { %6190 = vmatpush.bf16.msrb.mxu0 %v9167_v49  ;;  %6168 = vmatpush.bf16.msra.mxu1 %v8687_v14  ;;  %v9733_v49 = vld [vmem:[%s14679_s3 + $0x5bc] sm:$0xf0]  ;;  %v9046_v14 = vld [vmem:[%s14679_s3 + $0x668] sm:$0xf] }
 0x413   : > { %6203 = vmatpush.bf16.msrb.mxu2 %v9359_v28  ;;  %v9757_v28 = vld [vmem:[%s14679_s3 + $0x67c] sm:$0xf0]  ;;  %v8951_v61 = vor.u32 %v9733_v49, %v8950_v34  ;;  %v8568_v34 = vld [vmem:[%s14679_s3 + $0x2c0] sm:$0xf0] }
 0x414   : > { %6159 = vmatmul.bf16.vlgmr.msra.gmra.mxu2 %v12498_v59  ;;  %v9047_v11 = vor.u32 %v9757_v28, %v9046_v14  ;;  %v9709_v14 = vld [vmem:[%s14679_s3 + $0x4fc] sm:$0xf0] }
 0x415   : > { %6117 = vmatpush.bf16.msra.mxu3 %v9235_v20  ;;  %v8927_v20 = vor.u32 %v9727_v40, %v8926_v12  ;;  %v8544_v12 = vld [vmem:[%s14679_s3 + $0x290] sm:$0xf0] }
 0x416   : > { %6191 = vmatpush.bf16.msrb.mxu0 %v9143_v52  ;;  %6169 = vmatpush.bf16.msra.mxu1 %v8663_v44  ;;  %v9239_v52 = vor.u32 %v9805_v63, %v9238_v31  ;;  %v9022_v44 = vld [vmem:[%s14679_s3 + $0x638] sm:$0xf]  ;;  %v8736_v31 = vld [vmem:[%s14679_s3 + $0x410] sm:$0xf0] }
 0x417   : > { %6204 = vmatpush.bf16.msrb.mxu2 %v9335_v15  ;;  %v9751_v15 = vld [vmem:[%s14679_s3 + $0x64c] sm:$0xf0] }
 0x418   : > { %v9023_v3 = vor.u32 %v9751_v15, %v9022_v44  ;;  %v9703_v44 = vld [vmem:[%s14679_s3 + $0x4cc] sm:$0xf0] }
 0x419   : > { %6118 = vmatpush.bf16.msra.mxu3 %v9211_v10  ;;  %v9793_v10 = vld [vmem:[%s14679_s3 + $0x79c] sm:$0xf0] }
 0x41a   : > { %6192 = vmatpush.bf16.msrb.mxu0 %v9119_v46  ;;  %6170 = vmatpush.bf16.msra.mxu1 %v8639_v17  ;;  %v9215_v46 = vor.u32 %v9799_v38, %v9214_v9  ;;  %v9745_v17 = vld [vmem:[%s14679_s3 + $0x61c] sm:$0xf0]  ;;  %v8712_v9 = vld [vmem:[%s14679_s3 + $0x3e0] sm:$0xf0] }
 0x41b   : > { %6205 = vmatpush.bf16.msrb.mxu2 %v9311_v37  ;;  %v9688_v37 = vld [vmem:[%s14679_s3 + $0x45c] sm:$0xf]  ;;  %v8999_v56 = vor.u32 %v9745_v17, %v8998_v57  ;;  %v8806_v57 = vld [vmem:[%s14679_s3 + $0x488] sm:$0xf] }
 0x41c   : > { %v8787_v26 = vor.u32 %v9688_v37, %v8784_v48  ;;  %v9592_v17 = vld [vmem:[%s14679_s3 + $0x15c] sm:$0xf]  ;;  %v8400_v48 = vld [vmem:[%s14679_s3 + $0x170] sm:$0xf0] }
 0x41d   : > { %6119 = vmatpush.bf16.msra.mxu3 %v9187_v32  ;;  %v9682_v32 = vld [vmem:[%s14679_s3 + $0x42c] sm:$0xf] }
 0x41e   : > { %6193 = vmatpush.bf16.msrb.mxu0 %v9095_v25  ;;  %6171 = vmatpush.bf16.msra.mxu1 %v8615_v21  ;;  %v9640_v25 = vld [vmem:[%s14679_s3 + $0x2dc] sm:$0xf]  ;;  %v9191_v21 = vor.u32 %v9793_v10, %v9190_v58  ;;  %v8763_v49 = vor.u32 %v9682_v32, %v8760_v19  ;;  %v8688_v58 = vld [vmem:[%s14679_s3 + $0x3b0] sm:$0xf0]  ;;  %v8856_v32 = vld [vmem:[%s14679_s3 + $0x500] sm:$0xf0] }
 0x41f   : > { %6206 = vmatpush.bf16.msrb.mxu2 %v9287_v13  ;;  %v8878_v13 = vld [vmem:[%s14679_s3 + $0x518] sm:$0xf]  ;;  %v8595_v62 = vor.u32 %v9640_v25, %v8592_v23  ;;  %v9586_v23 = vld [vmem:[%s14679_s3 + $0x12c] sm:$0xf] }
 0x420   : > { %6120 = vmatmul.bf16.vlgmr.msra.gmra.mxu3 %v12600_v30  ;;  %v8879_v55 = vor.u32 %v9715_v7, %v8878_v13  ;;  %v9658_v13 = vld [vmem:[%s14679_s3 + $0x36c] sm:$0xf]  ;;  %v8664_v7 = vld [vmem:[%s14679_s3 + $0x380] sm:$0xf0] }
 0x421   : > { %6177 = vmatpush.bf16.msrb.mxu3 %v8975_v47  ;;  %6172 = vmatmul.bf16.vlgmr.msra.gmra.mxu1 %v12482_v27  ;;  %v9730_v47 = vld [vmem:[%s14679_s3 + $0x5ac] sm:$0xf] }
 0x422   : > { %6219 = vmatpush.bf16.msrb.mxu1 %v5945_v22  ;;  %6194 = vmatpush.bf16.msrb.mxu0 %v9071_v36  ;;  %v8979_v22 = vor.u32 %v9736_v0, %v8976_v18  ;;  %v9634_v36 = vld [vmem:[%s14679_s3 + $0x2ac] sm:$0xf]  ;;  %v8955_v28 = vor.u32 %v9730_v47, %v8952_v33  ;;  %v9616_v0 = vld [vmem:[%s14679_s3 + $0x21c] sm:$0xf]  ;;  %v8496_v18 = vld [vmem:[%s14679_s3 + $0x230] sm:$0xf0]  ;;  %v8667_v33 = vor.u32 %v9658_v13, %v8664_v7 }
 0x423   : > { %6207 = vmatpush.bf16.msrb.mxu2 %v9263_v4  ;;  %v8854_v4 = vld [vmem:[%s14679_s3 + $0x4e8] sm:$0xf]  ;;  %v8571_v63 = vor.u32 %v9634_v36, %v8568_v34  ;;  %v9610_v19 = vld [vmem:[%s14679_s3 + $0x1ec] sm:$0xf]  ;;  %v8352_v34 = vld [vmem:[%s14679_s3 + $0x110] sm:$0xf0] }
 0x424   : > { %v8855_v39 = vor.u32 %v9709_v14, %v8854_v4  ;;  %v8640_v4 = vld [vmem:[%s14679_s3 + $0x350] sm:$0xf0]  ;;  %v5298_v14 = vunpack.c.h.b16 %v12925_v53  ;;  %v9850_v7 = vld [vmem:[%s14679_s3 + $0x96c] sm:$0xf] }
 0x425   : > { %6178 = vmatpush.bf16.msrb.mxu3 %v8951_v61  ;;  %v9724_v61 = vld [vmem:[%s14679_s3 + $0x57c] sm:$0xf]  ;;  %v8448_v53 = vld [vmem:[%s14679_s3 + $0x1d0] sm:$0xf0] }
 0x426   : > { %6220 = vmatpush.bf16.msrb.mxu1 %v9455_v24  ;;  %6195 = vmatpush.bf16.msrb.mxu0 %v9047_v11  ;;  %v9676_v24 = vld [vmem:[%s14679_s3 + $0x3fc] sm:$0xf]  ;;  %v8931_v15 = vor.u32 %v9724_v61, %v8928_v60 }
 0x427   : > { %6208 = vmatpush.bf16.msrb.mxu2 %v9239_v52  ;;  %v9628_v11 = vld [vmem:[%s14679_s3 + $0x27c] sm:$0xf]  ;;  %v8739_v40 = vor.u32 %v9676_v24, %v8736_v31  ;;  %v8830_v52 = vld [vmem:[%s14679_s3 + $0x4b8] sm:$0xf]  ;;  %v8832_v31 = vld [vmem:[%s14679_s3 + $0x4d0] sm:$0xf0] }
 0x428   : > { %v8547_v38 = vor.u32 %v9628_v11, %v8544_v12  ;;  %v8831_v51 = vor.u32 %v9703_v44, %v8830_v52  ;;  %v9700_v24 = vld [vmem:[%s14679_s3 + $0x4bc] sm:$0xf]  ;;  %v8328_v12 = vld [vmem:[%s14679_s3 + $0xe0] sm:$0xf0]  ;;  %v5616_v44 = vpack.c.b16 %v5298_v14, %v5298_v14 }
 0x429   : > { %6179 = vmatpush.bf16.msrb.mxu3 %v8927_v20  ;;  %v9718_v20 = vld [vmem:[%s14679_s3 + $0x54c] sm:$0xf]  ;;  %v8835_v11 = vor.u32 %v9700_v24, %v8832_v31  ;;  %v8616_v52 = vld [vmem:[%s14679_s3 + $0x320] sm:$0xf0]  ;;  %v9844_v14 = vld [vmem:[%s14679_s3 + $0x93c] sm:$0xf] }
 0x42a   : > { %6221 = vmatpush.bf16.msrb.mxu1 %v9431_v42  ;;  %6196 = vmatpush.bf16.msrb.mxu0 %v9023_v3  ;;  %v9670_v42 = vld [vmem:[%s14679_s3 + $0x3cc] sm:$0xf]  ;;  %v8907_v37 = vor.u32 %v9718_v20, %v8904_v2  ;;  %v8424_v20 = vld [vmem:[%s14679_s3 + $0x1a0] sm:$0xf0]  ;;  %v8406_v2 = vld [vmem:[%s14679_s3 + $0x160] sm:$0xf] }
 0x42b   : > { %6209 = vmatpush.bf16.msrb.mxu2 %v9215_v46  ;;  %v9622_v3 = vld [vmem:[%s14679_s3 + $0x24c] sm:$0xf]  ;;  %v8715_v54 = vor.u32 %v9670_v42, %v8712_v9  ;;  %v9697_v46 = vld [vmem:[%s14679_s3 + $0x49c] sm:$0xf0]  ;;  %v8334_v31 = vld [vmem:[%s14679_s3 + $0xd0] sm:$0xf] }
 0x42c   : > { %v8523_v10 = vor.u32 %v9622_v3, %v8520_v8  ;;  %v8807_v50 = vor.u32 %v9697_v46, %v8806_v57  ;;  %v9598_v42 = vld [vmem:[%s14679_s3 + $0x18c] sm:$0xf]  ;;  %v9360_v57 = vld [vmem:[%s14679_s3 + $0x8f0] sm:$0xf0]  ;;  %v5948_v46 = vand.u32 %v12297_v16, %v5616_v44 }
 0x42d   : > { %6180 = vmatpush.bf16.msrb.mxu3 %v8903_v45  ;;  %v8880_v45 = vld [vmem:[%s14679_s3 + $0x530] sm:$0xf0]  ;;  %v9694_v9 = vld [vmem:[%s14679_s3 + $0x48c] sm:$0xf] }
 0x42e   : > { %6222 = vmatpush.bf16.msrb.mxu1 %v9407_v1  ;;  %6197 = vmatpush.bf16.msrb.mxu0 %v8999_v56  ;;  %v9664_v1 = vld [vmem:[%s14679_s3 + $0x39c] sm:$0xf]  ;;  %v8403_v56 = vor.u32 %v9592_v17, %v8400_v48  ;;  %v8304_v48 = vld [vmem:[%s14679_s3 + $0xb0] sm:$0xf0] }
 0x42f   : > { %6210 = vmatpush.bf16.msrb.mxu2 %v9191_v21  ;;  %v8691_v25 = vor.u32 %v9664_v1, %v8688_v58  ;;  %v8376_v21 = vld [vmem:[%s14679_s3 + $0x140] sm:$0xf0]  ;;  %v8427_v1 = vor.u32 %v9598_v42, %v8424_v20  ;;  %v9168_v44 = vld [vmem:[%s14679_s3 + $0x770] sm:$0xf0]  ;;  %v9838_v42 = vld [vmem:[%s14679_s3 + $0x90c] sm:$0xf] }
 0x430   : > { %v8379_v47 = vor.u32 %v9586_v23, %v8376_v21  ;;  %v8280_v21 = vld [vmem:[%s14679_s3 + $0x80] sm:$0xf0] }
 0x431   : > { %6198 = vmatmul.bf16.vlgmr.msrb.gmra.mxu0 %v12715_v6  ;;  %6181 = vmatpush.bf16.msrb.mxu3 %v8879_v55  ;;  %v9580_v55 = vld [vmem:[%s14679_s3 + $0xfc] sm:$0xf] }
 0x432   : > { %6255 = vmatpush.bf16.msra.mxu0 %v8787_v26  ;;  %6223 = vmatpush.bf16.msrb.mxu1 %v9383_v35  ;;  %v8883_v26 = vor.u32 %v9712_v5, %v8880_v45  ;;  %v8499_v35 = vor.u32 %v9616_v0, %v8496_v18  ;;  %v8355_v61 = vor.u32 %v9580_v55, %v8352_v34  ;;  %v9456_v5 = vld [vmem:[%s14679_s3 + $0x9b0] sm:$0xf0]  ;;  %v9590_v0 = vld [vmem:[%s14679_s3 + $0x144] sm:$0xf0]  ;;  %v9556_v34 = vld [vmem:[%s14679_s3 + $0x3c] sm:$0xf] }
 0x433   : > { %6268 = vmatpush.bf16.msra.mxu2 %v8979_v22  ;;  %v9706_v22 = vld [vmem:[%s14679_s3 + $0x4ec] sm:$0xf] }
 0x434   : > { %6211 = vmatmul.bf16.vlgmr.msrb.gmra.mxu2 %v12600_v30  ;;  %v8859_v36 = vor.u32 %v9706_v22, %v8856_v32  ;;  %v8358_v32 = vld [vmem:[%s14679_s3 + $0x100] sm:$0xf] }
 0x435   : > { %9470 = vmatmul.msk.bf16.vlgmr.msrb.gmra.mxu1 %vm5931_vm11, %v12579_v41  ;;  %6182 = vmatpush.bf16.msrb.mxu3 %v8855_v39  ;;  %v9574_v39 = vld [vmem:[%s14679_s3 + $0xcc] sm:$0xf] }
 0x436   : > { %6242 = vmatpush.bf16.msra.mxu1 %v8595_v62  ;;  %6256 = vmatpush.bf16.msra.mxu0 %v8763_v49  ;;  %v8472_v62 = vld [vmem:[%s14679_s3 + $0x200] sm:$0xf0]  ;;  %v9652_v49 = vld [vmem:[%s14679_s3 + $0x33c] sm:$0xf]  ;;  %v8331_v3 = vor.u32 %v9574_v39, %v8328_v12 }
 0x437   : > { %6269 = vmatpush.bf16.msra.mxu2 %v8955_v28  ;;  %v8475_v28 = vor.u32 %v9610_v19, %v8472_v62  ;;  %v8643_v60 = vor.u32 %v9652_v49, %v8640_v4  ;;  %v9584_v19 = vld [vmem:[%s14679_s3 + $0x114] sm:$0xf0]  ;;  %v8256_v49 = vld [vmem:[%s14679_s3 + $0x50] sm:$0xf0]  ;;  %v9288_v39 = vld [vmem:[%s14679_s3 + $0x860] sm:$0xf0] }
 0x438   : > { %v8359_v4 = vor.u32 %v9584_v19, %v8358_v32  ;;  %v8742_v32 = vld [vmem:[%s14679_s3 + $0x400] sm:$0xf] }
 0x439   : > { %6183 = vmatpush.bf16.msrb.mxu3 %v8831_v51  ;;  %v9596_v51 = vld [vmem:[%s14679_s3 + $0x174] sm:$0xf0] }
 0x43a   : > { %6243 = vmatpush.bf16.msra.mxu1 %v8571_v63  ;;  %6257 = vmatpush.bf16.msra.mxu0 %v8739_v40  ;;  %v9604_v63 = vld [vmem:[%s14679_s3 + $0x1bc] sm:$0xf]  ;;  %v9646_v40 = vld [vmem:[%s14679_s3 + $0x30c] sm:$0xf]  ;;  %v8407_v58 = vor.u32 %v9596_v51, %v8406_v2  ;;  %v9692_v2 = vld [vmem:[%s14679_s3 + $0x474] sm:$0xf0] }
 0x43b   : > { %6270 = vmatpush.bf16.msra.mxu2 %v8931_v15  ;;  %v8451_v15 = vor.u32 %v9604_v63, %v8448_v53  ;;  %v8619_v8 = vor.u32 %v9646_v40, %v8616_v52  ;;  %v9578_v63 = vld [vmem:[%s14679_s3 + $0xe4] sm:$0xf0]  ;;  %v8232_v40 = vld [vmem:[%s14679_s3 + $0x20] sm:$0xf0]  ;;  %v9784_v52 = vld [vmem:[%s14679_s3 + $0x75c] sm:$0xf] }
 0x43c   : > { %v8310_v51 = vld [vmem:[%s14679_s3 + $0xa0] sm:$0xf] }
 0x43d   : > { %6184 = vmatpush.bf16.msrb.mxu3 %v8807_v50  ;;  %v8382_v50 = vld [vmem:[%s14679_s3 + $0x130] sm:$0xf] }
 0x43e   : > { %6244 = vmatpush.bf16.msra.mxu1 %v8547_v38  ;;  %6258 = vmatpush.bf16.msra.mxu0 %v8715_v54  ;;  %v8808_v38 = vld [vmem:[%s14679_s3 + $0x4a0] sm:$0xf0]  ;;  %v9832_v54 = vld [vmem:[%s14679_s3 + $0x8dc] sm:$0xf]  ;;  %v8383_v13 = vor.u32 %v9590_v0, %v8382_v50  ;;  %v9686_v50 = vld [vmem:[%s14679_s3 + $0x444] sm:$0xf0] }
 0x43f   : > { %6271 = vmatpush.bf16.msra.mxu2 %v8907_v37  ;;  %v8811_v17 = vor.u32 %v9694_v9, %v8808_v38  ;;  %v9568_v37 = vld [vmem:[%s14679_s3 + $0x9c] sm:$0xf]  ;;  %v9363_v45 = vor.u32 %v9832_v54, %v9360_v57  ;;  %v9384_v9 = vld [vmem:[%s14679_s3 + $0x920] sm:$0xf0]  ;;  %v8790_v38 = vld [vmem:[%s14679_s3 + $0x460] sm:$0xf] }
 0x440   : > { %6185 = vmatmul.bf16.vlgmr.msrb.gmra.mxu3 %v12513_v43  ;;  %v8307_v18 = vor.u32 %v9568_v37, %v8304_v48  ;;  %v9808_v54 = vld [vmem:[%s14679_s3 + $0x81c] sm:$0xf]  ;;  %v9264_v57 = vld [vmem:[%s14679_s3 + $0x830] sm:$0xf0]  ;;  %v9387_v37 = vor.u32 %v9838_v42, %v9384_v9  ;;  %v8791_v48 = vor.u32 %v9692_v2, %v8790_v38  ;;  %v8286_v0 = vld [vmem:[%s14679_s3 + $0x70] sm:$0xf] }
 0x441   : > { %6229 = vmatpush.bf16.msra.mxu3 %v8403_v56  ;;  %v9826_v56 = vld [vmem:[%s14679_s3 + $0x8ac] sm:$0xf]  ;;  %v9788_v42 = vld [vmem:[%s14679_s3 + $0x774] sm:$0xf0]  ;;  %v8982_v38 = vld [vmem:[%s14679_s3 + $0x5e0] sm:$0xf] }
 0x442   : > { %6245 = vmatpush.bf16.msra.mxu1 %v8523_v10  ;;  %6259 = vmatpush.bf16.msra.mxu0 %v8691_v25  ;;  %v9856_v10 = vld [vmem:[%s14679_s3 + $0x99c] sm:$0xf]  ;;  %v9336_v25 = vld [vmem:[%s14679_s3 + $0x8c0] sm:$0xf0] }
 0x443   : > { %6272 = vmatpush.bf16.msra.mxu2 %v8883_v26  ;;  %v9459_v23 = vor.u32 %v9856_v10, %v9456_v5  ;;  %v9562_v26 = vld [vmem:[%s14679_s3 + $0x6c] sm:$0xf]  ;;  %v9339_v22 = vor.u32 %v9826_v56, %v9336_v25  ;;  %v9144_v10 = vld [vmem:[%s14679_s3 + $0x740] sm:$0xf0]  ;;  %v8766_v5 = vld [vmem:[%s14679_s3 + $0x430] sm:$0xf] }
 0x444   : > { %v8283_v62 = vor.u32 %v9562_v26, %v8280_v21  ;;  %v9240_v26 = vld [vmem:[%s14679_s3 + $0x800] sm:$0xf0] }
 0x445   : > { %6230 = vmatpush.bf16.msra.mxu3 %v8379_v47  ;;  %v9820_v47 = vld [vmem:[%s14679_s3 + $0x87c] sm:$0xf] }
 0x446   : > { %6246 = vmatpush.bf16.msra.mxu1 %v8499_v35  ;;  %6260 = vmatpush.bf16.msra.mxu0 %v8667_v33  ;;  %v9432_v35 = vld [vmem:[%s14679_s3 + $0x980] sm:$0xf0]  ;;  %v9312_v33 = vld [vmem:[%s14679_s3 + $0x890] sm:$0xf0] }
 0x447   : > { %6273 = vmatpush.bf16.msra.mxu2 %v8859_v36  ;;  %v9435_v36 = vor.u32 %v9850_v7, %v9432_v35  ;;  %v9315_v24 = vor.u32 %v9820_v47, %v9312_v33  ;;  %v9772_v35 = vld [vmem:[%s14679_s3 + $0x6fc] sm:$0xf]  ;;  %v8262_v47 = vld [vmem:[%s14679_s3 + $0x40] sm:$0xf]  ;;  %v9560_v33 = vld [vmem:[%s14679_s3 + $0x54] sm:$0xf0] }
 0x449   : > { %6231 = vmatpush.bf16.msra.mxu3 %v8355_v61  ;;  %v8259_v61 = vor.u32 %v9556_v34, %v8256_v49  ;;  %v9216_v34 = vld [vmem:[%s14679_s3 + $0x7d0] sm:$0xf0] }
 0x44a   : > { %6247 = vmatpush.bf16.msra.mxu1 %v8475_v28  ;;  %6261 = vmatpush.bf16.msra.mxu0 %v8643_v60  ;;  %v13339_v55 = vpop.f32.mrf.mxu1  ;;  %v9408_v28 = vld [vmem:[%s14679_s3 + $0x950] sm:$0xf0]  ;;  %v9814_v60 = vld [vmem:[%s14679_s3 + $0x84c] sm:$0xf] }
 0x44b   : > { %6274 = vmatpush.bf16.msra.mxu2 %v8835_v11  ;;  %v9550_v11 = vld [vmem:[%s14679_s3 + $0xc] sm:$0xf]  ;;  %v9411_v12 = vor.u32 %v9844_v14, %v9408_v28  ;;  %v9291_v20 = vor.u32 %v9814_v60, %v9288_v39 }
 0x44c   : > { %v9766_v14 = vld [vmem:[%s14679_s3 + $0x6cc] sm:$0xf] }
 0x44d   : > { %6232 = vmatpush.bf16.msra.mxu3 %v8331_v3  ;;  %v13359_v53 = vpop.f32.mrf.mxu0  ;;  %v9572_v3 = vld [vmem:[%s14679_s3 + $0xb4] sm:$0xf0]  ;;  %v9790_v39 = vld [vmem:[%s14679_s3 + $0x78c] sm:$0xf] }
 0x44e   : > { %6248 = vmatpush.bf16.msra.mxu1 %v8451_v15  ;;  %6262 = vmatpush.bf16.msra.mxu0 %v8619_v8  ;;  %v8335_v15 = vor.u32 %v9578_v63, %v8334_v31  ;;  %v8235_v8 = vor.u32 %v9550_v11, %v8232_v40  ;;  %v9096_v31 = vld [vmem:[%s14679_s3 + $0x6e0] sm:$0xf0]  ;;  %v8718_v63 = vld [vmem:[%s14679_s3 + $0x3d0] sm:$0xf] }
 0x44f   : > { %6275 = vmatpush.bf16.msra.mxu2 %v8811_v17  ;;  %v9171_v17 = vor.u32 %v9784_v52, %v9168_v44  ;;  %v8238_v11 = vld [vmem:[%s14679_s3 + $0x10] sm:$0xf]  ;;  %v9192_v44 = vld [vmem:[%s14679_s3 + $0x7a0] sm:$0xf0]  ;;  %v9099_v9 = vor.u32 %v9766_v14, %v9096_v31 }
 0x451   : > { %6263 = vmatmul.bf16.vlgmr.msra.gmra.mxu0 %v12482_v27  ;;  %6233 = vmatpush.bf16.msra.mxu3 %v8307_v18  ;;  %v9566_v18 = vld [vmem:[%s14679_s3 + $0x84] sm:$0xf0] }
 0x452   : > { %6310 = vmatpush.bf16.msrb.mxu0 %v5948_v46  ;;  %6249 = vmatpush.bf16.msra.mxu1 %v8427_v1  ;;  %v5993_v46 = vpop.f32.mrf.mxu1  ;;  %v8311_v1 = vor.u32 %v9572_v3, %v8310_v51  ;;  %v8287_v7 = vor.u32 %v9566_v18, %v8286_v0  ;;  %v9760_v3 = vld [vmem:[%s14679_s3 + $0x69c] sm:$0xf]  ;;  %v9754_v18 = vld [vmem:[%s14679_s3 + $0x66c] sm:$0xf] }
 0x453   : > { %6320 = vmatpush.bf16.msrb.mxu2 %v8407_v58  ;;  %v9778_v58 = vld [vmem:[%s14679_s3 + $0x72c] sm:$0xf]  ;;  %v8694_v46 = vld [vmem:[%s14679_s3 + $0x3a0] sm:$0xf] }
 0x454   : > { %6276 = vmatmul.bf16.vlgmr.msra.gmra.mxu2 %v12513_v43  ;;  %v9147_v21 = vor.u32 %v9778_v58, %v9144_v10 }
 0x455   : > { %6250 = vmatmul.bf16.vlgmr.msra.gmra.mxu1 %v12498_v59  ;;  %6234 = vmatpush.bf16.msra.mxu3 %v8283_v62  ;;  %v5980_v56 = vpop.f32.mrf.mxu0  ;;  %v13421_v25 = vpop.f32.mrf.mxu2  ;;  %v9680_v62 = vld [vmem:[%s14679_s3 + $0x414] sm:$0xf0] }
 0x456   : > { %6294 = vmatpush.bf16.msrb.mxu1 %v9363_v45  ;;  %6311 = vmatpush.bf16.msrb.mxu0 %v9459_v23  ;;  %v9267_v45 = vor.u32 %v9808_v54, %v9264_v57  ;;  %v9802_v23 = vld [vmem:[%s14679_s3 + $0x7ec] sm:$0xf]  ;;  %v8743_v28 = vor.u32 %v9680_v62, %v8742_v32  ;;  %v9195_v54 = vor.u32 %v9790_v39, %v9192_v44  ;;  %v9048_v56 = vld [vmem:[%s14679_s3 + $0x680] sm:$0xf0]  ;;  %v9126_v32 = vld [vmem:[%s14679_s3 + $0x700] sm:$0xf] }
 0x457   : > { %6321 = vmatpush.bf16.msrb.mxu2 %v8383_v13  ;;  %v8767_v13 = vor.u32 %v9686_v50, %v8766_v5  ;;  %v9243_v19 = vor.u32 %v9802_v23, %v9240_v26  ;;  %v8958_v5 = vld [vmem:[%s14679_s3 + $0x5b0] sm:$0xf]  ;;  %v9770_v39 = vld [vmem:[%s14679_s3 + $0x6e4] sm:$0xf0] }
 0x459   : > { %6235 = vmatpush.bf16.msra.mxu3 %v8259_v61  ;;  %v9674_v61 = vld [vmem:[%s14679_s3 + $0x3e4] sm:$0xf0] }
 0x45a   : > { %6295 = vmatpush.bf16.msrb.mxu1 %v9339_v22  ;;  %6312 = vmatpush.bf16.msrb.mxu0 %v9435_v36  ;;  %v9120_v22 = vld [vmem:[%s14679_s3 + $0x710] sm:$0xf0]  ;;  %v9796_v36 = vld [vmem:[%s14679_s3 + $0x7bc] sm:$0xf]  ;;  %v13456_v49 = vpop.f32.mrf.mxu1  ;;  %v8719_v2 = vor.u32 %v9674_v61, %v8718_v63 }
 0x45b   : > { %6322 = vmatpush.bf16.msrb.mxu2 %v8359_v4  ;;  %v9123_v4 = vor.u32 %v9772_v35, %v9120_v22  ;;  %v9219_v60 = vor.u32 %v9796_v36, %v9216_v34  ;;  %v9728_v36 = vld [vmem:[%s14679_s3 + $0x594] sm:$0xf0] }
 0x45d   : > { %6236 = vmatpush.bf16.msra.mxu3 %v8235_v8  ;;  %v6006_v40 = vpop.f32.mrf.mxu2  ;;  %v13479_v52 = vpop.f32.mrf.mxu0  ;;  %v9072_v8 = vld [vmem:[%s14679_s3 + $0x6b0] sm:$0xf0] }
 0x45e   : > { %6296 = vmatpush.bf16.msrb.mxu1 %v9315_v24  ;;  %6313 = vmatpush.bf16.msrb.mxu0 %v9411_v12  ;;  %v8263_v24 = vor.u32 %v9560_v33, %v8262_v47  ;;  %v9554_v12 = vld [vmem:[%s14679_s3 + $0x24] sm:$0xf0]  ;;  %v9075_v10 = vor.u32 %v9760_v3, %v9072_v8  ;;  %v9051_v47 = vor.u32 %v9754_v18, %v9048_v56  ;;  %v8934_v33 = vld [vmem:[%s14679_s3 + $0x580] sm:$0xf] }
 0x45f   : > { %6323 = vmatpush.bf16.msrb.mxu2 %v8335_v15  ;;  %v9174_v15 = vld [vmem:[%s14679_s3 + $0x760] sm:$0xf]  ;;  %v8239_v51 = vor.u32 %v9554_v12, %v8238_v11  ;;  %v8935_v61 = vor.u32 %v9728_v36, %v8934_v33  ;;  %v8910_v12 = vld [vmem:[%s14679_s3 + $0x550] sm:$0xf]  ;;  %v9650_v3 = vld [vmem:[%s14679_s3 + $0x324] sm:$0xf0] }
 0x460   : > { %6237 = vmatmul.bf16.vlgmr.msra.gmra.mxu3 %v12598_v29  ;;  %v9175_v57 = vor.u32 %v9788_v42, %v9174_v15  ;;  %v9742_v42 = vld [vmem:[%s14679_s3 + $0x60c] sm:$0xf]  ;;  %v9638_v18 = vld [vmem:[%s14679_s3 + $0x2c4] sm:$0xf0]  ;;  %v9462_v56 = vld [vmem:[%s14679_s3 + $0x9a0] sm:$0xf] }
 0x461   : > { %6281 = vmatpush.bf16.msrb.mxu3 %v9171_v17  ;;  %v9668_v17 = vld [vmem:[%s14679_s3 + $0x3b4] sm:$0xf0] }
 0x462   : > { %6297 = vmatpush.bf16.msrb.mxu1 %v9291_v20  ;;  %6314 = vmatpush.bf16.msrb.mxu0 %v9387_v37  ;;  %v9740_v20 = vld [vmem:[%s14679_s3 + $0x5f4] sm:$0xf0]  ;;  %v6045_v58 = vpop.f32.mrf.mxu1  ;;  %v8695_v0 = vor.u32 %v9668_v17, %v8694_v46  ;;  %v9078_v46 = vld [vmem:[%s14679_s3 + $0x6a0] sm:$0xf] }
 0x463   : > { %6324 = vmatpush.bf16.msrb.mxu2 %v8311_v1  ;;  %v8983_v37 = vor.u32 %v9740_v20, %v8982_v38  ;;  %v9782_v1 = vld [vmem:[%s14679_s3 + $0x744] sm:$0xf0]  ;;  %v5965_v50 = vpop.f32.mrf.mxu3  ;;  %v8598_v38 = vld [vmem:[%s14679_s3 + $0x2e0] sm:$0xf]  ;;  %v9764_v17 = vld [vmem:[%s14679_s3 + $0x6b4] sm:$0xf0] }
 0x464   : > { %v5979_v23 = vadd.f32 %v13359_v53, %v5965_v50  ;;  %v9776_v53 = vld [vmem:[%s14679_s3 + $0x714] sm:$0xf0]  ;;  %v9079_v50 = vor.u32 %v9764_v17, %v9078_v46 }
 0x465   : > { %9471 = vmatmul.msk.bf16.vlgmr.msrb.gmra.mxu0 %vm5931_vm11, %v12579_v41  ;;  %6282 = vmatpush.bf16.msrb.mxu3 %v9147_v21  ;;  %v8670_v21 = vld [vmem:[%s14679_s3 + $0x370] sm:$0xf]  ;;  %v13533_v35 = vpop.f32.mrf.mxu2  ;;  %v9127_v14 = vor.u32 %v9776_v53, %v9126_v32  ;;  %v9716_v58 = vld [vmem:[%s14679_s3 + $0x534] sm:$0xf0] }
 0x466   : > { %6346 = vmatpush.bf16.msra.mxu0 %v8791_v48  ;;  %6298 = vmatpush.bf16.msrb.mxu1 %v9267_v45  ;;  %v9150_v48 = vld [vmem:[%s14679_s3 + $0x730] sm:$0xf]  ;;  %v9734_v45 = vld [vmem:[%s14679_s3 + $0x5c4] sm:$0xf0]  ;;  %v5992_v62 = vadd.f32 %v13339_v55, %v5979_v23  ;;  %v9748_v55 = vld [vmem:[%s14679_s3 + $0x63c] sm:$0xf] }
 0x467   : > { %6325 = vmatpush.bf16.msrb.mxu2 %v8287_v7  ;;  %v9151_v26 = vor.u32 %v9782_v1, %v9150_v48  ;;  %v6032_v7 = vpop.f32.mrf.mxu0  ;;  %v8959_v22 = vor.u32 %v9734_v45, %v8958_v5  ;;  %v8886_v1 = vld [vmem:[%s14679_s3 + $0x520] sm:$0xf] }
 0x468   : > { %v6005_v63 = vadd.f32 %v13421_v25, %v5992_v62  ;;  %v9722_v25 = vld [vmem:[%s14679_s3 + $0x564] sm:$0xf0]  ;;  %v8887_v23 = vor.u32 %v9716_v58, %v8886_v1  ;;  %v8862_v7 = vld [vmem:[%s14679_s3 + $0x4f0] sm:$0xf]  ;;  %v8408_v1 = vld [vmem:[%s14679_s3 + $0x178] sm:$0xf0] }
 0x469   : > { %6283 = vmatpush.bf16.msrb.mxu3 %v9123_v4  ;;  %v9024_v4 = vld [vmem:[%s14679_s3 + $0x650] sm:$0xf0] }
 0x46a   : > { %6347 = vmatpush.bf16.msra.mxu0 %v8767_v13  ;;  %6299 = vmatpush.bf16.msrb.mxu1 %v9243_v19  ;;  %v9662_v13 = vld [vmem:[%s14679_s3 + $0x384] sm:$0xf0]  ;;  %v13544_v19 = vld [vmem:[%s14679_s3 + $0x9d0] sm:$0x77]  ;;  %v9027_v11 = vor.u32 %v9748_v55, %v9024_v4  ;;  %v9632_v55 = vld [vmem:[%s14679_s3 + $0x294] sm:$0xf0] }
 0x46b   : > { %6326 = vmatpush.bf16.msrb.mxu2 %v8263_v24  ;;  %v8671_v34 = vor.u32 %v9662_v13, %v8670_v21  ;;  %v9656_v24 = vld [vmem:[%s14679_s3 + $0x354] sm:$0xf0]  ;;  %v5299_v31 = vunpack.c.l.b16 %v13544_v19  ;;  %v5967_v44 = vpop.f32.mrf.mxu3  ;;  %v9054_v21 = vld [vmem:[%s14679_s3 + $0x670] sm:$0xf]  ;;  %v9758_v13 = vld [vmem:[%s14679_s3 + $0x684] sm:$0xf0] }
 0x46c   : > { %v13581_v40 = vpop.f32.mrf.mxu1  ;;  %v9055_v36 = vor.u32 %v9758_v13, %v9054_v21  ;;  %v9438_v4 = vld [vmem:[%s14679_s3 + $0x970] sm:$0xf]  ;;  %v8792_v13 = vld [vmem:[%s14679_s3 + $0x478] sm:$0xf0] }
 0x46d   : > { %6284 = vmatpush.bf16.msrb.mxu3 %v9099_v9  ;;  %v9000_v9 = vld [vmem:[%s14679_s3 + $0x620] sm:$0xf0]  ;;  %v5617_v8 = vpack.c.b16 %v5299_v31, %v5299_v31  ;;  %v9030_v31 = vld [vmem:[%s14679_s3 + $0x640] sm:$0xf] }
 0x46e   : > { %6348 = vmatpush.bf16.msra.mxu0 %v8743_v28  ;;  %6300 = vmatpush.bf16.msrb.mxu1 %v9219_v60  ;;  %v8646_v28 = vld [vmem:[%s14679_s3 + $0x340] sm:$0xf]  ;;  %v9102_v60 = vld [vmem:[%s14679_s3 + $0x6d0] sm:$0xf]  ;;  %v9003_v48 = vor.u32 %v9742_v42, %v9000_v9  ;;  %v9626_v42 = vld [vmem:[%s14679_s3 + $0x264] sm:$0xf0] }
 0x46f   : > { %6327 = vmatpush.bf16.msrb.mxu2 %v8239_v51  ;;  %v8647_v15 = vor.u32 %v9656_v24, %v8646_v28  ;;  %v9103_v20 = vor.u32 %v9770_v39, %v9102_v60  ;;  %v8622_v51 = vld [vmem:[%s14679_s3 + $0x310] sm:$0xf]  ;;  %v5951_v45 = vand.u32 %v12297_v16, %v5617_v8  ;;  %v9854_v24 = vld [vmem:[%s14679_s3 + $0x984] sm:$0xf0]  ;;  %v8838_v39 = vld [vmem:[%s14679_s3 + $0x4c0] sm:$0xf] }
 0x470   : > { %v8623_v5 = vor.u32 %v9650_v3, %v8622_v51  ;;  %v9414_v9 = vld [vmem:[%s14679_s3 + $0x940] sm:$0xf]  ;;  %v9746_v51 = vld [vmem:[%s14679_s3 + $0x624] sm:$0xf0]  ;;  %v9641_v8 = vld [vmem:[%s14679_s3 + $0x2e4] sm:$0xf] }
 0x471   : > { %6285 = vmatpush.bf16.msrb.mxu3 %v9075_v10  ;;  %v9698_v3 = vld [vmem:[%s14679_s3 + $0x4a4] sm:$0xf0] }
 0x472   : > { %6349 = vmatpush.bf16.msra.mxu0 %v8719_v2  ;;  %6301 = vmatpush.bf16.msrb.mxu1 %v9195_v54  ;;  %v9644_v2 = vld [vmem:[%s14679_s3 + $0x2f4] sm:$0xf0]  ;;  %v6058_v54 = vpop.f32.mrf.mxu2 }
 0x473   : > { %6372 = vmatpush.bf16.msra.mxu2 %v9175_v57  ;;  %v8911_v57 = vor.u32 %v9722_v25, %v8910_v12  ;;  %v8599_v10 = vor.u32 %v9644_v2, %v8598_v38  ;;  %v6017_v53 = vpop.f32.mrf.mxu3  ;;  %v8526_v25 = vld [vmem:[%s14679_s3 + $0x250] sm:$0xf]  ;;  %v9848_v38 = vld [vmem:[%s14679_s3 + $0x954] sm:$0xf0]  ;;  %v8600_v54 = vld [vmem:[%s14679_s3 + $0x2f8] sm:$0xf0] }
 0x474   : > { %6328 = vmatmul.bf16.vlgmr.msrb.gmra.mxu2 %v12598_v29  ;;  %v6084_v32 = vpop.f32.mrf.mxu1  ;;  %v9006_v2 = vld [vmem:[%s14679_s3 + $0x610] sm:$0xf]  ;;  %v8527_v17 = vor.u32 %v9626_v42, %v8526_v25  ;;  %v9415_v58 = vor.u32 %v9848_v38, %v9414_v9  ;;  %v8454_v25 = vld [vmem:[%s14679_s3 + $0x1c0] sm:$0xf]  ;;  %v9677_v38 = vld [vmem:[%s14679_s3 + $0x404] sm:$0xf] }
 0x475   : > { %6302 = vmatmul.bf16.vlgmr.msrb.gmra.mxu1 %v12600_v30  ;;  %6286 = vmatpush.bf16.msrb.mxu3 %v9051_v47  ;;  %v6018_v47 = vadd.f32 %v6017_v53, %v6005_v63  ;;  %v9752_v63 = vld [vmem:[%s14679_s3 + $0x654] sm:$0xf0]  ;;  %v9587_v53 = vld [vmem:[%s14679_s3 + $0x134] sm:$0xf] }
 0x476   : > { %6359 = vmatpush.bf16.msra.mxu1 %v8983_v37  ;;  %6350 = vmatpush.bf16.msra.mxu0 %v8695_v0  ;;  %v13607_v37 = vpop.f32.mrf.mxu0  ;;  %v8574_v0 = vld [vmem:[%s14679_s3 + $0x2b0] sm:$0xf] }
 0x477   : > { %6373 = vmatpush.bf16.msra.mxu2 %v9151_v26  ;;  %v9860_v26 = vld [vmem:[%s14679_s3 + $0x9b4] sm:$0xf0]  ;;  %v8575_v62 = vor.u32 %v9638_v18, %v8574_v0  ;;  %v8603_v18 = vor.u32 %v9641_v8, %v8600_v54  ;;  %v9575_v8 = vld [vmem:[%s14679_s3 + $0xd4] sm:$0xf]  ;;  %v8336_v54 = vld [vmem:[%s14679_s3 + $0xe8] sm:$0xf0] }
 0x478   : > { %v9463_v33 = vor.u32 %v9860_v26, %v9462_v56  ;;  %v9390_v56 = vld [vmem:[%s14679_s3 + $0x910] sm:$0xf]  ;;  %v9689_v26 = vld [vmem:[%s14679_s3 + $0x464] sm:$0xf] }
 0x479   : > { %6287 = vmatpush.bf16.msrb.mxu3 %v9027_v11  ;;  %v9704_v11 = vld [vmem:[%s14679_s3 + $0x4d4] sm:$0xf0] }
 0x47a   : > { %6360 = vmatpush.bf16.msra.mxu1 %v8959_v22  ;;  %6351 = vmatpush.bf16.msra.mxu0 %v8671_v34  ;;  %v9710_v22 = vld [vmem:[%s14679_s3 + $0x504] sm:$0xf0]  ;;  %v8550_v34 = vld [vmem:[%s14679_s3 + $0x280] sm:$0xf] }
 0x47b   : > { %6374 = vmatpush.bf16.msra.mxu2 %v9127_v14  ;;  %v13650_v14 = vpop.f32.mrf.mxu2  ;;  %v8863_v28 = vor.u32 %v9710_v22, %v8862_v7  ;;  %v8551_v12 = vor.u32 %v9632_v55, %v8550_v34  ;;  %v6019_v46 = vpop.f32.mrf.mxu3  ;;  %v9635_v7 = vld [vmem:[%s14679_s3 + $0x2b4] sm:$0xf]  ;;  %v8576_v22 = vld [vmem:[%s14679_s3 + $0x2c8] sm:$0xf0]  ;;  %v8795_v34 = vor.u32 %v9689_v26, %v8792_v13  ;;  %v8312_v26 = vld [vmem:[%s14679_s3 + $0xb8] sm:$0xf0] }
 0x47c   : > { %v8579_v55 = vor.u32 %v9635_v7, %v8576_v22  ;;  %v8430_v46 = vld [vmem:[%s14679_s3 + $0x190] sm:$0xf] }
 0x47d   : > { %6288 = vmatpush.bf16.msrb.mxu3 %v9003_v48  ;;  %v9593_v48 = vld [vmem:[%s14679_s3 + $0x164] sm:$0xf] }
 0x47e   : > { %6361 = vmatpush.bf16.msra.mxu1 %v8935_v61  ;;  %6352 = vmatpush.bf16.msra.mxu0 %v8647_v15  ;;  %v6031_v61 = vadd.f32 %v13479_v52, %v6018_v47  ;;  %v6097_v60 = vpop.f32.mrf.mxu0  ;;  %v9439_v52 = vor.u32 %v9854_v24, %v9438_v4  ;;  %v9031_v15 = vor.u32 %v9752_v63, %v9030_v31  ;;  %v9683_v4 = vld [vmem:[%s14679_s3 + $0x434] sm:$0xf]  ;;  %v8768_v24 = vld [vmem:[%s14679_s3 + $0x448] sm:$0xf0]  ;;  %v9629_v31 = vld [vmem:[%s14679_s3 + $0x284] sm:$0xf] }
 0x47f   : > { %6375 = vmatpush.bf16.msra.mxu2 %v9103_v20  ;;  %v8839_v20 = vor.u32 %v9704_v11, %v8838_v39  ;;  %v8411_v21 = vor.u32 %v9593_v48, %v8408_v1  ;;  %v8552_v63 = vld [vmem:[%s14679_s3 + $0x298] sm:$0xf0]  ;;  %v9581_v39 = vld [vmem:[%s14679_s3 + $0x104] sm:$0xf]  ;;  %v8771_v42 = vor.u32 %v9683_v4, %v8768_v24  ;;  %v9366_v1 = vld [vmem:[%s14679_s3 + $0x8e0] sm:$0xf] }
 0x480   : > { %6289 = vmatmul.bf16.vlgmr.msrb.gmra.mxu3 %v12715_v6  ;;  %v13673_v44 = vadd.f32 %v13456_v49, %v6031_v61  ;;  %v8814_v49 = vld [vmem:[%s14679_s3 + $0x490] sm:$0xf]  ;;  %v8360_v11 = vld [vmem:[%s14679_s3 + $0x118] sm:$0xf0]  ;;  %v8555_v9 = vor.u32 %v9629_v31, %v8552_v63  ;;  %v8288_v4 = vld [vmem:[%s14679_s3 + $0x88] sm:$0xf0] }
 0x481   : > { %6333 = vmatpush.bf16.msra.mxu3 %v8599_v10  ;;  %v9007_v10 = vor.u32 %v9746_v51, %v9006_v2  ;;  %v8815_v0 = vor.u32 %v9698_v3, %v8814_v49  ;;  %v8744_v49 = vld [vmem:[%s14679_s3 + $0x418] sm:$0xf0]  ;;  %v9623_v2 = vld [vmem:[%s14679_s3 + $0x254] sm:$0xf]  ;;  %v9318_v63 = vld [vmem:[%s14679_s3 + $0x880] sm:$0xf] }
 0x482   : > { %6362 = vmatpush.bf16.msra.mxu1 %v8911_v57  ;;  %6353 = vmatpush.bf16.msra.mxu0 %v8623_v5  ;;  %v13702_v57 = vpop.f32.mrf.mxu1  ;;  %v8502_v5 = vld [vmem:[%s14679_s3 + $0x220] sm:$0xf] }
 0x483   : > { %6376 = vmatpush.bf16.msra.mxu2 %v9079_v50  ;;  %v6110_v50 = vpop.f32.mrf.mxu2 }
 0x484   : > { %v8720_v50 = vld [vmem:[%s14679_s3 + $0x3e8] sm:$0xf0] }
 0x485   : > { %6354 = vmatmul.bf16.vlgmr.msra.gmra.mxu0 %v12482_v27  ;;  %6334 = vmatpush.bf16.msra.mxu3 %v8575_v62  ;;  %v8384_v62 = vld [vmem:[%s14679_s3 + $0x148] sm:$0xf0] }
 0x486   : > { %6401 = vmatpush.bf16.msrb.mxu0 %v5951_v45  ;;  %6363 = vmatpush.bf16.msra.mxu1 %v8887_v23  ;;  %v9620_v45 = vld [vmem:[%s14679_s3 + $0x234] sm:$0xf0]  ;;  %v9842_v23 = vld [vmem:[%s14679_s3 + $0x924] sm:$0xf0] }
 0x487   : > { %6377 = vmatpush.bf16.msra.mxu2 %v9055_v36  ;;  %v8503_v32 = vor.u32 %v9620_v45, %v8502_v5  ;;  %v9391_v47 = vor.u32 %v9842_v23, %v9390_v56  ;;  %v9614_v36 = vld [vmem:[%s14679_s3 + $0x204] sm:$0xf0]  ;;  %v8339_v45 = vor.u32 %v9575_v8, %v8336_v54  ;;  %v9551_v54 = vld [vmem:[%s14679_s3 + $0x14] sm:$0xf] }
 0x489   : > { %6335 = vmatpush.bf16.msra.mxu3 %v8551_v12  ;;  %v6069_v12 = vpop.f32.mrf.mxu3 }
 0x48a   : > { %6402 = vmatpush.bf16.msrb.mxu0 %v9463_v33  ;;  %6364 = vmatpush.bf16.msra.mxu1 %v8863_v28  ;;  %v8478_v33 = vld [vmem:[%s14679_s3 + $0x1f0] sm:$0xf]  ;;  %v8387_v28 = vor.u32 %v9587_v53, %v8384_v62  ;;  %v6136_v61 = vpop.f32.mrf.mxu1  ;;  %v9830_v62 = vld [vmem:[%s14679_s3 + $0x8c4] sm:$0xf0] }
 0x48b   : > { %6378 = vmatpush.bf16.msra.mxu2 %v9031_v15  ;;  %v8479_v60 = vor.u32 %v9614_v36, %v8478_v33  ;;  %v6070_v15 = vadd.f32 %v6069_v12, %v13533_v35  ;;  %v8528_v35 = vld [vmem:[%s14679_s3 + $0x268] sm:$0xf0]  ;;  %v9342_v53 = vld [vmem:[%s14679_s3 + $0x8b0] sm:$0xf]  ;;  %v8696_v33 = vld [vmem:[%s14679_s3 + $0x3b8] sm:$0xf0] }
 0x48c   : > { %v8531_v48 = vor.u32 %v9623_v2, %v8528_v35  ;;  %v9611_v36 = vld [vmem:[%s14679_s3 + $0x1f4] sm:$0xf]  ;;  %v9824_v61 = vld [vmem:[%s14679_s3 + $0x894] sm:$0xf0]  ;;  %v8672_v12 = vld [vmem:[%s14679_s3 + $0x388] sm:$0xf0] }
 0x48d   : > { %6336 = vmatpush.bf16.msra.mxu3 %v8527_v17  ;;  %v6083_v51 = vadd.f32 %v13581_v40, %v6070_v15  ;;  %v9602_v40 = vld [vmem:[%s14679_s3 + $0x1a4] sm:$0xf0]  ;;  %v8747_v17 = vor.u32 %v9677_v38, %v8744_v49  ;;  %v9319_v38 = vor.u32 %v9824_v61, %v9318_v63  ;;  %v9464_v61 = vld [vmem:[%s14679_s3 + $0x9b8] sm:$0xf0] }
 0x48e   : > { %6403 = vmatpush.bf16.msrb.mxu0 %v9439_v52  ;;  %6365 = vmatpush.bf16.msra.mxu1 %v8839_v20  ;;  %v9608_v52 = vld [vmem:[%s14679_s3 + $0x1d4] sm:$0xf0]  ;;  %v8363_v20 = vor.u32 %v9581_v39, %v8360_v11  ;;  %v13819_v56 = vpop.f32.mrf.mxu0  ;;  %v8431_v23 = vor.u32 %v9602_v40, %v8430_v46  ;;  %v9818_v35 = vld [vmem:[%s14679_s3 + $0x864] sm:$0xf0]  ;;  %v9599_v46 = vld [vmem:[%s14679_s3 + $0x194] sm:$0xf] }
 0x48f   : > { %6379 = vmatpush.bf16.msra.mxu2 %v9007_v10  ;;  %v8455_v3 = vor.u32 %v9608_v52, %v8454_v25  ;;  %v9671_v10 = vld [vmem:[%s14679_s3 + $0x3d4] sm:$0xf]  ;;  %v6096_v5 = vadd.f32 %v13607_v37, %v6083_v51  ;;  %v9569_v37 = vld [vmem:[%s14679_s3 + $0xa4] sm:$0xf]  ;;  %v8456_v52 = vld [vmem:[%s14679_s3 + $0x1d8] sm:$0xf0] }
 0x490   : > { %v8723_v22 = vor.u32 %v9671_v10, %v8720_v50  ;;  %v9605_v25 = vld [vmem:[%s14679_s3 + $0x1c4] sm:$0xf]  ;;  %v8432_v40 = vld [vmem:[%s14679_s3 + $0x1a8] sm:$0xf0] }
 0x491   : > { %6337 = vmatpush.bf16.msra.mxu3 %v8503_v32  ;;  %v6071_v13 = vpop.f32.mrf.mxu3  ;;  %v8459_v2 = vor.u32 %v9605_v25, %v8456_v52  ;;  %v9653_v51 = vld [vmem:[%s14679_s3 + $0x344] sm:$0xf] }
 0x492   : > { %6404 = vmatpush.bf16.msrb.mxu0 %v9415_v58  ;;  %6366 = vmatpush.bf16.msra.mxu1 %v8815_v0  ;;  %v9836_v58 = vld [vmem:[%s14679_s3 + $0x8f4] sm:$0xf0]  ;;  %v9617_v0 = vld [vmem:[%s14679_s3 + $0x224] sm:$0xf] }
 0x493   : > { %6424 = vmatpush.bf16.msrb.mxu2 %v8603_v18  ;;  %v8504_v18 = vld [vmem:[%s14679_s3 + $0x238] sm:$0xf0]  ;;  %v9367_v7 = vor.u32 %v9836_v58, %v9366_v1  ;;  %v9833_v1 = vld [vmem:[%s14679_s3 + $0x8e4] sm:$0xf] }
 0x494   : > { %6380 = vmatmul.bf16.vlgmr.msra.gmra.mxu2 %v12715_v6  ;;  %v8507_v32 = vor.u32 %v9617_v0, %v8504_v18  ;;  %v9368_v58 = vld [vmem:[%s14679_s3 + $0x8f8] sm:$0xf0]  ;;  %v8435_v0 = vor.u32 %v9599_v46, %v8432_v40  ;;  %v9270_v18 = vld [vmem:[%s14679_s3 + $0x820] sm:$0xf]  ;;  %v9773_v52 = vld [vmem:[%s14679_s3 + $0x704] sm:$0xf] }
 0x495   : > { %6367 = vmatmul.bf16.vlgmr.msra.gmra.mxu1 %v12513_v43  ;;  %6338 = vmatpush.bf16.msra.mxu3 %v8479_v60  ;;  %v9659_v60 = vld [vmem:[%s14679_s3 + $0x374] sm:$0xf]  ;;  %v9371_v13 = vor.u32 %v9833_v1, %v9368_v58  ;;  %v9198_v46 = vld [vmem:[%s14679_s3 + $0x790] sm:$0xf]  ;;  %v9794_v40 = vld [vmem:[%s14679_s3 + $0x7a4] sm:$0xf0] }
 0x496   : > { %6411 = vmatpush.bf16.msrb.mxu1 %v8411_v21  ;;  %6405 = vmatpush.bf16.msrb.mxu0 %v9391_v47  ;;  %v13828_v21 = vadd.f32 %v13650_v14, %v6096_v5  ;;  %v9665_v47 = vld [vmem:[%s14679_s3 + $0x3a4] sm:$0xf]  ;;  %v8315_v14 = vor.u32 %v9569_v37, %v8312_v26  ;;  %v6149_v15 = vpop.f32.mrf.mxu0  ;;  %v8675_v49 = vor.u32 %v9659_v60, %v8672_v12  ;;  %v8984_v1 = vld [vmem:[%s14679_s3 + $0x5f8] sm:$0xf0] }
 0x497   : > { %6425 = vmatpush.bf16.msrb.mxu2 %v8579_v55  ;;  %v9563_v55 = vld [vmem:[%s14679_s3 + $0x74] sm:$0xf]  ;;  %v8699_v24 = vor.u32 %v9665_v47, %v8696_v33  ;;  %v13864_v39 = vpop.f32.mrf.mxu2  ;;  %v9785_v5 = vld [vmem:[%s14679_s3 + $0x764] sm:$0xf]  ;;  %v9344_v47 = vld [vmem:[%s14679_s3 + $0x8c8] sm:$0xf0] }
 0x498   : > { %v8291_v11 = vor.u32 %v9563_v55, %v8288_v4  ;;  %v9779_v33 = vld [vmem:[%s14679_s3 + $0x734] sm:$0xf]  ;;  %v9246_v55 = vld [vmem:[%s14679_s3 + $0x7f0] sm:$0xf]  ;;  %v9806_v4 = vld [vmem:[%s14679_s3 + $0x804] sm:$0xf0] }
 0x499   : > { %9472 = vmatmul.msk.bf16.vlgmr.msrb.gmra.mxu0 %vm5931_vm11, %v12579_v41  ;;  %6339 = vmatpush.bf16.msra.mxu3 %v8455_v3  ;;  %v8648_v3 = vld [vmem:[%s14679_s3 + $0x358] sm:$0xf0]  ;;  %v9821_v60 = vld [vmem:[%s14679_s3 + $0x884] sm:$0xf]  ;;  %v9247_v25 = vor.u32 %v9806_v4, %v9246_v55  ;;  %v9755_v55 = vld [vmem:[%s14679_s3 + $0x674] sm:$0xf] }
 0x49a   : > { %6437 = vmatpush.bf16.msra.mxu0 %v8795_v34  ;;  %6412 = vmatpush.bf16.msrb.mxu1 %v8387_v28  ;;  %v8480_v34 = vld [vmem:[%s14679_s3 + $0x208] sm:$0xf0]  ;;  %v9343_v28 = vor.u32 %v9830_v62, %v9342_v53  ;;  %v8651_v50 = vor.u32 %v9653_v51, %v8648_v3  ;;  %v9827_v62 = vld [vmem:[%s14679_s3 + $0x8b4] sm:$0xf]  ;;  %v9128_v15 = vld [vmem:[%s14679_s3 + $0x718] sm:$0xf0] }
 0x49b   : > { %6426 = vmatpush.bf16.msrb.mxu2 %v8555_v9  ;;  %v8483_v31 = vor.u32 %v9611_v36, %v8480_v34  ;;  %v8264_v9 = vld [vmem:[%s14679_s3 + $0x58] sm:$0xf0]  ;;  %v9152_v36 = vld [vmem:[%s14679_s3 + $0x748] sm:$0xf0]  ;;  %v9815_v51 = vld [vmem:[%s14679_s3 + $0x854] sm:$0xf] }
 0x49c   : > { %v9155_v63 = vor.u32 %v9779_v33, %v9152_v36  ;;  %v9296_v3 = vld [vmem:[%s14679_s3 + $0x868] sm:$0xf0]  ;;  %v9845_v58 = vld [vmem:[%s14679_s3 + $0x944] sm:$0xf]  ;;  %v9803_v36 = vld [vmem:[%s14679_s3 + $0x7f4] sm:$0xf] }
 0x49d   : > { %6340 = vmatpush.bf16.msra.mxu3 %v8431_v23  ;;  %v9812_v23 = vld [vmem:[%s14679_s3 + $0x834] sm:$0xf0]  ;;  %v9392_v33 = vld [vmem:[%s14679_s3 + $0x928] sm:$0xf0] }
 0x49e   : > { %6438 = vmatpush.bf16.msra.mxu0 %v8771_v42  ;;  %6413 = vmatpush.bf16.msrb.mxu1 %v8363_v20  ;;  %v9557_v42 = vld [vmem:[%s14679_s3 + $0x44] sm:$0xf]  ;;  %v9294_v20 = vld [vmem:[%s14679_s3 + $0x850] sm:$0xf]  ;;  %v9056_v4 = vld [vmem:[%s14679_s3 + $0x688] sm:$0xf0] }
 0x49f   : > { %6427 = vmatpush.bf16.msrb.mxu2 %v8531_v48  ;;  %v8267_v8 = vor.u32 %v9557_v42, %v8264_v9  ;;  %v8240_v48 = vld [vmem:[%s14679_s3 + $0x28] sm:$0xf0]  ;;  %v9295_v10 = vor.u32 %v9818_v35, %v9294_v20  ;;  %v6162_v37 = vpop.f32.mrf.mxu2 }
 0x4a0   : > { %6341 = vmatmul.bf16.vlgmr.msra.gmra.mxu3 %v12498_v59  ;;  %v8243_v26 = vor.u32 %v9551_v54, %v8240_v48  ;;  %v9440_v35 = vld [vmem:[%s14679_s3 + $0x988] sm:$0xf0]  ;;  %v9737_v48 = vld [vmem:[%s14679_s3 + $0x5e4] sm:$0xf] }
 0x4a1   : > { %6385 = vmatpush.bf16.msrb.mxu3 %v9367_v7  ;;  %v9647_v7 = vld [vmem:[%s14679_s3 + $0x314] sm:$0xf]  ;;  %v9104_v54 = vld [vmem:[%s14679_s3 + $0x6e8] sm:$0xf0]  ;;  %v9761_v37 = vld [vmem:[%s14679_s3 + $0x6a4] sm:$0xf] }
 0x4a2   : > { %6439 = vmatpush.bf16.msra.mxu0 %v8747_v17  ;;  %6414 = vmatpush.bf16.msrb.mxu1 %v8339_v45  ;;  %v5300_v17 = vunpack.c.h.b16 %v13544_v19  ;;  %v9176_v19 = vld [vmem:[%s14679_s3 + $0x778] sm:$0xf0]  ;;  %v13918_v45 = vpop.f32.mrf.mxu1 }
 0x4a3   : > { %6428 = vmatpush.bf16.msrb.mxu2 %v8507_v32  ;;  %v9179_v53 = vor.u32 %v9785_v5, %v9176_v19  ;;  %v6121_v12 = vpop.f32.mrf.mxu3  ;;  %v9416_v5 = vld [vmem:[%s14679_s3 + $0x958] sm:$0xf0]  ;;  %v9809_v19 = vld [vmem:[%s14679_s3 + $0x824] sm:$0xf] }
 0x4a4   : > { %v5618_v32 = vpack.c.b16 %v5300_v17, %v5300_v17  ;;  %v6122_v42 = vadd.f32 %v6121_v12, %v13828_v21  ;;  %v9851_v21 = vld [vmem:[%s14679_s3 + $0x974] sm:$0xf]  ;;  %v9299_v17 = vor.u32 %v9815_v51, %v9296_v3  ;;  %v9797_v12 = vld [vmem:[%s14679_s3 + $0x7c4] sm:$0xf]  ;;  %v9008_v3 = vld [vmem:[%s14679_s3 + $0x628] sm:$0xf0] }
 0x4a5   : > { %6386 = vmatpush.bf16.msrb.mxu3 %v9343_v28  ;;  %v9743_v51 = vld [vmem:[%s14679_s3 + $0x614] sm:$0xf] }
 0x4a6   : > { %6440 = vmatpush.bf16.msra.mxu0 %v8723_v22  ;;  %6415 = vmatpush.bf16.msrb.mxu1 %v8315_v14  ;;  %v8624_v22 = vld [vmem:[%s14679_s3 + $0x328] sm:$0xf0]  ;;  %v9271_v14 = vor.u32 %v9812_v23, %v9270_v18  ;;  %v5954_v28 = vand.u32 %v12297_v16, %v5618_v32  ;;  %v9199_v23 = vor.u32 %v9794_v40, %v9198_v46  ;;  %v8888_v46 = vld [vmem:[%s14679_s3 + $0x538] sm:$0xf0] }
 0x4a7   : > { %6429 = vmatpush.bf16.msrb.mxu2 %v8483_v31  ;;  %v8627_v34 = vor.u32 %v9647_v7, %v8624_v22  ;;  %v9857_v31 = vld [vmem:[%s14679_s3 + $0x9a4] sm:$0xf]  ;;  %v9419_v22 = vor.u32 %v9845_v58, %v9416_v5 }
 0x4a8   : > { %v9467_v20 = vor.u32 %v9857_v31, %v9464_v61  ;;  %v8936_v61 = vld [vmem:[%s14679_s3 + $0x598] sm:$0xf0] }
 0x4a9   : > { %6387 = vmatpush.bf16.msrb.mxu3 %v9319_v38  ;;  %v9222_v38 = vld [vmem:[%s14679_s3 + $0x7c0] sm:$0xf] }
 0x4aa   : > { %6441 = vmatpush.bf16.msra.mxu0 %v8699_v24  ;;  %6416 = vmatpush.bf16.msrb.mxu1 %v8291_v11  ;;  %v9347_v24 = vor.u32 %v9827_v62, %v9344_v47  ;;  %v9320_v11 = vld [vmem:[%s14679_s3 + $0x898] sm:$0xf0]  ;;  %v6175_v9 = vpop.f32.mrf.mxu1  ;;  %v8960_v62 = vld [vmem:[%s14679_s3 + $0x5c8] sm:$0xf0]  ;;  %v9839_v47 = vld [vmem:[%s14679_s3 + $0x914] sm:$0xf] }
 0x4ab   : > { %6430 = vmatpush.bf16.msrb.mxu2 %v8459_v2  ;;  %v13982_v2 = vadd.f32 %v13702_v57, %v6122_v42  ;;  %v9767_v57 = vld [vmem:[%s14679_s3 + $0x6d4] sm:$0xf]  ;;  %v6123_v18 = vpop.f32.mrf.mxu3  ;;  %v9032_v42 = vld [vmem:[%s14679_s3 + $0x658] sm:$0xf0] }
 0x4ad   : > { %6388 = vmatpush.bf16.msrb.mxu3 %v9295_v10  ;;  %v9107_v10 = vor.u32 %v9767_v57, %v9104_v54  ;;  %v9713_v54 = vld [vmem:[%s14679_s3 + $0x524] sm:$0xf] }
 0x4ae   : > { %6442 = vmatpush.bf16.msra.mxu0 %v8675_v49  ;;  %6417 = vmatpush.bf16.msrb.mxu1 %v8267_v8  ;;  %v9323_v49 = vor.u32 %v9821_v60, %v9320_v11  ;;  %v9059_v11 = vor.u32 %v9755_v55, %v9056_v4 }
 0x4af   : > { %6431 = vmatpush.bf16.msrb.mxu2 %v8435_v0  ;;  %v14024_v0 = vpop.f32.mrf.mxu0 }
 0x4b1   : > { %6389 = vmatpush.bf16.msrb.mxu3 %v9271_v14 }
 0x4b2   : > { %6443 = vmatpush.bf16.msra.mxu0 %v8651_v50  ;;  %6418 = vmatpush.bf16.msrb.mxu1 %v8243_v26  ;;  %v9272_v50 = vld [vmem:[%s14679_s3 + $0x838] sm:$0xf0]  ;;  %v14032_v7 = vpop.f32.mrf.mxu1 }
 0x4b3   : > { %6476 = vmatpush.bf16.msra.mxu2 %v9371_v13  ;;  %v9080_v26 = vld [vmem:[%s14679_s3 + $0x6b8] sm:$0xf0]  ;;  %v8987_v13 = vor.u32 %v9737_v48, %v8984_v1  ;;  %v9275_v32 = vor.u32 %v9809_v19, %v9272_v50  ;;  %v8864_v48 = vld [vmem:[%s14679_s3 + $0x508] sm:$0xf0]  ;;  %v6161_v1 = vadd.f32 %v13864_v39, %v13819_v56  ;;  %v9701_v19 = vld [vmem:[%s14679_s3 + $0x4c4] sm:$0xf] }
 0x4b4   : > { %6432 = vmatmul.bf16.vlgmr.msrb.gmra.mxu2 %v12498_v59  ;;  %v9800_v59 = vld [vmem:[%s14679_s3 + $0x7d4] sm:$0xf0]  ;;  %v9083_v14 = vor.u32 %v9761_v37, %v9080_v26  ;;  %v8840_v50 = vld [vmem:[%s14679_s3 + $0x4d8] sm:$0xf0] }
 0x4b5   : > { %6419 = vmatmul.bf16.vlgmr.msrb.gmra.mxu1 %v12598_v29  ;;  %v9131_v29 = vor.u32 %v9773_v52, %v9128_v15  ;;  %6390 = vmatpush.bf16.msrb.mxu3 %v9247_v25  ;;  %v9223_v8 = vor.u32 %v9800_v59, %v9222_v38  ;;  %v9224_v25 = vld [vmem:[%s14679_s3 + $0x7d8] sm:$0xf0]  ;;  %v9749_v15 = vld [vmem:[%s14679_s3 + $0x644] sm:$0xf]  ;;  %v6174_v58 = vadd.f32 %v13918_v45, %v6161_v1 }
 0x4b6   : > { %6463 = vmatpush.bf16.msra.mxu1 %v9179_v53  ;;  %6444 = vmatpush.bf16.msra.mxu0 %v8627_v34  ;;  %v9731_v53 = vld [vmem:[%s14679_s3 + $0x5b4] sm:$0xf]  ;;  %v9248_v34 = vld [vmem:[%s14679_s3 + $0x808] sm:$0xf0]  ;;  %v9227_v59 = vor.u32 %v9797_v12, %v9224_v25  ;;  %v8843_v39 = vor.u32 %v9701_v19, %v8840_v50 }
 0x4b7   : > { %6477 = vmatpush.bf16.msra.mxu2 %v9347_v24  ;;  %v9395_v24 = vor.u32 %v9839_v47, %v9392_v33  ;;  %v9251_v31 = vor.u32 %v9803_v36, %v9248_v34  ;;  %v6212_v60 = vpop.f32.mrf.mxu2  ;;  %v6201_v52 = vpop.f32.mrf.mxu0  ;;  %v6545_v19 = vld [vmem:[%s14678_s2 + $0x8] sm:$0xff]  ;;  %v6546_v50 = vld [vmem:[%s14678_s2 + $0x10] sm:$0xff] }
 0x4b9   : > { %6445 = vmatmul.bf16.vlgmr.msra.gmra.mxu0 %v12482_v27  ;;  %v9443_v27 = vor.u32 %v9851_v21, %v9440_v35  ;;  %6391 = vmatpush.bf16.msrb.mxu3 %v9223_v8  ;;  %v9035_v21 = vor.u32 %v9749_v15, %v9032_v42  ;;  %v9200_v35 = vld [vmem:[%s14679_s3 + $0x7a8] sm:$0xf0] }
 0x4ba   : > { %6492 = vmatpush.bf16.msrb.mxu0 %v5954_v28  ;;  %6464 = vmatpush.bf16.msra.mxu1 %v9155_v63  ;;  %v8963_v28 = vor.u32 %v9731_v53, %v8960_v62  ;;  %v9725_v63 = vld [vmem:[%s14679_s3 + $0x584] sm:$0xf]  ;;  %v6227_v38 = vpop.f32.mrf.mxu1 }
 0x4bb   : > { %6478 = vmatpush.bf16.msra.mxu2 %v9323_v49  ;;  %v8939_v9 = vor.u32 %v9725_v63, %v8936_v61  ;;  %v8912_v49 = vld [vmem:[%s14679_s3 + $0x568] sm:$0xf0] }
 0x4bd   : > { %6392 = vmatpush.bf16.msrb.mxu3 %v9199_v23 }
 0x4be   : > { %6493 = vmatpush.bf16.msrb.mxu0 %v9467_v20  ;;  %6465 = vmatpush.bf16.msra.mxu1 %v9131_v29  ;;  %v9719_v20 = vld [vmem:[%s14679_s3 + $0x554] sm:$0xf] }
 0x4bf   : > { %6479 = vmatpush.bf16.msra.mxu2 %v9299_v17  ;;  %v9791_v29 = vld [vmem:[%s14679_s3 + $0x794] sm:$0xf]  ;;  %v8915_v8 = vor.u32 %v9719_v20, %v8912_v49  ;;  %v6214_v40 = vpop.f32.mrf.mxu2  ;;  %v8891_v17 = vor.u32 %v9713_v54, %v8888_v46 }
 0x4c0   : > { %6393 = vmatmul.bf16.vlgmr.msrb.gmra.mxu3 %v12600_v30  ;;  %v9203_v57 = vor.u32 %v9791_v29, %v9200_v35 }
 0x4c1   : > { %6450 = vmatpush.bf16.msra.mxu3 %v8987_v13 }
 0x4c2   : > { %6494 = vmatpush.bf16.msrb.mxu0 %v9443_v27  ;;  %6466 = vmatpush.bf16.msra.mxu1 %v9107_v10  ;;  %v9011_v27 = vor.u32 %v9743_v51, %v9008_v3 }
 0x4c3   : > { %6480 = vmatpush.bf16.msra.mxu2 %v9275_v32  ;;  %v6186_v5 = vpop.f32.mrf.mxu3 }
 0x4c4   : > { %v6187_v18 = vadd.f32 %v6186_v5, %v6174_v58  ;;  %v6544_v5 = vld [vmem:[%s14678_s2] sm:$0xff] }
 0x4c5   : > { %6451 = vmatpush.bf16.msra.mxu3 %v8963_v28 }
 0x4c6   : > { %6495 = vmatpush.bf16.msrb.mxu0 %v9419_v22  ;;  %6467 = vmatpush.bf16.msra.mxu1 %v9083_v14  ;;  %v6200_v56 = vadd.f32 %v14024_v0, %v6187_v18 }
 0x4c7   : > { %6481 = vmatpush.bf16.msra.mxu2 %v9251_v31 }
 0x4c8   : > { %v6213_v45 = vadd.f32 %v6212_v60, %v6200_v56  ;;  %v6547_v56 = vld [vmem:[%s14678_s2 + $0x18] sm:$0xff] }
 0x4c9   : > { %6452 = vmatpush.bf16.msra.mxu3 %v8939_v9 }
 0x4ca   : > { %6496 = vmatpush.bf16.msrb.mxu0 %v9395_v24  ;;  %6468 = vmatpush.bf16.msra.mxu1 %v9059_v11  ;;  %v14128_v23 = vadd.f32 %v14032_v7, %v6213_v45 }
 0x4cb   : > { %6482 = vmatpush.bf16.msra.mxu2 %v9227_v59  ;;  %v6188_v13 = vpop.f32.mrf.mxu3 }
 0x4cc   : > { %v9977_v0 = vpack.i.bf16 %v14128_v23, %v13982_v2 }
 0x4cd   : > { %9473 = vmatmul.msk.bf16.vlgmr.msrb.gmra.mxu0 %vm5931_vm11, %v12579_v41  ;;  %6453 = vmatpush.bf16.msra.mxu3 %v8915_v8  ;;  %v9707_v41 = vld [vmem:[%s14679_s3 + $0x4f4] sm:$0xf]  ;;  %vm6989_vm11 = vcmask 728064  }
 0x4ce   : > { %6469 = vmatpush.bf16.msra.mxu1 %v9035_v21  ;;  %v8867_v10 = vor.u32 %v9707_v41, %v8864_v48  ;;  %v6264_v37 = vpop.f32.mrf.mxu0  ;;  %9978 = vrot.lane.b32.xlu0 %v9977_v0, %s14728_s28 }
 0x4cf   : > { %6483 = vmatpush.bf16.msra.mxu2 %v9203_v57 }
 0x4d1   : > { %6454 = vmatpush.bf16.msra.mxu3 %v8891_v17 }
 0x4d2   : > { %6470 = vmatpush.bf16.msra.mxu1 %v9011_v27  ;;  %6484 = vmatmul.bf16.vlgmr.msra.gmra.mxu2 %v12600_v30  ;;  %v9695_v30 = vld [vmem:[%s14679_s3 + $0x494] sm:$0xf]  ;;  %v6251_v22 = vpop.f32.mrf.mxu1 }
 0x4d5   : > { %6471 = vmatmul.bf16.vlgmr.msra.gmra.mxu1 %v12715_v6  ;;  %6455 = vmatpush.bf16.msra.mxu3 %v8867_v10  ;;  %v8816_v6 = vld [vmem:[%s14679_s3 + $0x4a8] sm:$0xf0] }
 0x4d6   : > { %v8819_v26 = vor.u32 %v9695_v30, %v8816_v6  ;;  %v6266_v53 = vpop.f32.mrf.mxu0  ;;  %v6549_v30 = vpack.c.bf16 %v6547_v56, %v6546_v50 }
 0x4d7   : > { %v6277_v32 = vpop.f32.mrf.mxu2 }
 0x4d8   : > { %v6553_v45 = vunpack.c.l.b16 %v6549_v30 }
 0x4d9   : > { %6456 = vmatpush.bf16.msra.mxu3 %v8843_v39  ;;  %v6548_v39 = vpack.c.bf16 %v6545_v19, %v6544_v5 }
 0x4da   : > { %v6253_v62 = vpop.f32.mrf.mxu1 }
 0x4db   : > { %v6552_v6 = vunpack.c.l.b16 %v6548_v39 }
 0x4dd   : > { %6457 = vmatpush.bf16.msra.mxu3 %v8819_v26  ;;  %v14148_v26 = vpack.c.b16 %v6553_v45, %v6552_v6 }
 0x4df   : > { %v6279_v47 = vpop.f32.mrf.mxu2  ;;  %6555 = vrot.lane.b32.xlu1 %v14148_v26, %s14729_s27  ;;  %6655 = vrot.lane.b32.xlu0 %v14148_v26, %s14730_s0  ;;  %s10105_s27 = smov 50   ;;  %s14740_s0 = smov 68  }
 0x4e0   : > { %6458 = vmatmul.bf16.vlgmr.msra.gmra.mxu3 %v12513_v43 }
 0x4e2   : > { %v6316_v14 = vpop.f32.mrf.mxu0 }
 0x4e3   : > { %v6238_v7 = vpop.f32.mrf.mxu3 }
 0x4e4   : > { %v6252_v33 = vadd.f32 %v6251_v22, %v6238_v7 }
 0x4e6   : > { %v6265_v36 = vadd.f32 %v6264_v37, %v6252_v33 }
 0x4e7   : > { %6603 = vrot.lane.b32.xlu1 %v14148_v26, %s14731_s18  ;;  %6773 = vrot.lane.b32.xlu0 %v14148_v26, %s14728_s28  ;;  %s10106_s18 = smov 26  }
 0x4e8   : > { %v6278_v55 = vadd.f32 %v6277_v32, %v6265_v36 }
 0x4ea   : > { %v6318_v34 = vpop.f32.mrf.mxu0 }
 0x4eb   : > { %v6240_v4 = vpop.f32.mrf.mxu3 }
 0x4ef   : > { %6743 = vrot.lane.b32.xlu1 %v14148_v26, %s14732_s29  ;;  %6893 = vrot.lane.b32.xlu0 %v14148_v26, %s14733_s21  ;;  %s10107_s21 = smov 38  }
 0x4f2   : > { %v6303_v28 = vpop.f32.mrf.mxu1 }
 0x4f7   : > { %v6329_v24 = vpop.f32.mrf.mxu2  ;;  %6713 = vrot.lane.b32.xlu1 %v14148_v26, %s14734_s20  ;;  %7013 = vrot.lane.b32.xlu0 %v14148_v26, %s14735_s11  ;;  %s14741_s20 = smov 2  }
 0x4fa   : > { %v6305_v31 = vpop.f32.mrf.mxu1 }
 0x4ff   : > { %v6331_v63 = vpop.f32.mrf.mxu2  ;;  %7133 = vrot.lane.b32.xlu0 %v14148_v26, %s14720_s25  ;;  %s14747_s25 = smov 101  }
 0x502   : > { %v6355_v61 = vpop.f32.mrf.mxu0 }
 0x503   : > { %v6290_v60 = vpop.f32.mrf.mxu3 }
 0x504   : > { %v6291_v11 = vadd.f32 %v6290_v60, %v6278_v55  ;;  %v7163_v60 = vunpack.c.h.b16 %v6548_v39 }
 0x506   : > { %v6304_v12 = vadd.f32 %v6303_v28, %v6291_v11  ;;  %v7164_v11 = vunpack.c.h.b16 %v6549_v30 }
 0x508   : > { %v14134_v25 = vadd.f32 %v6316_v14, %v6304_v12 }
 0x50a   : > { %v6357_v43 = vpop.f32.mrf.mxu0 }
 0x50b   : > { %v6292_v52 = vpop.f32.mrf.mxu3  ;;  %v14196_v43 = vpack.c.b16 %v7164_v11, %v7163_v60 }
 0x512   : > { %v6368_v15 = vpop.f32.mrf.mxu1 }
 0x516   : > { %v6407_v42 = vpop.f32.mrf.mxu0 }
 0x517   : > { %v6381_v9 = vpop.f32.mrf.mxu2 }
 0x51a   : > { %v6370_v38 = vpop.f32.mrf.mxu1 }
 0x51e   : > { %v6409_v59 = vpop.f32.mrf.mxu0 }
 0x51f   : > { %v6383_v20 = vpop.f32.mrf.mxu2 }
 0x523   : > { %v6342_v49 = vpop.f32.mrf.mxu3 }
 0x524   : > { %v6343_v21 = vadd.f32 %v6342_v49, %v6329_v24 }
 0x526   : > { %v6356_v29 = vadd.f32 %v6355_v61, %v6343_v21 }
 0x528   : > { %v6369_v35 = vadd.f32 %v6368_v15, %v6356_v29 }
 0x52a   : > { %v6382_v51 = vadd.f32 %v6381_v9, %v6369_v35 }
 0x52b   : > { %v6344_v3 = vpop.f32.mrf.mxu3 }
 0x532   : > { %v6420_v8 = vpop.f32.mrf.mxu1 }
 0x536   : > { %v6446_v57 = vpop.f32.mrf.mxu0 }
 0x537   : > { %v6433_v54 = vpop.f32.mrf.mxu2 }
 0x538   : > { %v6434_v0 = vadd.f32 %v6433_v54, %v6420_v8 }
 0x53a   : > { %v6422_v46 = vpop.f32.mrf.mxu1  ;;  %v6447_v32 = vadd.f32 %v6446_v57, %v6434_v0 }
 0x53e   : > { %v6448_v40 = vpop.f32.mrf.mxu0 }
 0x53f   : > { %v6435_v27 = vpop.f32.mrf.mxu2 }
 0x543   : > { %v6394_v17 = vpop.f32.mrf.mxu3 }
 0x544   : > { %v6395_v48 = vadd.f32 %v6394_v17, %v6382_v51 }
 0x546   : > { %v6408_v1 = vadd.f32 %v6407_v42, %v6395_v48  ;;  %v9979_v42 = vpop.permute.xlu0 %9978 }
 0x547   : > { %v9981_v38 = vunpack.i.h.bf16 %v9979_v42  ;;  %v9980_v59 = vunpack.i.l.bf16 %v9979_v42 }
 0x549   : > { %v6509_v20 = vsel %vm6508_vm12, %v9980_v59, %v9981_v38  ;;  %v6513_v35 = vmax.f32 %v13982_v2, %v9981_v38 }
 0x54a   : > { %v6498_v41 = vpop.f32.mrf.mxu0  ;;  %v6512_v51 = vmax.f32 %v13673_v44, %v6509_v20 }
 0x54b   : > { %v6396_v58 = vpop.f32.mrf.mxu3 }
 0x551   : > { %v14269_v19 = vpop.permute.xlu0 %6655 }
 0x552   : > { %v6500_v10 = vpop.f32.mrf.mxu0  ;;  %v6472_v18 = vpop.f32.mrf.mxu1 }
 0x555   : > { %v6485_v37 = vpop.f32.mrf.mxu2 }
 0x559   : > { %v14280_v56 = vpop.permute.xlu0 %6773 }
 0x55a   : > { %v6474_v13 = vpop.f32.mrf.mxu1 }
 0x55d   : > { %v6487_v22 = vpop.f32.mrf.mxu2 }
 0x561   : > { %v14291_v6 = vpop.permute.xlu0 %6893 }
 0x563   : > { %v6459_v53 = vpop.f32.mrf.mxu3 }
 0x564   : > { %v6460_v62 = vadd.f32 %v6459_v53, %v6447_v32 }
 0x566   : > { %v6473_v47 = vadd.f32 %v6472_v18, %v6460_v62 }
 0x568   : > { %v6486_v14 = vadd.f32 %v6485_v37, %v6473_v47 }
 0x569   : > { %v14302_v13 = vpop.permute.xlu0 %7013 }
 0x56a   : > { %v6499_v7 = vadd.f32 %v6498_v41, %v6486_v14 }
 0x56b   : > { %v6461_v33 = vpop.f32.mrf.mxu3 }
 0x56c   : > { %v9982_v36 = vpack.i.bf16 %v6499_v7, %v6408_v1 }
 0x56e   : > { %9983 = vrot.lane.b32.xlu2 %v9982_v36, %s14728_s28  ;;  %s14738_s28 = smov 74  }
 0x571   : > { %v14313_v32 = vpop.permute.xlu0 %7133 }
 0x576   : > { %6629 = vrot.lane.b32.xlu2 %v14148_v26, %s14736_s26  ;;  %s10109_s26 = smov 14  }
 0x57e   : > { %6681 = vrot.lane.b32.xlu2 %v14148_v26, %s14737_s30 }
 0x5c8   : > { %v9984_v34 = vpop.permute.xlu2 %9983 }
 0x5c9   : > { %v9986_v55 = vunpack.i.h.bf16 %v9984_v34  ;;  %v9985_v4 = vunpack.i.l.bf16 %v9984_v34 }
 0x5cb   : > { %v6526_v28 = vmax.f32 %v6408_v1, %v9986_v55  ;;  %v6520_v24 = vsel %vm6508_vm12, %v9985_v4, %v9986_v55  ;;  %v6524_v31 = vmax.f32 %v14128_v23, %v9985_v4  ;;  %v14192_v23 = vpop.permute.xlu1 %6555  ;;  %vm7019_vm12 = vcmask 719872  }
 0x5cc   : > { %v6525_v63 = vmax.f32 %v14134_v25, %v6520_v24 }
 0x5cd   : > { %6534 = vrot.lane.b32.xlu2 %v6526_v28, %s14735_s11 }
 0x5ce   : > { %v9987_v61 = vpack.i.bf16 %v6525_v63, %v6524_v31 }
 0x5d0   : > { %9988 = vrot.lane.b32.xlu1 %v9987_v61, %s14735_s11  ;;  %s10108_s11 = smov 44   ;;  %v14201_v52 = vpop.permute.xlu2 %6629 }
 0x5d3   : > { %v14194_v12 = vpop.permute.xlu1 %6603 }
 0x5d5   : > { %6803 = vrot.lane.b32.xlu2 %v14148_v26, %s14738_s28 }
 0x5d8   : > { %6863 = vrot.lane.b32.xlu1 %v14148_v26, %s14739_s12  ;;  %s10110_s12 = smov 20   ;;  %v14205_v9 = vpop.permute.xlu2 %6681 }
 0x5db   : > { %v14199_v25 = vpop.permute.xlu1 %6743 }
 0x5dd   : > { %6923 = vrot.lane.b32.xlu2 %v14148_v26, %s10105_s27  ;;  %s10111_s27 = smov 118  }
 0x5e0   : > { %6833 = vrot.lane.b32.xlu1 %v14148_v26, %s14740_s0  ;;  %s14742_s0 = smov 126  }
 0x5e3   : > { %v14203_v15 = vpop.permute.xlu1 %6713 }
 0x5e5   : > { %7043 = vrot.lane.b32.xlu2 %v14148_v26, %s10106_s18  ;;  %s14743_s18 = smov 125  }
 0x5e8   : > { %6983 = vrot.lane.b32.xlu1 %v14148_v26, %s10107_s21  ;;  %s14744_s21 = smov 127  }
 0x5ed   : > { %7166 = vrot.lane.b32.xlu2 %v14148_v26, %s14741_s20 }
 0x5f0   : > { %6953 = vrot.lane.b32.xlu1 %v14148_v26, %s10108_s11  ;;  %s10112_s11 = smov 115  }
 0x5f8   : > { %7103 = vrot.lane.b32.xlu1 %v14148_v26, %s10109_s26  ;;  %s14745_s26 = smov 113  }
 0x600   : > { %7073 = vrot.lane.b32.xlu1 %v14148_v26, %s10110_s12  ;;  %s14746_s12 = smov 124  }
 0x608   : > { %7229 = vrot.lane.b32.xlu1 %v14196_v43, %s10111_s27  ;;  %s14722_s27 = smov 112  }
 0x627   : > { %v6535_v3 = vpop.permute.xlu2 %6534 }
 0x62f   : > { %v14250_v1 = vpop.permute.xlu2 %6803 }
 0x637   : > { %v14258_v10 = vpop.permute.xlu2 %6923 }
 0x63f   : > { %v14271_v50 = vpop.permute.xlu2 %7043 }
 0x642   : > { %v9989_v49 = vpop.permute.xlu1 %9988 }
 0x643   : > { %v9991_v21 = vunpack.i.h.bf16 %v9989_v49  ;;  %v9990_v29 = vunpack.i.l.bf16 %v9989_v49 }
 0x645   : > { %v6538_v8 = vsel %vm3038_vm6, %v9991_v21, %v6535_v3  ;;  %v6537_v57 = vsel %vm3038_vm6, %v9990_v29, %v9991_v21  ;;  %vm6869_vm6 = vcmask 826368  }
 0x646   : > { %v6541_v54 = vmax.f32 %v6512_v51, %v6537_v57  ;;  %v6542_v46 = vmax.f32 %v6513_v35, %v6538_v8 }
 0x647   : > { %v14285_v39 = vpop.permute.xlu2 %7166 }
 0x648   : > { %v6543_v40 = vpack.c.bf16 %v6542_v46, %v6541_v54 }
 0x64a   : > { %v6558_v27 = vunpack.c.l.b16 %v6543_v40  ;;  %v6587_v17 = vsel %vm5935_vm3, %v6543_v40, 0  ;;  %v6683_v44 = vunpack.c.h.b16 %v6543_v40  ;;  %v14245_v48 = vpop.permute.xlu1 %6863 }
 0x64b   : > { %6596 = vmatpush.bf16.msra.mxu0 %v6587_v17 }
 0x64c   : > { %v14213_v41 = vpack.c.b16 %v6558_v27, %v6558_v27  ;;  %v14226_v2 = vpack.c.b16 %v6683_v44, %v6683_v44 }
 0x64e   : > { %6605 = vrot.lane.b32.xlu1 %v14213_v41, %s14742_s0  ;;  %6631 = vrot.lane.b32.xlu2 %v14213_v41, %s14743_s18  ;;  %s10114_s0 = smov 111   ;;  %s10115_s18 = smov 114  }
 0x64f   : > { %6560 = vrot.lane.b32.xlu0 %v14213_v41, %s14744_s21  ;;  %s10116_s21 = smov 100   ;;  %9475 = vmatmul.msk.bf16.vlgmr.msra.gmra.mxu0 %vm6562_vm13, %v14148_v26 }
 0x652   : > { %v14252_v58 = vpop.permute.xlu1 %6833 }
 0x656   : > { %6685 = vrot.lane.b32.xlu1 %v14213_v41, %s10112_s11  ;;  %6745 = vrot.lane.b32.xlu2 %v14213_v41, %s14745_s26 }
 0x657   : > { %6657 = vrot.lane.b32.xlu0 %v14213_v41, %s14746_s12 }
 0x65a   : > { %v14265_v5 = vpop.permute.xlu1 %6983 }
 0x65e   : > { %6777 = vrot.lane.b32.xlu1 %v14226_v2, %s14722_s27  ;;  %6687 = vrot.lane.b32.xlu2 %v14226_v2, %s10112_s11  ;;  %s10117_s11 = smov 99  }
 0x65f   : > { %6747 = vrot.lane.b32.xlu0 %v14226_v2, %s14745_s26  ;;  %s10118_s26 = smov 88  }
 0x662   : > { %v14278_v18 = vpop.permute.xlu1 %6953 }
 0x666   : > { %6805 = vrot.lane.b32.xlu1 %v14213_v41, %s10114_s0  ;;  %6715 = vrot.lane.b32.xlu2 %v14213_v41, %s10115_s18 }
 0x667   : > { %6775 = vrot.lane.b32.xlu0 %v14213_v41, %s14722_s27  ;;  %s10119_s27 = smov 102  }
 0x66a   : > { %v14289_v30 = vpop.permute.xlu1 %7103 }
 0x66e   : > { %6897 = vrot.lane.b32.xlu1 %v14226_v2, %s10116_s21  ;;  %6865 = vrot.lane.b32.xlu2 %v14213_v41, %s14747_s25 }
 0x66f   : > { %6717 = vrot.lane.b32.xlu0 %v14226_v2, %s10115_s18  ;;  %s10120_s18 = smov 87  }
 0x672   : > { %v14298_v26 = vpop.permute.xlu1 %7073 }
 0x676   : > { %6925 = vrot.lane.b32.xlu1 %v14213_v41, %s10117_s11  ;;  %6807 = vrot.lane.b32.xlu2 %v14226_v2, %s10114_s0  ;;  %s14748_s0 = smov 89  }
 0x677   : > { %6867 = vrot.lane.b32.xlu0 %v14226_v2, %s14747_s25  ;;  %s10121_s25 = smov 76  }
 0x67a   : > { %v14309_v0 = vpop.permute.xlu1 %7229 }
 0x67e   : > { %7017 = vrot.lane.b32.xlu1 %v14226_v2, %s10118_s26  ;;  %6835 = vrot.lane.b32.xlu2 %v14213_v41, %s10119_s27 }
 0x67f   : > { %6895 = vrot.lane.b32.xlu0 %v14213_v41, %s10116_s21  ;;  %s10123_s21 = smov 72  }
 0x686   : > { %7045 = vrot.lane.b32.xlu1 %v14213_v41, %s10120_s18  ;;  %6985 = vrot.lane.b32.xlu2 %v14213_v41, %s14748_s0 }
 0x687   : > { %6837 = vrot.lane.b32.xlu0 %v14226_v2, %s10119_s27  ;;  %s10122_s27 = smov 75  }
 0x68e   : > { %7137 = vrot.lane.b32.xlu1 %v14226_v2, %s10121_s25  ;;  %6927 = vrot.lane.b32.xlu2 %v14226_v2, %s10117_s11  ;;  %s10124_s11 = smov 85  }
 0x68f   : > { %6987 = vrot.lane.b32.xlu0 %v14226_v2, %s14748_s0  ;;  %s7980_s0 = scalar_lea.hbm %s14686_s10, %s10204_s17 }
 0x696   : > { %7171 = vrot.lane.b32.xlu1 %v14213_v41, %s10122_s27  ;;  %6955 = vrot.lane.b32.xlu2 %v14213_v41, %s14737_s30 }
 0x697   : > { %7015 = vrot.lane.b32.xlu0 %v14213_v41, %s10118_s26  ;;  %s14749_s26 = smov 112  }
 0x69e   : > { %7263 = vrot.lane.b32.xlu1 %v14226_v2, %s10123_s21  ;;  %7105 = vrot.lane.b32.xlu2 %v14213_v41, %s10124_s11 }
 0x69f   : > { %6957 = vrot.lane.b32.xlu0 %v14226_v2, %s14737_s30  ;;  %s10125_s30 = smov 73  }
 0x6a6   : > { %7047 = vrot.lane.b32.xlu2 %v14226_v2, %s10120_s18  ;;  %7259 = vrot.lane.b32.xlu1 %v14196_v43, %s14749_s26 }
 0x6a7   : > { %7107 = vrot.lane.b32.xlu0 %v14226_v2, %s10124_s11  ;;  %s14750_s11 = smov 96  }
 0x6a8   : > { %v6632_v45 = vpop.permute.xlu2 %6631 }
 0x6a9   : > { %v6637_v37 = vsel %vm5935_vm3, %v6632_v45, 0 }
 0x6aa   : > { %6646 = vmatpush.bf16.msrb.mxu2 %v6637_v37 }
 0x6ad   : > { %9477 = vmatmul.msk.bf16.vlgmr.msrb.gmra.mxu2 %vm6562_vm13, %v14201_v52 }
 0x6ae   : > { %7075 = vrot.lane.b32.xlu2 %v14213_v41, %s14732_s29 }
 0x6af   : > { %7135 = vrot.lane.b32.xlu0 %v14213_v41, %s10121_s25  ;;  %s14751_s25 = smov 8  }
 0x6b0   : > { %v6746_v22 = vpop.permute.xlu2 %6745 }
 0x6b6   : > { %7231 = vrot.lane.b32.xlu2 %v14213_v41, %s10125_s30 }
 0x6b7   : > { %7077 = vrot.lane.b32.xlu0 %v14226_v2, %s14732_s29 }
 0x6b8   : > { %v6688_v53 = vpop.permute.xlu2 %6687 }
 0x6be   : > { %7173 = vrot.lane.b32.xlu2 %v14226_v2, %s10122_s27 }
 0x6bf   : > { %7233 = vrot.lane.b32.xlu0 %v14226_v2, %s10125_s30 }
 0x6c0   : > { %v6606_v62 = vpop.permute.xlu1 %6605  ;;  %v6716_v47 = vpop.permute.xlu2 %6715 }
 0x6c1   : > { %v6611_v14 = vsel %vm5935_vm3, %v6606_v62, 0  ;;  %v6561_v7 = vpop.permute.xlu0 %6560 }
 0x6c2   : > { %v6567_v33 = vsel %vm5935_vm3, %v6561_v7, 0  ;;  %6620 = vmatpush.bf16.msrb.mxu1 %v6611_v14 }
 0x6c3   : > { %6576 = vmatpush.bf16.msrb.mxu3 %v6567_v33 }
 0x6c5   : > { %9476 = vmatmul.msk.bf16.vlgmr.msrb.gmra.mxu1 %vm6562_vm13, %v14194_v12 }
 0x6c6   : > { %9474 = vmatmul.msk.bf16.vlgmr.msrb.gmra.mxu3 %vm6562_vm13, %v14192_v23  ;;  %7201 = vrot.lane.b32.xlu2 %v14213_v41, %s14738_s28 }
 0x6c7   : > { %7261 = vrot.lane.b32.xlu0 %v14213_v41, %s10123_s21  ;;  %s7984_s21 = sshll.u32 %s7980_s0, 4  ;;  %s7985_s21 = int_to_ptr.hbm [resolvable:$true] %s7984_s21 }
 0x6c8   : > { %v6686_v36 = vpop.permute.xlu1 %6685  ;;  %v6866_v34 = vpop.permute.xlu2 %6865  ;;  %s10009_s30 = sshra.s32 %s7985_s21, 4  ;;  %s10010_s30 = int_to_ptr.hbm [resolvable:$true] %s10009_s30 }
 0x6c9   : > { %v6690_v55 = vsel %vm6689_vm14, %v6686_v36, %v6688_v53  ;;  %v6658_v4 = vpop.permute.xlu0 %6657  ;;  %vm6959_vm14 = vcmask 801792   ;;  %s10011_s29 = scalar_lea.hbm %s10010_s30, 1  ;;  %p10016_p0 = scmp.lt.s32.totalorder %s10010_s30, %s14686_s10 }
 0x6ca   : > { %v6695_v28 = vsel %vm5935_vm3, %v6690_v55, 0  ;;  %v6663_v24 = vsel %vm5935_vm3, %v6658_v4, 0  ;;  %p10012_p11 = scmp.ne.s32.totalorder %s10010_s30, %s10011_s29 }
 0x6cb   : > { %6672 = vmatpush.bf16.msra.mxu3 %v6663_v24  ;;  %6704 = vmatpush.bf16.msrb.mxu0 %v6695_v28 }
 0x6cc   : > { %p10013_p12 = pnand %p10012_p11, %p10221_p5 }
 0x6ce   : > { %9479 = vmatmul.msk.bf16.vlgmr.msrb.gmra.mxu0 %vm6562_vm13, %v14205_v9  ;;  %7199 = vrot.lane.b32.xlu2 %v14196_v43, %s14746_s12  ;;  %p10014_p13 = pneg %p10013_p12 }
 0x6cf   : > { %7203 = vrot.lane.b32.xlu0 %v14226_v2, %s14738_s28 }
 0x6d0   : > { %v6778_v31 = vpop.permute.xlu1 %6777  ;;  %v6808_v63 = vpop.permute.xlu2 %6807 }
 0x6d1   : > { %v6748_v61 = vpop.permute.xlu0 %6747 }
 0x6d2   : > { %v6750_v23 = vsel %vm6749_vm15, %v6746_v22, %v6748_v61  ;;  %vm7175_vm15 = vcmask 613376  }
 0x6d3   : > { %v6755_v60 = vsel %vm5935_vm3, %v6750_v23, 0 }
 0x6d4   : > { %6764 = vmatpush.bf16.msra.mxu2 %v6755_v60 }
 0x6d6   : > { %9478 = vmatmul.msk.bf16.vlgmr.msra.gmra.mxu3 %vm6562_vm13, %v14269_v19 }
 0x6d7   : > { %7168 = vrot.lane.b32.xlu0 %v14196_v43, %s14741_s20  ;;  %9481 = vmatmul.msk.bf16.vlgmr.msra.gmra.mxu2 %vm6562_vm13, %v14199_v25  ;;  %s10127_s20 = smov 52  }
 0x6d8   : > { %v6806_v11 = vpop.permute.xlu1 %6805  ;;  %v6836_v12 = vpop.permute.xlu2 %6835 }
 0x6d9   : > { %v6810_v52 = vsel %vm6809_vm0, %v6806_v11, %v6808_v63  ;;  %v6776_v42 = vpop.permute.xlu0 %6775  ;;  %vm7109_vm0 = vcmask 695296  }
 0x6da   : > { %v6815_v9 = vsel %vm5935_vm3, %v6810_v52, 0  ;;  %v6780_v38 = vsel %vm6779_vm2, %v6776_v42, %v6778_v31  ;;  %vm7139_vm2 = vcmask 621568  }
 0x6db   : > { %v6785_v59 = vsel %vm5935_vm3, %v6780_v38, 0  ;;  %6824 = vmatpush.bf16.msra.mxu0 %v6815_v9  ;;  %v7289_v9 = vld [vmem:[%s14684_s8] sm:$0xff] }
 0x6dc   : > { %6794 = vmatpush.bf16.msrb.mxu3 %v6785_v59  ;;  %v10126_v59 = vmov 1  }
 0x6dd   : > { %9992 = vset.pattern.permute.xlu0 %v10126_v59  ;;  %9993 = vset.pattern.permute.xlu1 %v10126_v59  ;;  %v9865_v59 = vld [vmem:[%s14680_s4 + $0x20] sm:$0xff] }
 0x6de   : > { %9483 = vmatmul.msk.bf16.vlgmr.msra.gmra.mxu0 %vm6562_vm13, %v14250_v1 }
 0x6df   : > { %7293 = vperm.xlu0 %9992, %v7289_v9   ;;  %v9866_v9 = vld [vmem:[%s14680_s4 + $0x28] sm:$0xff] }
 0x6e0   : > { %v6898_v43 = vpop.permute.xlu1 %6897  ;;  %v6986_v20 = vpop.permute.xlu2 %6985 }
 0x6e1   : > { %v6718_v49 = vpop.permute.xlu0 %6717 }
 0x6e2   : > { %v6720_v25 = vsel %vm6719_vm4, %v6716_v47, %v6718_v49  ;;  %vm7079_vm4 = vcmask 703488  }
 0x6e3   : > { %v6725_v21 = vsel %vm5935_vm3, %v6720_v25, 0  ;;  %v7290_v25 = vld [vmem:[%s14684_s8 + $0x8] sm:$0xff] }
 0x6e4   : > { %6734 = vmatpush.bf16.msra.mxu1 %v6725_v21  ;;  %7298 = vperm.xlu1 %9993, %v7290_v25   ;;  %v9864_v25 = vld [vmem:[%s14680_s4 + $0x18] sm:$0xff] }
 0x6e6   : > { %9482 = vmatmul.msk.bf16.vlgmr.msrb.gmra.mxu3 %vm6562_vm13, %v14280_v56 }
 0x6e7   : > { %9480 = vmatmul.msk.bf16.vlgmr.msra.gmra.mxu1 %vm6562_vm13, %v14203_v15 }
 0x6e8   : > { %v6926_v29 = vpop.permute.xlu1 %6925  ;;  %v6928_v35 = vpop.permute.xlu2 %6927 }
 0x6e9   : > { %v6930_v51 = vsel %vm6929_vm5, %v6926_v29, %v6928_v35  ;;  %v6868_v3 = vpop.permute.xlu0 %6867  ;;  %vm7235_vm5 = vcmask 596992  }
 0x6ea   : > { %v6935_v8 = vsel %vm5935_vm3, %v6930_v51, 0  ;;  %v6870_v57 = vsel %vm6869_vm6, %v6866_v34, %v6868_v3  ;;  %vm7265_vm6 = vcmask 588800   ;;  %v6598_v3 = vpop.f32.mrf.mxu0 }
 0x6eb   : > { %v6875_v54 = vsel %vm5935_vm3, %v6870_v57, 0  ;;  %6944 = vmatpush.bf16.msrb.mxu0 %v6935_v8 }
 0x6ec   : > { %6884 = vmatpush.bf16.msrb.mxu2 %v6875_v54 }
 0x6ee   : > { %9487 = vmatmul.msk.bf16.vlgmr.msrb.gmra.mxu0 %vm6562_vm13, %v14258_v10 }
 0x6ef   : > { %9485 = vmatmul.msk.bf16.vlgmr.msrb.gmra.mxu2 %vm6562_vm13, %v14245_v48 }
 0x6f0   : > { %v6956_v15 = vpop.permute.xlu2 %6955  ;;  %v7018_v17 = vpop.permute.xlu1 %7017 }
 0x6f1   : > { %v6896_v46 = vpop.permute.xlu0 %6895 }
 0x6f2   : > { %v6900_v40 = vsel %vm6899_vm7, %v6896_v46, %v6898_v43  ;;  %vm7205_vm7 = vcmask 605184  }
 0x6f3   : > { %v6905_v27 = vsel %vm5935_vm3, %v6900_v40, 0 }
 0x6f4   : > { %6914 = vmatpush.bf16.msra.mxu3 %v6905_v27 }
 0x6f7   : > { %9486 = vmatmul.msk.bf16.vlgmr.msra.gmra.mxu3 %vm6562_vm13, %v14291_v6 }
 0x6f8   : > { %v7106_v41 = vpop.permute.xlu2 %7105  ;;  %v7046_v48 = vpop.permute.xlu1 %7045 }
 0x6f9   : > { %v6838_v44 = vpop.permute.xlu0 %6837 }
 0x6fa   : > { %v6840_v2 = vsel %vm6839_vm8, %v6836_v12, %v6838_v44  ;;  %vm7900_vm8 = vcmask 64512  }
 0x6fb   : > { %v6845_v1 = vsel %vm5935_vm3, %v6840_v2, 0 }
 0x6fc   : > { %6854 = vmatpush.bf16.msrb.mxu1 %v6845_v1 }
 0x6ff   : > { %9484 = vmatmul.msk.bf16.vlgmr.msrb.gmra.mxu1 %vm6562_vm13, %v14252_v58 }
 0x700   : > { %v7048_v10 = vpop.permute.xlu2 %7047  ;;  %v7138_v47 = vpop.permute.xlu1 %7137 }
 0x701   : > { %v7050_v19 = vsel %vm7049_vm10, %v7046_v48, %v7048_v10  ;;  %v6988_v56 = vpop.permute.xlu0 %6987  ;;  %vm7949_vm10 = vcmask 687104  }
 0x702   : > { %v7055_v45 = vsel %vm5935_vm3, %v7050_v19, 0  ;;  %v6990_v37 = vsel %vm6989_vm11, %v6986_v20, %v6988_v56  ;;  %vm7969_vm11 = vcmask 73728  }
 0x703   : > { %v6995_v6 = vsel %vm5935_vm3, %v6990_v37, 0  ;;  %7064 = vmatpush.bf16.msra.mxu0 %v7055_v45 }
 0x704   : > { %7004 = vmatpush.bf16.msra.mxu2 %v6995_v6 }
 0x706   : > { %9491 = vmatmul.msk.bf16.vlgmr.msra.gmra.mxu0 %vm6562_vm13, %v14271_v50 }
 0x707   : > { %9489 = vmatmul.msk.bf16.vlgmr.msra.gmra.mxu2 %vm6562_vm13, %v14265_v5 }
 0x708   : > { %v7076_v58 = vpop.permute.xlu2 %7075  ;;  %v7172_v5 = vpop.permute.xlu1 %7171 }
 0x709   : > { %v7016_v22 = vpop.permute.xlu0 %7015 }
 0x70a   : > { %v7020_v53 = vsel %vm7019_vm12, %v7016_v22, %v7018_v17 }
 0x70b   : > { %v7025_v62 = vsel %vm5935_vm3, %v7020_v53, 0 }
 0x70c   : > { %7034 = vmatpush.bf16.msrb.mxu3 %v7025_v62 }
 0x70f   : > { %9490 = vmatmul.msk.bf16.vlgmr.msrb.gmra.mxu3 %vm6562_vm13, %v14302_v13 }
 0x710   : > { %v7232_v14 = vpop.permute.xlu2 %7231  ;;  %v7264_v12 = vpop.permute.xlu1 %7263 }
 0x711   : > { %v6958_v7 = vpop.permute.xlu0 %6957 }
 0x712   : > { %v6960_v33 = vsel %vm6959_vm14, %v6956_v15, %v6958_v7  ;;  %v6600_v15 = vpop.f32.mrf.mxu0 }
 0x713   : > { %v6965_v50 = vsel %vm5935_vm3, %v6960_v33, 0 }
 0x714   : > { %6974 = vmatpush.bf16.msra.mxu1 %v6965_v50 }
 0x717   : > { %9488 = vmatmul.msk.bf16.vlgmr.msra.gmra.mxu1 %vm6562_vm13, %v14278_v18 }
 0x718   : > { %v7174_v36 = vpop.permute.xlu2 %7173  ;;  %v7260_v38 = vpop.permute.xlu1 %7259 }
 0x719   : > { %v7176_v34 = vsel %vm7175_vm15, %v7172_v5, %v7174_v36  ;;  %v7108_v55 = vpop.permute.xlu0 %7107  ;;  %v7320_v36 = vld [vmem:[%s14680_s4 + $0x38] sm:$0x7] }
 0x71a   : > { %v7181_v4 = vsel %vm5935_vm3, %v7176_v34, 0  ;;  %v7110_v28 = vsel %vm7109_vm0, %v7106_v41, %v7108_v55  ;;  %v7350_v55 = vunpack.c.l.b16 %v7320_v36 }
 0x71b   : > { %v7115_v13 = vsel %vm5935_vm3, %v7110_v28, 0  ;;  %7190 = vmatpush.bf16.msrb.mxu0 %v7181_v4 }
 0x71c   : > { %7124 = vmatpush.bf16.msrb.mxu2 %v7115_v13  ;;  %v7358_v13 = vpack.c.b16 %v7350_v55, %v7350_v55 }
 0x71f   : > { %9493 = vmatmul.msk.bf16.vlgmr.msrb.gmra.mxu2 %vm6562_vm13, %v14289_v30 }
 0x721   : > { %v7136_v24 = vpop.permute.xlu0 %7135 }
 0x722   : > { %v7140_v31 = vsel %vm7139_vm2, %v7136_v24, %v7138_v47 }
 0x723   : > { %v7145_v18 = vsel %vm5935_vm3, %v7140_v31, 0 }
 0x724   : > { %7154 = vmatpush.bf16.msra.mxu3 %v7145_v18 }
 0x727   : > { %9494 = vmatmul.msk.bf16.vlgmr.msra.gmra.mxu3 %vm6562_vm13, %v14313_v32 }
 0x729   : > { %v7078_v63 = vpop.permute.xlu0 %7077 }
 0x72a   : > { %v7080_v61 = vsel %vm7079_vm4, %v7076_v58, %v7078_v63  ;;  %v7371_v63 = vand.u32 %v7358_v13, %v12297_v16 }
 0x72b   : > { %v7085_v23 = vsel %vm5935_vm3, %v7080_v61, 0 }
 0x72c   : > { %7094 = vmatpush.bf16.msrb.mxu1 %v7085_v23  ;;  %7373 = vmatpush.bf16.msra.mxu0 %v7371_v63 }
 0x72f   : > { %9492 = vmatmul.msk.bf16.vlgmr.msrb.gmra.mxu1 %vm6562_vm13, %v14298_v26  ;;  %v7202_v26 = vpop.permute.xlu2 %7201 }
 0x730   : > { %v6648_v54 = vpop.f32.mrf.mxu2 }
 0x731   : > { %v7234_v30 = vpop.permute.xlu0 %7233 }
 0x732   : > { %v7236_v60 = vsel %vm7235_vm5, %v7232_v14, %v7234_v30 }
 0x733   : > { %v7241_v11 = vsel %vm5935_vm3, %v7236_v60, 0  ;;  %v9867_v60 = vld [vmem:[%s14680_s4 + $0x30] sm:$0xff] }
 0x734   : > { %7250 = vmatpush.bf16.msra.mxu2 %v7241_v11  ;;  %7374 = vmatpush.bf16.msra.mxu0 %v9867_v60 }
 0x737   : > { %9497 = vmatmul.msk.bf16.vlgmr.msra.gmra.mxu2 %vm6562_vm13, %v14309_v0  ;;  %v7200_v49 = vpop.permute.xlu2 %7199 }
 0x738   : > { %v6650_v27 = vpop.f32.mrf.mxu2  ;;  %7375 = vmatpush.bf16.msra.mxu0 %v9866_v9 }
 0x739   : > { %v7262_v32 = vpop.permute.xlu0 %7261 }
 0x73a   : > { %v7266_v52 = vsel %vm7265_vm6, %v7262_v32, %v7264_v12 }
 0x73b   : > { %v7271_v42 = vsel %vm5935_vm3, %v7266_v52, 0 }
 0x73c   : > { %7280 = vmatpush.bf16.msrb.mxu3 %v7271_v42  ;;  %7376 = vmatpush.bf16.msra.mxu0 %v9865_v59 }
 0x73f   : > { %9498 = vmatmul.msk.bf16.vlgmr.msrb.gmra.mxu3 %vm6562_vm13, %v7260_v38 }
 0x740   : > { %7377 = vmatpush.bf16.msra.mxu0 %v9864_v25 }
 0x741   : > { %v7204_v0 = vpop.permute.xlu0 %7203 }
 0x742   : > { %v7206_v43 = vsel %vm7205_vm7, %v7202_v26, %v7204_v0  ;;  %v6622_v8 = vpop.f32.mrf.mxu1 }
 0x743   : > { %v7211_v20 = vsel %vm5935_vm3, %v7206_v43, 0  ;;  %vm7480_vm3 = vcmask 130048  }
 0x744   : > { %7220 = vmatpush.bf16.msra.mxu1 %v7211_v20 }
 0x747   : > { %9496 = vmatmul.msk.bf16.vlgmr.msra.gmra.mxu1 %vm6562_vm13, %v7200_v49 }
 0x749   : > { %v7169_v21 = vpop.permute.xlu0 %7168  ;;  %v6578_v35 = vpop.f32.mrf.mxu3 }
 0x74a   : > { %v7170_v29 = vsel %vm3630_vm9, %v14285_v39, %v7169_v21  ;;  %v6624_v46 = vpop.f32.mrf.mxu1  ;;  %v6599_v1 = vadd.f32 %v6598_v3, %v6578_v35  ;;  %vm7366_vm9 = vcmask 957440  }
 0x74b   : > { %9495 = vmatmul.msk.bf16.vlgmr.msrb.gmra.mxu0 %vm6562_vm13, %v7170_v29  ;;  %v6706_v17 = vpop.f32.mrf.mxu0  ;;  %vm7907_vm13 = vcmask 1043456  }
 0x74c   : > { %v6627_v10 = vadd.f32 %v6622_v8, %v6599_v1  ;;  %v9863_v8 = vld [vmem:[%s14680_s4 + $0x10] sm:$0xff]  ;;  %v9861_v1 = vld [vmem:[%s14680_s4] sm:$0xff] }
 0x74d   : > { %7378 = vmatpush.bf16.msra.mxu0 %v9863_v8  ;;  %v7413_v8 = vld [vmem:[%s14681_s5 + $0x20] sm:$0xff] }
 0x74e   : > { %v6653_v37 = vadd.f32 %v6648_v54, %v6627_v10 }
 0x751   : > { %v6580_v51 = vpop.f32.mrf.mxu3  ;;  %v7294_v63 = vpop.permute.xlu0 %7293 }
 0x752   : > { %v6601_v45 = vadd.f32 %v6600_v15, %v6580_v51 }
 0x753   : > { %v6708_v48 = vpop.f32.mrf.mxu0 }
 0x754   : > { %v6628_v22 = vadd.f32 %v6624_v46, %v6601_v45 }
 0x756   : > { %v6654_v14 = vadd.f32 %v6650_v27, %v6628_v22 }
 0x759   : > { %v6674_v57 = vpop.f32.mrf.mxu3 }
 0x75a   : > { %v6766_v44 = vpop.f32.mrf.mxu2  ;;  %v6679_v6 = vadd.f32 %v6674_v57, %v6653_v37 }
 0x75b   : > { %v6826_v58 = vpop.f32.mrf.mxu0 }
 0x75c   : > { %v6711_v62 = vadd.f32 %v6706_v17, %v6679_v6 }
 0x761   : > { %v6676_v40 = vpop.f32.mrf.mxu3 }
 0x762   : > { %v6768_v19 = vpop.f32.mrf.mxu2  ;;  %v6680_v50 = vadd.f32 %v6676_v40, %v6654_v14  ;;  %v9862_v40 = vld [vmem:[%s14680_s4 + $0x8] sm:$0xff] }
 0x763   : > { %v6828_v34 = vpop.f32.mrf.mxu0  ;;  %7379 = vmatpush.bf16.msra.mxu0 %v9862_v40  ;;  %v7421_v40 = vld [vmem:[%s14681_s5 + $0x60] sm:$0xff] }
 0x764   : > { %v6736_v41 = vpop.f32.mrf.mxu1  ;;  %v6712_v4 = vadd.f32 %v6708_v48, %v6680_v50 }
 0x765   : > { %v6741_v7 = vadd.f32 %v6736_v41, %v6711_v62 }
 0x767   : > { %v6771_v5 = vadd.f32 %v6766_v44, %v6741_v7  ;;  %7380 = vmatpush.bf16.msra.mxu0 %v9861_v1 }
 0x769   : > { %v6796_v2 = vpop.f32.mrf.mxu3 }
 0x76a   : > { %v6801_v24 = vadd.f32 %v6796_v2, %v6771_v5 }
 0x76b   : > { %v6946_v12 = vpop.f32.mrf.mxu0 }
 0x76c   : > { %v6738_v39 = vpop.f32.mrf.mxu1  ;;  %v6831_v30 = vadd.f32 %v6826_v58, %v6801_v24 }
 0x76d   : > { %v6742_v31 = vadd.f32 %v6738_v39, %v6712_v4 }
 0x76f   : > { %v6772_v23 = vadd.f32 %v6768_v19, %v6742_v31 }
 0x771   : > { %v6798_v56 = vpop.f32.mrf.mxu3 }
 0x772   : > { %v6886_v47 = vpop.f32.mrf.mxu2  ;;  %v6802_v52 = vadd.f32 %v6798_v56, %v6772_v23 }
 0x773   : > { %v6948_v20 = vpop.f32.mrf.mxu0 }
 0x774   : > { %v6832_v38 = vadd.f32 %v6828_v34, %v6802_v52 }
 0x77a   : > { %v6916_v33 = vpop.f32.mrf.mxu3  ;;  %v6888_v18 = vpop.f32.mrf.mxu2 }
 0x77c   : > { %v6856_v53 = vpop.f32.mrf.mxu1 }
 0x77d   : > { %v6861_v11 = vadd.f32 %v6856_v53, %v6831_v30  ;;  %v7299_v30 = vpop.permute.xlu1 %7298 }
 0x77f   : > { %v6891_v26 = vadd.f32 %v6886_v47, %v6861_v11 }
 0x781   : > { %v6921_v43 = vadd.f32 %v6916_v33, %v6891_v26 }
 0x782   : > { %v6918_v61 = vpop.f32.mrf.mxu3 }
 0x783   : > { %v6951_v29 = vadd.f32 %v6946_v12, %v6921_v43  ;;  %v7066_v15 = vpop.f32.mrf.mxu0  ;;  %v7409_v43 = vld [vmem:[%s14681_s5] sm:$0xff] }
 0x784   : > { %v6858_v28 = vpop.f32.mrf.mxu1 }
 0x785   : > { %v6862_v0 = vadd.f32 %v6858_v28, %v6832_v38 }
 0x787   : > { %v6892_v21 = vadd.f32 %v6888_v18, %v6862_v0 }
 0x789   : > { %v6922_v57 = vadd.f32 %v6918_v61, %v6892_v21 }
 0x78a   : > { %v7006_v42 = vpop.f32.mrf.mxu2 }
 0x78b   : > { %v6952_v27 = vadd.f32 %v6948_v20, %v6922_v57  ;;  %v7068_v19 = vpop.f32.mrf.mxu0  ;;  %v7410_v20 = vld [vmem:[%s14681_s5 + $0x8] sm:$0xff] }
 0x78c   : > { %v7442_v25 = vpack.c.bf16 %v7410_v20, %v7410_v20 }
 0x792   : > { %v7036_v16 = vpop.f32.mrf.mxu3  ;;  %v7008_v35 = vpop.f32.mrf.mxu2 }
 0x794   : > { %v6976_v32 = vpop.f32.mrf.mxu1 }
 0x795   : > { %v6981_v51 = vadd.f32 %v6976_v32, %v6951_v29  ;;  %v7477_v29 = vunpack.c.l.b16 %v7442_v25 }
 0x797   : > { %v7011_v54 = vadd.f32 %v7006_v42, %v6981_v51  ;;  %v7411_v51 = vld [vmem:[%s14681_s5 + $0x10] sm:$0xff] }
 0x798   : > { %v7443_v57 = vpack.c.bf16 %v7411_v51, %v7411_v51 }
 0x799   : > { %v7041_v44 = vadd.f32 %v7036_v16, %v7011_v54 }
 0x79a   : > { %v7038_v3 = vpop.f32.mrf.mxu3 }
 0x79b   : > { %v7071_v10 = vadd.f32 %v7066_v15, %v7041_v44  ;;  %v7414_v15 = vld [vmem:[%s14681_s5 + $0x28] sm:$0xff] }
 0x79c   : > { %v6978_v49 = vpop.f32.mrf.mxu1 }
 0x79d   : > { %v6982_v41 = vadd.f32 %v6978_v49, %v6952_v27  ;;  %v7441_v49 = vpack.c.bf16 %v7409_v43, %v7409_v43  ;;  %v7422_v27 = vld [vmem:[%s14681_s5 + $0x68] sm:$0xff] }
 0x79e   : > { %v7454_v44 = vpack.c.bf16 %v7422_v27, %v7422_v27 }
 0x79f   : > { %v7012_v48 = vadd.f32 %v7008_v35, %v6982_v41  ;;  %v7476_v21 = vunpack.c.l.b16 %v7441_v49  ;;  %v7453_v41 = vpack.c.bf16 %v7421_v40, %v7421_v40 }
 0x7a1   : > { %v7042_v45 = vadd.f32 %v7038_v3, %v7012_v48  ;;  %v7478_v35 = vpack.c.b16 %v7477_v29, %v7476_v21  ;;  %v7412_v3 = vld [vmem:[%s14681_s5 + $0x18] sm:$0xff] }
 0x7a2   : > { %v7126_v17 = vpop.f32.mrf.mxu2  ;;  %v7444_v54 = vpack.c.bf16 %v7412_v3, %v7412_v3 }
 0x7a3   : > { %v7072_v22 = vadd.f32 %v7068_v19, %v7042_v45  ;;  %7491 = vmatpush.bf16.msrb.mxu1 %v7478_v35  ;;  %v7627_v19 = vunpack.c.l.b16 %v7454_v44 }
 0x7a4   : > { %v7507_v1 = vunpack.c.l.b16 %v7444_v54  ;;  %v7427_v54 = vld [vmem:[%s14681_s5 + $0x90] sm:$0xff] }
 0x7a5   : > { %v7459_v40 = vpack.c.bf16 %v7427_v54, %v7427_v54 }
 0x7aa   : > { %v7156_v2 = vpop.f32.mrf.mxu3  ;;  %v7128_v37 = vpop.f32.mrf.mxu2 }
 0x7ac   : > { %v7096_v46 = vpop.f32.mrf.mxu1 }
 0x7ad   : > { %v7101_v39 = vadd.f32 %v7096_v46, %v7071_v10  ;;  %v7445_v46 = vpack.c.bf16 %v7413_v8, %v7413_v8 }
 0x7af   : > { %v7131_v6 = vadd.f32 %v7126_v17, %v7101_v39  ;;  %v7446_v17 = vpack.c.bf16 %v7414_v15, %v7414_v15  ;;  %v7530_v48 = vunpack.c.l.b16 %v7445_v46  ;;  %v7626_v39 = vunpack.c.l.b16 %v7453_v41  ;;  %v7428_v15 = vld [vmem:[%s14681_s5 + $0x98] sm:$0xff]  ;;  %v7429_v46 = vld [vmem:[%s14681_s5 + $0xa0] sm:$0xff] }
 0x7b0   : > { %v7460_v27 = vpack.c.bf16 %v7428_v15, %v7428_v15  ;;  %v7461_v41 = vpack.c.bf16 %v7429_v46, %v7429_v46 }
 0x7b1   : > { %v7161_v62 = vadd.f32 %v7156_v2, %v7131_v6  ;;  %v7506_v2 = vunpack.c.l.b16 %v7443_v57  ;;  %v7531_v10 = vunpack.c.l.b16 %v7446_v17  ;;  %v7415_v6 = vld [vmem:[%s14681_s5 + $0x30] sm:$0xff]  ;;  %v7430_v17 = vld [vmem:[%s14681_s5 + $0xa8] sm:$0xff] }
 0x7b2   : > { %v7158_v58 = vpop.f32.mrf.mxu3  ;;  %v7462_v44 = vpack.c.bf16 %v7430_v17, %v7430_v17 }
 0x7b3   : > { %v7532_v45 = vpack.c.b16 %v7531_v10, %v7530_v48  ;;  %v7702_v48 = vunpack.c.l.b16 %v7459_v40  ;;  %v7703_v10 = vunpack.c.l.b16 %v7460_v27 }
 0x7b4   : > { %v7098_v56 = vpop.f32.mrf.mxu1 }
 0x7b5   : > { %v7102_v53 = vadd.f32 %v7098_v56, %v7072_v22  ;;  %v7508_v56 = vpack.c.b16 %v7507_v1, %v7506_v2  ;;  %7544 = vmatpush.bf16.msra.mxu3 %v7532_v45  ;;  %v7447_v22 = vpack.c.bf16 %v7415_v6, %v7415_v6  ;;  %v7431_v2 = vld [vmem:[%s14681_s5 + $0xb0] sm:$0xff]  ;;  %v7432_v1 = vld [vmem:[%s14681_s5 + $0xb8] sm:$0xff] }
 0x7b6   : > { %v7464_v45 = vpack.c.bf16 %v7432_v1, %v7432_v1 }
 0x7b7   : > { %v7132_v50 = vadd.f32 %v7128_v37, %v7102_v53  ;;  %v7628_v37 = vpack.c.b16 %v7627_v19, %v7626_v39  ;;  %7520 = vmatpush.bf16.msrb.mxu2 %v7508_v56  ;;  %v7726_v39 = vunpack.c.l.b16 %v7461_v41  ;;  %v7463_v19 = vpack.c.bf16 %v7431_v2, %v7431_v2 }
 0x7b8   : > { %v7727_v56 = vunpack.c.l.b16 %v7462_v44 }
 0x7b9   : > { %v7162_v55 = vadd.f32 %v7158_v58, %v7132_v50  ;;  %7640 = vmatpush.bf16.msrb.mxu0 %v7628_v37  ;;  %v7416_v58 = vld [vmem:[%s14681_s5 + $0x38] sm:$0xff]  ;;  %v7419_v50 = vld [vmem:[%s14681_s5 + $0x50] sm:$0xff]  ;;  %v7704_v37 = vpack.c.b16 %v7703_v10, %v7702_v48  ;;  %v7750_v6 = vunpack.c.l.b16 %v7463_v19 }
 0x7ba   : > { %v7252_v33 = vpop.f32.mrf.mxu2  ;;  %v7448_v53 = vpack.c.bf16 %v7416_v58, %v7416_v58  ;;  %v7728_v58 = vpack.c.b16 %v7727_v56, %v7726_v39  ;;  %v7883_v48 = vld [vmem:[%s14682_s6 + $0x70] sm:$0xff]  ;;  %v7881_v56 = vld [vmem:[%s14682_s6 + $0x60] sm:$0xff] }
 0x7bb   : > { %v7891_v10 = vpack.c.bf16 %v7883_v48, %v7883_v48 }
 0x7bd   : > { %v7909_v19 = vsel %vm7907_vm13, %v7891_v10, 0 }
 0x7c2   : > { %v7282_v36 = vpop.f32.mrf.mxu3  ;;  %v7254_v18 = vpop.f32.mrf.mxu2 }
 0x7c4   : > { %v7222_v14 = vpop.f32.mrf.mxu1 }
 0x7c8   : > { %v7192_v47 = vpop.f32.mrf.mxu0 }
 0x7c9   : > { %v7197_v7 = vadd.f32 %v7192_v47, %v7161_v62  ;;  %v7554_v62 = vunpack.c.l.b16 %v7447_v22  ;;  %v7555_v47 = vunpack.c.l.b16 %v7448_v53  ;;  %v7751_v22 = vunpack.c.l.b16 %v7464_v45  ;;  %v7882_v45 = vld [vmem:[%s14682_s6 + $0x68] sm:$0xff] }
 0x7ca   : > { %v7284_v23 = vpop.f32.mrf.mxu3 }
 0x7cb   : > { %v7227_v5 = vadd.f32 %v7222_v14, %v7197_v7  ;;  %v7556_v14 = vpack.c.b16 %v7555_v47, %v7554_v62  ;;  %v7417_v7 = vld [vmem:[%s14681_s5 + $0x40] sm:$0xff]  ;;  %v7752_v53 = vpack.c.b16 %v7751_v22, %v7750_v6  ;;  %v7879_v22 = vld [vmem:[%s14682_s6 + $0x50] sm:$0xff] }
 0x7cc   : > { %v7224_v13 = vpop.f32.mrf.mxu1  ;;  %v7433_v47 = vld [vmem:[%s14681_s5 + $0xc0] sm:$0xff] }
 0x7cd   : > { %v7257_v34 = vadd.f32 %v7252_v33, %v7227_v5  ;;  %v7418_v33 = vld [vmem:[%s14681_s5 + $0x48] sm:$0xff]  ;;  %7568 = vmatpush.bf16.msra.mxu1 %v7556_v14  ;;  %v7449_v5 = vpack.c.bf16 %v7417_v7, %v7417_v7  ;;  %v7465_v7 = vpack.c.bf16 %v7433_v47, %v7433_v47 }
 0x7ce   : > { %v7434_v14 = vld [vmem:[%s14681_s5 + $0xc8] sm:$0xff] }
 0x7cf   : > { %v7287_v24 = vadd.f32 %v7282_v36, %v7257_v34  ;;  %v7450_v36 = vpack.c.bf16 %v7418_v33, %v7418_v33  ;;  %v7420_v34 = vld [vmem:[%s14681_s5 + $0x58] sm:$0xff]  ;;  %v7466_v33 = vpack.c.bf16 %v7434_v14, %v7434_v14  ;;  %v7473_v14 = vld [vmem:[%s14685_s9] sm:$0x1] }
 0x7d0   : > { %v7194_v4 = vpop.f32.mrf.mxu0 }
 0x7d1   : > { %v7198_v28 = vadd.f32 %v7194_v4, %v7162_v55  ;;  %v7301_v60 = vadd.f32 %v7294_v63, %v7287_v24  ;;  %v7451_v55 = vpack.c.bf16 %v7419_v50, %v7419_v50  ;;  %v7452_v4 = vpack.c.bf16 %v7420_v34, %v7420_v34  ;;  %v7435_v50 = vld [vmem:[%s14681_s5 + $0xd0] sm:$0xff] }
 0x7d3   : > { %v7228_v31 = vadd.f32 %v7224_v13, %v7198_v28  ;;  %v7303_v32 = vmax.f32 %v7301_v60, 0.0  ;;  %v7578_v28 = vunpack.c.l.b16 %v7449_v5  ;;  %v7579_v13 = vunpack.c.l.b16 %v7450_v36  ;;  %v7436_v5 = vld [vmem:[%s14681_s5 + $0xd8] sm:$0xff] }
 0x7d4   : > { %v7602_v24 = vunpack.c.l.b16 %v7451_v55  ;;  %v7467_v36 = vpack.c.bf16 %v7435_v50, %v7435_v50  ;;  %v7468_v34 = vpack.c.bf16 %v7436_v5, %v7436_v5  ;;  %v7774_v55 = vunpack.c.l.b16 %v7465_v7  ;;  %v7877_v7 = vld [vmem:[%s14682_s6 + $0x40] sm:$0xff] }
 0x7d5   : > { %v7258_v61 = vadd.f32 %v7254_v18, %v7228_v31  ;;  %v7603_v31 = vunpack.c.l.b16 %v7452_v4  ;;  %v7580_v18 = vpack.c.b16 %v7579_v13, %v7578_v28  ;;  %v7775_v4 = vunpack.c.l.b16 %v7466_v33  ;;  %v7878_v33 = vld [vmem:[%s14682_s6 + $0x48] sm:$0xff] }
 0x7d6   : > { %v7798_v28 = vunpack.c.l.b16 %v7467_v36  ;;  %v7799_v13 = vunpack.c.l.b16 %v7468_v34  ;;  %v7888_v50 = vpack.c.bf16 %v7878_v33, %v7877_v7  ;;  %v7875_v36 = vld [vmem:[%s14682_s6 + $0x30] sm:$0xff]  ;;  %v7876_v34 = vld [vmem:[%s14682_s6 + $0x38] sm:$0xff] }
 0x7d7   : > { %v7288_v11 = vadd.f32 %v7284_v23, %v7258_v61  ;;  %v7604_v63 = vpack.c.b16 %v7603_v31, %v7602_v24  ;;  %7592 = vmatpush.bf16.msra.mxu2 %v7580_v18  ;;  %v7423_v61 = vld [vmem:[%s14681_s5 + $0x70] sm:$0xff]  ;;  %v7424_v23 = vld [vmem:[%s14681_s5 + $0x78] sm:$0xff]  ;;  %v7776_v24 = vpack.c.b16 %v7775_v4, %v7774_v55  ;;  %v7437_v18 = vld [vmem:[%s14681_s5 + $0xe0] sm:$0xff]  ;;  %v7887_v4 = vpack.c.bf16 %v7876_v34, %v7875_v36 }
 0x7d8   : > { %v7456_v60 = vpack.c.bf16 %v7424_v23, %v7424_v23  ;;  %v7800_v31 = vpack.c.b16 %v7799_v13, %v7798_v28  ;;  %v7873_v28 = vld [vmem:[%s14682_s6 + $0x20] sm:$0xff]  ;;  %v7874_v13 = vld [vmem:[%s14682_s6 + $0x28] sm:$0xff]  ;;  %v7928_v7 = vld [vmem:[%s14683_s7 + $0x10] sm:$0xff] }
 0x7d9   : > { %v7302_v12 = vadd.f32 %v7299_v30, %v7288_v11  ;;  %7616 = vmatpush.bf16.msrb.mxu3 %v7604_v63  ;;  %v7455_v30 = vpack.c.bf16 %v7423_v61, %v7423_v61  ;;  %v7438_v63 = vld [vmem:[%s14681_s5 + $0xe8] sm:$0xff]  ;;  %v7469_v61 = vpack.c.bf16 %v7437_v18, %v7437_v18  ;;  %v7871_v18 = vld [vmem:[%s14682_s6 + $0x10] sm:$0xff]  ;;  %v7929_v33 = vld [vmem:[%s14683_s7 + $0x18] sm:$0xff] }
 0x7da   : > { %v7470_v23 = vpack.c.bf16 %v7438_v63, %v7438_v63  ;;  %v7872_v63 = vld [vmem:[%s14682_s6 + $0x18] sm:$0xff]  ;;  %v7927_v36 = vld [vmem:[%s14683_s7 + $0x8] sm:$0xff] }
 0x7db   : > { %v7304_v52 = vmax.f32 %v7302_v12, 0.0  ;;  %v7650_v11 = vunpack.c.l.b16 %v7455_v30  ;;  %v7651_v12 = vunpack.c.l.b16 %v7456_v60  ;;  %v7439_v30 = vld [vmem:[%s14681_s5 + $0xf0] sm:$0xff]  ;;  %v7440_v60 = vld [vmem:[%s14681_s5 + $0xf8] sm:$0xff] }
 0x7dd   : > { %v7305_v42 = vpack.c.bf16 %v7304_v52, %v7303_v32 }
 0x7df   : > { %9527 = vmatmul.msk.bf16.vlgmr.msra.gmra.mxu0 %vm7366_vm9, %v7305_v42  ;;  %v7652_v42 = vpack.c.b16 %v7651_v12, %v7650_v11  ;;  %v7822_v11 = vunpack.c.l.b16 %v7469_v61  ;;  %v7823_v12 = vunpack.c.l.b16 %v7470_v23  ;;  %v7885_v23 = vpack.c.bf16 %v7872_v63, %v7871_v18 }
 0x7e0   : > { %7740 = vmatpush.bf16.msra.mxu0 %v7728_v58 }
 0x85c   : > { %v7382_v9 = vpop.f32.mrf.mxu0 }
 0x85d   : > { %7389 = vrot.lane.b32.xlu2 %v7382_v9, %s14749_s26 }
 0x864   : > { %v7384_v26 = vpop.f32.mrf.mxu0 }
 0x865   : > { %7391 = vrot.lane.b32.xlu1 %v7384_v26, %s14749_s26  ;;  %s350_s26 = sand.u32 1, %s10049_s14  }
 0x8b7   : > { %v7390_v16 = vpop.permute.xlu2 %7389 }
 0x8b8   : > { %v14429_v38 = vmax.f32 %v7382_v9, %v7390_v16  ;;  %v7425_v16 = vld [vmem:[%s14681_s5 + $0x80] sm:$0xff] }
 0x8b9   : > { %v7457_v43 = vpack.c.bf16 %v7425_v16, %v7425_v16 }
 0x8ba   : > { %7399 = vrot.lane.b32.xlu2 %v14429_v38, %s14750_s11 }
 0x8bb   : > { %v7673_v25 = vunpack.c.l.b16 %v7457_v43 }
 0x8d7   : > { %v7392_v59 = vpop.permute.xlu1 %7391 }
 0x8d8   : > { %v14433_v0 = vmax.f32 %v7384_v26, %v7392_v59  ;;  %v7426_v59 = vld [vmem:[%s14681_s5 + $0x88] sm:$0xff] }
 0x8d9   : > { %v7458_v20 = vpack.c.bf16 %v7426_v59, %v7426_v59 }
 0x8da   : > { %7401 = vrot.lane.b32.xlu0 %v14433_v0, %s14750_s11  ;;  %s7972_s11 = scalar_lea.sflag [#allocation3], %s350_s26 }
 0x914   : > { %v7400_v32 = vpop.permute.xlu2 %7399 }
 0x915   : > { %v7405_v52 = vmax.f32 %v14429_v38, %v7400_v32  ;;  %v7674_v38 = vunpack.c.l.b16 %v7458_v20  ;;  %v7471_v32 = vpack.c.bf16 %v7439_v30, %v7439_v30 }
 0x917   : > { %v7407_v9 = vpack.c.bf16 %v7405_v52, %v7405_v52  ;;  %v7675_v51 = vpack.c.b16 %v7674_v38, %v7673_v25  ;;  %v7472_v52 = vpack.c.bf16 %v7440_v60, %v7440_v60  ;;  %v7869_v60 = vld [vmem:[%s14682_s6] sm:$0xff] }
 0x919   : > { %v7499_v26 = vunpack.c.l.b16 %v7407_v9  ;;  %9528 = vmatmul.msk.bf16.vlgmr.msrb.gmra.mxu1 %vm7480_vm3, %v7407_v9  ;;  %v7846_v9 = vunpack.c.l.b16 %v7471_v32 }
 0x91a   : > { %7664 = vmatpush.bf16.msrb.mxu1 %v7652_v42  ;;  %v7824_v42 = vpack.c.b16 %v7823_v12, %v7822_v11  ;;  %v7870_v11 = vld [vmem:[%s14682_s6 + $0x8] sm:$0xff] }
 0x91b   : > { %v7500_v49 = vpack.c.b16 %v7499_v26, %v7499_v26  ;;  %v7847_v26 = vunpack.c.l.b16 %v7472_v52  ;;  %v7884_v12 = vpack.c.bf16 %v7870_v11, %v7869_v60 }
 0x91d   : > { %v7502_v21 = vshrl.u32 %v7500_v49, 16  ;;  %v7527_v29 = vrot.slane %v7500_v49, 1  ;;  %v7623_v35 = vrot.slane %v7500_v49, 3  ;;  %v7575_v8 = vrot.slane %v7500_v49, 2 }
 0x91e   : > { %v7848_v16 = vpack.c.b16 %v7847_v26, %v7846_v9  ;;  %v7892_v9 = vld [vmem:[%s14685_s9] sm:$0x3]  ;;  %v7936_v26 = vld [vmem:[%s14683_s7 + $0x50] sm:$0xf] }
 0x91f   : > { %9529 = vmatmul.msk.bf16.vlgmr.msrb.gmra.mxu2 %vm7480_vm3, %v7502_v21  ;;  %9530 = vmatmul.msk.bf16.vlgmr.msra.gmra.mxu3 %vm7480_vm3, %v7527_v29  ;;  %v7551_v3 = vrot.slane %v7502_v21, 1  ;;  %v7599_v57 = vrot.slane %v7502_v21, 2  ;;  %v7647_v62 = vrot.slane %v7502_v21, 3 }
 0x920   : > { %9534 = vmatmul.msk.bf16.vlgmr.msrb.gmra.mxu0 %vm7480_vm3, %v7623_v35  ;;  %7687 = vmatpush.bf16.msrb.mxu2 %v7675_v51 }
 0x921   : > { %7716 = vmatpush.bf16.msra.mxu3 %v7704_v37  ;;  %7836 = vmatpush.bf16.msrb.mxu0 %v7824_v42  ;;  %v7890_v37 = vpack.c.bf16 %v7882_v45, %v7881_v56 }
 0x929   : > { %9531 = vmatmul.msk.bf16.vlgmr.msra.gmra.mxu1 %vm7480_vm3, %v7551_v3 }
 0x92a   : > { %7764 = vmatpush.bf16.msra.mxu1 %v7752_v53  ;;  %v7880_v53 = vld [vmem:[%s14682_s6 + $0x58] sm:$0xff] }
 0x92f   : > { %9532 = vmatmul.msk.bf16.vlgmr.msra.gmra.mxu2 %vm7480_vm3, %v7575_v8  ;;  %9533 = vmatmul.msk.bf16.vlgmr.msrb.gmra.mxu3 %vm7480_vm3, %v7599_v57 }
 0x930   : > { %7788 = vmatpush.bf16.msra.mxu2 %v7776_v24  ;;  %7812 = vmatpush.bf16.msrb.mxu3 %v7800_v31  ;;  %v7886_v31 = vpack.c.bf16 %v7874_v13, %v7873_v28 }
 0x939   : > { %9535 = vmatmul.msk.bf16.vlgmr.msrb.gmra.mxu1 %vm7480_vm3, %v7647_v62  ;;  %v7889_v62 = vpack.c.bf16 %v7880_v53, %v7879_v22 }
 0x93a   : > { %7860 = vmatpush.bf16.msrb.mxu1 %v7848_v16 }
 0x94c   : > { %v7402_v59 = vpop.permute.xlu0 %7401 }
 0x94d   : > { %v7406_v43 = vmax.f32 %v14433_v0, %v7402_v59  ;;  %v7894_v59 = vperm.slane %v7892_v9, 0 }
 0x94f   : > { %v7408_v20 = vpack.c.bf16 %v7406_v43, %v7406_v43  ;;  %v7895_v43 = vperm.slane %v7892_v9, 1  ;;  %7896 = vrot.lane.b32.xlu1 %v7894_v59, %s14751_s25 }
 0x951   : > { %v7695_v49 = vunpack.c.l.b16 %v7408_v20  ;;  %9536 = vmatmul.msk.bf16.vlgmr.msrb.gmra.mxu2 %vm7480_vm3, %v7408_v20  ;;  %v7942_v20 = vpack.c.bf16 %v7936_v26, %v7936_v26  ;;  %7898 = vrot.lane.b32.xlu2 %v7895_v43, %s14751_s25  ;;  %s351_s25 = scalar_lea.vmem [#allocation2], %s350_s26 }
 0x952   : > { %7911 = vmatpush.bf16.msrb.mxu2 %v7909_v19  ;;  %s7982_s27 = sshll.u32 %s351_s25, 4  ;;  %s7983_s27 = int_to_ptr.vmem [resolvable:$true] %s7982_s27 }
 0x953   : > { %v7696_v25 = vpack.c.b16 %v7695_v49, %v7695_v49  ;;  %v7934_v49 = vld [vmem:[%s14683_s7 + $0x40] sm:$0xff] }
 0x955   : > { %v7698_v38 = vshrl.u32 %v7696_v25, 16  ;;  %v7723_v21 = vrot.slane %v7696_v25, 1  ;;  %v7771_v35 = vrot.slane %v7696_v25, 2  ;;  %v7819_v51 = vrot.slane %v7696_v25, 3  ;;  %v7935_v25 = vld [vmem:[%s14683_s7 + $0x48] sm:$0xff] }
 0x956   : > { %7912 = vmatpush.bf16.msrb.mxu2 %v7890_v37 }
 0x957   : > { %9537 = vmatmul.msk.bf16.vlgmr.msra.gmra.mxu3 %vm7480_vm3, %v7698_v38  ;;  %9538 = vmatmul.msk.bf16.vlgmr.msra.gmra.mxu0 %vm7480_vm3, %v7723_v21  ;;  %v7747_v29 = vrot.slane %v7698_v38, 1  ;;  %v7795_v3 = vrot.slane %v7698_v38, 2  ;;  %v7843_v0 = vrot.slane %v7698_v38, 3  ;;  %v7954_v21 = vsel %vm444_vm1, %v7942_v20, 0 }
 0x958   : > { %7958 = vmatpush.bf16.msra.mxu3 %v7954_v21  ;;  %vm7903_vm1 = vcmask 982016  }
 0x959   : > { %9539 = vmatmul.msk.bf16.vlgmr.msra.gmra.mxu1 %vm7480_vm3, %v7747_v29  ;;  %v7941_v29 = vpack.c.bf16 %v7935_v25, %v7934_v49 }
 0x95a   : > { %7913 = vmatpush.bf16.msrb.mxu2 %v7889_v62 }
 0x95c   : > { %7959 = vmatpush.bf16.msra.mxu3 %v7941_v29 }
 0x95e   : > { %7914 = vmatpush.bf16.msrb.mxu2 %v7888_v50  ;;  %v7938_v50 = vpack.c.bf16 %v7929_v33, %v7928_v7 }
 0x961   : > { %9540 = vmatmul.msk.bf16.vlgmr.msra.gmra.mxu2 %vm7480_vm3, %v7771_v35 }
 0x962   : > { %7915 = vmatpush.bf16.msrb.mxu2 %v7887_v4 }
 0x966   : > { %7916 = vmatpush.bf16.msrb.mxu2 %v7886_v31 }
 0x967   : > { %9541 = vmatmul.msk.bf16.vlgmr.msrb.gmra.mxu3 %vm7480_vm3, %v7795_v3  ;;  %9542 = vmatmul.msk.bf16.vlgmr.msrb.gmra.mxu0 %vm7480_vm3, %v7819_v51  ;;  %v7932_v51 = vld [vmem:[%s14683_s7 + $0x30] sm:$0xff]  ;;  %v7933_v3 = vld [vmem:[%s14683_s7 + $0x38] sm:$0xff] }
 0x969   : > { %9543 = vmatmul.msk.bf16.vlgmr.msrb.gmra.mxu1 %vm7480_vm3, %v7843_v0 }
 0x96a   : > { %7917 = vmatpush.bf16.msrb.mxu2 %v7885_v23 }
 0x96e   : > { %7918 = vmatpush.bf16.msrb.mxu2 %v7884_v12 }
 0x996   : > { %v7493_v8 = vpop.f32.mrf.mxu1 }
 0x997   : > { %v7497_v5 = vadd.f32 %v7493_v8, %v7473_v14 }
 0x99d   : > { %v14551_v57 = vpop.f32.mrf.mxu0 }
 0x99e   : > { %v7495_v54 = vpop.f32.mrf.mxu1 }
 0x9a2   : > { %v7522_v15 = vpop.f32.mrf.mxu2  ;;  %v7546_v46 = vpop.f32.mrf.mxu3 }
 0x9a3   : > { %v7526_v55 = vadd.f32 %v7522_v15, %v7497_v5  ;;  %v7940_v15 = vpack.c.bf16 %v7933_v3, %v7932_v51  ;;  %v7926_v5 = vld [vmem:[%s14683_s7] sm:$0xff] }
 0x9a4   : > { %v7937_v34 = vpack.c.bf16 %v7927_v36, %v7926_v5 }
 0x9a5   : > { %v7644_v40 = vpop.f32.mrf.mxu0  ;;  %v7550_v24 = vadd.f32 %v7546_v46, %v7526_v55  ;;  %7960 = vmatpush.bf16.msra.mxu3 %v7940_v15  ;;  %v9994_v55 = vld [vmem:[%s14685_s9 + $0x1] ss:$0 sm:$0xff] }
 0x9a6   : > { %v7570_v27 = vpop.f32.mrf.mxu1  ;;  %v7930_v40 = vld [vmem:[%s14683_s7 + $0x20] sm:$0xff]  ;;  %7946 = vrot.lane.b32.xlu0 %v9994_v55, %s10127_s20  ;;  %s10015_s20 = scalar_lea.hbm %s14686_s10, 2 }
 0x9a7   : > { %v7574_v61 = vadd.f32 %v7570_v27, %v7550_v24  ;;  %v7931_v27 = vld [vmem:[%s14683_s7 + $0x28] sm:$0xff]  ;;  %p10017_p1 = scmp.lt.s32.totalorder %s10015_s20, %s10011_s29 }
 0x9a9   : > { %p10018_p2 = por %p10017_p1, %p10016_p0 }
 0x9aa   : > { %v7524_v17 = vpop.f32.mrf.mxu2  ;;  %v7548_v41 = vpop.f32.mrf.mxu3 }
 0x9ab   : > { %v7939_v41 = vpack.c.bf16 %v7931_v27, %v7930_v40  ;;  %v7899_v4 = vpop.permute.xlu2 %7898  ;;  %p10019_p3 = pnand %p10018_p2, %p10014_p13 }
 0x9ad   : > { %7961 = vmatpush.bf16.msra.mxu3 %v7939_v41 }
 0x9ae   : > { %v7572_v44 = vpop.f32.mrf.mxu1 }
 0x9b1   : > { %7962 = vmatpush.bf16.msra.mxu3 %v7938_v50 }
 0x9b2   : > { %v7594_v2 = vpop.f32.mrf.mxu2  ;;  %v7618_v1 = vpop.f32.mrf.mxu3 }
 0x9b3   : > { %v7598_v30 = vadd.f32 %v7594_v2, %v7574_v61 }
 0x9b5   : > { %v7622_v32 = vadd.f32 %v7618_v1, %v7598_v30  ;;  %7963 = vmatpush.bf16.msra.mxu3 %v7937_v34 }
 0x9b6   : > { %v7666_v39 = vpop.f32.mrf.mxu1 }
 0x9b7   : > { %v7646_v38 = vadd.f32 %v14551_v57, %v7622_v32 }
 0x9b9   : > { %v7670_v0 = vadd.f32 %v7666_v39, %v7646_v38 }
 0x9ba   : > { %v7596_v6 = vpop.f32.mrf.mxu2  ;;  %v7620_v58 = vpop.f32.mrf.mxu3 }
 0x9be   : > { %v7668_v47 = vpop.f32.mrf.mxu1 }
 0x9c1   : > { %v7897_v28 = vpop.permute.xlu1 %7896 }
 0x9c2   : > { %v7901_v13 = vsel %vm7900_vm8, %v7897_v28, %v7899_v4 }
 0x9d4   : > { %v7689_v52 = vpop.f32.mrf.mxu2  ;;  %v7742_v42 = vpop.f32.mrf.mxu0 }
 0x9d5   : > { %v7693_v54 = vadd.f32 %v7689_v52, %v7670_v0 }
 0x9d6   : > { %v7766_v16 = vpop.f32.mrf.mxu1 }
 0x9da   : > { %v7718_v35 = vpop.f32.mrf.mxu3 }
 0x9db   : > { %v7722_v17 = vadd.f32 %v7718_v35, %v7693_v54 }
 0x9dc   : > { %v7691_v8 = vpop.f32.mrf.mxu2  ;;  %v7744_v57 = vpop.f32.mrf.mxu0 }
 0x9dd   : > { %v7746_v2 = vadd.f32 %v7742_v42, %v7722_v17 }
 0x9de   : > { %v7768_v46 = vpop.f32.mrf.mxu1 }
 0x9df   : > { %v7770_v39 = vadd.f32 %v7766_v16, %v7746_v2 }
 0x9e2   : > { %v7720_v44 = vpop.f32.mrf.mxu3 }
 0x9e4   : > { %v7790_v1 = vpop.f32.mrf.mxu2  ;;  %v7838_v48 = vpop.f32.mrf.mxu0 }
 0x9e5   : > { %v7794_v19 = vadd.f32 %v7790_v1, %v7770_v39 }
 0x9e6   : > { %v7862_v10 = vpop.f32.mrf.mxu1 }
 0x9ea   : > { %v7814_v56 = vpop.f32.mrf.mxu3 }
 0x9eb   : > { %v7818_v45 = vadd.f32 %v7814_v56, %v7794_v19 }
 0x9ec   : > { %v7792_v37 = vpop.f32.mrf.mxu2  ;;  %v7840_v6 = vpop.f32.mrf.mxu0 }
 0x9ed   : > { %v7842_v58 = vadd.f32 %v7838_v48, %v7818_v45 }
 0x9ee   : > { %v7864_v22 = vpop.f32.mrf.mxu1 }
 0x9ef   : > { %v7866_v53 = vadd.f32 %v7862_v10, %v7842_v58 }
 0x9f1   : > { %v7867_v62 = vmax.f32 %v7866_v53, 0.0 }
 0x9f2   : > { %v7816_v47 = vpop.f32.mrf.mxu3 }
 0x9f3   : > { %v7868_v14 = vpack.c.bf16 %v7867_v62, %v7867_v62 }
 0x9f5   : > { %9544 = vmatmul.msk.bf16.vlgmr.msrb.gmra.mxu2 %vm7903_vm1, %v7868_v14 }
 0xa18   : > { %v7947_v23 = vpop.permute.xlu0 %7946 }
 0xa78   : > { %v7920_v24 = vpop.f32.mrf.mxu2 }
 0xa79   : > { %v7921_v31 = vadd.f32 %v7920_v24, %v7901_v13 }
 0xa7b   : > { %v7924_v18 = vmax.f32 %v7921_v31, 0.0 }
 0xa7d   : > { %v7925_v63 = vpack.c.bf16 %v7924_v18, %v7924_v18 }
 0xa7f   : > { %9545 = vmatmul.msk.bf16.vlgmr.msra.gmra.mxu3 %vm7949_vm10, %v7925_v63 }
 0xa80   : > { %v7922_v61 = vpop.f32.mrf.mxu2 }
 0xb02   : > { %v7965_v30 = vpop.f32.mrf.mxu3 }
 0xb03   : > { %v7966_v60 = vadd.f32 %v7965_v30, %v7947_v23 }
 0xb05   : > { %7970 = vst.msk [vmem:[%s351_s25] sm:$0x1] %vm7969_vm11, %v7966_v60 }
 0xb06   : > { %10022 = shalt.err (!%p10019_p3)
}
 0xb07   : > { %9868 = dma.vmem_to_hbm [thread:$0]  (%p10221_p5), %s7983_s27, 16, %s7985_s21, %s7972_s11  }
 0xb0a   : > { %v7967_v11 = vpop.f32.mrf.mxu3 }
 0xb0b PF: > { %p9874_p4 = scmp.ge.s32.totalorder %s10057_s16, 2  ;;  %s7996_s26 = sand.u32 1, %s10045_s13  }
 0xb0c   : > { %s7997_s0 = scalar_lea.sflag [#allocation3], %s7996_s26 }
 0xb0d   : > { %p9871_p7 = pnand %p9874_p4, %p10225_p6 }
 0xb0f   : > { %p9872_p8 = pneg %p9871_p7 }
 0xb11   : > { %10040 = dma.done.wait (%p9872_p8), %s7997_s0, 16  }
 0xb12   : > { %10042 = vsyncadd (%p9872_p8), %s7997_s0, 4294967280  ;;  %p20_p9 = scmp.ge.s32.totalorder %s10208_s19, 4   ;;  %s14752_s13 = smov %s10049_s14 }
 0xb13   : > { %s14753_s14 = smov %s10053_s15  ;;  %s14754_s15 = smov %s10219_s22 }
 0xb14   : > { %s14755_s16 = smov %s10208_s19  ;;  %22 = sbr.rel (!%p20_p9) target bundleno = 5 (0x5), region = 98 }
 0xb19   :  { %8002 = vsyncpa [#allocation3], 1 }
 0xb1a   :  { %8004 = vsyncpa [#allocation3 + $0x1], 1 }

</bundles_post_ra>
